<compile_context>
chip_gen: v5e
topology: v5e:2x2
jax: 0.10.0
libtpu: 0.0.40
codegen_flags: <defaults>
</compile_context>

<pallas_src>
import functools

import numpy as np
import jax
import jax.numpy as jnp
from jax.experimental import pallas as pl
from jax.experimental.pallas import tpu as pltpu

# MXU operand dtype.  float32 keeps parity with the f32 reference; flip to
# jnp.bfloat16 on v6e/v7x to halve HBM/VMEM traffic for the GEMM operands
# (accumulation stays f32 via preferred_element_type, epilogue stays f32).
_MXU_DTYPE = jnp.float32

_COMPILER_PARAMS = pltpu.CompilerParams(
    dimension_semantics=("parallel",),          # image axis -> v7x megacore
    vmem_limit_bytes=32 * 1024 * 1024,          # explicit, with headroom
)


# ----------------------------------------------------------------------------
# Pallas kernels (one image per grid step)
# ----------------------------------------------------------------------------

def _frontend_kernel(inv_denom, kp_ref, xg_ref, yg_ref, wk_ref, wc_ref, b_ref,
                     o_ref):
    """Gaussian heatmaps + coord channels + 1x1 conv + LeakyReLU(0.2).

    kp_ref: (1, 3, K)      rows = (x, y, scale) per keypoint
    xg/yg : (hm*hm, 1)     per-pixel x / y coordinates (flattened hm x hm grid)
    wk_ref: (K, C1)        keypoint rows of the 1x1 weight
    wc_ref: (2, C1)        coord-channel rows of the 1x1 weight
    b_ref : (1, C1)        bias
    o_ref : (1, hm*hm, C1)
    """
    kx = kp_ref[0, 0:1, :]
    ky = kp_ref[0, 1:2, :]
    ks = kp_ref[0, 2:3, :]
    dx = xg_ref[...] - kx                               # (hm*hm, K)
    dy = yg_ref[...] - ky
    g = jnp.exp(-(dx * dx + dy * dy) * inv_denom) * ks  # (hm*hm, K)
    acc = jnp.dot(g.astype(_MXU_DTYPE), wk_ref[...].astype(_MXU_DTYPE),
                  preferred_element_type=jnp.float32)
    # coord channels through the 1x1 conv == per-pixel bias map
    acc = (acc + xg_ref[...] * wc_ref[0:1, :] + yg_ref[...] * wc_ref[1:2, :]
           + b_ref[...])
    acc = jnp.where(acc > 0, acc, 0.2 * acc)
    o_ref[0] = acc.astype(o_ref.dtype)


def _conv1x1_kernel(leaky, x_ref, w_ref, b_ref, o_ref):
    """x_ref: (1, M, Cin); w_ref: (Cin, Cout); b_ref: (1, Cout); o_ref: (1, M, Cout)."""
    acc = jnp.dot(x_ref[0].astype(_MXU_DTYPE), w_ref[...].astype(_MXU_DTYPE),
                  preferred_element_type=jnp.float32)
    acc = acc + b_ref[...]
    if leaky:
        acc = jnp.where(acc > 0, acc, 0.2 * acc)
    o_ref[0] = acc.astype(o_ref.dtype)


def _conv3x3_kernel(H, W, leaky, x_ref, w_ref, b_ref, o_ref):
    """SAME 3x3 conv on one zero-padded, row-flattened image.

    x_ref: (1, (H+2)*(W+2)+2, Cin)   padded image, rows flattened (+2 tail rows)
    w_ref: (9, Cin, Cout)            tap t = r*3 + s  <->  weight w[r, s]
    o_ref: (1, H*(W+2), Cout)        (2 junk columns per row dropped outside)

    Each tap window is a contiguous slice of the flattened image, so the 9-tap
    reduction runs on the single VMEM-resident input copy and accumulates in
    registers (no scratch, no grid reduction axis).
    """
    wp = W + 2
    hp = H * wp
    acc = None
    for r in range(3):
        for s in range(3):
            delta = r * wp + s
            patch = x_ref[0, delta:delta + hp, :].astype(_MXU_DTYPE)
            part = jnp.dot(patch, w_ref[r * 3 + s].astype(_MXU_DTYPE),
                           preferred_element_type=jnp.float32)
            acc = part if acc is None else acc + part
    acc = acc + b_ref[...]
    if leaky:
        acc = jnp.where(acc > 0, acc, 0.2 * acc)
    o_ref[0] = acc.astype(o_ref.dtype)


def _upconv3x3_kernel(H, W, leaky, x_ref, w_ref, b_ref, o_ref):
    """Fused {2x nearest upsample -> SAME 3x3 conv} via sub-pixel decomposition.

    x_ref: (1, (H+2)*(W+2)+2, Cin)   zero-padded LOW-RES image, rows flattened
    w_ref: (16, Cin, Cout)           combined 2x2 weights, idx ((a*2+b)*2+p)*2+q
    o_ref: (1, 4, H*(W+2), Cout)     phase-major: o[0, 2a+b, i*(W+2)+j] = y[2i+a, 2j+b]
    """
    wp = W + 2
    hp = H * wp
    for a in range(2):
        for b in range(2):
            acc = None
            for p in range(2):
                for q in range(2):
                    delta = (a + p) * wp + (b + q)
                    patch = x_ref[0, delta:delta + hp, :].astype(_MXU_DTYPE)
                    t = ((a * 2 + b) * 2 + p) * 2 + q
                    part = jnp.dot(patch, w_ref[t].astype(_MXU_DTYPE),
                                   preferred_element_type=jnp.float32)
                    acc = part if acc is None else acc + part
            acc = acc + b_ref[...]
            if leaky:
                acc = jnp.where(acc > 0, acc, 0.2 * acc)
            o_ref[0, a * 2 + b] = acc.astype(o_ref.dtype)


# ----------------------------------------------------------------------------
# Wrappers (layout plumbing + pallas_call setup)
# ----------------------------------------------------------------------------

def _pad_flatten(x):
    """(N, H, W, C) -> (N, (H+2)*(W+2)+2, C): zero border, flatten rows, +2 tail rows."""
    N, H, W, C = x.shape
    xp = jnp.pad(x, ((0, 0), (1, 1), (1, 1), (0, 0)))
    xf = xp.reshape(N, (H + 2) * (W + 2), C)
    return jnp.pad(xf, ((0, 0), (0, 2), (0, 0)))


def frontend_heatmaps_coords_1x1(kp, w1, b1, sigma, hm):
    """kp: (N, K, 3) -> heatmaps + coord channels + 1x1 conv + LeakyReLU: (N, hm, hm, C1)."""
    N, K, _ = kp.shape
    C1 = w1.shape[-1]
    kp_t = jnp.transpose(kp, (0, 2, 1))                      # (N, 3, K)
    xs = jnp.linspace(-1.0, 1.0, hm, dtype=jnp.float32)      # left -> right
    ys = jnp.linspace(1.0, -1.0, hm, dtype=jnp.float32)      # top  -> bottom
    xg = jnp.tile(xs, hm).reshape(hm * hm, 1)                # xg[i*hm+j] = xs[j]
    yg = jnp.repeat(ys, hm).reshape(hm * hm, 1)              # yg[i*hm+j] = ys[i]
    inv_denom = 1.0 / (2.0 * (float(sigma) / hm) ** 2)
    wk = w1[:K]
    wc = w1[K:]
    cost = pl.CostEstimate(
        flops=2 * N * hm * hm * K * C1,
        transcendentals=N * hm * hm * K,
        bytes_accessed=4 * (N * 3 * K + 2 * hm * hm + (K + 2) * C1 + C1
                            + N * hm * hm * C1))
    out = pl.pallas_call(
        functools.partial(_frontend_kernel, inv_denom),
        out_shape=jax.ShapeDtypeStruct((N, hm * hm, C1), jnp.float32),
        grid=(N,),
        in_specs=[
            pl.BlockSpec((1, 3, K), lambda n: (n, 0, 0)),
            pl.BlockSpec((hm * hm, 1), lambda n: (0, 0)),
            pl.BlockSpec((hm * hm, 1), lambda n: (0, 0)),
            pl.BlockSpec((K, C1), lambda n: (0, 0)),
            pl.BlockSpec((2, C1), lambda n: (0, 0)),
            pl.BlockSpec((1, C1), lambda n: (0, 0)),
        ],
        out_specs=pl.BlockSpec((1, hm * hm, C1), lambda n: (n, 0, 0)),
        compiler_params=_COMPILER_PARAMS,
        cost_estimate=cost,
    )(kp_t, xg, yg, wk, wc, b1.reshape(1, C1))
    return out.reshape(N, hm, hm, C1)


def conv1x1(x, w, b, leaky):
    """x: (N, H, W, Cin) NHWC; w: (Cin, Cout); b: (Cout,)."""
    N, H, W, Cin = x.shape
    Cout = w.shape[-1]
    M = H * W
    cost = pl.CostEstimate(
        flops=2 * N * M * Cin * Cout, transcendentals=0,
        bytes_accessed=4 * (N * M * (Cin + Cout) + Cin * Cout + Cout))
    out = pl.pallas_call(
        functools.partial(_conv1x1_kernel, leaky),
        out_shape=jax.ShapeDtypeStruct((N, M, Cout), jnp.float32),
        grid=(N,),
        in_specs=[
            pl.BlockSpec((1, M, Cin), lambda n: (n, 0, 0)),
            pl.BlockSpec((Cin, Cout), lambda n: (0, 0)),
            pl.BlockSpec((1, Cout), lambda n: (0, 0)),
        ],
        out_specs=pl.BlockSpec((1, M, Cout), lambda n: (n, 0, 0)),
        compiler_params=_COMPILER_PARAMS,
        cost_estimate=cost,
    )(x.reshape(N, M, Cin), w, b.reshape(1, Cout))
    return out.reshape(N, H, W, Cout)


def conv3x3(x, w, b, leaky=True):
    """SAME 3x3 conv, stride 1.  x: (N, H, W, Cin); w: (3, 3, Cin, Cout)."""
    N, H, W, Cin = x.shape
    Cout = w.shape[-1]
    wp = W + 2
    hp = H * wp
    xf = _pad_flatten(x)                                     # (N, (H+2)*wp+2, Cin)
    cost = pl.CostEstimate(
        flops=2 * 9 * N * hp * Cin * Cout, transcendentals=0,
        bytes_accessed=4 * (N * xf.shape[1] * Cin + 9 * Cin * Cout + Cout
                            + N * hp * Cout))
    out = pl.pallas_call(
        functools.partial(_conv3x3_kernel, H, W, leaky),
        out_shape=jax.ShapeDtypeStruct((N, hp, Cout), jnp.float32),
        grid=(N,),
        in_specs=[
            pl.BlockSpec((1, xf.shape[1], Cin), lambda n: (n, 0, 0)),
            pl.BlockSpec((9, Cin, Cout), lambda n: (0, 0, 0)),
            pl.BlockSpec((1, Cout), lambda n: (0, 0)),
        ],
        out_specs=pl.BlockSpec((1, hp, Cout), lambda n: (n, 0, 0)),
        compiler_params=_COMPILER_PARAMS,
        cost_estimate=cost,
    )(xf, w.reshape(9, Cin, Cout), b.reshape(1, Cout))
    # drop the 2 junk columns per row produced by the row-flattened tap trick
    return out.reshape(N, H, wp, Cout)[:, :, :W, :]


# Row/col combination matrices for the sub-pixel (upsample+conv) decomposition.
# R[a, p, r]: weight row r of the 3x3 kernel contributes to low-res tap row p
# of output phase a (phase a = output row parity after 2x nearest upsample).
_SUBPIXEL_ROW_COMBINE = np.array(
    [[[1.0, 0.0, 0.0],
      [0.0, 1.0, 1.0]],
     [[1.0, 1.0, 0.0],
      [0.0, 0.0, 1.0]]], dtype=np.float32)


def upsample2x_conv3x3(x, w, b, leaky=True):
    """Fused {2x nearest upsample -> SAME 3x3 conv -> LeakyReLU}.

    x: (N, H, W, Cin) low-res NHWC; w: (3, 3, Cin, Cout); returns (N, 2H, 2W, Cout).
    """
    N, H, W, Cin = x.shape
    Cout = w.shape[-1]
    wp = W + 2
    hp = H * wp
    R = jnp.asarray(_SUBPIXEL_ROW_COMBINE)
    # wc[a, b, p, q] = sum_{r,s} R[a,p,r] * R[b,q,s] * w[r,s]   (tiny, one-off)
    wc = jnp.einsum('apr,bqs,rsio->abpqio', R, R, w).reshape(16, Cin, Cout)
    xf = _pad_flatten(x)
    cost = pl.CostEstimate(
        flops=2 * 16 * N * hp * Cin * Cout, transcendentals=0,
        bytes_accessed=4 * (N * xf.shape[1] * Cin + 16 * Cin * Cout + Cout
                            + 4 * N * hp * Cout))
    out = pl.pallas_call(
        functools.partial(_upconv3x3_kernel, H, W, leaky),
        out_shape=jax.ShapeDtypeStruct((N, 4, hp, Cout), jnp.float32),
        grid=(N,),
        in_specs=[
            pl.BlockSpec((1, xf.shape[1], Cin), lambda n: (n, 0, 0)),
            pl.BlockSpec((16, Cin, Cout), lambda n: (0, 0, 0)),
            pl.BlockSpec((1, Cout), lambda n: (0, 0)),
        ],
        out_specs=pl.BlockSpec((1, 4, hp, Cout), lambda n: (n, 0, 0, 0)),
        compiler_params=_COMPILER_PARAMS,
        cost_estimate=cost,
    )(xf, wc, b.reshape(1, Cout))
    # (N, 4, H*(W+2), Cout) -> drop junk cols -> interleave the 4 phases
    y = out.reshape(N, 2, 2, H, wp, Cout)[:, :, :, :, :W, :]
    y = jnp.transpose(y, (0, 3, 1, 4, 2, 5)).reshape(N, 2 * H, 2 * W, Cout)
    return y


# ----------------------------------------------------------------------------
# Parameters (deterministic synthetic init, shapes from the module __init__)
# ----------------------------------------------------------------------------

def _conv_init(key, ksize, cin, cout):
    wk, bk = jax.random.split(key)
    fan_in = cin * ksize * ksize
    bound = float(1.0 / np.sqrt(fan_in))
    if ksize == 1:
        w = jax.random.uniform(wk, (cin, cout), jnp.float32, -bound, bound)
    else:
        w = jax.random.uniform(wk, (ksize, ksize, cin, cout), jnp.float32,
                               -bound, bound)
    b = jax.random.uniform(bk, (cout,), jnp.float32, -bound, bound)
    return w, b


def init_params(key, cfg, image_shape):
    T, im_C, im_H, im_W = image_shape
    K = cfg["num_keypoints"]
    hm = cfg["heatmap_width"]
    num_enc_out = cfg["num_encoder_filters"] * im_W // hm
    keys = iter(jax.random.split(key, 32))

    params = {}
    # adjust_channels_of_decoder_input: Conv2d(K+2, num_enc_out, k=1) + LeakyReLU
    params["adjust_in"] = _conv_init(next(keys), 1, K + 2, num_enc_out)

    # ImageDecoder: per scale {2x upsample, conv3x3 halving filters, then
    # layers_per_scale extra conv3x3}, each conv followed by LeakyReLU(0.2).
    num_levels = int(np.log2(im_W // hm))
    decoder = []
    nf = num_enc_out
    for _ in range(num_levels):
        scale = [_conv_init(next(keys), 3, nf, nf // 2)]
        nf //= 2
        for _ in range(cfg["layers_per_scale"]):
            scale.append(_conv_init(next(keys), 3, nf, nf))
        decoder.append(scale)
    params["decoder"] = decoder

    # adjust_channels_of_output_image: Conv2d(num_encoder_filters, im_C, k=1)
    params["adjust_out"] = _conv_init(next(keys), 1, cfg["num_encoder_filters"],
                                      im_C)
    return params


# ----------------------------------------------------------------------------
# Forward pass (== KeypToImagesDecoderNoFirst.forward)
# ----------------------------------------------------------------------------

def keyp_to_images_decoder_no_first(params, keypoints_seq, cfg, image_shape):
    """keypoints_seq: [B, T, K, 3] -> [B, T, im_C, im_H, im_W]."""
    T, im_C, im_H, im_W = image_shape
    B, Tk, K, _ = keypoints_seq.shape
    hm = cfg["heatmap_width"]
    N = B * Tk

    # Time loop is batched: fold (B, T) -> B*T (== unstack_time / stack_time).
    kp = keypoints_seq.reshape(N, K, 3).astype(jnp.float32)

    # KeypointsToHeatmaps + add_coord_channels + adjust_channels_of_decoder_input
    w1, b1 = params["adjust_in"]
    x = frontend_heatmaps_coords_1x1(kp, w1, b1, cfg["keypoint_width"], hm)

    # ImageDecoder: per scale {fused 2x upsample + conv3x3 + LeakyReLU}, then
    # layers_per_scale extra {conv3x3 + LeakyReLU}
    for scale in params["decoder"]:
        w, b = scale[0]
        x = upsample2x_conv3x3(x, w, b, leaky=True)
        for (w, b) in scale[1:]:
            x = conv3x3(x, w, b, leaky=True)

    # adjust_channels_of_output_image (1x1 conv, no activation)
    w2, b2 = params["adjust_out"]
    x = conv1x1(x, w2, b2, leaky=False)                      # (N, H, W, im_C)

    x = jnp.transpose(x, (0, 3, 1, 2))                       # NHWC -> NCHW
    return x.reshape(B, Tk, im_C, im_H, im_W)


# ----------------------------------------------------------------------------
# Pure-jnp/XLA reference of the same forward pass (for a runtime self-check)
# ----------------------------------------------------------------------------

def _ref_conv1x1(x, w, b, leaky):
    y = jnp.einsum('nhwc,co->nhwo', x, w,
                   precision=jax.lax.Precision.HIGHEST) + b
    return jnp.where(y > 0, y, 0.2 * y) if leaky else y


def _ref_conv3x3(x, w, b):
    y = jax.lax.conv_general_dilated(
        x, w, window_strides=(1, 1), padding='SAME',
        dimension_numbers=('NHWC', 'HWIO', 'NHWC'),
        precision=jax.lax.Precision.HIGHEST) + b
    return jnp.where(y > 0, y, 0.2 * y)


def _reference_forward(params, keypoints_seq, cfg, image_shape):
    T, im_C, im_H, im_W = image_shape
    B, Tk, K, _ = keypoints_seq.shape
    hm = cfg["heatmap_width"]
    N = B * Tk
    kp = keypoints_seq.reshape(N, K, 3).astype(jnp.float32)

    xs = jnp.linspace(-1.0, 1.0, hm, dtype=jnp.float32)
    ys = jnp.linspace(1.0, -1.0, hm, dtype=jnp.float32)
    kx = kp[:, :, 0][:, :, None, None]
    ky = kp[:, :, 1][:, :, None, None]
    ks = kp[:, :, 2][:, :, None, None]
    inv_denom = 1.0 / (2.0 * (float(cfg["keypoint_width"]) / hm) ** 2)
    d2 = (xs[None, None, None, :] - kx) ** 2 + (ys[None, None, :, None] - ky) ** 2
    g = ks * jnp.exp(-d2 * inv_denom)                        # (N, K, hm, hm)

    x = jnp.transpose(g, (0, 2, 3, 1))                       # NHWC
    xmap = jnp.broadcast_to(xs[None, None, :, None], (N, hm, hm, 1))
    ymap = jnp.broadcast_to(ys[None, :, None, None], (N, hm, hm, 1))
    x = jnp.concatenate([x, xmap, ymap], axis=-1)

    w1, b1 = params["adjust_in"]
    x = _ref_conv1x1(x, w1, b1, leaky=True)
    for scale in params["decoder"]:
        x = jnp.repeat(jnp.repeat(x, 2, axis=1), 2, axis=2)  # nearest 2x
        for (w, b) in scale:
            x = _ref_conv3x3(x, w, b)
    w2, b2 = params["adjust_out"]
    x = _ref_conv1x1(x, w2, b2, leaky=False)
    x = jnp.transpose(x, (0, 3, 1, 2))
    return x.reshape(B, Tk, im_C, im_H, im_W)


# ----------------------------------------------------------------------------

if __name__ == "__main__":
    cfg = dict(
        num_keypoints=6,
        keypoint_width=1.5,
        heatmap_width=4,
        num_encoder_filters=8,
        layers_per_scale=1,
    )
    image_shape = (2, 3, 16, 16)   # (T, im_C, im_H, im_W)
    B, T = 2, image_shape[0]
    K = cfg["num_keypoints"]

    key = jax.random.PRNGKey(0)
    pkey, xkey = jax.random.split(key)
    params = init_params(pkey, cfg, image_shape)
    keypoints_seq = jax.random.uniform(xkey, (B, T, K, 3), jnp.float32,
                                       -1.0, 1.0)

    fwd = jax.jit(functools.partial(keyp_to_images_decoder_no_first,
                                    cfg=cfg, image_shape=image_shape))
    out = fwd(params, keypoints_seq)
    jax.block_until_ready(out)

    assert out.shape == (B, T, image_shape[1], image_shape[2], image_shape[3])
    assert out.dtype == jnp.float32
    assert bool(jnp.all(jnp.isfinite(out)))

    # Numerical self-check against the pure-XLA reference of the same forward.
    ref = jax.jit(functools.partial(_reference_forward,
                                    cfg=cfg, image_shape=image_shape))(
        params, keypoints_seq)
    jax.block_until_ready(ref)
    err = float(jnp.max(jnp.abs(out - ref)))
    assert err < 5e-3, f"max abs error vs reference: {err}"

    print("KERNEL_OK")
</pallas_src>

<mosaic_0001>
module attributes {stable_mosaic.version = 11 : i64} {
  func.func @_frontend_kernel(%arg0: i32, %arg1: memref<1x3x6xf32, #tpu.memory_space<vmem>>, %arg2: memref<16x1xf32, #tpu.memory_space<vmem>>, %arg3: memref<16x1xf32, #tpu.memory_space<vmem>>, %arg4: memref<6x32xf32, #tpu.memory_space<vmem>>, %arg5: memref<2x32xf32, #tpu.memory_space<vmem>>, %arg6: memref<1x32xf32, #tpu.memory_space<vmem>>, %arg7: memref<1x16x32xf32, #tpu.memory_space<vmem>>) attributes {dimension_semantics = [#tpu.dimension_semantics<parallel>], iteration_bounds = array<i64: 4>, scalar_prefetch = 0 : i64, scratch_operands = 0 : i64, tpu.core_type = #tpu.core_type<tc>, window_params = [{transform_indices = @transform_0, window_bounds = array<i64: 1, 3, 6>}, {pipeline_mode = #tpu.pipeline_mode<synchronous>, transform_indices = @transform_1, window_bounds = array<i64: 16, 1>}, {pipeline_mode = #tpu.pipeline_mode<synchronous>, transform_indices = @transform_2, window_bounds = array<i64: 16, 1>}, {pipeline_mode = #tpu.pipeline_mode<synchronous>, transform_indices = @transform_3, window_bounds = array<i64: 6, 32>}, {pipeline_mode = #tpu.pipeline_mode<synchronous>, transform_indices = @transform_4, window_bounds = array<i64: 2, 32>}, {pipeline_mode = #tpu.pipeline_mode<synchronous>, transform_indices = @transform_5, window_bounds = array<i64: 1, 32>}, {transform_indices = @transform_6, window_bounds = array<i64: 1, 16, 32>}]} {
    %c0 = arith.constant 0 : index
    %c0_0 = arith.constant 0 : index
    %c0_1 = arith.constant 0 : index
    %0 = vector.load %arg1[%c0, %c0_0, %c0_1] : memref<1x3x6xf32, #tpu.memory_space<vmem>>, vector<1x1x6xf32>
    %1 = vector.shape_cast %0 : vector<1x1x6xf32> to vector<1x6xf32>
    %c0_2 = arith.constant 0 : index
    %c1 = arith.constant 1 : index
    %c0_3 = arith.constant 0 : index
    %2 = vector.load %arg1[%c0_2, %c1, %c0_3] : memref<1x3x6xf32, #tpu.memory_space<vmem>>, vector<1x1x6xf32>
    %3 = vector.shape_cast %2 : vector<1x1x6xf32> to vector<1x6xf32>
    %c0_4 = arith.constant 0 : index
    %c2 = arith.constant 2 : index
    %c0_5 = arith.constant 0 : index
    %4 = vector.load %arg1[%c0_4, %c2, %c0_5] : memref<1x3x6xf32, #tpu.memory_space<vmem>>, vector<1x1x6xf32>
    %5 = vector.shape_cast %4 : vector<1x1x6xf32> to vector<1x6xf32>
    %c0_6 = arith.constant 0 : index
    %c0_7 = arith.constant 0 : index
    %6 = vector.load %arg2[%c0_6, %c0_7] : memref<16x1xf32, #tpu.memory_space<vmem>>, vector<16x1xf32>
    %7 = vector.broadcast %6 : vector<16x1xf32> to vector<16x6xf32>
    %8 = vector.broadcast %1 : vector<1x6xf32> to vector<16x6xf32>
    %9 = arith.subf %7, %8 : vector<16x6xf32>
    %c0_8 = arith.constant 0 : index
    %c0_9 = arith.constant 0 : index
    %10 = vector.load %arg3[%c0_8, %c0_9] : memref<16x1xf32, #tpu.memory_space<vmem>>, vector<16x1xf32>
    %11 = vector.broadcast %10 : vector<16x1xf32> to vector<16x6xf32>
    %12 = vector.broadcast %3 : vector<1x6xf32> to vector<16x6xf32>
    %13 = arith.subf %11, %12 : vector<16x6xf32>
    %14 = arith.mulf %9, %9 : vector<16x6xf32>
    %15 = arith.mulf %13, %13 : vector<16x6xf32>
    %16 = arith.addf %14, %15 : vector<16x6xf32>
    %cst = arith.constant 0.000000e+00 : f32
    %17 = vector.broadcast %cst : f32 to vector<16x6xf32>
    %18 = arith.subf %17, %16 : vector<16x6xf32>
    %cst_10 = arith.constant 3.55555558 : f32
    %19 = vector.broadcast %cst_10 : f32 to vector<16x6xf32>
    %20 = arith.mulf %18, %19 : vector<16x6xf32>
    %21 = math.exp %20 : vector<16x6xf32>
    %22 = vector.broadcast %5 : vector<1x6xf32> to vector<16x6xf32>
    %23 = arith.mulf %21, %22 : vector<16x6xf32>
    %c0_11 = arith.constant 0 : index
    %c0_12 = arith.constant 0 : index
    %24 = vector.load %arg4[%c0_11, %c0_12] : memref<6x32xf32, #tpu.memory_space<vmem>>, vector<6x32xf32>
    %cst_13 = arith.constant dense<0.000000e+00> : vector<16x32xf32>
    %25 = tpu.matmul %23, %24, %cst_13 {dimension_numbers = #tpu.dot_dimension_numbers<[1], [0], [0], [1], [0, 0, 1, 1], [], []>} : vector<16x6xf32>, vector<6x32xf32>, vector<16x32xf32> -> vector<16x32xf32>
    %c0_14 = arith.constant 0 : index
    %c0_15 = arith.constant 0 : index
    %26 = vector.load %arg2[%c0_14, %c0_15] : memref<16x1xf32, #tpu.memory_space<vmem>>, vector<16x1xf32>
    %c0_16 = arith.constant 0 : index
    %c0_17 = arith.constant 0 : index
    %27 = vector.load %arg5[%c0_16, %c0_17] : memref<2x32xf32, #tpu.memory_space<vmem>>, vector<1x32xf32>
    %28 = vector.broadcast %26 : vector<16x1xf32> to vector<16x32xf32>
    %29 = vector.broadcast %27 : vector<1x32xf32> to vector<16x32xf32>
    %30 = arith.mulf %28, %29 : vector<16x32xf32>
    %31 = arith.addf %25, %30 : vector<16x32xf32>
    %c0_18 = arith.constant 0 : index
    %c0_19 = arith.constant 0 : index
    %32 = vector.load %arg3[%c0_18, %c0_19] : memref<16x1xf32, #tpu.memory_space<vmem>>, vector<16x1xf32>
    %c1_20 = arith.constant 1 : index
    %c0_21 = arith.constant 0 : index
    %33 = vector.load %arg5[%c1_20, %c0_21] : memref<2x32xf32, #tpu.memory_space<vmem>>, vector<1x32xf32>
    %34 = vector.broadcast %32 : vector<16x1xf32> to vector<16x32xf32>
    %35 = vector.broadcast %33 : vector<1x32xf32> to vector<16x32xf32>
    %36 = arith.mulf %34, %35 : vector<16x32xf32>
    %37 = arith.addf %31, %36 : vector<16x32xf32>
    %c0_22 = arith.constant 0 : index
    %c0_23 = arith.constant 0 : index
    %38 = vector.load %arg6[%c0_22, %c0_23] : memref<1x32xf32, #tpu.memory_space<vmem>>, vector<1x32xf32>
    %39 = vector.broadcast %38 : vector<1x32xf32> to vector<16x32xf32>
    %40 = arith.addf %37, %39 : vector<16x32xf32>
    %cst_24 = arith.constant 0.000000e+00 : f32
    %41 = vector.broadcast %cst_24 : f32 to vector<16x32xf32>
    %42 = arith.cmpf ogt, %40, %41 : vector<16x32xf32>
    %cst_25 = arith.constant 2.000000e-01 : f32
    %43 = vector.broadcast %cst_25 : f32 to vector<16x32xf32>
    %44 = arith.mulf %43, %40 : vector<16x32xf32>
    %45 = arith.select %42, %40, %44 : vector<16x32xi1>, vector<16x32xf32>
    %c0_26 = arith.constant 0 : index
    %c0_27 = arith.constant 0 : index
    %c0_28 = arith.constant 0 : index
    %46 = vector.load %arg7[%c0_26, %c0_27, %c0_28] : memref<1x16x32xf32, #tpu.memory_space<vmem>>, vector<1x16x32xf32>
    %47 = vector.shape_cast %46 : vector<1x16x32xf32> to vector<16x32xf32>
    %48 = vector.shape_cast %45 : vector<16x32xf32> to vector<1x16x32xf32>
    tpu.vector_store %arg7[%c0_26, %c0_27, %c0_28], %48 {strides = array<i32>} : memref<1x16x32xf32, #tpu.memory_space<vmem>>, vector<1x16x32xf32>,
    return
  }
  func.func @transform_0(%arg0: i32) -> (i32, i32, i32) {
    %c0_i32 = arith.constant 0 : i32
    %c0_i32_0 = arith.constant 0 : i32
    %c0_i32_1 = arith.constant 0 : i32
    return %arg0, %c0_i32, %c0_i32_0 : i32, i32, i32
  }
  func.func @transform_1(%arg0: i32) -> (i32, i32) {
    %c0_i32 = arith.constant 0 : i32
    %c0_i32_0 = arith.constant 0 : i32
    %c0_i32_1 = arith.constant 0 : i32
    return %c0_i32, %c0_i32_0 : i32, i32
  }
  func.func @transform_2(%arg0: i32) -> (i32, i32) {
    %c0_i32 = arith.constant 0 : i32
    %c0_i32_0 = arith.constant 0 : i32
    %c0_i32_1 = arith.constant 0 : i32
    return %c0_i32, %c0_i32_0 : i32, i32
  }
  func.func @transform_3(%arg0: i32) -> (i32, i32) {
    %c0_i32 = arith.constant 0 : i32
    %c0_i32_0 = arith.constant 0 : i32
    %c0_i32_1 = arith.constant 0 : i32
    return %c0_i32, %c0_i32_0 : i32, i32
  }
  func.func @transform_4(%arg0: i32) -> (i32, i32) {
    %c0_i32 = arith.constant 0 : i32
    %c0_i32_0 = arith.constant 0 : i32
    %c0_i32_1 = arith.constant 0 : i32
    return %c0_i32, %c0_i32_0 : i32, i32
  }
  func.func @transform_5(%arg0: i32) -> (i32, i32) {
    %c0_i32 = arith.constant 0 : i32
    %c0_i32_0 = arith.constant 0 : i32
    %c0_i32_1 = arith.constant 0 : i32
    return %c0_i32, %c0_i32_0 : i32, i32
  }
  func.func @transform_6(%arg0: i32) -> (i32, i32, i32) {
    %c0_i32 = arith.constant 0 : i32
    %c0_i32_0 = arith.constant 0 : i32
    %c0_i32_1 = arith.constant 0 : i32
    return %arg0, %c0_i32, %c0_i32_0 : i32, i32, i32
  }
}

module attributes {stable_mosaic.version = 11 : i64} {
  func.func @_upconv3x3_kernel(%arg0: i32, %arg1: memref<1x38x32xf32, #tpu.memory_space<vmem>>, %arg2: memref<16x32x16xf32, #tpu.memory_space<vmem>>, %arg3: memref<1x16xf32, #tpu.memory_space<vmem>>, %arg4: memref<1x4x24x16xf32, #tpu.memory_space<vmem>>) attributes {dimension_semantics = [#tpu.dimension_semantics<parallel>], iteration_bounds = array<i64: 4>, scalar_prefetch = 0 : i64, scratch_operands = 0 : i64, tpu.core_type = #tpu.core_type<tc>, window_params = [{transform_indices = @transform_0, window_bounds = array<i64: 1, 38, 32>}, {pipeline_mode = #tpu.pipeline_mode<synchronous>, transform_indices = @transform_1, window_bounds = array<i64: 16, 32, 16>}, {pipeline_mode = #tpu.pipeline_mode<synchronous>, transform_indices = @transform_2, window_bounds = array<i64: 1, 16>}, {transform_indices = @transform_3, window_bounds = array<i64: 1, 4, 24, 16>}]} {
    %c0 = arith.constant 0 : index
    %c0_0 = arith.constant 0 : index
    %c0_1 = arith.constant 0 : index
    %0 = vector.load %arg1[%c0, %c0_0, %c0_1] : memref<1x38x32xf32, #tpu.memory_space<vmem>>, vector<1x24x32xf32>
    %1 = vector.shape_cast %0 : vector<1x24x32xf32> to vector<24x32xf32>
    %c0_2 = arith.constant 0 : index
    %c0_3 = arith.constant 0 : index
    %c0_4 = arith.constant 0 : index
    %2 = vector.load %arg2[%c0_2, %c0_3, %c0_4] : memref<16x32x16xf32, #tpu.memory_space<vmem>>, vector<1x32x16xf32>
    %3 = vector.shape_cast %2 : vector<1x32x16xf32> to vector<32x16xf32>
    %cst = arith.constant dense<0.000000e+00> : vector<24x16xf32>
    %4 = tpu.matmul %1, %3, %cst {dimension_numbers = #tpu.dot_dimension_numbers<[1], [0], [0], [1], [0, 0, 1, 1], [], []>} : vector<24x32xf32>, vector<32x16xf32>, vector<24x16xf32> -> vector<24x16xf32>
    %c0_5 = arith.constant 0 : index
    %c1 = arith.constant 1 : index
    %c0_6 = arith.constant 0 : index
    %5 = vector.load %arg1[%c0_5, %c1, %c0_6] : memref<1x38x32xf32, #tpu.memory_space<vmem>>, vector<1x24x32xf32>
    %6 = vector.shape_cast %5 : vector<1x24x32xf32> to vector<24x32xf32>
    %c1_7 = arith.constant 1 : index
    %c0_8 = arith.constant 0 : index
    %c0_9 = arith.constant 0 : index
    %7 = vector.load %arg2[%c1_7, %c0_8, %c0_9] : memref<16x32x16xf32, #tpu.memory_space<vmem>>, vector<1x32x16xf32>
    %8 = vector.shape_cast %7 : vector<1x32x16xf32> to vector<32x16xf32>
    %cst_10 = arith.constant dense<0.000000e+00> : vector<24x16xf32>
    %9 = tpu.matmul %6, %8, %cst_10 {dimension_numbers = #tpu.dot_dimension_numbers<[1], [0], [0], [1], [0, 0, 1, 1], [], []>} : vector<24x32xf32>, vector<32x16xf32>, vector<24x16xf32> -> vector<24x16xf32>
    %10 = arith.addf %4, %9 : vector<24x16xf32>
    %c0_11 = arith.constant 0 : index
    %c6 = arith.constant 6 : index
    %c0_12 = arith.constant 0 : index
    %11 = vector.load %arg1[%c0_11, %c6, %c0_12] : memref<1x38x32xf32, #tpu.memory_space<vmem>>, vector<1x24x32xf32>
    %12 = vector.shape_cast %11 : vector<1x24x32xf32> to vector<24x32xf32>
    %c2 = arith.constant 2 : index
    %c0_13 = arith.constant 0 : index
    %c0_14 = arith.constant 0 : index
    %13 = vector.load %arg2[%c2, %c0_13, %c0_14] : memref<16x32x16xf32, #tpu.memory_space<vmem>>, vector<1x32x16xf32>
    %14 = vector.shape_cast %13 : vector<1x32x16xf32> to vector<32x16xf32>
    %cst_15 = arith.constant dense<0.000000e+00> : vector<24x16xf32>
    %15 = tpu.matmul %12, %14, %cst_15 {dimension_numbers = #tpu.dot_dimension_numbers<[1], [0], [0], [1], [0, 0, 1, 1], [], []>} : vector<24x32xf32>, vector<32x16xf32>, vector<24x16xf32> -> vector<24x16xf32>
    %16 = arith.addf %10, %15 : vector<24x16xf32>
    %c0_16 = arith.constant 0 : index
    %c7 = arith.constant 7 : index
    %c0_17 = arith.constant 0 : index
    %17 = vector.load %arg1[%c0_16, %c7, %c0_17] : memref<1x38x32xf32, #tpu.memory_space<vmem>>, vector<1x24x32xf32>
    %18 = vector.shape_cast %17 : vector<1x24x32xf32> to vector<24x32xf32>
    %c3 = arith.constant 3 : index
    %c0_18 = arith.constant 0 : index
    %c0_19 = arith.constant 0 : index
    %19 = vector.load %arg2[%c3, %c0_18, %c0_19] : memref<16x32x16xf32, #tpu.memory_space<vmem>>, vector<1x32x16xf32>
    %20 = vector.shape_cast %19 : vector<1x32x16xf32> to vector<32x16xf32>
    %cst_20 = arith.constant dense<0.000000e+00> : vector<24x16xf32>
    %21 = tpu.matmul %18, %20, %cst_20 {dimension_numbers = #tpu.dot_dimension_numbers<[1], [0], [0], [1], [0, 0, 1, 1], [], []>} : vector<24x32xf32>, vector<32x16xf32>, vector<24x16xf32> -> vector<24x16xf32>
    %22 = arith.addf %16, %21 : vector<24x16xf32>
    %c0_21 = arith.constant 0 : index
    %c0_22 = arith.constant 0 : index
    %23 = vector.load %arg3[%c0_21, %c0_22] : memref<1x16xf32, #tpu.memory_space<vmem>>, vector<1x16xf32>
    %24 = vector.broadcast %23 : vector<1x16xf32> to vector<24x16xf32>
    %25 = arith.addf %22, %24 : vector<24x16xf32>
    %cst_23 = arith.constant 0.000000e+00 : f32
    %26 = vector.broadcast %cst_23 : f32 to vector<24x16xf32>
    %27 = arith.cmpf ogt, %25, %26 : vector<24x16xf32>
    %cst_24 = arith.constant 2.000000e-01 : f32
    %28 = vector.broadcast %cst_24 : f32 to vector<24x16xf32>
    %29 = arith.mulf %28, %25 : vector<24x16xf32>
    %30 = arith.select %27, %25, %29 : vector<24x16xi1>, vector<24x16xf32>
    %c0_25 = arith.constant 0 : index
    %c0_26 = arith.constant 0 : index
    %c0_27 = arith.constant 0 : index
    %c0_28 = arith.constant 0 : index
    %31 = vector.load %arg4[%c0_25, %c0_26, %c0_27, %c0_28] : memref<1x4x24x16xf32, #tpu.memory_space<vmem>>, vector<1x1x24x16xf32>
    %32 = vector.shape_cast %31 : vector<1x1x24x16xf32> to vector<24x16xf32>
    %33 = vector.shape_cast %30 : vector<24x16xf32> to vector<1x1x24x16xf32>
    tpu.vector_store %arg4[%c0_25, %c0_26, %c0_27, %c0_28], %33 {strides = array<i32>} : memref<1x4x24x16xf32, #tpu.memory_space<vmem>>, vector<1x1x24x16xf32>,
    %c0_29 = arith.constant 0 : index
    %c1_30 = arith.constant 1 : index
    %c0_31 = arith.constant 0 : index
    %34 = vector.load %arg1[%c0_29, %c1_30, %c0_31] : memref<1x38x32xf32, #tpu.memory_space<vmem>>, vector<1x24x32xf32>
    %35 = vector.shape_cast %34 : vector<1x24x32xf32> to vector<24x32xf32>
    %c4 = arith.constant 4 : index
    %c0_32 = arith.constant 0 : index
    %c0_33 = arith.constant 0 : index
    %36 = vector.load %arg2[%c4, %c0_32, %c0_33] : memref<16x32x16xf32, #tpu.memory_space<vmem>>, vector<1x32x16xf32>
    %37 = vector.shape_cast %36 : vector<1x32x16xf32> to vector<32x16xf32>
    %cst_34 = arith.constant dense<0.000000e+00> : vector<24x16xf32>
    %38 = tpu.matmul %35, %37, %cst_34 {dimension_numbers = #tpu.dot_dimension_numbers<[1], [0], [0], [1], [0, 0, 1, 1], [], []>} : vector<24x32xf32>, vector<32x16xf32>, vector<24x16xf32> -> vector<24x16xf32>
    %c0_35 = arith.constant 0 : index
    %c2_36 = arith.constant 2 : index
    %c0_37 = arith.constant 0 : index
    %39 = vector.load %arg1[%c0_35, %c2_36, %c0_37] : memref<1x38x32xf32, #tpu.memory_space<vmem>>, vector<1x24x32xf32>
    %40 = vector.shape_cast %39 : vector<1x24x32xf32> to vector<24x32xf32>
    %c5 = arith.constant 5 : index
    %c0_38 = arith.constant 0 : index
    %c0_39 = arith.constant 0 : index
    %41 = vector.load %arg2[%c5, %c0_38, %c0_39] : memref<16x32x16xf32, #tpu.memory_space<vmem>>, vector<1x32x16xf32>
    %42 = vector.shape_cast %41 : vector<1x32x16xf32> to vector<32x16xf32>
    %cst_40 = arith.constant dense<0.000000e+00> : vector<24x16xf32>
    %43 = tpu.matmul %40, %42, %cst_40 {dimension_numbers = #tpu.dot_dimension_numbers<[1], [0], [0], [1], [0, 0, 1, 1], [], []>} : vector<24x32xf32>, vector<32x16xf32>, vector<24x16xf32> -> vector<24x16xf32>
    %44 = arith.addf %38, %43 : vector<24x16xf32>
    %c0_41 = arith.constant 0 : index
    %c7_42 = arith.constant 7 : index
    %c0_43 = arith.constant 0 : index
    %45 = vector.load %arg1[%c0_41, %c7_42, %c0_43] : memref<1x38x32xf32, #tpu.memory_space<vmem>>, vector<1x24x32xf32>
    %46 = vector.shape_cast %45 : vector<1x24x32xf32> to vector<24x32xf32>
    %c6_44 = arith.constant 6 : index
    %c0_45 = arith.constant 0 : index
    %c0_46 = arith.constant 0 : index
    %47 = vector.load %arg2[%c6_44, %c0_45, %c0_46] : memref<16x32x16xf32, #tpu.memory_space<vmem>>, vector<1x32x16xf32>
    %48 = vector.shape_cast %47 : vector<1x32x16xf32> to vector<32x16xf32>
    %cst_47 = arith.constant dense<0.000000e+00> : vector<24x16xf32>
    %49 = tpu.matmul %46, %48, %cst_47 {dimension_numbers = #tpu.dot_dimension_numbers<[1], [0], [0], [1], [0, 0, 1, 1], [], []>} : vector<24x32xf32>, vector<32x16xf32>, vector<24x16xf32> -> vector<24x16xf32>
    %50 = arith.addf %44, %49 : vector<24x16xf32>
    %c0_48 = arith.constant 0 : index
    %c8 = arith.constant 8 : index
    %c0_49 = arith.constant 0 : index
    %51 = vector.load %arg1[%c0_48, %c8, %c0_49] : memref<1x38x32xf32, #tpu.memory_space<vmem>>, vector<1x24x32xf32>
    %52 = vector.shape_cast %51 : vector<1x24x32xf32> to vector<24x32xf32>
    %c7_50 = arith.constant 7 : index
    %c0_51 = arith.constant 0 : index
    %c0_52 = arith.constant 0 : index
    %53 = vector.load %arg2[%c7_50, %c0_51, %c0_52] : memref<16x32x16xf32, #tpu.memory_space<vmem>>, vector<1x32x16xf32>
    %54 = vector.shape_cast %53 : vector<1x32x16xf32> to vector<32x16xf32>
    %cst_53 = arith.constant dense<0.000000e+00> : vector<24x16xf32>
    %55 = tpu.matmul %52, %54, %cst_53 {dimension_numbers = #tpu.dot_dimension_numbers<[1], [0], [0], [1], [0, 0, 1, 1], [], []>} : vector<24x32xf32>, vector<32x16xf32>, vector<24x16xf32> -> vector<24x16xf32>
    %56 = arith.addf %50, %55 : vector<24x16xf32>
    %c0_54 = arith.constant 0 : index
    %c0_55 = arith.constant 0 : index
    %57 = vector.load %arg3[%c0_54, %c0_55] : memref<1x16xf32, #tpu.memory_space<vmem>>, vector<1x16xf32>
    %58 = vector.broadcast %57 : vector<1x16xf32> to vector<24x16xf32>
    %59 = arith.addf %56, %58 : vector<24x16xf32>
    %cst_56 = arith.constant 0.000000e+00 : f32
    %60 = vector.broadcast %cst_56 : f32 to vector<24x16xf32>
    %61 = arith.cmpf ogt, %59, %60 : vector<24x16xf32>
    %cst_57 = arith.constant 2.000000e-01 : f32
    %62 = vector.broadcast %cst_57 : f32 to vector<24x16xf32>
    %63 = arith.mulf %62, %59 : vector<24x16xf32>
    %64 = arith.select %61, %59, %63 : vector<24x16xi1>, vector<24x16xf32>
    %c0_58 = arith.constant 0 : index
    %c1_59 = arith.constant 1 : index
    %c0_60 = arith.constant 0 : index
    %c0_61 = arith.constant 0 : index
    %65 = vector.load %arg4[%c0_58, %c1_59, %c0_60, %c0_61] : memref<1x4x24x16xf32, #tpu.memory_space<vmem>>, vector<1x1x24x16xf32>
    %66 = vector.shape_cast %65 : vector<1x1x24x16xf32> to vector<24x16xf32>
    %67 = vector.shape_cast %64 : vector<24x16xf32> to vector<1x1x24x16xf32>
    tpu.vector_store %arg4[%c0_58, %c1_59, %c0_60, %c0_61], %67 {strides = array<i32>} : memref<1x4x24x16xf32, #tpu.memory_space<vmem>>, vector<1x1x24x16xf32>,
    %c0_62 = arith.constant 0 : index
    %c6_63 = arith.constant 6 : index
    %c0_64 = arith.constant 0 : index
    %68 = vector.load %arg1[%c0_62, %c6_63, %c0_64] : memref<1x38x32xf32, #tpu.memory_space<vmem>>, vector<1x24x32xf32>
    %69 = vector.shape_cast %68 : vector<1x24x32xf32> to vector<24x32xf32>
    %c8_65 = arith.constant 8 : index
    %c0_66 = arith.constant 0 : index
    %c0_67 = arith.constant 0 : index
    %70 = vector.load %arg2[%c8_65, %c0_66, %c0_67] : memref<16x32x16xf32, #tpu.memory_space<vmem>>, vector<1x32x16xf32>
    %71 = vector.shape_cast %70 : vector<1x32x16xf32> to vector<32x16xf32>
    %cst_68 = arith.constant dense<0.000000e+00> : vector<24x16xf32>
    %72 = tpu.matmul %69, %71, %cst_68 {dimension_numbers = #tpu.dot_dimension_numbers<[1], [0], [0], [1], [0, 0, 1, 1], [], []>} : vector<24x32xf32>, vector<32x16xf32>, vector<24x16xf32> -> vector<24x16xf32>
    %c0_69 = arith.constant 0 : index
    %c7_70 = arith.constant 7 : index
    %c0_71 = arith.constant 0 : index
    %73 = vector.load %arg1[%c0_69, %c7_70, %c0_71] : memref<1x38x32xf32, #tpu.memory_space<vmem>>, vector<1x24x32xf32>
    %74 = vector.shape_cast %73 : vector<1x24x32xf32> to vector<24x32xf32>
    %c9 = arith.constant 9 : index
    %c0_72 = arith.constant 0 : index
    %c0_73 = arith.constant 0 : index
    %75 = vector.load %arg2[%c9, %c0_72, %c0_73] : memref<16x32x16xf32, #tpu.memory_space<vmem>>, vector<1x32x16xf32>
    %76 = vector.shape_cast %75 : vector<1x32x16xf32> to vector<32x16xf32>
    %cst_74 = arith.constant dense<0.000000e+00> : vector<24x16xf32>
    %77 = tpu.matmul %74, %76, %cst_74 {dimension_numbers = #tpu.dot_dimension_numbers<[1], [0], [0], [1], [0, 0, 1, 1], [], []>} : vector<24x32xf32>, vector<32x16xf32>, vector<24x16xf32> -> vector<24x16xf32>
    %78 = arith.addf %72, %77 : vector<24x16xf32>
    %c0_75 = arith.constant 0 : index
    %c12 = arith.constant 12 : index
    %c0_76 = arith.constant 0 : index
    %79 = vector.load %arg1[%c0_75, %c12, %c0_76] : memref<1x38x32xf32, #tpu.memory_space<vmem>>, vector<1x24x32xf32>
    %80 = vector.shape_cast %79 : vector<1x24x32xf32> to vector<24x32xf32>
    %c10 = arith.constant 10 : index
    %c0_77 = arith.constant 0 : index
    %c0_78 = arith.constant 0 : index
    %81 = vector.load %arg2[%c10, %c0_77, %c0_78] : memref<16x32x16xf32, #tpu.memory_space<vmem>>, vector<1x32x16xf32>
    %82 = vector.shape_cast %81 : vector<1x32x16xf32> to vector<32x16xf32>
    %cst_79 = arith.constant dense<0.000000e+00> : vector<24x16xf32>
    %83 = tpu.matmul %80, %82, %cst_79 {dimension_numbers = #tpu.dot_dimension_numbers<[1], [0], [0], [1], [0, 0, 1, 1], [], []>} : vector<24x32xf32>, vector<32x16xf32>, vector<24x16xf32> -> vector<24x16xf32>
    %84 = arith.addf %78, %83 : vector<24x16xf32>
    %c0_80 = arith.constant 0 : index
    %c13 = arith.constant 13 : index
    %c0_81 = arith.constant 0 : index
    %85 = vector.load %arg1[%c0_80, %c13, %c0_81] : memref<1x38x32xf32, #tpu.memory_space<vmem>>, vector<1x24x32xf32>
    %86 = vector.shape_cast %85 : vector<1x24x32xf32> to vector<24x32xf32>
    %c11 = arith.constant 11 : index
    %c0_82 = arith.constant 0 : index
    %c0_83 = arith.constant 0 : index
    %87 = vector.load %arg2[%c11, %c0_82, %c0_83] : memref<16x32x16xf32, #tpu.memory_space<vmem>>, vector<1x32x16xf32>
    %88 = vector.shape_cast %87 : vector<1x32x16xf32> to vector<32x16xf32>
    %cst_84 = arith.constant dense<0.000000e+00> : vector<24x16xf32>
    %89 = tpu.matmul %86, %88, %cst_84 {dimension_numbers = #tpu.dot_dimension_numbers<[1], [0], [0], [1], [0, 0, 1, 1], [], []>} : vector<24x32xf32>, vector<32x16xf32>, vector<24x16xf32> -> vector<24x16xf32>
    %90 = arith.addf %84, %89 : vector<24x16xf32>
    %c0_85 = arith.constant 0 : index
    %c0_86 = arith.constant 0 : index
    %91 = vector.load %arg3[%c0_85, %c0_86] : memref<1x16xf32, #tpu.memory_space<vmem>>, vector<1x16xf32>
    %92 = vector.broadcast %91 : vector<1x16xf32> to vector<24x16xf32>
    %93 = arith.addf %90, %92 : vector<24x16xf32>
    %cst_87 = arith.constant 0.000000e+00 : f32
    %94 = vector.broadcast %cst_87 : f32 to vector<24x16xf32>
    %95 = arith.cmpf ogt, %93, %94 : vector<24x16xf32>
    %cst_88 = arith.constant 2.000000e-01 : f32
    %96 = vector.broadcast %cst_88 : f32 to vector<24x16xf32>
    %97 = arith.mulf %96, %93 : vector<24x16xf32>
    %98 = arith.select %95, %93, %97 : vector<24x16xi1>, vector<24x16xf32>
    %c0_89 = arith.constant 0 : index
    %c2_90 = arith.constant 2 : index
    %c0_91 = arith.constant 0 : index
    %c0_92 = arith.constant 0 : index
    %99 = vector.load %arg4[%c0_89, %c2_90, %c0_91, %c0_92] : memref<1x4x24x16xf32, #tpu.memory_space<vmem>>, vector<1x1x24x16xf32>
    %100 = vector.shape_cast %99 : vector<1x1x24x16xf32> to vector<24x16xf32>
    %101 = vector.shape_cast %98 : vector<24x16xf32> to vector<1x1x24x16xf32>
    tpu.vector_store %arg4[%c0_89, %c2_90, %c0_91, %c0_92], %101 {strides = array<i32>} : memref<1x4x24x16xf32, #tpu.memory_space<vmem>>, vector<1x1x24x16xf32>,
    %c0_93 = arith.constant 0 : index
    %c7_94 = arith.constant 7 : index
    %c0_95 = arith.constant 0 : index
    %102 = vector.load %arg1[%c0_93, %c7_94, %c0_95] : memref<1x38x32xf32, #tpu.memory_space<vmem>>, vector<1x24x32xf32>
    %103 = vector.shape_cast %102 : vector<1x24x32xf32> to vector<24x32xf32>
    %c12_96 = arith.constant 12 : index
    %c0_97 = arith.constant 0 : index
    %c0_98 = arith.constant 0 : index
    %104 = vector.load %arg2[%c12_96, %c0_97, %c0_98] : memref<16x32x16xf32, #tpu.memory_space<vmem>>, vector<1x32x16xf32>
    %105 = vector.shape_cast %104 : vector<1x32x16xf32> to vector<32x16xf32>
    %cst_99 = arith.constant dense<0.000000e+00> : vector<24x16xf32>
    %106 = tpu.matmul %103, %105, %cst_99 {dimension_numbers = #tpu.dot_dimension_numbers<[1], [0], [0], [1], [0, 0, 1, 1], [], []>} : vector<24x32xf32>, vector<32x16xf32>, vector<24x16xf32> -> vector<24x16xf32>
    %c0_100 = arith.constant 0 : index
    %c8_101 = arith.constant 8 : index
    %c0_102 = arith.constant 0 : index
    %107 = vector.load %arg1[%c0_100, %c8_101, %c0_102] : memref<1x38x32xf32, #tpu.memory_space<vmem>>, vector<1x24x32xf32>
    %108 = vector.shape_cast %107 : vector<1x24x32xf32> to vector<24x32xf32>
    %c13_103 = arith.constant 13 : index
    %c0_104 = arith.constant 0 : index
    %c0_105 = arith.constant 0 : index
    %109 = vector.load %arg2[%c13_103, %c0_104, %c0_105] : memref<16x32x16xf32, #tpu.memory_space<vmem>>, vector<1x32x16xf32>
    %110 = vector.shape_cast %109 : vector<1x32x16xf32> to vector<32x16xf32>
    %cst_106 = arith.constant dense<0.000000e+00> : vector<24x16xf32>
    %111 = tpu.matmul %108, %110, %cst_106 {dimension_numbers = #tpu.dot_dimension_numbers<[1], [0], [0], [1], [0, 0, 1, 1], [], []>} : vector<24x32xf32>, vector<32x16xf32>, vector<24x16xf32> -> vector<24x16xf32>
    %112 = arith.addf %106, %111 : vector<24x16xf32>
    %c0_107 = arith.constant 0 : index
    %c13_108 = arith.constant 13 : index
    %c0_109 = arith.constant 0 : index
    %113 = vector.load %arg1[%c0_107, %c13_108, %c0_109] : memref<1x38x32xf32, #tpu.memory_space<vmem>>, vector<1x24x32xf32>
    %114 = vector.shape_cast %113 : vector<1x24x32xf32> to vector<24x32xf32>
    %c14 = arith.constant 14 : index
    %c0_110 = arith.constant 0 : index
    %c0_111 = arith.constant 0 : index
    %115 = vector.load %arg2[%c14, %c0_110, %c0_111] : memref<16x32x16xf32, #tpu.memory_space<vmem>>, vector<1x32x16xf32>
    %116 = vector.shape_cast %115 : vector<1x32x16xf32> to vector<32x16xf32>
    %cst_112 = arith.constant dense<0.000000e+00> : vector<24x16xf32>
    %117 = tpu.matmul %114, %116, %cst_112 {dimension_numbers = #tpu.dot_dimension_numbers<[1], [0], [0], [1], [0, 0, 1, 1], [], []>} : vector<24x32xf32>, vector<32x16xf32>, vector<24x16xf32> -> vector<24x16xf32>
    %118 = arith.addf %112, %117 : vector<24x16xf32>
    %c0_113 = arith.constant 0 : index
    %c14_114 = arith.constant 14 : index
    %c0_115 = arith.constant 0 : index
    %119 = vector.load %arg1[%c0_113, %c14_114, %c0_115] : memref<1x38x32xf32, #tpu.memory_space<vmem>>, vector<1x24x32xf32>
    %120 = vector.shape_cast %119 : vector<1x24x32xf32> to vector<24x32xf32>
    %c15 = arith.constant 15 : index
    %c0_116 = arith.constant 0 : index
    %c0_117 = arith.constant 0 : index
    %121 = vector.load %arg2[%c15, %c0_116, %c0_117] : memref<16x32x16xf32, #tpu.memory_space<vmem>>, vector<1x32x16xf32>
    %122 = vector.shape_cast %121 : vector<1x32x16xf32> to vector<32x16xf32>
    %cst_118 = arith.constant dense<0.000000e+00> : vector<24x16xf32>
    %123 = tpu.matmul %120, %122, %cst_118 {dimension_numbers = #tpu.dot_dimension_numbers<[1], [0], [0], [1], [0, 0, 1, 1], [], []>} : vector<24x32xf32>, vector<32x16xf32>, vector<24x16xf32> -> vector<24x16xf32>
    %124 = arith.addf %118, %123 : vector<24x16xf32>
    %c0_119 = arith.constant 0 : index
    %c0_120 = arith.constant 0 : index
    %125 = vector.load %arg3[%c0_119, %c0_120] : memref<1x16xf32, #tpu.memory_space<vmem>>, vector<1x16xf32>
    %126 = vector.broadcast %125 : vector<1x16xf32> to vector<24x16xf32>
    %127 = arith.addf %124, %126 : vector<24x16xf32>
    %cst_121 = arith.constant 0.000000e+00 : f32
    %128 = vector.broadcast %cst_121 : f32 to vector<24x16xf32>
    %129 = arith.cmpf ogt, %127, %128 : vector<24x16xf32>
    %cst_122 = arith.constant 2.000000e-01 : f32
    %130 = vector.broadcast %cst_122 : f32 to vector<24x16xf32>
    %131 = arith.mulf %130, %127 : vector<24x16xf32>
    %132 = arith.select %129, %127, %131 : vector<24x16xi1>, vector<24x16xf32>
    %c0_123 = arith.constant 0 : index
    %c3_124 = arith.constant 3 : index
    %c0_125 = arith.constant 0 : index
    %c0_126 = arith.constant 0 : index
    %133 = vector.load %arg4[%c0_123, %c3_124, %c0_125, %c0_126] : memref<1x4x24x16xf32, #tpu.memory_space<vmem>>, vector<1x1x24x16xf32>
    %134 = vector.shape_cast %133 : vector<1x1x24x16xf32> to vector<24x16xf32>
    %135 = vector.shape_cast %132 : vector<24x16xf32> to vector<1x1x24x16xf32>
    tpu.vector_store %arg4[%c0_123, %c3_124, %c0_125, %c0_126], %135 {strides = array<i32>} : memref<1x4x24x16xf32, #tpu.memory_space<vmem>>, vector<1x1x24x16xf32>,
    return
  }
  func.func @transform_0(%arg0: i32) -> (i32, i32, i32) {
    %c0_i32 = arith.constant 0 : i32
    %c0_i32_0 = arith.constant 0 : i32
    %c0_i32_1 = arith.constant 0 : i32
    return %arg0, %c0_i32, %c0_i32_0 : i32, i32, i32
  }
  func.func @transform_1(%arg0: i32) -> (i32, i32, i32) {
    %c0_i32 = arith.constant 0 : i32
    %c0_i32_0 = arith.constant 0 : i32
    %c0_i32_1 = arith.constant 0 : i32
    %c0_i32_2 = arith.constant 0 : i32
    return %c0_i32, %c0_i32_0, %c0_i32_1 : i32, i32, i32
  }
  func.func @transform_2(%arg0: i32) -> (i32, i32) {
    %c0_i32 = arith.constant 0 : i32
    %c0_i32_0 = arith.constant 0 : i32
    %c0_i32_1 = arith.constant 0 : i32
    return %c0_i32, %c0_i32_0 : i32, i32
  }
  func.func @transform_3(%arg0: i32) -> (i32, i32, i32, i32) {
    %c0_i32 = arith.constant 0 : i32
    %c0_i32_0 = arith.constant 0 : i32
    %c0_i32_1 = arith.constant 0 : i32
    %c0_i32_2 = arith.constant 0 : i32
    return %arg0, %c0_i32, %c0_i32_0, %c0_i32_1 : i32, i32, i32, i32
  }
}

module attributes {stable_mosaic.version = 11 : i64} {
  func.func @_conv3x3_kernel(%arg0: i32, %arg1: memref<1x102x16xf32, #tpu.memory_space<vmem>>, %arg2: memref<9x16x16xf32, #tpu.memory_space<vmem>>, %arg3: memref<1x16xf32, #tpu.memory_space<vmem>>, %arg4: memref<1x80x16xf32, #tpu.memory_space<vmem>>) attributes {dimension_semantics = [#tpu.dimension_semantics<parallel>], iteration_bounds = array<i64: 4>, scalar_prefetch = 0 : i64, scratch_operands = 0 : i64, tpu.core_type = #tpu.core_type<tc>, window_params = [{transform_indices = @transform_0, window_bounds = array<i64: 1, 102, 16>}, {pipeline_mode = #tpu.pipeline_mode<synchronous>, transform_indices = @transform_1, window_bounds = array<i64: 9, 16, 16>}, {pipeline_mode = #tpu.pipeline_mode<synchronous>, transform_indices = @transform_2, window_bounds = array<i64: 1, 16>}, {transform_indices = @transform_3, window_bounds = array<i64: 1, 80, 16>}]} {
    %c0 = arith.constant 0 : index
    %c0_0 = arith.constant 0 : index
    %c0_1 = arith.constant 0 : index
    %0 = vector.load %arg1[%c0, %c0_0, %c0_1] : memref<1x102x16xf32, #tpu.memory_space<vmem>>, vector<1x80x16xf32>
    %1 = vector.shape_cast %0 : vector<1x80x16xf32> to vector<80x16xf32>
    %c0_2 = arith.constant 0 : index
    %c0_3 = arith.constant 0 : index
    %c0_4 = arith.constant 0 : index
    %2 = vector.load %arg2[%c0_2, %c0_3, %c0_4] : memref<9x16x16xf32, #tpu.memory_space<vmem>>, vector<1x16x16xf32>
    %3 = vector.shape_cast %2 : vector<1x16x16xf32> to vector<16x16xf32>
    %cst = arith.constant dense<0.000000e+00> : vector<80x16xf32>
    %4 = tpu.matmul %1, %3, %cst {dimension_numbers = #tpu.dot_dimension_numbers<[1], [0], [0], [1], [0, 0, 1, 1], [], []>} : vector<80x16xf32>, vector<16x16xf32>, vector<80x16xf32> -> vector<80x16xf32>
    %c0_5 = arith.constant 0 : index
    %c1 = arith.constant 1 : index
    %c0_6 = arith.constant 0 : index
    %5 = vector.load %arg1[%c0_5, %c1, %c0_6] : memref<1x102x16xf32, #tpu.memory_space<vmem>>, vector<1x80x16xf32>
    %6 = vector.shape_cast %5 : vector<1x80x16xf32> to vector<80x16xf32>
    %c1_7 = arith.constant 1 : index
    %c0_8 = arith.constant 0 : index
    %c0_9 = arith.constant 0 : index
    %7 = vector.load %arg2[%c1_7, %c0_8, %c0_9] : memref<9x16x16xf32, #tpu.memory_space<vmem>>, vector<1x16x16xf32>
    %8 = vector.shape_cast %7 : vector<1x16x16xf32> to vector<16x16xf32>
    %cst_10 = arith.constant dense<0.000000e+00> : vector<80x16xf32>
    %9 = tpu.matmul %6, %8, %cst_10 {dimension_numbers = #tpu.dot_dimension_numbers<[1], [0], [0], [1], [0, 0, 1, 1], [], []>} : vector<80x16xf32>, vector<16x16xf32>, vector<80x16xf32> -> vector<80x16xf32>
    %10 = arith.addf %4, %9 : vector<80x16xf32>
    %c0_11 = arith.constant 0 : index
    %c2 = arith.constant 2 : index
    %c0_12 = arith.constant 0 : index
    %11 = vector.load %arg1[%c0_11, %c2, %c0_12] : memref<1x102x16xf32, #tpu.memory_space<vmem>>, vector<1x80x16xf32>
    %12 = vector.shape_cast %11 : vector<1x80x16xf32> to vector<80x16xf32>
    %c2_13 = arith.constant 2 : index
    %c0_14 = arith.constant 0 : index
    %c0_15 = arith.constant 0 : index
    %13 = vector.load %arg2[%c2_13, %c0_14, %c0_15] : memref<9x16x16xf32, #tpu.memory_space<vmem>>, vector<1x16x16xf32>
    %14 = vector.shape_cast %13 : vector<1x16x16xf32> to vector<16x16xf32>
    %cst_16 = arith.constant dense<0.000000e+00> : vector<80x16xf32>
    %15 = tpu.matmul %12, %14, %cst_16 {dimension_numbers = #tpu.dot_dimension_numbers<[1], [0], [0], [1], [0, 0, 1, 1], [], []>} : vector<80x16xf32>, vector<16x16xf32>, vector<80x16xf32> -> vector<80x16xf32>
    %16 = arith.addf %10, %15 : vector<80x16xf32>
    %c0_17 = arith.constant 0 : index
    %c10 = arith.constant 10 : index
    %c0_18 = arith.constant 0 : index
    %17 = vector.load %arg1[%c0_17, %c10, %c0_18] : memref<1x102x16xf32, #tpu.memory_space<vmem>>, vector<1x80x16xf32>
    %18 = vector.shape_cast %17 : vector<1x80x16xf32> to vector<80x16xf32>
    %c3 = arith.constant 3 : index
    %c0_19 = arith.constant 0 : index
    %c0_20 = arith.constant 0 : index
    %19 = vector.load %arg2[%c3, %c0_19, %c0_20] : memref<9x16x16xf32, #tpu.memory_space<vmem>>, vector<1x16x16xf32>
    %20 = vector.shape_cast %19 : vector<1x16x16xf32> to vector<16x16xf32>
    %cst_21 = arith.constant dense<0.000000e+00> : vector<80x16xf32>
    %21 = tpu.matmul %18, %20, %cst_21 {dimension_numbers = #tpu.dot_dimension_numbers<[1], [0], [0], [1], [0, 0, 1, 1], [], []>} : vector<80x16xf32>, vector<16x16xf32>, vector<80x16xf32> -> vector<80x16xf32>
    %22 = arith.addf %16, %21 : vector<80x16xf32>
    %c0_22 = arith.constant 0 : index
    %c11 = arith.constant 11 : index
    %c0_23 = arith.constant 0 : index
    %23 = vector.load %arg1[%c0_22, %c11, %c0_23] : memref<1x102x16xf32, #tpu.memory_space<vmem>>, vector<1x80x16xf32>
    %24 = vector.shape_cast %23 : vector<1x80x16xf32> to vector<80x16xf32>
    %c4 = arith.constant 4 : index
    %c0_24 = arith.constant 0 : index
    %c0_25 = arith.constant 0 : index
    %25 = vector.load %arg2[%c4, %c0_24, %c0_25] : memref<9x16x16xf32, #tpu.memory_space<vmem>>, vector<1x16x16xf32>
    %26 = vector.shape_cast %25 : vector<1x16x16xf32> to vector<16x16xf32>
    %cst_26 = arith.constant dense<0.000000e+00> : vector<80x16xf32>
    %27 = tpu.matmul %24, %26, %cst_26 {dimension_numbers = #tpu.dot_dimension_numbers<[1], [0], [0], [1], [0, 0, 1, 1], [], []>} : vector<80x16xf32>, vector<16x16xf32>, vector<80x16xf32> -> vector<80x16xf32>
    %28 = arith.addf %22, %27 : vector<80x16xf32>
    %c0_27 = arith.constant 0 : index
    %c12 = arith.constant 12 : index
    %c0_28 = arith.constant 0 : index
    %29 = vector.load %arg1[%c0_27, %c12, %c0_28] : memref<1x102x16xf32, #tpu.memory_space<vmem>>, vector<1x80x16xf32>
    %30 = vector.shape_cast %29 : vector<1x80x16xf32> to vector<80x16xf32>
    %c5 = arith.constant 5 : index
    %c0_29 = arith.constant 0 : index
    %c0_30 = arith.constant 0 : index
    %31 = vector.load %arg2[%c5, %c0_29, %c0_30] : memref<9x16x16xf32, #tpu.memory_space<vmem>>, vector<1x16x16xf32>
    %32 = vector.shape_cast %31 : vector<1x16x16xf32> to vector<16x16xf32>
    %cst_31 = arith.constant dense<0.000000e+00> : vector<80x16xf32>
    %33 = tpu.matmul %30, %32, %cst_31 {dimension_numbers = #tpu.dot_dimension_numbers<[1], [0], [0], [1], [0, 0, 1, 1], [], []>} : vector<80x16xf32>, vector<16x16xf32>, vector<80x16xf32> -> vector<80x16xf32>
    %34 = arith.addf %28, %33 : vector<80x16xf32>
    %c0_32 = arith.constant 0 : index
    %c20 = arith.constant 20 : index
    %c0_33 = arith.constant 0 : index
    %35 = vector.load %arg1[%c0_32, %c20, %c0_33] : memref<1x102x16xf32, #tpu.memory_space<vmem>>, vector<1x80x16xf32>
    %36 = vector.shape_cast %35 : vector<1x80x16xf32> to vector<80x16xf32>
    %c6 = arith.constant 6 : index
    %c0_34 = arith.constant 0 : index
    %c0_35 = arith.constant 0 : index
    %37 = vector.load %arg2[%c6, %c0_34, %c0_35] : memref<9x16x16xf32, #tpu.memory_space<vmem>>, vector<1x16x16xf32>
    %38 = vector.shape_cast %37 : vector<1x16x16xf32> to vector<16x16xf32>
    %cst_36 = arith.constant dense<0.000000e+00> : vector<80x16xf32>
    %39 = tpu.matmul %36, %38, %cst_36 {dimension_numbers = #tpu.dot_dimension_numbers<[1], [0], [0], [1], [0, 0, 1, 1], [], []>} : vector<80x16xf32>, vector<16x16xf32>, vector<80x16xf32> -> vector<80x16xf32>
    %40 = arith.addf %34, %39 : vector<80x16xf32>
    %c0_37 = arith.constant 0 : index
    %c21 = arith.constant 21 : index
    %c0_38 = arith.constant 0 : index
    %41 = vector.load %arg1[%c0_37, %c21, %c0_38] : memref<1x102x16xf32, #tpu.memory_space<vmem>>, vector<1x80x16xf32>
    %42 = vector.shape_cast %41 : vector<1x80x16xf32> to vector<80x16xf32>
    %c7 = arith.constant 7 : index
    %c0_39 = arith.constant 0 : index
    %c0_40 = arith.constant 0 : index
    %43 = vector.load %arg2[%c7, %c0_39, %c0_40] : memref<9x16x16xf32, #tpu.memory_space<vmem>>, vector<1x16x16xf32>
    %44 = vector.shape_cast %43 : vector<1x16x16xf32> to vector<16x16xf32>
    %cst_41 = arith.constant dense<0.000000e+00> : vector<80x16xf32>
    %45 = tpu.matmul %42, %44, %cst_41 {dimension_numbers = #tpu.dot_dimension_numbers<[1], [0], [0], [1], [0, 0, 1, 1], [], []>} : vector<80x16xf32>, vector<16x16xf32>, vector<80x16xf32> -> vector<80x16xf32>
    %46 = arith.addf %40, %45 : vector<80x16xf32>
    %c0_42 = arith.constant 0 : index
    %c22 = arith.constant 22 : index
    %c0_43 = arith.constant 0 : index
    %47 = vector.load %arg1[%c0_42, %c22, %c0_43] : memref<1x102x16xf32, #tpu.memory_space<vmem>>, vector<1x80x16xf32>
    %48 = vector.shape_cast %47 : vector<1x80x16xf32> to vector<80x16xf32>
    %c8 = arith.constant 8 : index
    %c0_44 = arith.constant 0 : index
    %c0_45 = arith.constant 0 : index
    %49 = vector.load %arg2[%c8, %c0_44, %c0_45] : memref<9x16x16xf32, #tpu.memory_space<vmem>>, vector<1x16x16xf32>
    %50 = vector.shape_cast %49 : vector<1x16x16xf32> to vector<16x16xf32>
    %cst_46 = arith.constant dense<0.000000e+00> : vector<80x16xf32>
    %51 = tpu.matmul %48, %50, %cst_46 {dimension_numbers = #tpu.dot_dimension_numbers<[1], [0], [0], [1], [0, 0, 1, 1], [], []>} : vector<80x16xf32>, vector<16x16xf32>, vector<80x16xf32> -> vector<80x16xf32>
    %52 = arith.addf %46, %51 : vector<80x16xf32>
    %c0_47 = arith.constant 0 : index
    %c0_48 = arith.constant 0 : index
    %53 = vector.load %arg3[%c0_47, %c0_48] : memref<1x16xf32, #tpu.memory_space<vmem>>, vector<1x16xf32>
    %54 = vector.broadcast %53 : vector<1x16xf32> to vector<80x16xf32>
    %55 = arith.addf %52, %54 : vector<80x16xf32>
    %cst_49 = arith.constant 0.000000e+00 : f32
    %56 = vector.broadcast %cst_49 : f32 to vector<80x16xf32>
    %57 = arith.cmpf ogt, %55, %56 : vector<80x16xf32>
    %cst_50 = arith.constant 2.000000e-01 : f32
    %58 = vector.broadcast %cst_50 : f32 to vector<80x16xf32>
    %59 = arith.mulf %58, %55 : vector<80x16xf32>
    %60 = arith.select %57, %55, %59 : vector<80x16xi1>, vector<80x16xf32>
    %c0_51 = arith.constant 0 : index
    %c0_52 = arith.constant 0 : index
    %c0_53 = arith.constant 0 : index
    %61 = vector.load %arg4[%c0_51, %c0_52, %c0_53] : memref<1x80x16xf32, #tpu.memory_space<vmem>>, vector<1x80x16xf32>
    %62 = vector.shape_cast %61 : vector<1x80x16xf32> to vector<80x16xf32>
    %63 = vector.shape_cast %60 : vector<80x16xf32> to vector<1x80x16xf32>
    tpu.vector_store %arg4[%c0_51, %c0_52, %c0_53], %63 {strides = array<i32>} : memref<1x80x16xf32, #tpu.memory_space<vmem>>, vector<1x80x16xf32>,
    return
  }
  func.func @transform_0(%arg0: i32) -> (i32, i32, i32) {
    %c0_i32 = arith.constant 0 : i32
    %c0_i32_0 = arith.constant 0 : i32
    %c0_i32_1 = arith.constant 0 : i32
    return %arg0, %c0_i32, %c0_i32_0 : i32, i32, i32
  }
  func.func @transform_1(%arg0: i32) -> (i32, i32, i32) {
    %c0_i32 = arith.constant 0 : i32
    %c0_i32_0 = arith.constant 0 : i32
    %c0_i32_1 = arith.constant 0 : i32
    %c0_i32_2 = arith.constant 0 : i32
    return %c0_i32, %c0_i32_0, %c0_i32_1 : i32, i32, i32
  }
  func.func @transform_2(%arg0: i32) -> (i32, i32) {
    %c0_i32 = arith.constant 0 : i32
    %c0_i32_0 = arith.constant 0 : i32
    %c0_i32_1 = arith.constant 0 : i32
    return %c0_i32, %c0_i32_0 : i32, i32
  }
  func.func @transform_3(%arg0: i32) -> (i32, i32, i32) {
    %c0_i32 = arith.constant 0 : i32
    %c0_i32_0 = arith.constant 0 : i32
    %c0_i32_1 = arith.constant 0 : i32
    return %arg0, %c0_i32, %c0_i32_0 : i32, i32, i32
  }
}

module attributes {stable_mosaic.version = 11 : i64} {
  func.func @_upconv3x3_kernel(%arg0: i32, %arg1: memref<1x102x16xf32, #tpu.memory_space<vmem>>, %arg2: memref<16x16x8xf32, #tpu.memory_space<vmem>>, %arg3: memref<1x8xf32, #tpu.memory_space<vmem>>, %arg4: memref<1x4x80x8xf32, #tpu.memory_space<vmem>>) attributes {dimension_semantics = [#tpu.dimension_semantics<parallel>], iteration_bounds = array<i64: 4>, scalar_prefetch = 0 : i64, scratch_operands = 0 : i64, tpu.core_type = #tpu.core_type<tc>, window_params = [{transform_indices = @transform_0, window_bounds = array<i64: 1, 102, 16>}, {pipeline_mode = #tpu.pipeline_mode<synchronous>, transform_indices = @transform_1, window_bounds = array<i64: 16, 16, 8>}, {pipeline_mode = #tpu.pipeline_mode<synchronous>, transform_indices = @transform_2, window_bounds = array<i64: 1, 8>}, {transform_indices = @transform_3, window_bounds = array<i64: 1, 4, 80, 8>}]} {
    %c0 = arith.constant 0 : index
    %c0_0 = arith.constant 0 : index
    %c0_1 = arith.constant 0 : index
    %0 = vector.load %arg1[%c0, %c0_0, %c0_1] : memref<1x102x16xf32, #tpu.memory_space<vmem>>, vector<1x80x16xf32>
    %1 = vector.shape_cast %0 : vector<1x80x16xf32> to vector<80x16xf32>
    %c0_2 = arith.constant 0 : index
    %c0_3 = arith.constant 0 : index
    %c0_4 = arith.constant 0 : index
    %2 = vector.load %arg2[%c0_2, %c0_3, %c0_4] : memref<16x16x8xf32, #tpu.memory_space<vmem>>, vector<1x16x8xf32>
    %3 = vector.shape_cast %2 : vector<1x16x8xf32> to vector<16x8xf32>
    %cst = arith.constant dense<0.000000e+00> : vector<80x8xf32>
    %4 = tpu.matmul %1, %3, %cst {dimension_numbers = #tpu.dot_dimension_numbers<[1], [0], [0], [1], [0, 0, 1, 1], [], []>} : vector<80x16xf32>, vector<16x8xf32>, vector<80x8xf32> -> vector<80x8xf32>
    %c0_5 = arith.constant 0 : index
    %c1 = arith.constant 1 : index
    %c0_6 = arith.constant 0 : index
    %5 = vector.load %arg1[%c0_5, %c1, %c0_6] : memref<1x102x16xf32, #tpu.memory_space<vmem>>, vector<1x80x16xf32>
    %6 = vector.shape_cast %5 : vector<1x80x16xf32> to vector<80x16xf32>
    %c1_7 = arith.constant 1 : index
    %c0_8 = arith.constant 0 : index
    %c0_9 = arith.constant 0 : index
    %7 = vector.load %arg2[%c1_7, %c0_8, %c0_9] : memref<16x16x8xf32, #tpu.memory_space<vmem>>, vector<1x16x8xf32>
    %8 = vector.shape_cast %7 : vector<1x16x8xf32> to vector<16x8xf32>
    %cst_10 = arith.constant dense<0.000000e+00> : vector<80x8xf32>
    %9 = tpu.matmul %6, %8, %cst_10 {dimension_numbers = #tpu.dot_dimension_numbers<[1], [0], [0], [1], [0, 0, 1, 1], [], []>} : vector<80x16xf32>, vector<16x8xf32>, vector<80x8xf32> -> vector<80x8xf32>
    %10 = arith.addf %4, %9 : vector<80x8xf32>
    %c0_11 = arith.constant 0 : index
    %c10 = arith.constant 10 : index
    %c0_12 = arith.constant 0 : index
    %11 = vector.load %arg1[%c0_11, %c10, %c0_12] : memref<1x102x16xf32, #tpu.memory_space<vmem>>, vector<1x80x16xf32>
    %12 = vector.shape_cast %11 : vector<1x80x16xf32> to vector<80x16xf32>
    %c2 = arith.constant 2 : index
    %c0_13 = arith.constant 0 : index
    %c0_14 = arith.constant 0 : index
    %13 = vector.load %arg2[%c2, %c0_13, %c0_14] : memref<16x16x8xf32, #tpu.memory_space<vmem>>, vector<1x16x8xf32>
    %14 = vector.shape_cast %13 : vector<1x16x8xf32> to vector<16x8xf32>
    %cst_15 = arith.constant dense<0.000000e+00> : vector<80x8xf32>
    %15 = tpu.matmul %12, %14, %cst_15 {dimension_numbers = #tpu.dot_dimension_numbers<[1], [0], [0], [1], [0, 0, 1, 1], [], []>} : vector<80x16xf32>, vector<16x8xf32>, vector<80x8xf32> -> vector<80x8xf32>
    %16 = arith.addf %10, %15 : vector<80x8xf32>
    %c0_16 = arith.constant 0 : index
    %c11 = arith.constant 11 : index
    %c0_17 = arith.constant 0 : index
    %17 = vector.load %arg1[%c0_16, %c11, %c0_17] : memref<1x102x16xf32, #tpu.memory_space<vmem>>, vector<1x80x16xf32>
    %18 = vector.shape_cast %17 : vector<1x80x16xf32> to vector<80x16xf32>
    %c3 = arith.constant 3 : index
    %c0_18 = arith.constant 0 : index
    %c0_19 = arith.constant 0 : index
    %19 = vector.load %arg2[%c3, %c0_18, %c0_19] : memref<16x16x8xf32, #tpu.memory_space<vmem>>, vector<1x16x8xf32>
    %20 = vector.shape_cast %19 : vector<1x16x8xf32> to vector<16x8xf32>
    %cst_20 = arith.constant dense<0.000000e+00> : vector<80x8xf32>
    %21 = tpu.matmul %18, %20, %cst_20 {dimension_numbers = #tpu.dot_dimension_numbers<[1], [0], [0], [1], [0, 0, 1, 1], [], []>} : vector<80x16xf32>, vector<16x8xf32>, vector<80x8xf32> -> vector<80x8xf32>
    %22 = arith.addf %16, %21 : vector<80x8xf32>
    %c0_21 = arith.constant 0 : index
    %c0_22 = arith.constant 0 : index
    %23 = vector.load %arg3[%c0_21, %c0_22] : memref<1x8xf32, #tpu.memory_space<vmem>>, vector<1x8xf32>
    %24 = vector.broadcast %23 : vector<1x8xf32> to vector<80x8xf32>
    %25 = arith.addf %22, %24 : vector<80x8xf32>
    %cst_23 = arith.constant 0.000000e+00 : f32
    %26 = vector.broadcast %cst_23 : f32 to vector<80x8xf32>
    %27 = arith.cmpf ogt, %25, %26 : vector<80x8xf32>
    %cst_24 = arith.constant 2.000000e-01 : f32
    %28 = vector.broadcast %cst_24 : f32 to vector<80x8xf32>
    %29 = arith.mulf %28, %25 : vector<80x8xf32>
    %30 = arith.select %27, %25, %29 : vector<80x8xi1>, vector<80x8xf32>
    %c0_25 = arith.constant 0 : index
    %c0_26 = arith.constant 0 : index
    %c0_27 = arith.constant 0 : index
    %c0_28 = arith.constant 0 : index
    %31 = vector.load %arg4[%c0_25, %c0_26, %c0_27, %c0_28] : memref<1x4x80x8xf32, #tpu.memory_space<vmem>>, vector<1x1x80x8xf32>
    %32 = vector.shape_cast %31 : vector<1x1x80x8xf32> to vector<80x8xf32>
    %33 = vector.shape_cast %30 : vector<80x8xf32> to vector<1x1x80x8xf32>
    tpu.vector_store %arg4[%c0_25, %c0_26, %c0_27, %c0_28], %33 {strides = array<i32>} : memref<1x4x80x8xf32, #tpu.memory_space<vmem>>, vector<1x1x80x8xf32>,
    %c0_29 = arith.constant 0 : index
    %c1_30 = arith.constant 1 : index
    %c0_31 = arith.constant 0 : index
    %34 = vector.load %arg1[%c0_29, %c1_30, %c0_31] : memref<1x102x16xf32, #tpu.memory_space<vmem>>, vector<1x80x16xf32>
    %35 = vector.shape_cast %34 : vector<1x80x16xf32> to vector<80x16xf32>
    %c4 = arith.constant 4 : index
    %c0_32 = arith.constant 0 : index
    %c0_33 = arith.constant 0 : index
    %36 = vector.load %arg2[%c4, %c0_32, %c0_33] : memref<16x16x8xf32, #tpu.memory_space<vmem>>, vector<1x16x8xf32>
    %37 = vector.shape_cast %36 : vector<1x16x8xf32> to vector<16x8xf32>
    %cst_34 = arith.constant dense<0.000000e+00> : vector<80x8xf32>
    %38 = tpu.matmul %35, %37, %cst_34 {dimension_numbers = #tpu.dot_dimension_numbers<[1], [0], [0], [1], [0, 0, 1, 1], [], []>} : vector<80x16xf32>, vector<16x8xf32>, vector<80x8xf32> -> vector<80x8xf32>
    %c0_35 = arith.constant 0 : index
    %c2_36 = arith.constant 2 : index
    %c0_37 = arith.constant 0 : index
    %39 = vector.load %arg1[%c0_35, %c2_36, %c0_37] : memref<1x102x16xf32, #tpu.memory_space<vmem>>, vector<1x80x16xf32>
    %40 = vector.shape_cast %39 : vector<1x80x16xf32> to vector<80x16xf32>
    %c5 = arith.constant 5 : index
    %c0_38 = arith.constant 0 : index
    %c0_39 = arith.constant 0 : index
    %41 = vector.load %arg2[%c5, %c0_38, %c0_39] : memref<16x16x8xf32, #tpu.memory_space<vmem>>, vector<1x16x8xf32>
    %42 = vector.shape_cast %41 : vector<1x16x8xf32> to vector<16x8xf32>
    %cst_40 = arith.constant dense<0.000000e+00> : vector<80x8xf32>
    %43 = tpu.matmul %40, %42, %cst_40 {dimension_numbers = #tpu.dot_dimension_numbers<[1], [0], [0], [1], [0, 0, 1, 1], [], []>} : vector<80x16xf32>, vector<16x8xf32>, vector<80x8xf32> -> vector<80x8xf32>
    %44 = arith.addf %38, %43 : vector<80x8xf32>
    %c0_41 = arith.constant 0 : index
    %c11_42 = arith.constant 11 : index
    %c0_43 = arith.constant 0 : index
    %45 = vector.load %arg1[%c0_41, %c11_42, %c0_43] : memref<1x102x16xf32, #tpu.memory_space<vmem>>, vector<1x80x16xf32>
    %46 = vector.shape_cast %45 : vector<1x80x16xf32> to vector<80x16xf32>
    %c6 = arith.constant 6 : index
    %c0_44 = arith.constant 0 : index
    %c0_45 = arith.constant 0 : index
    %47 = vector.load %arg2[%c6, %c0_44, %c0_45] : memref<16x16x8xf32, #tpu.memory_space<vmem>>, vector<1x16x8xf32>
    %48 = vector.shape_cast %47 : vector<1x16x8xf32> to vector<16x8xf32>
    %cst_46 = arith.constant dense<0.000000e+00> : vector<80x8xf32>
    %49 = tpu.matmul %46, %48, %cst_46 {dimension_numbers = #tpu.dot_dimension_numbers<[1], [0], [0], [1], [0, 0, 1, 1], [], []>} : vector<80x16xf32>, vector<16x8xf32>, vector<80x8xf32> -> vector<80x8xf32>
    %50 = arith.addf %44, %49 : vector<80x8xf32>
    %c0_47 = arith.constant 0 : index
    %c12 = arith.constant 12 : index
    %c0_48 = arith.constant 0 : index
    %51 = vector.load %arg1[%c0_47, %c12, %c0_48] : memref<1x102x16xf32, #tpu.memory_space<vmem>>, vector<1x80x16xf32>
    %52 = vector.shape_cast %51 : vector<1x80x16xf32> to vector<80x16xf32>
    %c7 = arith.constant 7 : index
    %c0_49 = arith.constant 0 : index
    %c0_50 = arith.constant 0 : index
    %53 = vector.load %arg2[%c7, %c0_49, %c0_50] : memref<16x16x8xf32, #tpu.memory_space<vmem>>, vector<1x16x8xf32>
    %54 = vector.shape_cast %53 : vector<1x16x8xf32> to vector<16x8xf32>
    %cst_51 = arith.constant dense<0.000000e+00> : vector<80x8xf32>
    %55 = tpu.matmul %52, %54, %cst_51 {dimension_numbers = #tpu.dot_dimension_numbers<[1], [0], [0], [1], [0, 0, 1, 1], [], []>} : vector<80x16xf32>, vector<16x8xf32>, vector<80x8xf32> -> vector<80x8xf32>
    %56 = arith.addf %50, %55 : vector<80x8xf32>
    %c0_52 = arith.constant 0 : index
    %c0_53 = arith.constant 0 : index
    %57 = vector.load %arg3[%c0_52, %c0_53] : memref<1x8xf32, #tpu.memory_space<vmem>>, vector<1x8xf32>
    %58 = vector.broadcast %57 : vector<1x8xf32> to vector<80x8xf32>
    %59 = arith.addf %56, %58 : vector<80x8xf32>
    %cst_54 = arith.constant 0.000000e+00 : f32
    %60 = vector.broadcast %cst_54 : f32 to vector<80x8xf32>
    %61 = arith.cmpf ogt, %59, %60 : vector<80x8xf32>
    %cst_55 = arith.constant 2.000000e-01 : f32
    %62 = vector.broadcast %cst_55 : f32 to vector<80x8xf32>
    %63 = arith.mulf %62, %59 : vector<80x8xf32>
    %64 = arith.select %61, %59, %63 : vector<80x8xi1>, vector<80x8xf32>
    %c0_56 = arith.constant 0 : index
    %c1_57 = arith.constant 1 : index
    %c0_58 = arith.constant 0 : index
    %c0_59 = arith.constant 0 : index
    %65 = vector.load %arg4[%c0_56, %c1_57, %c0_58, %c0_59] : memref<1x4x80x8xf32, #tpu.memory_space<vmem>>, vector<1x1x80x8xf32>
    %66 = vector.shape_cast %65 : vector<1x1x80x8xf32> to vector<80x8xf32>
    %67 = vector.shape_cast %64 : vector<80x8xf32> to vector<1x1x80x8xf32>
    tpu.vector_store %arg4[%c0_56, %c1_57, %c0_58, %c0_59], %67 {strides = array<i32>} : memref<1x4x80x8xf32, #tpu.memory_space<vmem>>, vector<1x1x80x8xf32>,
    %c0_60 = arith.constant 0 : index
    %c10_61 = arith.constant 10 : index
    %c0_62 = arith.constant 0 : index
    %68 = vector.load %arg1[%c0_60, %c10_61, %c0_62] : memref<1x102x16xf32, #tpu.memory_space<vmem>>, vector<1x80x16xf32>
    %69 = vector.shape_cast %68 : vector<1x80x16xf32> to vector<80x16xf32>
    %c8 = arith.constant 8 : index
    %c0_63 = arith.constant 0 : index
    %c0_64 = arith.constant 0 : index
    %70 = vector.load %arg2[%c8, %c0_63, %c0_64] : memref<16x16x8xf32, #tpu.memory_space<vmem>>, vector<1x16x8xf32>
    %71 = vector.shape_cast %70 : vector<1x16x8xf32> to vector<16x8xf32>
    %cst_65 = arith.constant dense<0.000000e+00> : vector<80x8xf32>
    %72 = tpu.matmul %69, %71, %cst_65 {dimension_numbers = #tpu.dot_dimension_numbers<[1], [0], [0], [1], [0, 0, 1, 1], [], []>} : vector<80x16xf32>, vector<16x8xf32>, vector<80x8xf32> -> vector<80x8xf32>
    %c0_66 = arith.constant 0 : index
    %c11_67 = arith.constant 11 : index
    %c0_68 = arith.constant 0 : index
    %73 = vector.load %arg1[%c0_66, %c11_67, %c0_68] : memref<1x102x16xf32, #tpu.memory_space<vmem>>, vector<1x80x16xf32>
    %74 = vector.shape_cast %73 : vector<1x80x16xf32> to vector<80x16xf32>
    %c9 = arith.constant 9 : index
    %c0_69 = arith.constant 0 : index
    %c0_70 = arith.constant 0 : index
    %75 = vector.load %arg2[%c9, %c0_69, %c0_70] : memref<16x16x8xf32, #tpu.memory_space<vmem>>, vector<1x16x8xf32>
    %76 = vector.shape_cast %75 : vector<1x16x8xf32> to vector<16x8xf32>
    %cst_71 = arith.constant dense<0.000000e+00> : vector<80x8xf32>
    %77 = tpu.matmul %74, %76, %cst_71 {dimension_numbers = #tpu.dot_dimension_numbers<[1], [0], [0], [1], [0, 0, 1, 1], [], []>} : vector<80x16xf32>, vector<16x8xf32>, vector<80x8xf32> -> vector<80x8xf32>
    %78 = arith.addf %72, %77 : vector<80x8xf32>
    %c0_72 = arith.constant 0 : index
    %c20 = arith.constant 20 : index
    %c0_73 = arith.constant 0 : index
    %79 = vector.load %arg1[%c0_72, %c20, %c0_73] : memref<1x102x16xf32, #tpu.memory_space<vmem>>, vector<1x80x16xf32>
    %80 = vector.shape_cast %79 : vector<1x80x16xf32> to vector<80x16xf32>
    %c10_74 = arith.constant 10 : index
    %c0_75 = arith.constant 0 : index
    %c0_76 = arith.constant 0 : index
    %81 = vector.load %arg2[%c10_74, %c0_75, %c0_76] : memref<16x16x8xf32, #tpu.memory_space<vmem>>, vector<1x16x8xf32>
    %82 = vector.shape_cast %81 : vector<1x16x8xf32> to vector<16x8xf32>
    %cst_77 = arith.constant dense<0.000000e+00> : vector<80x8xf32>
    %83 = tpu.matmul %80, %82, %cst_77 {dimension_numbers = #tpu.dot_dimension_numbers<[1], [0], [0], [1], [0, 0, 1, 1], [], []>} : vector<80x16xf32>, vector<16x8xf32>, vector<80x8xf32> -> vector<80x8xf32>
    %84 = arith.addf %78, %83 : vector<80x8xf32>
    %c0_78 = arith.constant 0 : index
    %c21 = arith.constant 21 : index
    %c0_79 = arith.constant 0 : index
    %85 = vector.load %arg1[%c0_78, %c21, %c0_79] : memref<1x102x16xf32, #tpu.memory_space<vmem>>, vector<1x80x16xf32>
    %86 = vector.shape_cast %85 : vector<1x80x16xf32> to vector<80x16xf32>
    %c11_80 = arith.constant 11 : index
    %c0_81 = arith.constant 0 : index
    %c0_82 = arith.constant 0 : index
    %87 = vector.load %arg2[%c11_80, %c0_81, %c0_82] : memref<16x16x8xf32, #tpu.memory_space<vmem>>, vector<1x16x8xf32>
    %88 = vector.shape_cast %87 : vector<1x16x8xf32> to vector<16x8xf32>
    %cst_83 = arith.constant dense<0.000000e+00> : vector<80x8xf32>
    %89 = tpu.matmul %86, %88, %cst_83 {dimension_numbers = #tpu.dot_dimension_numbers<[1], [0], [0], [1], [0, 0, 1, 1], [], []>} : vector<80x16xf32>, vector<16x8xf32>, vector<80x8xf32> -> vector<80x8xf32>
    %90 = arith.addf %84, %89 : vector<80x8xf32>
    %c0_84 = arith.constant 0 : index
    %c0_85 = arith.constant 0 : index
    %91 = vector.load %arg3[%c0_84, %c0_85] : memref<1x8xf32, #tpu.memory_space<vmem>>, vector<1x8xf32>
    %92 = vector.broadcast %91 : vector<1x8xf32> to vector<80x8xf32>
    %93 = arith.addf %90, %92 : vector<80x8xf32>
    %cst_86 = arith.constant 0.000000e+00 : f32
    %94 = vector.broadcast %cst_86 : f32 to vector<80x8xf32>
    %95 = arith.cmpf ogt, %93, %94 : vector<80x8xf32>
    %cst_87 = arith.constant 2.000000e-01 : f32
    %96 = vector.broadcast %cst_87 : f32 to vector<80x8xf32>
    %97 = arith.mulf %96, %93 : vector<80x8xf32>
    %98 = arith.select %95, %93, %97 : vector<80x8xi1>, vector<80x8xf32>
    %c0_88 = arith.constant 0 : index
    %c2_89 = arith.constant 2 : index
    %c0_90 = arith.constant 0 : index
    %c0_91 = arith.constant 0 : index
    %99 = vector.load %arg4[%c0_88, %c2_89, %c0_90, %c0_91] : memref<1x4x80x8xf32, #tpu.memory_space<vmem>>, vector<1x1x80x8xf32>
    %100 = vector.shape_cast %99 : vector<1x1x80x8xf32> to vector<80x8xf32>
    %101 = vector.shape_cast %98 : vector<80x8xf32> to vector<1x1x80x8xf32>
    tpu.vector_store %arg4[%c0_88, %c2_89, %c0_90, %c0_91], %101 {strides = array<i32>} : memref<1x4x80x8xf32, #tpu.memory_space<vmem>>, vector<1x1x80x8xf32>,
    %c0_92 = arith.constant 0 : index
    %c11_93 = arith.constant 11 : index
    %c0_94 = arith.constant 0 : index
    %102 = vector.load %arg1[%c0_92, %c11_93, %c0_94] : memref<1x102x16xf32, #tpu.memory_space<vmem>>, vector<1x80x16xf32>
    %103 = vector.shape_cast %102 : vector<1x80x16xf32> to vector<80x16xf32>
    %c12_95 = arith.constant 12 : index
    %c0_96 = arith.constant 0 : index
    %c0_97 = arith.constant 0 : index
    %104 = vector.load %arg2[%c12_95, %c0_96, %c0_97] : memref<16x16x8xf32, #tpu.memory_space<vmem>>, vector<1x16x8xf32>
    %105 = vector.shape_cast %104 : vector<1x16x8xf32> to vector<16x8xf32>
    %cst_98 = arith.constant dense<0.000000e+00> : vector<80x8xf32>
    %106 = tpu.matmul %103, %105, %cst_98 {dimension_numbers = #tpu.dot_dimension_numbers<[1], [0], [0], [1], [0, 0, 1, 1], [], []>} : vector<80x16xf32>, vector<16x8xf32>, vector<80x8xf32> -> vector<80x8xf32>
    %c0_99 = arith.constant 0 : index
    %c12_100 = arith.constant 12 : index
    %c0_101 = arith.constant 0 : index
    %107 = vector.load %arg1[%c0_99, %c12_100, %c0_101] : memref<1x102x16xf32, #tpu.memory_space<vmem>>, vector<1x80x16xf32>
    %108 = vector.shape_cast %107 : vector<1x80x16xf32> to vector<80x16xf32>
    %c13 = arith.constant 13 : index
    %c0_102 = arith.constant 0 : index
    %c0_103 = arith.constant 0 : index
    %109 = vector.load %arg2[%c13, %c0_102, %c0_103] : memref<16x16x8xf32, #tpu.memory_space<vmem>>, vector<1x16x8xf32>
    %110 = vector.shape_cast %109 : vector<1x16x8xf32> to vector<16x8xf32>
    %cst_104 = arith.constant dense<0.000000e+00> : vector<80x8xf32>
    %111 = tpu.matmul %108, %110, %cst_104 {dimension_numbers = #tpu.dot_dimension_numbers<[1], [0], [0], [1], [0, 0, 1, 1], [], []>} : vector<80x16xf32>, vector<16x8xf32>, vector<80x8xf32> -> vector<80x8xf32>
    %112 = arith.addf %106, %111 : vector<80x8xf32>
    %c0_105 = arith.constant 0 : index
    %c21_106 = arith.constant 21 : index
    %c0_107 = arith.constant 0 : index
    %113 = vector.load %arg1[%c0_105, %c21_106, %c0_107] : memref<1x102x16xf32, #tpu.memory_space<vmem>>, vector<1x80x16xf32>
    %114 = vector.shape_cast %113 : vector<1x80x16xf32> to vector<80x16xf32>
    %c14 = arith.constant 14 : index
    %c0_108 = arith.constant 0 : index
    %c0_109 = arith.constant 0 : index
    %115 = vector.load %arg2[%c14, %c0_108, %c0_109] : memref<16x16x8xf32, #tpu.memory_space<vmem>>, vector<1x16x8xf32>
    %116 = vector.shape_cast %115 : vector<1x16x8xf32> to vector<16x8xf32>
    %cst_110 = arith.constant dense<0.000000e+00> : vector<80x8xf32>
    %117 = tpu.matmul %114, %116, %cst_110 {dimension_numbers = #tpu.dot_dimension_numbers<[1], [0], [0], [1], [0, 0, 1, 1], [], []>} : vector<80x16xf32>, vector<16x8xf32>, vector<80x8xf32> -> vector<80x8xf32>
    %118 = arith.addf %112, %117 : vector<80x8xf32>
    %c0_111 = arith.constant 0 : index
    %c22 = arith.constant 22 : index
    %c0_112 = arith.constant 0 : index
    %119 = vector.load %arg1[%c0_111, %c22, %c0_112] : memref<1x102x16xf32, #tpu.memory_space<vmem>>, vector<1x80x16xf32>
    %120 = vector.shape_cast %119 : vector<1x80x16xf32> to vector<80x16xf32>
    %c15 = arith.constant 15 : index
    %c0_113 = arith.constant 0 : index
    %c0_114 = arith.constant 0 : index
    %121 = vector.load %arg2[%c15, %c0_113, %c0_114] : memref<16x16x8xf32, #tpu.memory_space<vmem>>, vector<1x16x8xf32>
    %122 = vector.shape_cast %121 : vector<1x16x8xf32> to vector<16x8xf32>
    %cst_115 = arith.constant dense<0.000000e+00> : vector<80x8xf32>
    %123 = tpu.matmul %120, %122, %cst_115 {dimension_numbers = #tpu.dot_dimension_numbers<[1], [0], [0], [1], [0, 0, 1, 1], [], []>} : vector<80x16xf32>, vector<16x8xf32>, vector<80x8xf32> -> vector<80x8xf32>
    %124 = arith.addf %118, %123 : vector<80x8xf32>
    %c0_116 = arith.constant 0 : index
    %c0_117 = arith.constant 0 : index
    %125 = vector.load %arg3[%c0_116, %c0_117] : memref<1x8xf32, #tpu.memory_space<vmem>>, vector<1x8xf32>
    %126 = vector.broadcast %125 : vector<1x8xf32> to vector<80x8xf32>
    %127 = arith.addf %124, %126 : vector<80x8xf32>
    %cst_118 = arith.constant 0.000000e+00 : f32
    %128 = vector.broadcast %cst_118 : f32 to vector<80x8xf32>
    %129 = arith.cmpf ogt, %127, %128 : vector<80x8xf32>
    %cst_119 = arith.constant 2.000000e-01 : f32
    %130 = vector.broadcast %cst_119 : f32 to vector<80x8xf32>
    %131 = arith.mulf %130, %127 : vector<80x8xf32>
    %132 = arith.select %129, %127, %131 : vector<80x8xi1>, vector<80x8xf32>
    %c0_120 = arith.constant 0 : index
    %c3_121 = arith.constant 3 : index
    %c0_122 = arith.constant 0 : index
    %c0_123 = arith.constant 0 : index
    %133 = vector.load %arg4[%c0_120, %c3_121, %c0_122, %c0_123] : memref<1x4x80x8xf32, #tpu.memory_space<vmem>>, vector<1x1x80x8xf32>
    %134 = vector.shape_cast %133 : vector<1x1x80x8xf32> to vector<80x8xf32>
    %135 = vector.shape_cast %132 : vector<80x8xf32> to vector<1x1x80x8xf32>
    tpu.vector_store %arg4[%c0_120, %c3_121, %c0_122, %c0_123], %135 {strides = array<i32>} : memref<1x4x80x8xf32, #tpu.memory_space<vmem>>, vector<1x1x80x8xf32>,
    return
  }
  func.func @transform_0(%arg0: i32) -> (i32, i32, i32) {
    %c0_i32 = arith.constant 0 : i32
    %c0_i32_0 = arith.constant 0 : i32
    %c0_i32_1 = arith.constant 0 : i32
    return %arg0, %c0_i32, %c0_i32_0 : i32, i32, i32
  }
  func.func @transform_1(%arg0: i32) -> (i32, i32, i32) {
    %c0_i32 = arith.constant 0 : i32
    %c0_i32_0 = arith.constant 0 : i32
    %c0_i32_1 = arith.constant 0 : i32
    %c0_i32_2 = arith.constant 0 : i32
    return %c0_i32, %c0_i32_0, %c0_i32_1 : i32, i32, i32
  }
  func.func @transform_2(%arg0: i32) -> (i32, i32) {
    %c0_i32 = arith.constant 0 : i32
    %c0_i32_0 = arith.constant 0 : i32
    %c0_i32_1 = arith.constant 0 : i32
    return %c0_i32, %c0_i32_0 : i32, i32
  }
  func.func @transform_3(%arg0: i32) -> (i32, i32, i32, i32) {
    %c0_i32 = arith.constant 0 : i32
    %c0_i32_0 = arith.constant 0 : i32
    %c0_i32_1 = arith.constant 0 : i32
    %c0_i32_2 = arith.constant 0 : i32
    return %arg0, %c0_i32, %c0_i32_0, %c0_i32_1 : i32, i32, i32, i32
  }
}

module attributes {stable_mosaic.version = 11 : i64} {
  func.func @_conv3x3_kernel(%arg0: i32, %arg1: memref<1x326x8xf32, #tpu.memory_space<vmem>>, %arg2: memref<9x8x8xf32, #tpu.memory_space<vmem>>, %arg3: memref<1x8xf32, #tpu.memory_space<vmem>>, %arg4: memref<1x288x8xf32, #tpu.memory_space<vmem>>) attributes {dimension_semantics = [#tpu.dimension_semantics<parallel>], iteration_bounds = array<i64: 4>, scalar_prefetch = 0 : i64, scratch_operands = 0 : i64, tpu.core_type = #tpu.core_type<tc>, window_params = [{transform_indices = @transform_0, window_bounds = array<i64: 1, 326, 8>}, {pipeline_mode = #tpu.pipeline_mode<synchronous>, transform_indices = @transform_1, window_bounds = array<i64: 9, 8, 8>}, {pipeline_mode = #tpu.pipeline_mode<synchronous>, transform_indices = @transform_2, window_bounds = array<i64: 1, 8>}, {transform_indices = @transform_3, window_bounds = array<i64: 1, 288, 8>}]} {
    %c0 = arith.constant 0 : index
    %c0_0 = arith.constant 0 : index
    %c0_1 = arith.constant 0 : index
    %0 = vector.load %arg1[%c0, %c0_0, %c0_1] : memref<1x326x8xf32, #tpu.memory_space<vmem>>, vector<1x288x8xf32>
    %1 = vector.shape_cast %0 : vector<1x288x8xf32> to vector<288x8xf32>
    %c0_2 = arith.constant 0 : index
    %c0_3 = arith.constant 0 : index
    %c0_4 = arith.constant 0 : index
    %2 = vector.load %arg2[%c0_2, %c0_3, %c0_4] : memref<9x8x8xf32, #tpu.memory_space<vmem>>, vector<1x8x8xf32>
    %3 = vector.shape_cast %2 : vector<1x8x8xf32> to vector<8x8xf32>
    %cst = arith.constant dense<0.000000e+00> : vector<288x8xf32>
    %4 = tpu.matmul %1, %3, %cst {dimension_numbers = #tpu.dot_dimension_numbers<[1], [0], [0], [1], [0, 0, 1, 1], [], []>} : vector<288x8xf32>, vector<8x8xf32>, vector<288x8xf32> -> vector<288x8xf32>
    %c0_5 = arith.constant 0 : index
    %c1 = arith.constant 1 : index
    %c0_6 = arith.constant 0 : index
    %5 = vector.load %arg1[%c0_5, %c1, %c0_6] : memref<1x326x8xf32, #tpu.memory_space<vmem>>, vector<1x288x8xf32>
    %6 = vector.shape_cast %5 : vector<1x288x8xf32> to vector<288x8xf32>
    %c1_7 = arith.constant 1 : index
    %c0_8 = arith.constant 0 : index
    %c0_9 = arith.constant 0 : index
    %7 = vector.load %arg2[%c1_7, %c0_8, %c0_9] : memref<9x8x8xf32, #tpu.memory_space<vmem>>, vector<1x8x8xf32>
    %8 = vector.shape_cast %7 : vector<1x8x8xf32> to vector<8x8xf32>
    %cst_10 = arith.constant dense<0.000000e+00> : vector<288x8xf32>
    %9 = tpu.matmul %6, %8, %cst_10 {dimension_numbers = #tpu.dot_dimension_numbers<[1], [0], [0], [1], [0, 0, 1, 1], [], []>} : vector<288x8xf32>, vector<8x8xf32>, vector<288x8xf32> -> vector<288x8xf32>
    %10 = arith.addf %4, %9 : vector<288x8xf32>
    %c0_11 = arith.constant 0 : index
    %c2 = arith.constant 2 : index
    %c0_12 = arith.constant 0 : index
    %11 = vector.load %arg1[%c0_11, %c2, %c0_12] : memref<1x326x8xf32, #tpu.memory_space<vmem>>, vector<1x288x8xf32>
    %12 = vector.shape_cast %11 : vector<1x288x8xf32> to vector<288x8xf32>
    %c2_13 = arith.constant 2 : index
    %c0_14 = arith.constant 0 : index
    %c0_15 = arith.constant 0 : index
    %13 = vector.load %arg2[%c2_13, %c0_14, %c0_15] : memref<9x8x8xf32, #tpu.memory_space<vmem>>, vector<1x8x8xf32>
    %14 = vector.shape_cast %13 : vector<1x8x8xf32> to vector<8x8xf32>
    %cst_16 = arith.constant dense<0.000000e+00> : vector<288x8xf32>
    %15 = tpu.matmul %12, %14, %cst_16 {dimension_numbers = #tpu.dot_dimension_numbers<[1], [0], [0], [1], [0, 0, 1, 1], [], []>} : vector<288x8xf32>, vector<8x8xf32>, vector<288x8xf32> -> vector<288x8xf32>
    %16 = arith.addf %10, %15 : vector<288x8xf32>
    %c0_17 = arith.constant 0 : index
    %c18 = arith.constant 18 : index
    %c0_18 = arith.constant 0 : index
    %17 = vector.load %arg1[%c0_17, %c18, %c0_18] : memref<1x326x8xf32, #tpu.memory_space<vmem>>, vector<1x288x8xf32>
    %18 = vector.shape_cast %17 : vector<1x288x8xf32> to vector<288x8xf32>
    %c3 = arith.constant 3 : index
    %c0_19 = arith.constant 0 : index
    %c0_20 = arith.constant 0 : index
    %19 = vector.load %arg2[%c3, %c0_19, %c0_20] : memref<9x8x8xf32, #tpu.memory_space<vmem>>, vector<1x8x8xf32>
    %20 = vector.shape_cast %19 : vector<1x8x8xf32> to vector<8x8xf32>
    %cst_21 = arith.constant dense<0.000000e+00> : vector<288x8xf32>
    %21 = tpu.matmul %18, %20, %cst_21 {dimension_numbers = #tpu.dot_dimension_numbers<[1], [0], [0], [1], [0, 0, 1, 1], [], []>} : vector<288x8xf32>, vector<8x8xf32>, vector<288x8xf32> -> vector<288x8xf32>
    %22 = arith.addf %16, %21 : vector<288x8xf32>
    %c0_22 = arith.constant 0 : index
    %c19 = arith.constant 19 : index
    %c0_23 = arith.constant 0 : index
    %23 = vector.load %arg1[%c0_22, %c19, %c0_23] : memref<1x326x8xf32, #tpu.memory_space<vmem>>, vector<1x288x8xf32>
    %24 = vector.shape_cast %23 : vector<1x288x8xf32> to vector<288x8xf32>
    %c4 = arith.constant 4 : index
    %c0_24 = arith.constant 0 : index
    %c0_25 = arith.constant 0 : index
    %25 = vector.load %arg2[%c4, %c0_24, %c0_25] : memref<9x8x8xf32, #tpu.memory_space<vmem>>, vector<1x8x8xf32>
    %26 = vector.shape_cast %25 : vector<1x8x8xf32> to vector<8x8xf32>
    %cst_26 = arith.constant dense<0.000000e+00> : vector<288x8xf32>
    %27 = tpu.matmul %24, %26, %cst_26 {dimension_numbers = #tpu.dot_dimension_numbers<[1], [0], [0], [1], [0, 0, 1, 1], [], []>} : vector<288x8xf32>, vector<8x8xf32>, vector<288x8xf32> -> vector<288x8xf32>
    %28 = arith.addf %22, %27 : vector<288x8xf32>
    %c0_27 = arith.constant 0 : index
    %c20 = arith.constant 20 : index
    %c0_28 = arith.constant 0 : index
    %29 = vector.load %arg1[%c0_27, %c20, %c0_28] : memref<1x326x8xf32, #tpu.memory_space<vmem>>, vector<1x288x8xf32>
    %30 = vector.shape_cast %29 : vector<1x288x8xf32> to vector<288x8xf32>
    %c5 = arith.constant 5 : index
    %c0_29 = arith.constant 0 : index
    %c0_30 = arith.constant 0 : index
    %31 = vector.load %arg2[%c5, %c0_29, %c0_30] : memref<9x8x8xf32, #tpu.memory_space<vmem>>, vector<1x8x8xf32>
    %32 = vector.shape_cast %31 : vector<1x8x8xf32> to vector<8x8xf32>
    %cst_31 = arith.constant dense<0.000000e+00> : vector<288x8xf32>
    %33 = tpu.matmul %30, %32, %cst_31 {dimension_numbers = #tpu.dot_dimension_numbers<[1], [0], [0], [1], [0, 0, 1, 1], [], []>} : vector<288x8xf32>, vector<8x8xf32>, vector<288x8xf32> -> vector<288x8xf32>
    %34 = arith.addf %28, %33 : vector<288x8xf32>
    %c0_32 = arith.constant 0 : index
    %c36 = arith.constant 36 : index
    %c0_33 = arith.constant 0 : index
    %35 = vector.load %arg1[%c0_32, %c36, %c0_33] : memref<1x326x8xf32, #tpu.memory_space<vmem>>, vector<1x288x8xf32>
    %36 = vector.shape_cast %35 : vector<1x288x8xf32> to vector<288x8xf32>
    %c6 = arith.constant 6 : index
    %c0_34 = arith.constant 0 : index
    %c0_35 = arith.constant 0 : index
    %37 = vector.load %arg2[%c6, %c0_34, %c0_35] : memref<9x8x8xf32, #tpu.memory_space<vmem>>, vector<1x8x8xf32>
    %38 = vector.shape_cast %37 : vector<1x8x8xf32> to vector<8x8xf32>
    %cst_36 = arith.constant dense<0.000000e+00> : vector<288x8xf32>
    %39 = tpu.matmul %36, %38, %cst_36 {dimension_numbers = #tpu.dot_dimension_numbers<[1], [0], [0], [1], [0, 0, 1, 1], [], []>} : vector<288x8xf32>, vector<8x8xf32>, vector<288x8xf32> -> vector<288x8xf32>
    %40 = arith.addf %34, %39 : vector<288x8xf32>
    %c0_37 = arith.constant 0 : index
    %c37 = arith.constant 37 : index
    %c0_38 = arith.constant 0 : index
    %41 = vector.load %arg1[%c0_37, %c37, %c0_38] : memref<1x326x8xf32, #tpu.memory_space<vmem>>, vector<1x288x8xf32>
    %42 = vector.shape_cast %41 : vector<1x288x8xf32> to vector<288x8xf32>
    %c7 = arith.constant 7 : index
    %c0_39 = arith.constant 0 : index
    %c0_40 = arith.constant 0 : index
    %43 = vector.load %arg2[%c7, %c0_39, %c0_40] : memref<9x8x8xf32, #tpu.memory_space<vmem>>, vector<1x8x8xf32>
    %44 = vector.shape_cast %43 : vector<1x8x8xf32> to vector<8x8xf32>
    %cst_41 = arith.constant dense<0.000000e+00> : vector<288x8xf32>
    %45 = tpu.matmul %42, %44, %cst_41 {dimension_numbers = #tpu.dot_dimension_numbers<[1], [0], [0], [1], [0, 0, 1, 1], [], []>} : vector<288x8xf32>, vector<8x8xf32>, vector<288x8xf32> -> vector<288x8xf32>
    %46 = arith.addf %40, %45 : vector<288x8xf32>
    %c0_42 = arith.constant 0 : index
    %c38 = arith.constant 38 : index
    %c0_43 = arith.constant 0 : index
    %47 = vector.load %arg1[%c0_42, %c38, %c0_43] : memref<1x326x8xf32, #tpu.memory_space<vmem>>, vector<1x288x8xf32>
    %48 = vector.shape_cast %47 : vector<1x288x8xf32> to vector<288x8xf32>
    %c8 = arith.constant 8 : index
    %c0_44 = arith.constant 0 : index
    %c0_45 = arith.constant 0 : index
    %49 = vector.load %arg2[%c8, %c0_44, %c0_45] : memref<9x8x8xf32, #tpu.memory_space<vmem>>, vector<1x8x8xf32>
    %50 = vector.shape_cast %49 : vector<1x8x8xf32> to vector<8x8xf32>
    %cst_46 = arith.constant dense<0.000000e+00> : vector<288x8xf32>
    %51 = tpu.matmul %48, %50, %cst_46 {dimension_numbers = #tpu.dot_dimension_numbers<[1], [0], [0], [1], [0, 0, 1, 1], [], []>} : vector<288x8xf32>, vector<8x8xf32>, vector<288x8xf32> -> vector<288x8xf32>
    %52 = arith.addf %46, %51 : vector<288x8xf32>
    %c0_47 = arith.constant 0 : index
    %c0_48 = arith.constant 0 : index
    %53 = vector.load %arg3[%c0_47, %c0_48] : memref<1x8xf32, #tpu.memory_space<vmem>>, vector<1x8xf32>
    %54 = vector.broadcast %53 : vector<1x8xf32> to vector<288x8xf32>
    %55 = arith.addf %52, %54 : vector<288x8xf32>
    %cst_49 = arith.constant 0.000000e+00 : f32
    %56 = vector.broadcast %cst_49 : f32 to vector<288x8xf32>
    %57 = arith.cmpf ogt, %55, %56 : vector<288x8xf32>
    %cst_50 = arith.constant 2.000000e-01 : f32
    %58 = vector.broadcast %cst_50 : f32 to vector<288x8xf32>
    %59 = arith.mulf %58, %55 : vector<288x8xf32>
    %60 = arith.select %57, %55, %59 : vector<288x8xi1>, vector<288x8xf32>
    %c0_51 = arith.constant 0 : index
    %c0_52 = arith.constant 0 : index
    %c0_53 = arith.constant 0 : index
    %61 = vector.load %arg4[%c0_51, %c0_52, %c0_53] : memref<1x288x8xf32, #tpu.memory_space<vmem>>, vector<1x288x8xf32>
    %62 = vector.shape_cast %61 : vector<1x288x8xf32> to vector<288x8xf32>
    %63 = vector.shape_cast %60 : vector<288x8xf32> to vector<1x288x8xf32>
    tpu.vector_store %arg4[%c0_51, %c0_52, %c0_53], %63 {strides = array<i32>} : memref<1x288x8xf32, #tpu.memory_space<vmem>>, vector<1x288x8xf32>,
    return
  }
  func.func @transform_0(%arg0: i32) -> (i32, i32, i32) {
    %c0_i32 = arith.constant 0 : i32
    %c0_i32_0 = arith.constant 0 : i32
    %c0_i32_1 = arith.constant 0 : i32
    return %arg0, %c0_i32, %c0_i32_0 : i32, i32, i32
  }
  func.func @transform_1(%arg0: i32) -> (i32, i32, i32) {
    %c0_i32 = arith.constant 0 : i32
    %c0_i32_0 = arith.constant 0 : i32
    %c0_i32_1 = arith.constant 0 : i32
    %c0_i32_2 = arith.constant 0 : i32
    return %c0_i32, %c0_i32_0, %c0_i32_1 : i32, i32, i32
  }
  func.func @transform_2(%arg0: i32) -> (i32, i32) {
    %c0_i32 = arith.constant 0 : i32
    %c0_i32_0 = arith.constant 0 : i32
    %c0_i32_1 = arith.constant 0 : i32
    return %c0_i32, %c0_i32_0 : i32, i32
  }
  func.func @transform_3(%arg0: i32) -> (i32, i32, i32) {
    %c0_i32 = arith.constant 0 : i32
    %c0_i32_0 = arith.constant 0 : i32
    %c0_i32_1 = arith.constant 0 : i32
    return %arg0, %c0_i32, %c0_i32_0 : i32, i32, i32
  }
}

module attributes {stable_mosaic.version = 11 : i64} {
  func.func @_conv1x1_kernel(%arg0: i32, %arg1: memref<1x256x8xf32, #tpu.memory_space<vmem>>, %arg2: memref<8x3xf32, #tpu.memory_space<vmem>>, %arg3: memref<1x3xf32, #tpu.memory_space<vmem>>, %arg4: memref<1x256x3xf32, #tpu.memory_space<vmem>>) attributes {dimension_semantics = [#tpu.dimension_semantics<parallel>], iteration_bounds = array<i64: 4>, scalar_prefetch = 0 : i64, scratch_operands = 0 : i64, tpu.core_type = #tpu.core_type<tc>, window_params = [{transform_indices = @transform_0, window_bounds = array<i64: 1, 256, 8>}, {pipeline_mode = #tpu.pipeline_mode<synchronous>, transform_indices = @transform_1, window_bounds = array<i64: 8, 3>}, {pipeline_mode = #tpu.pipeline_mode<synchronous>, transform_indices = @transform_2, window_bounds = array<i64: 1, 3>}, {transform_indices = @transform_3, window_bounds = array<i64: 1, 256, 3>}]} {
    %c0 = arith.constant 0 : index
    %c0_0 = arith.constant 0 : index
    %c0_1 = arith.constant 0 : index
    %0 = vector.load %arg1[%c0, %c0_0, %c0_1] : memref<1x256x8xf32, #tpu.memory_space<vmem>>, vector<1x256x8xf32>
    %1 = vector.shape_cast %0 : vector<1x256x8xf32> to vector<256x8xf32>
    %c0_2 = arith.constant 0 : index
    %c0_3 = arith.constant 0 : index
    %2 = vector.load %arg2[%c0_2, %c0_3] : memref<8x3xf32, #tpu.memory_space<vmem>>, vector<8x3xf32>
    %cst = arith.constant dense<0.000000e+00> : vector<256x3xf32>
    %3 = tpu.matmul %1, %2, %cst {dimension_numbers = #tpu.dot_dimension_numbers<[1], [0], [0], [1], [0, 0, 1, 1], [], []>} : vector<256x8xf32>, vector<8x3xf32>, vector<256x3xf32> -> vector<256x3xf32>
    %c0_4 = arith.constant 0 : index
    %c0_5 = arith.constant 0 : index
    %4 = vector.load %arg3[%c0_4, %c0_5] : memref<1x3xf32, #tpu.memory_space<vmem>>, vector<1x3xf32>
    %5 = vector.broadcast %4 : vector<1x3xf32> to vector<256x3xf32>
    %6 = arith.addf %3, %5 : vector<256x3xf32>
    %c0_6 = arith.constant 0 : index
    %c0_7 = arith.constant 0 : index
    %c0_8 = arith.constant 0 : index
    %7 = vector.load %arg4[%c0_6, %c0_7, %c0_8] : memref<1x256x3xf32, #tpu.memory_space<vmem>>, vector<1x256x3xf32>
    %8 = vector.shape_cast %7 : vector<1x256x3xf32> to vector<256x3xf32>
    %9 = vector.shape_cast %6 : vector<256x3xf32> to vector<1x256x3xf32>
    tpu.vector_store %arg4[%c0_6, %c0_7, %c0_8], %9 {strides = array<i32>} : memref<1x256x3xf32, #tpu.memory_space<vmem>>, vector<1x256x3xf32>,
    return
  }
  func.func @transform_0(%arg0: i32) -> (i32, i32, i32) {
    %c0_i32 = arith.constant 0 : i32
    %c0_i32_0 = arith.constant 0 : i32
    %c0_i32_1 = arith.constant 0 : i32
    return %arg0, %c0_i32, %c0_i32_0 : i32, i32, i32
  }
  func.func @transform_1(%arg0: i32) -> (i32, i32) {
    %c0_i32 = arith.constant 0 : i32
    %c0_i32_0 = arith.constant 0 : i32
    %c0_i32_1 = arith.constant 0 : i32
    return %c0_i32, %c0_i32_0 : i32, i32
  }
  func.func @transform_2(%arg0: i32) -> (i32, i32) {
    %c0_i32 = arith.constant 0 : i32
    %c0_i32_0 = arith.constant 0 : i32
    %c0_i32_1 = arith.constant 0 : i32
    return %c0_i32, %c0_i32_0 : i32, i32
  }
  func.func @transform_3(%arg0: i32) -> (i32, i32, i32) {
    %c0_i32 = arith.constant 0 : i32
    %c0_i32_0 = arith.constant 0 : i32
    %c0_i32_1 = arith.constant 0 : i32
    return %arg0, %c0_i32, %c0_i32_0 : i32, i32, i32
  }
}

</mosaic_0001>

<bundles_post_ra>
// kernel: tile.8
= control target key start
LH: loop header
LB: loop body
LE: loop exit
PB: predicated region body
PF: predicated region fallthrough
CT: control target
= control target key end

     0   :  { %s22_s0 = inlined_call_operand.vmem [shape: f32[4], index: 0, kind: input, shape index: {}]   ;;  %s23_s1 = inlined_call_operand.vmem [shape: f32[4,4], index: 1, kind: output, shape index: {}]  }
   0x1   :  { %v4_v0 = vld [vmem:[%s22_s0] ss:$0 sm:$0xff] }
   0x2   :  { %5 = vst [vmem:[%s23_s1] sm:$0xf] %v4_v0 }

// kernel: keyp_to_images_decoder_no_first.6
= control target key start
LH: loop header
LB: loop body
LE: loop exit
PB: predicated region body
PF: predicated region fallthrough
CT: control target
= control target key end

     0   :  { %s494_s21 = smov 0   ;;  %s539_s0 = inlined_call_operand.vmem [shape: f32[4,3,6], index: 0, kind: input, shape index: {}]   ;;  %s540_s1 = inlined_call_operand.vmem [shape: f32[16,1], index: 1, kind: input, shape index: {}]   ;;  %s541_s2 = inlined_call_operand.vmem [shape: f32[16,1], index: 2, kind: input, shape index: {}]   ;;  %s542_s3 = inlined_call_operand.vmem [shape: f32[6,32], index: 3, kind: input, shape index: {}]   ;;  %s543_s4 = inlined_call_operand.vmem [shape: f32[2,32], index: 4, kind: input, shape index: {}]   ;;  %s544_s5 = inlined_call_operand.vmem [shape: f32[1,32], index: 5, kind: input, shape index: {}]   ;;  %s545_s6 = inlined_call_operand.vmem [shape: f32[4,16,32], index: 6, kind: output, shape index: {}]  }
   0x1 LB: > { %s414_s22 = sadd.s32 4294967295, %s456_s21   ;;  %p418_p0 = scmp.ge.s32.totalorder %s456_s21, 1  ;;  %s456_s21 = sphi %s494_s21, %s16_s21  }
   0x2   : > { %p211_p1 = scmp.lt.s32.totalorder %s456_s21, 5 }
   0x4   : > { %p212_p2 = pnand %p418_p0, %p211_p1 }
   0x5   : > { %p240_p3 = scmp.lt.s32.totalorder (!%p212_p2), %s414_s22, 3 }
   0x6   : > { %215 = sbr.rel (%p212_p2) target bundleno = 293 (0x125), region = 44 }
   0xb   : > { %v267_v0 = vld [vmem:[%s541_s2] sm:$0xff]  ;;  %v458_v2 = vmov 0   ;;  %s547_s22 = smov (!%p240_p3, %s414_s22), 3  ;;  %v268_v3 = vld [vmem:[%s541_s2 + $0x8] sm:$0xff]  ;;  %vm311_vm0 = vcmask 1045504   ;;  %vm304_vm1 = vcmask 48128  }
   0xc   : > { %v252_v1 = vld [vmem:[%s540_s1] sm:$0xff]  ;;  %439 = vset.pattern.permute.xlu1 %v458_v2  ;;  %438 = vset.pattern.permute.xlu0 %v458_v2  ;;  %s419_s27 = sshll.u32 %s547_s22, 2  ;;  %v253_v4 = vld [vmem:[%s540_s1 + $0x8] sm:$0xff]  ;;  %s427_s19 = sshll.u32 %s547_s22, 4  ;;  %vm356_vm3 = vcmask 261120  }
   0xd   : > { %271 = vperm.xlu1 %439, %v267_v0   ;;  %256 = vperm.xlu0 %438, %v252_v1   ;;  %s243_s30 = scalar_lea.vmem %s539_s0, %s419_s27  ;;  %v299_v5 = vld [vmem:[%s542_s3] sm:$0x3f]  ;;  %s248_s24 = scalar_lea.vmem %s545_s6, %s427_s19 }
   0xe   : > { %422 = vmatpush.msk.msra.mxu0 %vm311_vm0, %v299_v5  ;;  %428 = vmatpush.msk.msra.mxu1 %vm311_vm0, %v299_v5  ;;  %v441_v6 = vld [vmem:[%s243_s30 + $0x1] ss:$0 sm:$0xff]  ;;  %v443_v7 = vld [vmem:[%s243_s30] ss:$0 sm:$0xff]  ;;  %v444_v26 = vld [vmem:[%s243_s30 + $0x2] ss:$0 sm:$0xff] }
   0xf   : > { %v442_v33 = vld [vmem:[%s543_s4] ss:$0 sm:$0xff]  ;;  %v440_v34 = vld [vmem:[%s543_s4 + $0x1] ss:$0 sm:$0xff] }
  0x10   : > { %v445_v39 = vld [vmem:[%s544_s5] ss:$0 sm:$0xff] }
  0x15   : > { %276 = vperm.xlu1 %439, %v268_v3   ;;  %261 = vperm.xlu0 %438, %v253_v4  }
  0x7f   : > { %v272_v8 = vpop.permute.xlu1 %271  ;;  %v257_v9 = vpop.permute.xlu0 %256 }
  0x80   : > { %v280_v10 = vsub.f32 %v272_v8, %v441_v6  ;;  %v265_v11 = vsub.f32 %v257_v9, %v443_v7  ;;  %v302_v35 = vmul.f32 %v442_v33, %v257_v9  ;;  %v340_v37 = vmul.f32 %v440_v34, %v272_v8 }
  0x82   : > { %v284_v12 = vmul.f32 %v280_v10, %v280_v10  ;;  %v282_v13 = vmul.f32 %v265_v11, %v265_v11 }
  0x84   : > { %v286_v14 = vadd.f32 %v284_v12, %v282_v13 }
  0x86   : > { %v288_v15 = vsub.f32 0.0, %v286_v14 }
  0x87   : > { %v277_v16 = vpop.permute.xlu1 %276  ;;  %v262_v17 = vpop.permute.xlu0 %261 }
  0x88   : > { %v290_v18 = vmul.f32 3.5555556, %v288_v15  ;;  %v281_v19 = vsub.f32 %v277_v16, %v441_v6  ;;  %v266_v20 = vsub.f32 %v262_v17, %v443_v7  ;;  %v303_v42 = vmul.f32 %v442_v33, %v262_v17 }
  0x89   : > { %v341_v45 = vmul.f32 %v440_v34, %v277_v16 }
  0x8a   : > { %v292_v21 = vmul.f32 1.442695, %v290_v18  ;;  %v285_v22 = vmul.f32 %v281_v19, %v281_v19  ;;  %v283_v23 = vmul.f32 %v266_v20, %v266_v20 }
  0x8c   : > { %446 = vpow2.f32 %v292_v21  ;;  %v287_v24 = vadd.f32 %v285_v22, %v283_v23 }
  0x8e   : > { %v289_v25 = vsub.f32 0.0, %v287_v24 }
  0x90   : > { %v291_v27 = vmul.f32 3.5555556, %v289_v25 }
  0x92   : > { %v447_v28 = vpop.eup %446  ;;  %v294_v29 = vmul.f32 1.442695, %v291_v27 }
  0x93   : > { %v297_v30 = vmul.f32 %v447_v28, %v444_v26 }
  0x94   : > { %448 = vpow2.f32 %v294_v29 }
  0x95   : > { %423 = vmatmul.msk.f32.vlgmr.msra.gmra.mxu0 %vm304_vm1, %v297_v30 }
  0x9a   : > { %v449_v31 = vpop.eup %448 }
  0x9b   : > { %v298_v32 = vmul.f32 %v449_v31, %v444_v26 }
  0x9d   : > { %424 = vmatmul.msk.f32.vlgmr.msra.gmra.mxu1 %vm304_vm1, %v298_v32 }
 0x112   : > { %v332_v36 = vpop.f32.mrf.mxu0 }
 0x113   : > { %v333_v38 = vadd.f32 %v332_v36, %v302_v35 }
 0x115   : > { %v342_v40 = vadd.f32 %v340_v37, %v333_v38 }
 0x117   : > { %v348_v41 = vadd.f32 %v445_v39, %v342_v40 }
 0x119   : > { %vm350_vm2 = vcmp.gt.f32.partialorder %v348_v41, 0.0  ;;  %v352_v43 = vmul.f32 0.2, %v348_v41 }
 0x11a   : > { %v335_v44 = vpop.f32.mrf.mxu1 }
 0x11b   : > { %v354_v46 = vsel %vm350_vm2, %v348_v41, %v352_v43  ;;  %v336_v47 = vadd.f32 %v335_v44, %v303_v42 }
 0x11c   : > { %357 = vst.msk [vmem:[%s248_s24] sm:$0xff] %vm356_vm3, %v354_v46 }
 0x11d   : > { %v343_v48 = vadd.f32 %v341_v45, %v336_v47 }
 0x11f   : > { %v349_v49 = vadd.f32 %v445_v39, %v343_v48 }
 0x121   : > { %vm351_vm4 = vcmp.gt.f32.partialorder %v349_v49, 0.0  ;;  %v353_v50 = vmul.f32 0.2, %v349_v49 }
 0x123   : > { %v355_v51 = vsel %vm351_vm4, %v349_v49, %v353_v50 }
 0x124   : > { %358 = vst.msk [vmem:[%s248_s24 + $0x8] sm:$0xff] %vm356_vm3, %v355_v51 }
 0x125 PF: > { %s16_s21 = sadd.s32 1, %s456_s21  }
 0x126   : > { %p13_p4 = scmp.ge.s32.totalorder %s16_s21, 6  }
 0x128   :  { %15 = sbr.rel (!%p13_p4) target bundleno = 1 (0x1), region = 74 }

// kernel: keyp_to_images_decoder_no_first.7
= control target key start
LH: loop header
LB: loop body
LE: loop exit
PB: predicated region body
PF: predicated region fallthrough
CT: control target
= control target key end

     0   :  { %s1186_s12 = smov 0   ;;  %s1564_s0 = inlined_call_operand.vmem [shape: f32[4,38,32], index: 0, kind: input, shape index: {}]   ;;  %s1565_s1 = inlined_call_operand.vmem [shape: f32[16,32,16], index: 1, kind: input, shape index: {}]   ;;  %s1566_s2 = inlined_call_operand.vmem [shape: f32[1,16], index: 2, kind: input, shape index: {}]   ;;  %s1567_s3 = inlined_call_operand.vmem [shape: f32[4,4,24,16], index: 3, kind: output, shape index: {}]  }
   0x1 LB: > { %s1018_s13 = sadd.s32 4294967295, %s1164_s12   ;;  %p1022_p0 = scmp.ge.s32.totalorder %s1164_s12, 1  ;;  %s1164_s12 = sphi %s1186_s12, %s13_s12  }
   0x2   : > { %p137_p1 = scmp.lt.s32.totalorder %s1164_s12, 5 }
   0x4   : > { %p138_p2 = pnand %p1022_p0, %p137_p1 }
   0x5   : > { %p161_p3 = scmp.lt.s32.totalorder (!%p138_p2), %s1018_s13, 3 }
   0x6   : > { %141 = sbr.rel (%p138_p2) target bundleno = 250 (0xfa), region = 32 }
   0xb   : > { %v1038_v0 = vld [vmem:[%s1565_s1 + $0x58] sm:$0xff]  ;;  %v1037_v1 = vld [vmem:[%s1565_s1 + $0x50] sm:$0xff]  ;;  %v1036_v5 = vld [vmem:[%s1565_s1 + $0x48] sm:$0xff]  ;;  %s1569_s13 = smov (!%p161_p3, %s1018_s13), 3  ;;  %vm186_vm0 = vcmask 261120   ;;  %vm365_vm2 = vcmask 130048  }
   0xc   : > { %v1045_v2 = vld [vmem:[%s1565_s1 + $0x78] sm:$0xff]  ;;  %286 = vmatpush.msra.mxu2 %v1038_v0  ;;  %v1044_v6 = vld [vmem:[%s1565_s1 + $0x70] sm:$0xff]  ;;  %v1035_v9 = vld [vmem:[%s1565_s1 + $0x40] sm:$0xff]  ;;  %s1144_s9 = smul.u32 40, %s1569_s13 }
   0xd   : > { %332 = vmatpush.msra.mxu3 %v1045_v2  ;;  %v1028_v3 = vld [vmem:[%s1565_s1 + $0x38] sm:$0xff]  ;;  %v1027_v7 = vld [vmem:[%s1565_s1 + $0x30] sm:$0xff]  ;;  %v1043_v10 = vld [vmem:[%s1565_s1 + $0x68] sm:$0xff] }
   0xe   : > { %v177_v4 = vld [vmem:[%s1565_s1 + $0x18] sm:$0xff]  ;;  %208 = vmatpush.msra.mxu0 %v1028_v3  ;;  %v176_v8 = vld [vmem:[%s1565_s1 + $0x10] sm:$0xff]  ;;  %287 = vmatpush.msra.mxu2 %v1037_v1  ;;  %v1026_v11 = vld [vmem:[%s1565_s1 + $0x28] sm:$0xff]  ;;  %s1242_s20 = scalar_lea.vmem %s1564_s0, %s1144_s9 }
   0xf   : > { %243 = vmatpush.msra.mxu1 %v177_v4  ;;  %333 = vmatpush.msra.mxu3 %v1044_v6  ;;  %v175_v12 = vld [vmem:[%s1565_s1 + $0x8] sm:$0xff]  ;;  %v1042_v13 = vld [vmem:[%s1565_s1 + $0x60] sm:$0xff]  ;;  %v1066_v14 = vld [vmem:[%s1565_s1 + $0xd8] sm:$0xff] }
  0x10   : > { %209 = vmatpush.msra.mxu0 %v1027_v7  ;;  %288 = vmatpush.msra.mxu2 %v1036_v5  ;;  %v1073_v15 = vld [vmem:[%s1565_s1 + $0xf8] sm:$0xff]  ;;  %v1025_v16 = vld [vmem:[%s1565_s1 + $0x20] sm:$0xff]  ;;  %v1065_v24 = vld [vmem:[%s1565_s1 + $0xd0] sm:$0xff] }
  0x11   : > { %244 = vmatpush.msra.mxu1 %v176_v8  ;;  %334 = vmatpush.msra.mxu3 %v1043_v10  ;;  %v1254_v17 = vld [vmem:[%s1242_s20 + $0x6] sm:$0xff]  ;;  %v1056_v22 = vld [vmem:[%s1565_s1 + $0xb8] sm:$0xff]  ;;  %v1072_v25 = vld [vmem:[%s1565_s1 + $0xf0] sm:$0xff] }
  0x12   : > { %210 = vmatpush.msra.mxu0 %v1026_v11  ;;  %289 = vmatpush.msra.mxu2 %v1035_v9  ;;  %v1257_v18 = vld [vmem:[%s1242_s20 + $0x7] sm:$0xff]  ;;  %v1052_v23 = vld [vmem:[%s1565_s1 + $0x98] sm:$0xff]  ;;  %v1055_v26 = vld [vmem:[%s1565_s1 + $0xb0] sm:$0xff] }
  0x13   : > { %245 = vmatpush.msra.mxu1 %v175_v12  ;;  %335 = vmatpush.msra.mxu3 %v1042_v13  ;;  %v174_v19 = vld [vmem:[%s1565_s1] sm:$0xff]  ;;  %v1051_v27 = vld [vmem:[%s1565_s1 + $0x90] sm:$0xff]  ;;  %v1064_v28 = vld [vmem:[%s1565_s1 + $0xc8] sm:$0xff] }
  0x14   : > { %1039 = vmatmul.msk.f32.vlgmr.msra.gmra.mxu2 %vm186_vm0, %v1254_v17  ;;  %1046 = vmatmul.msk.f32.vlgmr.msra.gmra.mxu3 %vm186_vm0, %v1257_v18  ;;  %v1267_v20 = vld [vmem:[%s1242_s20 + $0x1] sm:$0xff]  ;;  %v1298_v30 = vld [vmem:[%s1242_s20 + $0xe] sm:$0xff]  ;;  %v1097_v40 = vld [vmem:[%s1565_s1 + $0x158] sm:$0xff] }
  0x15   : > { %v171_v21 = vld [vmem:[%s1242_s20] sm:$0xff]  ;;  %484 = vmatpush.msrb.mxu2 %v1066_v14  ;;  %530 = vmatpush.msrb.mxu3 %v1073_v15  ;;  %v1071_v29 = vld [vmem:[%s1565_s1 + $0xe8] sm:$0xff]  ;;  %v1104_v41 = vld [vmem:[%s1565_s1 + $0x178] sm:$0xff] }
  0x16   : > { %211 = vmatpush.msra.mxu0 %v1025_v16  ;;  %246 = vmatpush.msra.mxu1 %v174_v19  ;;  %v1301_v31 = vld [vmem:[%s1242_s20 + $0xf] sm:$0xff]  ;;  %v1063_v34 = vld [vmem:[%s1565_s1 + $0xc0] sm:$0xff]  ;;  %v1087_v43 = vld [vmem:[%s1565_s1 + $0x138] sm:$0xff] }
  0x17   : > { %1029 = vmatmul.msk.f32.vlgmr.msra.gmra.mxu0 %vm186_vm0, %v1267_v20  ;;  %1032 = vmatmul.msk.f32.vlgmr.msra.gmra.mxu1 %vm186_vm0, %v171_v21  ;;  %v1054_v32 = vld [vmem:[%s1565_s1 + $0xa8] sm:$0xff]  ;;  %v1070_v35 = vld [vmem:[%s1565_s1 + $0xe0] sm:$0xff]  ;;  %v1342_v42 = vld [vmem:[%s1242_s20 + $0x16] sm:$0xff] }
  0x18   : > { %406 = vmatpush.msrb.mxu0 %v1056_v22  ;;  %441 = vmatpush.msrb.mxu1 %v1052_v23  ;;  %v1050_v33 = vld [vmem:[%s1565_s1 + $0x88] sm:$0xff]  ;;  %v1053_v38 = vld [vmem:[%s1565_s1 + $0xa0] sm:$0xff]  ;;  %v1083_v44 = vld [vmem:[%s1565_s1 + $0x118] sm:$0xff] }
  0x19   : > { %485 = vmatpush.msrb.mxu2 %v1065_v24  ;;  %531 = vmatpush.msrb.mxu3 %v1072_v25  ;;  %v1320_v36 = vld [vmem:[%s1242_s20 + $0x9] sm:$0xff]  ;;  %v1049_v39 = vld [vmem:[%s1565_s1 + $0x80] sm:$0xff]  ;;  %v1351_v45 = vld [vmem:[%s1242_s20 + $0x17] sm:$0xff] }
  0x1a   : > { %407 = vmatpush.msrb.mxu0 %v1055_v26  ;;  %442 = vmatpush.msrb.mxu1 %v1051_v27  ;;  %v1323_v37 = vld [vmem:[%s1242_s20 + $0x8] sm:$0xff]  ;;  %v1096_v46 = vld [vmem:[%s1565_s1 + $0x150] sm:$0xff]  ;;  %v1094_v56 = vld [vmem:[%s1565_s1 + $0x140] sm:$0xff] }
  0x1b   : > { %486 = vmatpush.msrb.mxu2 %v1064_v28  ;;  %532 = vmatpush.msrb.mxu3 %v1071_v29  ;;  %v1103_v47 = vld [vmem:[%s1565_s1 + $0x170] sm:$0xff]  ;;  %v1095_v50 = vld [vmem:[%s1565_s1 + $0x148] sm:$0xff]  ;;  %v1101_v57 = vld [vmem:[%s1565_s1 + $0x160] sm:$0xff] }
  0x1c   : > { %1040 = vmatmul.msk.f32.gmra.mxu2 %vm186_vm0, %v1298_v30  ;;  %1047 = vmatmul.msk.f32.gmra.mxu3 %vm186_vm0, %v1301_v31  ;;  %v1086_v48 = vld [vmem:[%s1565_s1 + $0x130] sm:$0xff]  ;;  %v1102_v51 = vld [vmem:[%s1565_s1 + $0x168] sm:$0xff]  ;;  %v1084_v58 = vld [vmem:[%s1565_s1 + $0x120] sm:$0xff] }
  0x1d   : > { %408 = vmatpush.msrb.mxu0 %v1054_v32  ;;  %443 = vmatpush.msrb.mxu1 %v1050_v33  ;;  %v1082_v49 = vld [vmem:[%s1565_s1 + $0x110] sm:$0xff]  ;;  %v1085_v54 = vld [vmem:[%s1565_s1 + $0x128] sm:$0xff]  ;;  %v1080_v59 = vld [vmem:[%s1565_s1 + $0x100] sm:$0xff] }
  0x1e   : > { %487 = vmatpush.msrb.mxu2 %v1063_v34  ;;  %533 = vmatpush.msrb.mxu3 %v1070_v35  ;;  %v1376_v52 = vld [vmem:[%s1242_s20 + $0x11] sm:$0xff]  ;;  %v1081_v55 = vld [vmem:[%s1565_s1 + $0x108] sm:$0xff]  ;;  %v1125_v10 = vld [vmem:[%s1565_s1 + $0x1c0] sm:$0xff] }
  0x1f   : > { %1030 = vmatmul.msk.f32.gmra.mxu0 %vm186_vm0, %v1320_v36  ;;  %1033 = vmatmul.msk.f32.gmra.mxu1 %vm186_vm0, %v1323_v37  ;;  %v1379_v53 = vld [vmem:[%s1242_s20 + $0x10] sm:$0xff]  ;;  %v1128_v60 = vld [vmem:[%s1565_s1 + $0x1d8] sm:$0xff]  ;;  %v377_v62 = vld [vmem:[%s1242_s20 + $0x2] sm:$0xff] }
  0x20   : > { %409 = vmatpush.msrb.mxu0 %v1053_v38  ;;  %444 = vmatpush.msrb.mxu1 %v1049_v39  ;;  %v1135_v61 = vld [vmem:[%s1565_s1 + $0x1f8] sm:$0xff]  ;;  %v1127_v1 = vld [vmem:[%s1565_s1 + $0x1d0] sm:$0xff]  ;;  %v1126_v5 = vld [vmem:[%s1565_s1 + $0x1c8] sm:$0xff] }
  0x21   : > { %682 = vmatpush.msra.mxu2 %v1097_v40  ;;  %728 = vmatpush.msra.mxu3 %v1104_v41  ;;  %v1118_v63 = vld [vmem:[%s1565_s1 + $0x1b8] sm:$0xff]  ;;  %v1134_v2 = vld [vmem:[%s1565_s1 + $0x1f0] sm:$0xff]  ;;  %v1133_v6 = vld [vmem:[%s1565_s1 + $0x1e8] sm:$0xff] }
  0x22   : > { %604 = vmatpush.msra.mxu0 %v1087_v43  ;;  %639 = vmatpush.msra.mxu1 %v1083_v44  ;;  %v1114_v0 = vld [vmem:[%s1565_s1 + $0x198] sm:$0xff]  ;;  %v1117_v3 = vld [vmem:[%s1565_s1 + $0x1b0] sm:$0xff]  ;;  %v1116_v8 = vld [vmem:[%s1565_s1 + $0x1a8] sm:$0xff] }
  0x23   : > { %683 = vmatpush.msra.mxu2 %v1096_v46  ;;  %729 = vmatpush.msra.mxu3 %v1103_v47  ;;  %v1113_v4 = vld [vmem:[%s1565_s1 + $0x190] sm:$0xff]  ;;  %v1112_v9 = vld [vmem:[%s1565_s1 + $0x188] sm:$0xff]  ;;  %v1132_v11 = vld [vmem:[%s1565_s1 + $0x1e0] sm:$0xff] }
  0x24   : > { %1041 = vmatmul.msk.f32.gmra.mxu2 %vm186_vm0, %v1342_v42  ;;  %1048 = vmatmul.msk.f32.gmra.mxu3 %vm186_vm0, %v1351_v45  ;;  %v378_v7 = vld [vmem:[%s1242_s20 + $0xa] sm:$0xff]  ;;  %v1115_v12 = vld [vmem:[%s1565_s1 + $0x1a0] sm:$0xff]  ;;  %v503_v14 = vld [vmem:[%s1242_s20 + $0x18] sm:$0xff] }
  0x25   : > { %605 = vmatpush.msra.mxu0 %v1086_v48  ;;  %640 = vmatpush.msra.mxu1 %v1082_v49  ;;  %v1111_v13 = vld [vmem:[%s1565_s1 + $0x180] sm:$0xff]  ;;  %v379_v15 = vld [vmem:[%s1242_s20 + $0x12] sm:$0xff] }
  0x26   : > { %684 = vmatpush.msra.mxu2 %v1095_v50  ;;  %730 = vmatpush.msra.mxu3 %v1102_v51  ;;  %v653_v16 = vld [vmem:[%s1242_s20 + $0xc] sm:$0xff]  ;;  %v700_v21 = vld [vmem:[%s1242_s20 + $0x15] sm:$0xff]  ;;  %v701_v23 = vld [vmem:[%s1242_s20 + $0x1d] sm:$0xff] }
  0x27   : > { %1031 = vmatmul.msk.f32.gmra.mxu0 %vm186_vm0, %v1376_v52  ;;  %1034 = vmatmul.msk.f32.gmra.mxu1 %vm186_vm0, %v1379_v53  ;;  %v699_v19 = vld [vmem:[%s1242_s20 + $0xd] sm:$0xff]  ;;  %v655_v22 = vld [vmem:[%s1242_s20 + $0x1c] sm:$0xff] }
  0x28   : > { %606 = vmatpush.msra.mxu0 %v1085_v54  ;;  %641 = vmatpush.msra.mxu1 %v1081_v55  ;;  %v1154_v29 = vld [vmem:[%s1566_s2] ss:$0 sm:$0xff] }
  0x29   : > { %685 = vmatpush.msra.mxu2 %v1094_v56  ;;  %731 = vmatpush.msra.mxu3 %v1101_v57 }
  0x2a   : > { %607 = vmatpush.msra.mxu0 %v1084_v58  ;;  %642 = vmatpush.msra.mxu1 %v1080_v59 }
  0x2c   : > { %1067 = vmatmul.msk.f32.vlgmr.msrb.gmra.mxu2 %vm186_vm0, %v1257_v18  ;;  %1074 = vmatmul.msk.f32.vlgmr.msrb.gmra.mxu3 %vm186_vm0, %v1323_v37 }
  0x2d   : > { %880 = vmatpush.msrb.mxu2 %v1128_v60  ;;  %926 = vmatpush.msrb.mxu3 %v1135_v61  ;;  %v1155_v60 = vld [vmem:[%s1566_s2] ss:$0 sm:$0xff] }
  0x2f   : > { %1057 = vmatmul.msk.f32.vlgmr.msrb.gmra.mxu0 %vm186_vm0, %v377_v62  ;;  %1060 = vmatmul.msk.f32.vlgmr.msrb.gmra.mxu1 %vm186_vm0, %v1267_v20  ;;  %v654_v20 = vld [vmem:[%s1242_s20 + $0x14] sm:$0xff] }
  0x30   : > { %802 = vmatpush.msrb.mxu0 %v1118_v63  ;;  %837 = vmatpush.msrb.mxu1 %v1114_v0 }
  0x31   : > { %881 = vmatpush.msrb.mxu2 %v1127_v1  ;;  %927 = vmatpush.msrb.mxu3 %v1134_v2 }
  0x32   : > { %803 = vmatpush.msrb.mxu0 %v1117_v3  ;;  %838 = vmatpush.msrb.mxu1 %v1113_v4 }
  0x33   : > { %882 = vmatpush.msrb.mxu2 %v1126_v5  ;;  %928 = vmatpush.msrb.mxu3 %v1133_v6 }
  0x34   : > { %1068 = vmatmul.msk.f32.gmra.mxu2 %vm186_vm0, %v1301_v31  ;;  %1075 = vmatmul.msk.f32.gmra.mxu3 %vm186_vm0, %v1379_v53 }
  0x35   : > { %804 = vmatpush.msrb.mxu0 %v1116_v8  ;;  %839 = vmatpush.msrb.mxu1 %v1112_v9 }
  0x36   : > { %883 = vmatpush.msrb.mxu2 %v1125_v10  ;;  %929 = vmatpush.msrb.mxu3 %v1132_v11 }
  0x37   : > { %1058 = vmatmul.msk.f32.gmra.mxu0 %vm186_vm0, %v378_v7  ;;  %1061 = vmatmul.msk.f32.gmra.mxu1 %vm186_vm0, %v1320_v36 }
  0x38   : > { %805 = vmatpush.msrb.mxu0 %v1115_v12  ;;  %840 = vmatpush.msrb.mxu1 %v1111_v13 }
  0x3c   : > { %1069 = vmatmul.msk.f32.gmra.mxu2 %vm186_vm0, %v1351_v45  ;;  %1076 = vmatmul.msk.f32.gmra.mxu3 %vm186_vm0, %v503_v14 }
  0x3f   : > { %1059 = vmatmul.msk.f32.gmra.mxu0 %vm186_vm0, %v379_v15  ;;  %1062 = vmatmul.msk.f32.gmra.mxu1 %vm186_vm0, %v1376_v52 }
  0x44   : > { %1098 = vmatmul.msk.f32.vlgmr.msra.gmra.mxu2 %vm186_vm0, %v653_v16  ;;  %1105 = vmatmul.msk.f32.vlgmr.msra.gmra.mxu3 %vm186_vm0, %v699_v19 }
  0x47   : > { %1088 = vmatmul.msk.f32.vlgmr.msra.gmra.mxu0 %vm186_vm0, %v1257_v18  ;;  %1091 = vmatmul.msk.f32.vlgmr.msra.gmra.mxu1 %vm186_vm0, %v1254_v17  ;;  %v899_v17 = vld [vmem:[%s1242_s20 + $0x1e] sm:$0xff]  ;;  %s1145_s20 = smul.u32 96, %s1569_s13 }
  0x49   : > { %s1526_s29 = scalar_lea.vmem %s1567_s3, %s1145_s20 }
  0x4c   : > { %1099 = vmatmul.msk.f32.gmra.mxu2 %vm186_vm0, %v654_v20  ;;  %1106 = vmatmul.msk.f32.gmra.mxu3 %vm186_vm0, %v700_v21 }
  0x4f   : > { %1089 = vmatmul.msk.f32.gmra.mxu0 %vm186_vm0, %v1301_v31  ;;  %1092 = vmatmul.msk.f32.gmra.mxu1 %vm186_vm0, %v1298_v30 }
  0x54   : > { %1100 = vmatmul.msk.f32.gmra.mxu2 %vm186_vm0, %v655_v22  ;;  %1107 = vmatmul.msk.f32.gmra.mxu3 %vm186_vm0, %v701_v23 }
  0x57   : > { %1090 = vmatmul.msk.f32.gmra.mxu0 %vm186_vm0, %v1351_v45  ;;  %1093 = vmatmul.msk.f32.gmra.mxu1 %vm186_vm0, %v1342_v42 }
  0x5c   : > { %1129 = vmatmul.msk.f32.vlgmr.msrb.gmra.mxu2 %vm186_vm0, %v699_v19  ;;  %1136 = vmatmul.msk.f32.vlgmr.msrb.gmra.mxu3 %vm186_vm0, %v1298_v30 }
  0x5f   : > { %1119 = vmatmul.msk.f32.vlgmr.msrb.gmra.mxu0 %vm186_vm0, %v1323_v37  ;;  %1122 = vmatmul.msk.f32.vlgmr.msrb.gmra.mxu1 %vm186_vm0, %v1257_v18 }
  0x64   : > { %1130 = vmatmul.msk.f32.gmra.mxu2 %vm186_vm0, %v700_v21  ;;  %1137 = vmatmul.msk.f32.gmra.mxu3 %vm186_vm0, %v1342_v42 }
  0x67   : > { %1120 = vmatmul.msk.f32.gmra.mxu0 %vm186_vm0, %v1379_v53  ;;  %1123 = vmatmul.msk.f32.gmra.mxu1 %vm186_vm0, %v1301_v31 }
  0x6c   : > { %1131 = vmatmul.msk.f32.gmra.mxu2 %vm186_vm0, %v701_v23  ;;  %1138 = vmatmul.msk.f32.gmra.mxu3 %vm186_vm0, %v899_v17 }
  0x6f   : > { %1121 = vmatmul.msk.f32.gmra.mxu0 %vm186_vm0, %v503_v14  ;;  %1124 = vmatmul.msk.f32.gmra.mxu1 %vm186_vm0, %v1351_v45 }
  0x94   : > { %v213_v18 = vpop.f32.mrf.mxu0  ;;  %v248_v24 = vpop.f32.mrf.mxu1 }
  0x95   : > { %v249_v25 = vadd.f32 %v248_v24, %v213_v18 }
  0x97   : > { %v291_v26 = vpop.f32.mrf.mxu2  ;;  %v337_v27 = vpop.f32.mrf.mxu3 }
  0x98   : > { %v300_v28 = vadd.f32 %v291_v26, %v249_v25 }
  0x9a   : > { %v346_v30 = vadd.f32 %v337_v27, %v300_v28  ;;  %v1156_v27 = vld [vmem:[%s1566_s2] ss:$0 sm:$0xff] }
  0x9c   : > { %v353_v31 = vadd.f32 %v1154_v29, %v346_v30  ;;  %v216_v32 = vpop.f32.mrf.mxu0  ;;  %v251_v33 = vpop.f32.mrf.mxu1 }
  0x9d   : > { %v252_v34 = vadd.f32 %v251_v33, %v216_v32 }
  0x9e   : > { %vm356_vm1 = vcmp.gt.f32.partialorder %v353_v31, 0.0  ;;  %v359_v35 = vmul.f32 0.2, %v353_v31 }
  0x9f   : > { %v294_v36 = vpop.f32.mrf.mxu2  ;;  %v340_v37 = vpop.f32.mrf.mxu3 }
  0xa0   : > { %v362_v38 = vsel %vm356_vm1, %v353_v31, %v359_v35  ;;  %v301_v39 = vadd.f32 %v294_v36, %v252_v34 }
  0xa1   : > { %366 = vst.msk [vmem:[%s1526_s29] sm:$0xff] %vm365_vm2, %v362_v38 }
  0xa2   : > { %v347_v40 = vadd.f32 %v340_v37, %v301_v39 }
  0xa4   : > { %v354_v41 = vadd.f32 %v1154_v29, %v347_v40  ;;  %v219_v42 = vpop.f32.mrf.mxu0  ;;  %v254_v43 = vpop.f32.mrf.mxu1 }
  0xa5   : > { %v255_v44 = vadd.f32 %v254_v43, %v219_v42 }
  0xa6   : > { %vm357_vm3 = vcmp.gt.f32.partialorder %v354_v41, 0.0  ;;  %v360_v45 = vmul.f32 0.2, %v354_v41 }
  0xa7   : > { %v297_v46 = vpop.f32.mrf.mxu2  ;;  %v343_v47 = vpop.f32.mrf.mxu3 }
  0xa8   : > { %v363_v48 = vsel %vm357_vm3, %v354_v41, %v360_v45  ;;  %v302_v49 = vadd.f32 %v297_v46, %v255_v44 }
  0xa9   : > { %367 = vst.msk [vmem:[%s1526_s29 + $0x8] sm:$0xff] %vm365_vm2, %v363_v48 }
  0xaa   : > { %v348_v50 = vadd.f32 %v343_v47, %v302_v49 }
  0xac   : > { %v355_v51 = vadd.f32 %v1154_v29, %v348_v50  ;;  %v411_v52 = vpop.f32.mrf.mxu0  ;;  %v446_v53 = vpop.f32.mrf.mxu1 }
  0xad   : > { %v447_v54 = vadd.f32 %v446_v53, %v411_v52 }
  0xae   : > { %vm358_vm4 = vcmp.gt.f32.partialorder %v355_v51, 0.0  ;;  %v361_v55 = vmul.f32 0.2, %v355_v51 }
  0xaf   : > { %v489_v56 = vpop.f32.mrf.mxu2  ;;  %v535_v57 = vpop.f32.mrf.mxu3 }
  0xb0   : > { %v364_v58 = vsel %vm358_vm4, %v355_v51, %v361_v55  ;;  %v498_v59 = vadd.f32 %v489_v56, %v447_v54 }
  0xb1   : > { %368 = vst.msk [vmem:[%s1526_s29 + $0x10] sm:$0xff] %vm365_vm2, %v364_v58  ;;  %v1157_v58 = vld [vmem:[%s1566_s2] ss:$0 sm:$0xff] }
  0xb2   : > { %v544_v61 = vadd.f32 %v535_v57, %v498_v59 }
  0xb4   : > { %v551_v62 = vadd.f32 %v1155_v60, %v544_v61  ;;  %v414_v63 = vpop.f32.mrf.mxu0  ;;  %v449_v0 = vpop.f32.mrf.mxu1 }
  0xb5   : > { %v450_v1 = vadd.f32 %v449_v0, %v414_v63 }
  0xb6   : > { %vm554_vm5 = vcmp.gt.f32.partialorder %v551_v62, 0.0  ;;  %v557_v2 = vmul.f32 0.2, %v551_v62 }
  0xb7   : > { %v492_v3 = vpop.f32.mrf.mxu2  ;;  %v538_v4 = vpop.f32.mrf.mxu3 }
  0xb8   : > { %v560_v5 = vsel %vm554_vm5, %v551_v62, %v557_v2  ;;  %v499_v6 = vadd.f32 %v492_v3, %v450_v1 }
  0xb9   : > { %1077 = vst.msk [vmem:[%s1526_s29 + $0x18] sm:$0xff] %vm365_vm2, %v560_v5 }
  0xba   : > { %v545_v7 = vadd.f32 %v538_v4, %v499_v6 }
  0xbc   : > { %v552_v8 = vadd.f32 %v1155_v60, %v545_v7  ;;  %v417_v9 = vpop.f32.mrf.mxu0  ;;  %v452_v10 = vpop.f32.mrf.mxu1 }
  0xbd   : > { %v453_v11 = vadd.f32 %v452_v10, %v417_v9 }
  0xbe   : > { %vm555_vm6 = vcmp.gt.f32.partialorder %v552_v8, 0.0  ;;  %v558_v12 = vmul.f32 0.2, %v552_v8 }
  0xbf   : > { %v495_v13 = vpop.f32.mrf.mxu2  ;;  %v541_v14 = vpop.f32.mrf.mxu3 }
  0xc0   : > { %v561_v15 = vsel %vm555_vm6, %v552_v8, %v558_v12  ;;  %v500_v16 = vadd.f32 %v495_v13, %v453_v11 }
  0xc1   : > { %1078 = vst.msk [vmem:[%s1526_s29 + $0x20] sm:$0xff] %vm365_vm2, %v561_v15 }
  0xc2   : > { %v546_v19 = vadd.f32 %v541_v14, %v500_v16 }
  0xc4   : > { %v553_v20 = vadd.f32 %v1155_v60, %v546_v19  ;;  %v609_v21 = vpop.f32.mrf.mxu0  ;;  %v644_v22 = vpop.f32.mrf.mxu1 }
  0xc5   : > { %v645_v23 = vadd.f32 %v644_v22, %v609_v21 }
  0xc6   : > { %vm556_vm7 = vcmp.gt.f32.partialorder %v553_v20, 0.0  ;;  %v559_v17 = vmul.f32 0.2, %v553_v20 }
  0xc7   : > { %v687_v18 = vpop.f32.mrf.mxu2  ;;  %v733_v24 = vpop.f32.mrf.mxu3 }
  0xc8   : > { %v562_v25 = vsel %vm556_vm7, %v553_v20, %v559_v17  ;;  %v696_v26 = vadd.f32 %v687_v18, %v645_v23 }
  0xc9   : > { %1079 = vst.msk [vmem:[%s1526_s29 + $0x28] sm:$0xff] %vm365_vm2, %v562_v25 }
  0xca   : > { %v742_v28 = vadd.f32 %v733_v24, %v696_v26 }
  0xcc   : > { %v749_v29 = vadd.f32 %v1156_v27, %v742_v28  ;;  %v612_v30 = vpop.f32.mrf.mxu0  ;;  %v647_v31 = vpop.f32.mrf.mxu1 }
  0xcd   : > { %v648_v32 = vadd.f32 %v647_v31, %v612_v30 }
  0xce   : > { %vm752_vm8 = vcmp.gt.f32.partialorder %v749_v29, 0.0  ;;  %v755_v33 = vmul.f32 0.2, %v749_v29 }
  0xcf   : > { %v690_v34 = vpop.f32.mrf.mxu2  ;;  %v736_v35 = vpop.f32.mrf.mxu3 }
  0xd0   : > { %v758_v36 = vsel %vm752_vm8, %v749_v29, %v755_v33  ;;  %v697_v37 = vadd.f32 %v690_v34, %v648_v32 }
  0xd1   : > { %1108 = vst.msk [vmem:[%s1526_s29 + $0x30] sm:$0xff] %vm365_vm2, %v758_v36 }
  0xd2   : > { %v743_v38 = vadd.f32 %v736_v35, %v697_v37 }
  0xd4   : > { %v750_v39 = vadd.f32 %v1156_v27, %v743_v38  ;;  %v615_v40 = vpop.f32.mrf.mxu0  ;;  %v650_v41 = vpop.f32.mrf.mxu1 }
  0xd5   : > { %v651_v42 = vadd.f32 %v650_v41, %v615_v40 }
  0xd6   : > { %vm753_vm9 = vcmp.gt.f32.partialorder %v750_v39, 0.0  ;;  %v756_v43 = vmul.f32 0.2, %v750_v39 }
  0xd7   : > { %v693_v44 = vpop.f32.mrf.mxu2  ;;  %v739_v45 = vpop.f32.mrf.mxu3 }
  0xd8   : > { %v759_v46 = vsel %vm753_vm9, %v750_v39, %v756_v43  ;;  %v698_v47 = vadd.f32 %v693_v44, %v651_v42 }
  0xd9   : > { %1109 = vst.msk [vmem:[%s1526_s29 + $0x38] sm:$0xff] %vm365_vm2, %v759_v46 }
  0xda   : > { %v744_v48 = vadd.f32 %v739_v45, %v698_v47 }
  0xdc   : > { %v751_v49 = vadd.f32 %v1156_v27, %v744_v48  ;;  %v807_v50 = vpop.f32.mrf.mxu0  ;;  %v842_v51 = vpop.f32.mrf.mxu1 }
  0xdd   : > { %v843_v52 = vadd.f32 %v842_v51, %v807_v50 }
  0xde   : > { %vm754_vm10 = vcmp.gt.f32.partialorder %v751_v49, 0.0  ;;  %v757_v53 = vmul.f32 0.2, %v751_v49 }
  0xdf   : > { %v885_v54 = vpop.f32.mrf.mxu2  ;;  %v931_v55 = vpop.f32.mrf.mxu3 }
  0xe0   : > { %v760_v56 = vsel %vm754_vm10, %v751_v49, %v757_v53  ;;  %v894_v57 = vadd.f32 %v885_v54, %v843_v52 }
  0xe1   : > { %1110 = vst.msk [vmem:[%s1526_s29 + $0x40] sm:$0xff] %vm365_vm2, %v760_v56 }
  0xe2   : > { %v940_v59 = vadd.f32 %v931_v55, %v894_v57 }
  0xe4   : > { %v947_v60 = vadd.f32 %v1157_v58, %v940_v59  ;;  %v810_v61 = vpop.f32.mrf.mxu0  ;;  %v845_v62 = vpop.f32.mrf.mxu1 }
  0xe5   : > { %v846_v63 = vadd.f32 %v845_v62, %v810_v61 }
  0xe6   : > { %vm950_vm11 = vcmp.gt.f32.partialorder %v947_v60, 0.0  ;;  %v953_v0 = vmul.f32 0.2, %v947_v60 }
  0xe7   : > { %v888_v1 = vpop.f32.mrf.mxu2  ;;  %v934_v2 = vpop.f32.mrf.mxu3 }
  0xe8   : > { %v956_v3 = vsel %vm950_vm11, %v947_v60, %v953_v0  ;;  %v895_v4 = vadd.f32 %v888_v1, %v846_v63 }
  0xe9   : > { %1139 = vst.msk [vmem:[%s1526_s29 + $0x48] sm:$0xff] %vm365_vm2, %v956_v3 }
  0xea   : > { %v941_v5 = vadd.f32 %v934_v2, %v895_v4 }
  0xec   : > { %v948_v6 = vadd.f32 %v1157_v58, %v941_v5  ;;  %v813_v7 = vpop.f32.mrf.mxu0  ;;  %v848_v8 = vpop.f32.mrf.mxu1 }
  0xed   : > { %v849_v9 = vadd.f32 %v848_v8, %v813_v7 }
  0xee   : > { %vm951_vm12 = vcmp.gt.f32.partialorder %v948_v6, 0.0  ;;  %v954_v10 = vmul.f32 0.2, %v948_v6 }
  0xef   : > { %v891_v11 = vpop.f32.mrf.mxu2  ;;  %v937_v12 = vpop.f32.mrf.mxu3 }
  0xf0   : > { %v957_v13 = vsel %vm951_vm12, %v948_v6, %v954_v10  ;;  %v896_v14 = vadd.f32 %v891_v11, %v849_v9 }
  0xf1   : > { %1140 = vst.msk [vmem:[%s1526_s29 + $0x50] sm:$0xff] %vm365_vm2, %v957_v13 }
  0xf2   : > { %v942_v15 = vadd.f32 %v937_v12, %v896_v14 }
  0xf4   : > { %v949_v16 = vadd.f32 %v1157_v58, %v942_v15 }
  0xf6   : > { %vm952_vm13 = vcmp.gt.f32.partialorder %v949_v16, 0.0  ;;  %v955_v19 = vmul.f32 0.2, %v949_v16 }
  0xf8   : > { %v958_v20 = vsel %vm952_vm13, %v949_v16, %v955_v19 }
  0xf9   : > { %1141 = vst.msk [vmem:[%s1526_s29 + $0x58] sm:$0xff] %vm365_vm2, %v958_v20 }
  0xfa PF: > { %s13_s12 = sadd.s32 1, %s1164_s12  }
  0xfb   : > { %p10_p4 = scmp.ge.s32.totalorder %s13_s12, 6  }
  0xfd   :  { %12 = sbr.rel (!%p10_p4) target bundleno = 1 (0x1), region = 80 }

// kernel: keyp_to_images_decoder_no_first.8
= control target key start
LH: loop header
LB: loop body
LE: loop exit
PB: predicated region body
PF: predicated region fallthrough
CT: control target
= control target key end

     0   :  { %s1320_s12 = smov 0   ;;  %s1647_s0 = inlined_call_operand.vmem [shape: f32[4,102,16], index: 0, kind: input, shape index: {}]   ;;  %s1648_s1 = inlined_call_operand.vmem [shape: f32[9,16,16], index: 1, kind: input, shape index: {}]   ;;  %s1649_s2 = inlined_call_operand.vmem [shape: f32[1,16], index: 2, kind: input, shape index: {}]   ;;  %s1650_s3 = inlined_call_operand.vmem [shape: f32[4,80,16], index: 3, kind: output, shape index: {}]  }
   0x1 LB: > { %s1160_s13 = sadd.s32 4294967295, %s1298_s12   ;;  %p1164_p0 = scmp.ge.s32.totalorder %s1298_s12, 1  ;;  %s1298_s12 = sphi %s1320_s12, %s13_s12  }
   0x2   : > { %p137_p1 = scmp.lt.s32.totalorder %s1298_s12, 5 }
   0x4   : > { %p138_p2 = pnand %p1164_p0, %p137_p1 }
   0x5   : > { %p161_p3 = scmp.lt.s32.totalorder (!%p138_p2), %s1160_s13, 3 }
   0x6   : > { %141 = sbr.rel (%p138_p2) target bundleno = 337 (0x151), region = 32 }
   0xb   : > { %v1168_v0 = vld [vmem:[%s1648_s1 + $0x18] sm:$0xff]  ;;  %v1167_v1 = vld [vmem:[%s1648_s1 + $0x10] sm:$0xff]  ;;  %v182_v3 = vld [vmem:[%s1648_s1 + $0x8] sm:$0xff]  ;;  %s1652_s13 = smov (!%p161_p3, %s1160_s13), 3  ;;  %vm196_vm0 = vcmask 130048  }
   0xc   : > { %1275 = vmatpush.msra.mxu1 %v1168_v0  ;;  %1277 = vmatpush.msra.mxu3 %v1168_v0  ;;  %v1202_v2 = vld [vmem:[%s1648_s1 + $0x38] sm:$0xff]  ;;  %v1214_v4 = vld [vmem:[%s1648_s1 + $0x48] sm:$0xff]  ;;  %v1201_v5 = vld [vmem:[%s1648_s1 + $0x30] sm:$0xff]  ;;  %s1281_s26 = smul.u32 104, %s1652_s13 }
   0xd   : > { %241 = vmatpush.msra.mxu0 %v1168_v0  ;;  %1276 = vmatpush.msra.mxu2 %v1168_v0  ;;  %v181_v6 = vld [vmem:[%s1648_s1] sm:$0xff]  ;;  %v1190_v7 = vld [vmem:[%s1648_s1 + $0x28] sm:$0xff]  ;;  %v1250_v15 = vld [vmem:[%s1648_s1 + $0x78] sm:$0xff]  ;;  %s1282_s4 = smul.u32 80, %s1652_s13 }
   0xe   : > { %1278 = vmatpush.msra.mxu1 %v1167_v1  ;;  %1280 = vmatpush.msra.mxu3 %v1167_v1  ;;  %s1358_s6 = scalar_lea.vmem %s1647_s0, %s1281_s26  ;;  %v1189_v8 = vld [vmem:[%s1648_s1 + $0x20] sm:$0xff]  ;;  %v1238_v14 = vld [vmem:[%s1648_s1 + $0x68] sm:$0xff]  ;;  %v1226_v16 = vld [vmem:[%s1648_s1 + $0x58] sm:$0xff] }
   0xf   : > { %242 = vmatpush.msra.mxu0 %v1167_v1  ;;  %1279 = vmatpush.msra.mxu2 %v1167_v1  ;;  %v1213_v9 = vld [vmem:[%s1648_s1 + $0x40] sm:$0xff]  ;;  %v189_v13 = vld [vmem:[%s1358_s6 + $0x31] sm:$0xff]  ;;  %v1262_v17 = vld [vmem:[%s1648_s1 + $0x88] sm:$0xff]  ;;  %s1605_s7 = scalar_lea.vmem %s1650_s3, %s1282_s4 }
  0x10   : > { %508 = vmatpush.msrb.mxu3 %v1202_v2  ;;  %318 = vmatpush.msrb.mxu1 %v182_v3  ;;  %v186_v10 = vld [vmem:[%s1358_s6 + $0x19] sm:$0xff]  ;;  %v183_v12 = vld [vmem:[%s1358_s6 + $0x1] sm:$0xff]  ;;  %v184_v20 = vld [vmem:[%s1358_s6 + $0x9] sm:$0xff] }
  0x11   : > { %608 = vmatpush.msrb.mxu0 %v1214_v4  ;;  %v190_v11 = vld [vmem:[%s1358_s6 + $0x39] sm:$0xff]  ;;  %408 = vmatpush.msrb.mxu2 %v1190_v7  ;;  %v187_v18 = vld [vmem:[%s1358_s6 + $0x21] sm:$0xff]  ;;  %v188_v22 = vld [vmem:[%s1358_s6 + $0x29] sm:$0xff] }
  0x12   : > { %509 = vmatpush.msrb.mxu3 %v1201_v5  ;;  %319 = vmatpush.msrb.mxu1 %v181_v6  ;;  %v191_v19 = vld [vmem:[%s1358_s6 + $0x41] sm:$0xff]  ;;  %v192_v23 = vld [vmem:[%s1358_s6 + $0x49] sm:$0xff]  ;;  %v185_v24 = vld [vmem:[%s1358_s6 + $0x11] sm:$0xff] }
  0x13   : > { %1172 = vmatmul.msk.f32.vlgmr.msra.gmra.mxu1 %vm196_vm0, %v186_v10  ;;  %1176 = vmatmul.msk.f32.vlgmr.msra.gmra.mxu3 %vm196_vm0, %v190_v11  ;;  %v351_v21 = vld [vmem:[%s1358_s6 + $0x2] sm:$0xff]  ;;  %v451_v25 = vld [vmem:[%s1358_s6 + $0xa] sm:$0xff]  ;;  %v452_v28 = vld [vmem:[%s1358_s6 + $0x12] sm:$0xff] }
  0x14   : > { %1169 = vmatmul.msk.f32.vlgmr.msra.gmra.mxu0 %vm196_vm0, %v183_v12  ;;  %1175 = vmatmul.msk.f32.vlgmr.msra.gmra.mxu2 %vm196_vm0, %v189_v13  ;;  %v171_v26 = vld [vmem:[%s1358_s6] sm:$0xff]  ;;  %v551_v27 = vld [vmem:[%s1358_s6 + $0xb] sm:$0xff]  ;;  %v552_v31 = vld [vmem:[%s1358_s6 + $0x13] sm:$0xff] }
  0x15   : > { %409 = vmatpush.msrb.mxu2 %v1189_v8  ;;  %609 = vmatpush.msrb.mxu0 %v1213_v9  ;;  %v1237_v29 = vld [vmem:[%s1648_s1 + $0x60] sm:$0xff]  ;;  %v172_v30 = vld [vmem:[%s1358_s6 + $0x8] sm:$0xff]  ;;  %v1249_v33 = vld [vmem:[%s1648_s1 + $0x70] sm:$0xff] }
  0x16   : > { %908 = vmatpush.msra.mxu3 %v1250_v15  ;;  %708 = vmatpush.msra.mxu1 %v1226_v16  ;;  %v453_v32 = vld [vmem:[%s1358_s6 + $0x1a] sm:$0xff]  ;;  %v1225_v34 = vld [vmem:[%s1648_s1 + $0x50] sm:$0xff]  ;;  %v454_v37 = vld [vmem:[%s1358_s6 + $0x22] sm:$0xff] }
  0x17   : > { %808 = vmatpush.msra.mxu2 %v1238_v14  ;;  %1008 = vmatpush.msra.mxu0 %v1262_v17  ;;  %v173_v35 = vld [vmem:[%s1358_s6 + $0x10] sm:$0xff]  ;;  %v553_v36 = vld [vmem:[%s1358_s6 + $0x1b] sm:$0xff]  ;;  %v554_v40 = vld [vmem:[%s1358_s6 + $0x23] sm:$0xff] }
  0x18   : > { %909 = vmatpush.msra.mxu3 %v1249_v33  ;;  %709 = vmatpush.msra.mxu1 %v1225_v34  ;;  %v1261_v38 = vld [vmem:[%s1648_s1 + $0x80] sm:$0xff]  ;;  %v174_v39 = vld [vmem:[%s1358_s6 + $0x18] sm:$0xff]  ;;  %v455_v41 = vld [vmem:[%s1358_s6 + $0x2a] sm:$0xff] }
  0x19   : > { %809 = vmatpush.msra.mxu2 %v1237_v29  ;;  %1009 = vmatpush.msra.mxu0 %v1261_v38  ;;  %v175_v42 = vld [vmem:[%s1358_s6 + $0x20] sm:$0xff]  ;;  %v555_v43 = vld [vmem:[%s1358_s6 + $0x2b] sm:$0xff]  ;;  %v556_v46 = vld [vmem:[%s1358_s6 + $0x33] sm:$0xff] }
  0x1a   : > { %v456_v44 = vld [vmem:[%s1358_s6 + $0x32] sm:$0xff]  ;;  %v176_v45 = vld [vmem:[%s1358_s6 + $0x28] sm:$0xff]  ;;  %v457_v47 = vld [vmem:[%s1358_s6 + $0x3a] sm:$0xff] }
  0x1b   : > { %1173 = vmatmul.msk.f32.gmra.mxu1 %vm196_vm0, %v187_v18  ;;  %1177 = vmatmul.msk.f32.gmra.mxu3 %vm196_vm0, %v191_v19  ;;  %v177_v48 = vld [vmem:[%s1358_s6 + $0x30] sm:$0xff]  ;;  %v557_v49 = vld [vmem:[%s1358_s6 + $0x3b] sm:$0xff]  ;;  %v558_v52 = vld [vmem:[%s1358_s6 + $0x43] sm:$0xff] }
  0x1c   : > { %1170 = vmatmul.msk.f32.gmra.mxu0 %vm196_vm0, %v184_v20  ;;  %1191 = vmatmul.msk.f32.vlgmr.msrb.gmra.mxu2 %vm196_vm0, %v351_v21  ;;  %v458_v50 = vld [vmem:[%s1358_s6 + $0x42] sm:$0xff]  ;;  %v178_v51 = vld [vmem:[%s1358_s6 + $0x38] sm:$0xff]  ;;  %v459_v53 = vld [vmem:[%s1358_s6 + $0x4a] sm:$0xff] }
  0x1d   : > { %v179_v54 = vld [vmem:[%s1358_s6 + $0x40] sm:$0xff]  ;;  %v559_v55 = vld [vmem:[%s1358_s6 + $0x4b] sm:$0xff]  ;;  %v751_v56 = vld [vmem:[%s1358_s6 + $0x14] sm:$0xff] }
  0x1e   : > { %v180_v57 = vld [vmem:[%s1358_s6 + $0x48] sm:$0xff]  ;;  %v460_v58 = vld [vmem:[%s1358_s6 + $0x52] sm:$0xff]  ;;  %v752_v60 = vld [vmem:[%s1358_s6 + $0x1c] sm:$0xff] }
  0x1f   : > { %v560_v59 = vld [vmem:[%s1358_s6 + $0x53] sm:$0xff]  ;;  %v753_v0 = vld [vmem:[%s1358_s6 + $0x24] sm:$0xff]  ;;  %v756_v11 = vld [vmem:[%s1358_s6 + $0x3c] sm:$0xff] }
  0x20   : > { %v651_v61 = vld [vmem:[%s1358_s6 + $0xc] sm:$0xff]  ;;  %v851_v62 = vld [vmem:[%s1358_s6 + $0x15] sm:$0xff]  ;;  %v852_v1 = vld [vmem:[%s1358_s6 + $0x1d] sm:$0xff] }
  0x21   : > { %v951_v63 = vld [vmem:[%s1358_s6 + $0x16] sm:$0xff]  ;;  %v952_v2 = vld [vmem:[%s1358_s6 + $0x1e] sm:$0xff]  ;;  %v754_v3 = vld [vmem:[%s1358_s6 + $0x2c] sm:$0xff] }
  0x22   : > { %v853_v4 = vld [vmem:[%s1358_s6 + $0x25] sm:$0xff]  ;;  %v755_v6 = vld [vmem:[%s1358_s6 + $0x34] sm:$0xff] }
  0x23   : > { %1174 = vmatmul.msk.f32.gmra.mxu1 %vm196_vm0, %v188_v22  ;;  %1178 = vmatmul.msk.f32.gmra.mxu3 %vm196_vm0, %v192_v23  ;;  %v953_v5 = vld [vmem:[%s1358_s6 + $0x26] sm:$0xff]  ;;  %v954_v10 = vld [vmem:[%s1358_s6 + $0x2e] sm:$0xff]  ;;  %v955_v17 = vld [vmem:[%s1358_s6 + $0x36] sm:$0xff] }
  0x24   : > { %1171 = vmatmul.msk.f32.gmra.mxu0 %vm196_vm0, %v185_v24  ;;  %1192 = vmatmul.msk.f32.gmra.mxu2 %vm196_vm0, %v451_v25  ;;  %v854_v8 = vld [vmem:[%s1358_s6 + $0x2d] sm:$0xff]  ;;  %v855_v15 = vld [vmem:[%s1358_s6 + $0x35] sm:$0xff]  ;;  %v757_v18 = vld [vmem:[%s1358_s6 + $0x44] sm:$0xff] }
  0x25   : > { %v856_v22 = vld [vmem:[%s1358_s6 + $0x3d] sm:$0xff]  ;;  %v857_v29 = vld [vmem:[%s1358_s6 + $0x45] sm:$0xff]  ;;  %v759_v33 = vld [vmem:[%s1358_s6 + $0x54] sm:$0xff] }
  0x26   : > { %v956_v24 = vld [vmem:[%s1358_s6 + $0x3e] sm:$0xff] }
  0x2b   : > { %1179 = vmatmul.msk.f32.vlgmr.msrb.gmra.mxu1 %vm196_vm0, %v171_v26  ;;  %1203 = vmatmul.msk.f32.vlgmr.msrb.gmra.mxu3 %vm196_vm0, %v451_v25  ;;  %v758_v25 = vld [vmem:[%s1358_s6 + $0x4c] sm:$0xff] }
  0x2c   : > { %1215 = vmatmul.msk.f32.vlgmr.msrb.gmra.mxu0 %vm196_vm0, %v551_v27  ;;  %1193 = vmatmul.msk.f32.gmra.mxu2 %vm196_vm0, %v452_v28 }
  0x33   : > { %1180 = vmatmul.msk.f32.gmra.mxu1 %vm196_vm0, %v172_v30  ;;  %1204 = vmatmul.msk.f32.gmra.mxu3 %vm196_vm0, %v452_v28 }
  0x34   : > { %1216 = vmatmul.msk.f32.gmra.mxu0 %vm196_vm0, %v552_v31  ;;  %1194 = vmatmul.msk.f32.gmra.mxu2 %vm196_vm0, %v453_v32 }
  0x3b   : > { %1181 = vmatmul.msk.f32.gmra.mxu1 %vm196_vm0, %v173_v35  ;;  %1205 = vmatmul.msk.f32.gmra.mxu3 %vm196_vm0, %v453_v32  ;;  %v957_v32 = vld [vmem:[%s1358_s6 + $0x46] sm:$0xff] }
  0x3c   : > { %1217 = vmatmul.msk.f32.gmra.mxu0 %vm196_vm0, %v553_v36  ;;  %1195 = vmatmul.msk.f32.gmra.mxu2 %vm196_vm0, %v454_v37 }
  0x43   : > { %1182 = vmatmul.msk.f32.gmra.mxu1 %vm196_vm0, %v174_v39  ;;  %1206 = vmatmul.msk.f32.gmra.mxu3 %vm196_vm0, %v454_v37  ;;  %v858_v39 = vld [vmem:[%s1358_s6 + $0x4d] sm:$0xff] }
  0x44   : > { %1218 = vmatmul.msk.f32.gmra.mxu0 %vm196_vm0, %v554_v40  ;;  %1196 = vmatmul.msk.f32.gmra.mxu2 %vm196_vm0, %v455_v41 }
  0x4b   : > { %1183 = vmatmul.msk.f32.gmra.mxu1 %vm196_vm0, %v175_v42  ;;  %1207 = vmatmul.msk.f32.gmra.mxu3 %vm196_vm0, %v455_v41 }
  0x4c   : > { %1219 = vmatmul.msk.f32.gmra.mxu0 %vm196_vm0, %v555_v43  ;;  %1197 = vmatmul.msk.f32.gmra.mxu2 %vm196_vm0, %v456_v44  ;;  %v958_v43 = vld [vmem:[%s1358_s6 + $0x4e] sm:$0xff] }
  0x53   : > { %1184 = vmatmul.msk.f32.gmra.mxu1 %vm196_vm0, %v176_v45  ;;  %1208 = vmatmul.msk.f32.gmra.mxu3 %vm196_vm0, %v456_v44  ;;  %v760_v44 = vld [vmem:[%s1358_s6 + $0x5c] sm:$0xff] }
  0x54   : > { %1220 = vmatmul.msk.f32.gmra.mxu0 %vm196_vm0, %v556_v46  ;;  %1198 = vmatmul.msk.f32.gmra.mxu2 %vm196_vm0, %v457_v47 }
  0x5b   : > { %1185 = vmatmul.msk.f32.gmra.mxu1 %vm196_vm0, %v177_v48  ;;  %1209 = vmatmul.msk.f32.gmra.mxu3 %vm196_vm0, %v457_v47 }
  0x5c   : > { %1221 = vmatmul.msk.f32.gmra.mxu0 %vm196_vm0, %v557_v49  ;;  %1199 = vmatmul.msk.f32.gmra.mxu2 %vm196_vm0, %v458_v50 }
  0x63   : > { %1186 = vmatmul.msk.f32.gmra.mxu1 %vm196_vm0, %v178_v51  ;;  %1210 = vmatmul.msk.f32.gmra.mxu3 %vm196_vm0, %v458_v50  ;;  %v859_v50 = vld [vmem:[%s1358_s6 + $0x55] sm:$0xff] }
  0x64   : > { %1222 = vmatmul.msk.f32.gmra.mxu0 %vm196_vm0, %v558_v52  ;;  %1200 = vmatmul.msk.f32.gmra.mxu2 %vm196_vm0, %v459_v53 }
  0x6b   : > { %1187 = vmatmul.msk.f32.gmra.mxu1 %vm196_vm0, %v179_v54  ;;  %1211 = vmatmul.msk.f32.gmra.mxu3 %vm196_vm0, %v459_v53  ;;  %v959_v54 = vld [vmem:[%s1358_s6 + $0x56] sm:$0xff] }
  0x6c   : > { %1223 = vmatmul.msk.f32.gmra.mxu0 %vm196_vm0, %v559_v55  ;;  %1239 = vmatmul.msk.f32.vlgmr.msra.gmra.mxu2 %vm196_vm0, %v751_v56 }
  0x73   : > { %1188 = vmatmul.msk.f32.gmra.mxu1 %vm196_vm0, %v180_v57  ;;  %1212 = vmatmul.msk.f32.gmra.mxu3 %vm196_vm0, %v460_v58 }
  0x74   : > { %1224 = vmatmul.msk.f32.gmra.mxu0 %vm196_vm0, %v560_v59  ;;  %1240 = vmatmul.msk.f32.gmra.mxu2 %vm196_vm0, %v752_v60 }
  0x7b   : > { %1227 = vmatmul.msk.f32.vlgmr.msra.gmra.mxu1 %vm196_vm0, %v651_v61  ;;  %1251 = vmatmul.msk.f32.vlgmr.msra.gmra.mxu3 %vm196_vm0, %v851_v62 }
  0x7c   : > { %1263 = vmatmul.msk.f32.vlgmr.msra.gmra.mxu0 %vm196_vm0, %v951_v63  ;;  %1241 = vmatmul.msk.f32.gmra.mxu2 %vm196_vm0, %v753_v0 }
  0x83   : > { %1228 = vmatmul.msk.f32.gmra.mxu1 %vm196_vm0, %v751_v56  ;;  %1252 = vmatmul.msk.f32.gmra.mxu3 %vm196_vm0, %v852_v1 }
  0x84   : > { %1264 = vmatmul.msk.f32.gmra.mxu0 %vm196_vm0, %v952_v2  ;;  %1242 = vmatmul.msk.f32.gmra.mxu2 %vm196_vm0, %v754_v3 }
  0x8b   : > { %1229 = vmatmul.msk.f32.gmra.mxu1 %vm196_vm0, %v752_v60  ;;  %1253 = vmatmul.msk.f32.gmra.mxu3 %vm196_vm0, %v853_v4  ;;  %v860_v60 = vld [vmem:[%s1358_s6 + $0x5d] sm:$0xff] }
  0x8c   : > { %1265 = vmatmul.msk.f32.gmra.mxu0 %vm196_vm0, %v953_v5  ;;  %1243 = vmatmul.msk.f32.gmra.mxu2 %vm196_vm0, %v755_v6 }
  0x90   : > { %v1507_v7 = vpop.f32.mrf.mxu1 }
  0x91   : > { %v244_v9 = vpop.f32.mrf.mxu0 }
  0x93   : > { %1230 = vmatmul.msk.f32.gmra.mxu1 %vm196_vm0, %v753_v0  ;;  %1254 = vmatmul.msk.f32.gmra.mxu3 %vm196_vm0, %v854_v8  ;;  %v960_v0 = vld [vmem:[%s1358_s6 + $0x5e] sm:$0xff] }
  0x94   : > { %1266 = vmatmul.msk.f32.gmra.mxu0 %vm196_vm0, %v954_v10  ;;  %1244 = vmatmul.msk.f32.gmra.mxu2 %vm196_vm0, %v756_v11 }
  0x96   : > { %v1516_v12 = vpop.f32.mrf.mxu3 }
  0x97   : > { %v1518_v13 = vpop.f32.mrf.mxu2 }
  0x98   : > { %v1520_v14 = vpop.f32.mrf.mxu1 }
  0x99   : > { %v247_v16 = vpop.f32.mrf.mxu0 }
  0x9b   : > { %1231 = vmatmul.msk.f32.gmra.mxu1 %vm196_vm0, %v754_v3  ;;  %1255 = vmatmul.msk.f32.gmra.mxu3 %vm196_vm0, %v855_v15 }
  0x9c   : > { %1267 = vmatmul.msk.f32.gmra.mxu0 %vm196_vm0, %v955_v17  ;;  %1245 = vmatmul.msk.f32.gmra.mxu2 %vm196_vm0, %v757_v18 }
  0x9e   : > { %v1529_v19 = vpop.f32.mrf.mxu3 }
  0x9f   : > { %v411_v20 = vpop.f32.mrf.mxu2 }
  0xa0   : > { %v1531_v21 = vpop.f32.mrf.mxu1 }
  0xa1   : > { %v250_v23 = vpop.f32.mrf.mxu0 }
  0xa3   : > { %1232 = vmatmul.msk.f32.gmra.mxu1 %vm196_vm0, %v755_v6  ;;  %1256 = vmatmul.msk.f32.gmra.mxu3 %vm196_vm0, %v856_v22 }
  0xa4   : > { %1268 = vmatmul.msk.f32.gmra.mxu0 %vm196_vm0, %v956_v24  ;;  %1246 = vmatmul.msk.f32.gmra.mxu2 %vm196_vm0, %v758_v25 }
  0xa6   : > { %v1540_v26 = vpop.f32.mrf.mxu3 }
  0xa7   : > { %v414_v27 = vpop.f32.mrf.mxu2 }
  0xa8   : > { %v321_v28 = vpop.f32.mrf.mxu1 }
  0xa9   : > { %v322_v30 = vadd.f32 %v321_v28, %v244_v9  ;;  %v611_v31 = vpop.f32.mrf.mxu0 }
  0xab   : > { %v441_v34 = vadd.f32 %v411_v20, %v322_v30  ;;  %1233 = vmatmul.msk.f32.gmra.mxu1 %vm196_vm0, %v756_v11  ;;  %1257 = vmatmul.msk.f32.gmra.mxu3 %vm196_vm0, %v857_v29 }
  0xac   : > { %1269 = vmatmul.msk.f32.gmra.mxu0 %vm196_vm0, %v957_v32  ;;  %1247 = vmatmul.msk.f32.gmra.mxu2 %vm196_vm0, %v759_v33 }
  0xae   : > { %v511_v35 = vpop.f32.mrf.mxu3 }
  0xaf   : > { %v541_v36 = vadd.f32 %v511_v35, %v441_v34  ;;  %v417_v37 = vpop.f32.mrf.mxu2 }
  0xb0   : > { %v324_v38 = vpop.f32.mrf.mxu1 }
  0xb1   : > { %v325_v40 = vadd.f32 %v324_v38, %v247_v16  ;;  %v1550_v41 = vadd.f32 %v611_v31, %v541_v36  ;;  %v614_v42 = vpop.f32.mrf.mxu0 }
  0xb3   : > { %v442_v45 = vadd.f32 %v414_v27, %v325_v40  ;;  %1234 = vmatmul.msk.f32.gmra.mxu1 %vm196_vm0, %v757_v18  ;;  %1258 = vmatmul.msk.f32.gmra.mxu3 %vm196_vm0, %v858_v39 }
  0xb4   : > { %1270 = vmatmul.msk.f32.gmra.mxu0 %vm196_vm0, %v958_v43  ;;  %1248 = vmatmul.msk.f32.gmra.mxu2 %vm196_vm0, %v760_v44 }
  0xb6   : > { %v514_v46 = vpop.f32.mrf.mxu3 }
  0xb7   : > { %v542_v47 = vadd.f32 %v514_v46, %v442_v45  ;;  %v420_v48 = vpop.f32.mrf.mxu2 }
  0xb8   : > { %v327_v49 = vpop.f32.mrf.mxu1 }
  0xb9   : > { %v328_v51 = vadd.f32 %v327_v49, %v250_v23  ;;  %v1559_v52 = vadd.f32 %v614_v42, %v542_v47  ;;  %v617_v53 = vpop.f32.mrf.mxu0 }
  0xbb   : > { %v443_v55 = vadd.f32 %v417_v37, %v328_v51  ;;  %1235 = vmatmul.msk.f32.gmra.mxu1 %vm196_vm0, %v758_v25  ;;  %1259 = vmatmul.msk.f32.gmra.mxu3 %vm196_vm0, %v859_v50 }
  0xbc   : > { %1271 = vmatmul.msk.f32.gmra.mxu0 %vm196_vm0, %v959_v54 }
  0xbe   : > { %v517_v56 = vpop.f32.mrf.mxu3 }
  0xbf   : > { %v543_v57 = vadd.f32 %v517_v56, %v443_v55  ;;  %v423_v58 = vpop.f32.mrf.mxu2 }
  0xc0   : > { %v330_v59 = vpop.f32.mrf.mxu1 }
  0xc1   : > { %v331_v61 = vadd.f32 %v330_v59, %v1507_v7  ;;  %v1567_v62 = vadd.f32 %v617_v53, %v543_v57  ;;  %v620_v63 = vpop.f32.mrf.mxu0 }
  0xc3   : > { %v444_v1 = vadd.f32 %v420_v48, %v331_v61  ;;  %1236 = vmatmul.msk.f32.gmra.mxu1 %vm196_vm0, %v759_v33  ;;  %1260 = vmatmul.msk.f32.gmra.mxu3 %vm196_vm0, %v860_v60 }
  0xc4   : > { %1272 = vmatmul.msk.f32.gmra.mxu0 %vm196_vm0, %v960_v0 }
  0xc6   : > { %v520_v2 = vpop.f32.mrf.mxu3 }
  0xc7   : > { %v544_v3 = vadd.f32 %v520_v2, %v444_v1  ;;  %v426_v4 = vpop.f32.mrf.mxu2 }
  0xc8   : > { %v333_v5 = vpop.f32.mrf.mxu1 }
  0xc9   : > { %v334_v6 = vadd.f32 %v333_v5, %v1520_v14  ;;  %v1574_v8 = vadd.f32 %v620_v63, %v544_v3  ;;  %v623_v7 = vpop.f32.mrf.mxu0 }
  0xcb   : > { %v445_v9 = vadd.f32 %v423_v58, %v334_v6 }
  0xce   : > { %v523_v10 = vpop.f32.mrf.mxu3 }
  0xcf   : > { %v545_v11 = vadd.f32 %v523_v10, %v445_v9  ;;  %v429_v15 = vpop.f32.mrf.mxu2 }
  0xd0   : > { %v336_v16 = vpop.f32.mrf.mxu1 }
  0xd1   : > { %v337_v17 = vadd.f32 %v336_v16, %v1531_v21  ;;  %v1577_v18 = vadd.f32 %v623_v7, %v545_v11  ;;  %v626_v20 = vpop.f32.mrf.mxu0 }
  0xd3   : > { %v446_v22 = vadd.f32 %v426_v4, %v337_v17 }
  0xd6   : > { %v526_v23 = vpop.f32.mrf.mxu3 }
  0xd7   : > { %v546_v24 = vadd.f32 %v526_v23, %v446_v22  ;;  %v432_v25 = vpop.f32.mrf.mxu2 }
  0xd8   : > { %v339_v27 = vpop.f32.mrf.mxu1 }
  0xd9   : > { %v340_v14 = vadd.f32 %v339_v27, %v1518_v13  ;;  %v1580_v28 = vadd.f32 %v626_v20, %v546_v24  ;;  %v629_v29 = vpop.f32.mrf.mxu0 }
  0xdb   : > { %v447_v30 = vadd.f32 %v429_v15, %v340_v14 }
  0xde   : > { %v529_v31 = vpop.f32.mrf.mxu3 }
  0xdf   : > { %v547_v32 = vadd.f32 %v529_v31, %v447_v30  ;;  %v435_v33 = vpop.f32.mrf.mxu2 }
  0xe0   : > { %v342_v34 = vpop.f32.mrf.mxu1 }
  0xe1   : > { %v343_v21 = vadd.f32 %v342_v34, %v1516_v12  ;;  %v1583_v35 = vadd.f32 %v629_v29, %v547_v32  ;;  %v632_v36 = vpop.f32.mrf.mxu0 }
  0xe3   : > { %v448_v37 = vadd.f32 %v432_v25, %v343_v21 }
  0xe6   : > { %v532_v38 = vpop.f32.mrf.mxu3 }
  0xe7   : > { %v548_v39 = vadd.f32 %v532_v38, %v448_v37  ;;  %v438_v40 = vpop.f32.mrf.mxu2 }
  0xe8   : > { %v345_v42 = vpop.f32.mrf.mxu1 }
  0xe9   : > { %v346_v13 = vadd.f32 %v345_v42, %v1529_v19  ;;  %v1586_v43 = vadd.f32 %v632_v36, %v548_v39  ;;  %v635_v44 = vpop.f32.mrf.mxu0 }
  0xeb   : > { %v449_v45 = vadd.f32 %v435_v33, %v346_v13 }
  0xee   : > { %v535_v46 = vpop.f32.mrf.mxu3 }
  0xef   : > { %v549_v47 = vadd.f32 %v535_v46, %v449_v45  ;;  %v811_v48 = vpop.f32.mrf.mxu2 }
  0xf0   : > { %v348_v49 = vpop.f32.mrf.mxu1 }
  0xf1   : > { %v349_v12 = vadd.f32 %v348_v49, %v1540_v26  ;;  %v1589_v50 = vadd.f32 %v635_v44, %v549_v47  ;;  %v638_v51 = vpop.f32.mrf.mxu0  ;;  %v1597_v26 = vld [vmem:[%s1649_s2] ss:$0 sm:$0xff] }
  0xf3   : > { %v450_v53 = vadd.f32 %v438_v40, %v349_v12 }
  0xf6   : > { %v538_v54 = vpop.f32.mrf.mxu3 }
  0xf7   : > { %v550_v55 = vadd.f32 %v538_v54, %v450_v53  ;;  %v814_v56 = vpop.f32.mrf.mxu2 }
  0xf8   : > { %v711_v57 = vpop.f32.mrf.mxu1 }
  0xf9   : > { %v1591_v19 = vadd.f32 %v638_v51, %v550_v55  ;;  %v741_v58 = vadd.f32 %v711_v57, %v1550_v41  ;;  %v1011_v59 = vpop.f32.mrf.mxu0 }
  0xfb   : > { %v841_v60 = vadd.f32 %v811_v48, %v741_v58 }
  0xfe   : > { %v911_v61 = vpop.f32.mrf.mxu3 }
  0xff   : > { %v941_v63 = vadd.f32 %v911_v61, %v841_v60  ;;  %v817_v0 = vpop.f32.mrf.mxu2 }
 0x100   : > { %v714_v1 = vpop.f32.mrf.mxu1 }
 0x101   : > { %v742_v2 = vadd.f32 %v714_v1, %v1559_v52  ;;  %v1041_v3 = vadd.f32 %v1011_v59, %v941_v63  ;;  %v1014_v4 = vpop.f32.mrf.mxu0 }
 0x103   : > { %v1055_v5 = vadd.f32 %v1597_v26, %v1041_v3  ;;  %v842_v6 = vadd.f32 %v814_v56, %v742_v2 }
 0x105   : > { %vm1065_vm1 = vcmp.gt.f32.partialorder %v1055_v5, 0.0  ;;  %v1075_v41 = vmul.f32 0.2, %v1055_v5 }
 0x106   : > { %v914_v7 = vpop.f32.mrf.mxu3 }
 0x107   : > { %v1085_v9 = vsel %vm1065_vm1, %v1055_v5, %v1075_v41  ;;  %v942_v10 = vadd.f32 %v914_v7, %v842_v6  ;;  %v820_v11 = vpop.f32.mrf.mxu2 }
 0x108   : > { %1095 = vst.msk [vmem:[%s1605_s7] sm:$0xff] %vm196_vm0, %v1085_v9  ;;  %v717_v52 = vpop.f32.mrf.mxu1 }
 0x109   : > { %v743_v15 = vadd.f32 %v717_v52, %v1567_v62  ;;  %v1042_v16 = vadd.f32 %v1014_v4, %v942_v10  ;;  %v1017_v17 = vpop.f32.mrf.mxu0 }
 0x10b   : > { %v1056_v20 = vadd.f32 %v1597_v26, %v1042_v16  ;;  %v843_v23 = vadd.f32 %v817_v0, %v743_v15 }
 0x10d   : > { %vm1066_vm2 = vcmp.gt.f32.partialorder %v1056_v20, 0.0  ;;  %v1076_v22 = vmul.f32 0.2, %v1056_v20 }
 0x10e   : > { %v917_v24 = vpop.f32.mrf.mxu3 }
 0x10f   : > { %v1086_v25 = vsel %vm1066_vm2, %v1056_v20, %v1076_v22  ;;  %v943_v27 = vadd.f32 %v917_v24, %v843_v23  ;;  %v823_v29 = vpop.f32.mrf.mxu2 }
 0x110   : > { %1096 = vst.msk [vmem:[%s1605_s7 + $0x8] sm:$0xff] %vm196_vm0, %v1086_v25  ;;  %v720_v14 = vpop.f32.mrf.mxu1 }
 0x111   : > { %v744_v30 = vadd.f32 %v720_v14, %v1574_v8  ;;  %v1043_v31 = vadd.f32 %v1017_v17, %v943_v27  ;;  %v1020_v32 = vpop.f32.mrf.mxu0 }
 0x113   : > { %v1057_v62 = vadd.f32 %v1597_v26, %v1043_v31  ;;  %v844_v34 = vadd.f32 %v820_v11, %v744_v30 }
 0x115   : > { %vm1067_vm3 = vcmp.gt.f32.partialorder %v1057_v62, 0.0  ;;  %v1077_v33 = vmul.f32 0.2, %v1057_v62 }
 0x116   : > { %v920_v21 = vpop.f32.mrf.mxu3 }
 0x117   : > { %v1087_v36 = vsel %vm1067_vm3, %v1057_v62, %v1077_v33  ;;  %v944_v37 = vadd.f32 %v920_v21, %v844_v34  ;;  %v826_v13 = vpop.f32.mrf.mxu2 }
 0x118   : > { %1097 = vst.msk [vmem:[%s1605_s7 + $0x10] sm:$0xff] %vm196_vm0, %v1087_v36  ;;  %v723_v38 = vpop.f32.mrf.mxu1 }
 0x119   : > { %v745_v39 = vadd.f32 %v723_v38, %v1577_v18  ;;  %v1044_v40 = vadd.f32 %v1020_v32, %v944_v37  ;;  %v1023_v42 = vpop.f32.mrf.mxu0 }
 0x11b   : > { %v1058_v8 = vadd.f32 %v1597_v26, %v1044_v40  ;;  %v845_v45 = vadd.f32 %v823_v29, %v745_v39 }
 0x11d   : > { %vm1068_vm4 = vcmp.gt.f32.partialorder %v1058_v8, 0.0  ;;  %v1078_v44 = vmul.f32 0.2, %v1058_v8 }
 0x11e   : > { %v923_v46 = vpop.f32.mrf.mxu3 }
 0x11f   : > { %v1088_v47 = vsel %vm1068_vm4, %v1058_v8, %v1078_v44  ;;  %v945_v48 = vadd.f32 %v923_v46, %v845_v45  ;;  %v829_v54 = vpop.f32.mrf.mxu2 }
 0x120   : > { %1098 = vst.msk [vmem:[%s1605_s7 + $0x18] sm:$0xff] %vm196_vm0, %v1088_v47  ;;  %v726_v49 = vpop.f32.mrf.mxu1 }
 0x121   : > { %v746_v12 = vadd.f32 %v726_v49, %v1580_v28  ;;  %v1045_v51 = vadd.f32 %v1023_v42, %v945_v48  ;;  %v1026_v53 = vpop.f32.mrf.mxu0 }
 0x123   : > { %v1059_v18 = vadd.f32 %v1597_v26, %v1045_v51  ;;  %v846_v56 = vadd.f32 %v826_v13, %v746_v12 }
 0x125   : > { %vm1069_vm5 = vcmp.gt.f32.partialorder %v1059_v18, 0.0  ;;  %v1079_v55 = vmul.f32 0.2, %v1059_v18 }
 0x126   : > { %v926_v57 = vpop.f32.mrf.mxu3 }
 0x127   : > { %v1089_v58 = vsel %vm1069_vm5, %v1059_v18, %v1079_v55  ;;  %v946_v59 = vadd.f32 %v926_v57, %v846_v56  ;;  %v832_v4 = vpop.f32.mrf.mxu2 }
 0x128   : > { %1099 = vst.msk [vmem:[%s1605_s7 + $0x20] sm:$0xff] %vm196_vm0, %v1089_v58  ;;  %v729_v60 = vpop.f32.mrf.mxu1 }
 0x129   : > { %v747_v61 = vadd.f32 %v729_v60, %v1583_v35  ;;  %v1046_v63 = vadd.f32 %v1026_v53, %v946_v59  ;;  %v1029_v0 = vpop.f32.mrf.mxu0 }
 0x12b   : > { %v1060_v28 = vadd.f32 %v1597_v26, %v1046_v63  ;;  %v847_v2 = vadd.f32 %v829_v54, %v747_v61 }
 0x12d   : > { %vm1070_vm6 = vcmp.gt.f32.partialorder %v1060_v28, 0.0  ;;  %v1080_v1 = vmul.f32 0.2, %v1060_v28 }
 0x12e   : > { %v929_v3 = vpop.f32.mrf.mxu3 }
 0x12f   : > { %v1090_v5 = vsel %vm1070_vm6, %v1060_v28, %v1080_v1  ;;  %v947_v41 = vadd.f32 %v929_v3, %v847_v2  ;;  %v835_v22 = vpop.f32.mrf.mxu2 }
 0x130   : > { %1100 = vst.msk [vmem:[%s1605_s7 + $0x28] sm:$0xff] %vm196_vm0, %v1090_v5  ;;  %v732_v6 = vpop.f32.mrf.mxu1 }
 0x131   : > { %v748_v7 = vadd.f32 %v732_v6, %v1586_v43  ;;  %v1047_v9 = vadd.f32 %v1029_v0, %v947_v41  ;;  %v1032_v10 = vpop.f32.mrf.mxu0 }
 0x133   : > { %v1061_v35 = vadd.f32 %v1597_v26, %v1047_v9  ;;  %v848_v52 = vadd.f32 %v832_v4, %v748_v7 }
 0x135   : > { %vm1071_vm7 = vcmp.gt.f32.partialorder %v1061_v35, 0.0  ;;  %v1081_v11 = vmul.f32 0.2, %v1061_v35 }
 0x136   : > { %v932_v15 = vpop.f32.mrf.mxu3 }
 0x137   : > { %v1091_v16 = vsel %vm1071_vm7, %v1061_v35, %v1081_v11  ;;  %v948_v17 = vadd.f32 %v932_v15, %v848_v52  ;;  %v838_v34 = vpop.f32.mrf.mxu2 }
 0x138   : > { %1101 = vst.msk [vmem:[%s1605_s7 + $0x30] sm:$0xff] %vm196_vm0, %v1091_v16  ;;  %v735_v20 = vpop.f32.mrf.mxu1 }
 0x139   : > { %v749_v23 = vadd.f32 %v735_v20, %v1589_v50  ;;  %v1048_v24 = vadd.f32 %v1032_v10, %v948_v17  ;;  %v1035_v25 = vpop.f32.mrf.mxu0 }
 0x13b   : > { %v1062_v43 = vadd.f32 %v1597_v26, %v1048_v24  ;;  %v849_v14 = vadd.f32 %v835_v22, %v749_v23 }
 0x13d   : > { %vm1072_vm8 = vcmp.gt.f32.partialorder %v1062_v43, 0.0  ;;  %v1082_v27 = vmul.f32 0.2, %v1062_v43 }
 0x13e   : > { %v935_v29 = vpop.f32.mrf.mxu3 }
 0x13f   : > { %v1092_v30 = vsel %vm1072_vm8, %v1062_v43, %v1082_v27  ;;  %v949_v31 = vadd.f32 %v935_v29, %v849_v14 }
 0x140   : > { %1102 = vst.msk [vmem:[%s1605_s7 + $0x38] sm:$0xff] %vm196_vm0, %v1092_v30  ;;  %v738_v32 = vpop.f32.mrf.mxu1 }
 0x141   : > { %v750_v62 = vadd.f32 %v738_v32, %v1591_v19  ;;  %v1049_v33 = vadd.f32 %v1035_v25, %v949_v31  ;;  %v1038_v38 = vpop.f32.mrf.mxu0 }
 0x143   : > { %v1063_v50 = vadd.f32 %v1597_v26, %v1049_v33  ;;  %v850_v36 = vadd.f32 %v838_v34, %v750_v62 }
 0x145   : > { %vm1073_vm9 = vcmp.gt.f32.partialorder %v1063_v50, 0.0  ;;  %v1083_v21 = vmul.f32 0.2, %v1063_v50 }
 0x146   : > { %v938_v37 = vpop.f32.mrf.mxu3 }
 0x147   : > { %v1093_v39 = vsel %vm1073_vm9, %v1063_v50, %v1083_v21  ;;  %v950_v40 = vadd.f32 %v938_v37, %v850_v36 }
 0x148   : > { %1103 = vst.msk [vmem:[%s1605_s7 + $0x40] sm:$0xff] %vm196_vm0, %v1093_v39 }
 0x149   : > { %v1050_v42 = vadd.f32 %v1038_v38, %v950_v40 }
 0x14b   : > { %v1064_v13 = vadd.f32 %v1597_v26, %v1050_v42 }
 0x14d   : > { %vm1074_vm10 = vcmp.gt.f32.partialorder %v1064_v13, 0.0  ;;  %v1084_v8 = vmul.f32 0.2, %v1064_v13 }
 0x14f   : > { %v1094_v19 = vsel %vm1074_vm10, %v1064_v13, %v1084_v8 }
 0x150   : > { %1104 = vst.msk [vmem:[%s1605_s7 + $0x48] sm:$0xff] %vm196_vm0, %v1094_v19 }
 0x151 PF: > { %s13_s12 = sadd.s32 1, %s1298_s12  }
 0x152   : > { %p10_p4 = scmp.ge.s32.totalorder %s13_s12, 6  }
 0x154   :  { %12 = sbr.rel (!%p10_p4) target bundleno = 1 (0x1), region = 70 }

// kernel: keyp_to_images_decoder_no_first.9
= control target key start
LH: loop header
LB: loop body
LE: loop exit
PB: predicated region body
PF: predicated region fallthrough
CT: control target
= control target key end

     0   :  { %s2237_s12 = smov 0   ;;  %s2968_s0 = inlined_call_operand.vmem [shape: f32[4,102,16], index: 0, kind: input, shape index: {}]   ;;  %s2969_s1 = inlined_call_operand.vmem [shape: f32[16,16,8], index: 1, kind: input, shape index: {}]   ;;  %s2970_s2 = inlined_call_operand.vmem [shape: f32[1,8], index: 2, kind: input, shape index: {}]   ;;  %s2971_s3 = inlined_call_operand.vmem [shape: f32[4,4,80,8], index: 3, kind: output, shape index: {}]  }
   0x1 LB: > { %s1966_s13 = sadd.s32 4294967295, %s2215_s12   ;;  %p1970_p0 = scmp.ge.s32.totalorder %s2215_s12, 1  ;;  %s2215_s12 = sphi %s2237_s12, %s13_s12  }
   0x2   : > { %p137_p1 = scmp.lt.s32.totalorder %s2215_s12, 5 }
   0x4   : > { %p138_p2 = pnand %p1970_p0, %p137_p1 }
   0x5   : > { %p161_p3 = scmp.lt.s32.totalorder (!%p138_p2), %s1966_s13, 3 }
   0x6   : > { %141 = sbr.rel (%p138_p2) target bundleno = 472 (0x1d8), region = 32 }
   0xb   : > { %v1996_v0 = vld [vmem:[%s2969_s1 + $0x28] sm:$0xff]  ;;  %v1995_v1 = vld [vmem:[%s2969_s1 + $0x20] sm:$0xff]  ;;  %v2008_v2 = vld [vmem:[%s2969_s1 + $0x38] sm:$0xff]  ;;  %s2973_s13 = smov (!%p161_p3, %s1966_s13), 3  ;;  %vm196_vm0 = vcmask 130048   ;;  %vm595_vm2 = vcmask 64512  }
   0xc   : > { %408 = vmatpush.msra.mxu2 %v1996_v0  ;;  %508 = vmatpush.msra.mxu3 %v2008_v2  ;;  %v2044_v3 = vld [vmem:[%s2969_s1 + $0x68] sm:$0xff]  ;;  %v1974_v4 = vld [vmem:[%s2969_s1 + $0x18] sm:$0xff]  ;;  %v2007_v6 = vld [vmem:[%s2969_s1 + $0x30] sm:$0xff]  ;;  %s2195_s11 = smul.u32 104, %s2973_s13 }
   0xd   : > { %v182_v5 = vld [vmem:[%s2969_s1 + $0x8] sm:$0xff]  ;;  %241 = vmatpush.msra.mxu0 %v1974_v4  ;;  %v2056_v7 = vld [vmem:[%s2969_s1 + $0x78] sm:$0xff]  ;;  %v1973_v8 = vld [vmem:[%s2969_s1 + $0x10] sm:$0xff]  ;;  %s2196_s25 = smul.u32 320, %s2973_s13 }
   0xe   : > { %318 = vmatpush.msra.mxu1 %v182_v5  ;;  %409 = vmatpush.msra.mxu2 %v1995_v1  ;;  %v181_v9 = vld [vmem:[%s2969_s1] sm:$0xff]  ;;  %v2022_v10 = vld [vmem:[%s2969_s1 + $0x58] sm:$0xff]  ;;  %v2020_v11 = vld [vmem:[%s2969_s1 + $0x48] sm:$0xff]  ;;  %s2287_s16 = scalar_lea.vmem %s2968_s0, %s2195_s11 }
   0xf   : > { %509 = vmatpush.msra.mxu3 %v2007_v6  ;;  %242 = vmatpush.msra.mxu0 %v1973_v8  ;;  %v2290_v12 = vld [vmem:[%s2287_s16 + $0xa] sm:$0xff]  ;;  %v2296_v14 = vld [vmem:[%s2287_s16 + $0x1] sm:$0xff]  ;;  %v2307_v16 = vld [vmem:[%s2287_s16 + $0x12] sm:$0xff]  ;;  %s2605_s29 = scalar_lea.vmem %s2971_s3, %s2196_s25 }
  0x10   : > { %843 = vmatpush.msrb.mxu2 %v2044_v3  ;;  %319 = vmatpush.msra.mxu1 %v181_v9  ;;  %v2293_v13 = vld [vmem:[%s2287_s16 + $0xb] sm:$0xff]  ;;  %v171_v15 = vld [vmem:[%s2287_s16] sm:$0xff]  ;;  %v2310_v17 = vld [vmem:[%s2287_s16 + $0x13] sm:$0xff] }
  0x11   : > { %943 = vmatpush.msrb.mxu3 %v2056_v7  ;;  %676 = vmatpush.msrb.mxu0 %v2022_v10  ;;  %v2313_v18 = vld [vmem:[%s2287_s16 + $0x9] sm:$0xff]  ;;  %v2043_v20 = vld [vmem:[%s2969_s1 + $0x60] sm:$0xff]  ;;  %v2342_v26 = vld [vmem:[%s2287_s16 + $0x11] sm:$0xff] }
  0x12   : > { %753 = vmatpush.msrb.mxu1 %v2020_v11  ;;  %1997 = vmatmul.msk.f32.vlgmr.msra.gmra.mxu2 %vm196_vm0, %v2290_v12  ;;  %v172_v19 = vld [vmem:[%s2287_s16 + $0x8] sm:$0xff]  ;;  %v2055_v21 = vld [vmem:[%s2969_s1 + $0x70] sm:$0xff]  ;;  %v2019_v23 = vld [vmem:[%s2969_s1 + $0x40] sm:$0xff] }
  0x13   : > { %2009 = vmatmul.msk.f32.vlgmr.msra.gmra.mxu3 %vm196_vm0, %v2293_v13  ;;  %1975 = vmatmul.msk.f32.vlgmr.msra.gmra.mxu0 %vm196_vm0, %v2296_v14  ;;  %v2021_v22 = vld [vmem:[%s2969_s1 + $0x50] sm:$0xff]  ;;  %v2336_v24 = vld [vmem:[%s2287_s16 + $0x1a] sm:$0xff]  ;;  %v2353_v28 = vld [vmem:[%s2287_s16 + $0x22] sm:$0xff] }
  0x14   : > { %1985 = vmatmul.msk.f32.vlgmr.msra.gmra.mxu1 %vm196_vm0, %v171_v15  ;;  %844 = vmatpush.msrb.mxu2 %v2043_v20  ;;  %v2339_v25 = vld [vmem:[%s2287_s16 + $0x1b] sm:$0xff]  ;;  %v173_v27 = vld [vmem:[%s2287_s16 + $0x10] sm:$0xff]  ;;  %v2356_v29 = vld [vmem:[%s2287_s16 + $0x23] sm:$0xff] }
  0x15   : > { %944 = vmatpush.msrb.mxu3 %v2055_v21  ;;  %677 = vmatpush.msrb.mxu0 %v2021_v22  ;;  %v2359_v30 = vld [vmem:[%s2287_s16 + $0x19] sm:$0xff]  ;;  %v2370_v32 = vld [vmem:[%s2287_s16 + $0x2a] sm:$0xff]  ;;  %v2376_v34 = vld [vmem:[%s2287_s16 + $0x21] sm:$0xff] }
  0x16   : > { %754 = vmatpush.msrb.mxu1 %v2019_v23  ;;  %v174_v31 = vld [vmem:[%s2287_s16 + $0x18] sm:$0xff]  ;;  %v2373_v33 = vld [vmem:[%s2287_s16 + $0x2b] sm:$0xff]  ;;  %v175_v35 = vld [vmem:[%s2287_s16 + $0x20] sm:$0xff] }
  0x17   : > { %v2387_v36 = vld [vmem:[%s2287_s16 + $0x32] sm:$0xff]  ;;  %v2393_v38 = vld [vmem:[%s2287_s16 + $0x29] sm:$0xff]  ;;  %v2404_v40 = vld [vmem:[%s2287_s16 + $0x3a] sm:$0xff] }
  0x18   : > { %v2390_v37 = vld [vmem:[%s2287_s16 + $0x33] sm:$0xff]  ;;  %v176_v39 = vld [vmem:[%s2287_s16 + $0x28] sm:$0xff]  ;;  %v2407_v41 = vld [vmem:[%s2287_s16 + $0x3b] sm:$0xff] }
  0x19   : > { %v2410_v42 = vld [vmem:[%s2287_s16 + $0x31] sm:$0xff]  ;;  %v2102_v44 = vld [vmem:[%s2969_s1 + $0xa8] sm:$0xff]  ;;  %v2439_v50 = vld [vmem:[%s2287_s16 + $0x39] sm:$0xff] }
  0x1a   : > { %1998 = vmatmul.msk.f32.gmra.mxu2 %vm196_vm0, %v2307_v16  ;;  %v177_v43 = vld [vmem:[%s2287_s16 + $0x30] sm:$0xff]  ;;  %v2114_v45 = vld [vmem:[%s2969_s1 + $0xb8] sm:$0xff]  ;;  %v2078_v47 = vld [vmem:[%s2969_s1 + $0x88] sm:$0xff] }
  0x1b   : > { %2010 = vmatmul.msk.f32.gmra.mxu3 %vm196_vm0, %v2310_v17  ;;  %1976 = vmatmul.msk.f32.gmra.mxu0 %vm196_vm0, %v2313_v18  ;;  %v2080_v46 = vld [vmem:[%s2969_s1 + $0x98] sm:$0xff]  ;;  %v2433_v48 = vld [vmem:[%s2287_s16 + $0x42] sm:$0xff]  ;;  %v2450_v52 = vld [vmem:[%s2287_s16 + $0x4a] sm:$0xff] }
  0x1c   : > { %1986 = vmatmul.msk.f32.gmra.mxu1 %vm196_vm0, %v172_v19  ;;  %1278 = vmatpush.msra.mxu2 %v2102_v44  ;;  %v2436_v49 = vld [vmem:[%s2287_s16 + $0x43] sm:$0xff]  ;;  %v178_v51 = vld [vmem:[%s2287_s16 + $0x38] sm:$0xff]  ;;  %v2453_v53 = vld [vmem:[%s2287_s16 + $0x4b] sm:$0xff] }
  0x1d   : > { %1378 = vmatpush.msra.mxu3 %v2114_v45  ;;  %1111 = vmatpush.msra.mxu0 %v2080_v46  ;;  %v2456_v54 = vld [vmem:[%s2287_s16 + $0x41] sm:$0xff]  ;;  %v2467_v56 = vld [vmem:[%s2287_s16 + $0x52] sm:$0xff]  ;;  %v2473_v58 = vld [vmem:[%s2287_s16 + $0x49] sm:$0xff] }
  0x1e   : > { %1188 = vmatpush.msra.mxu1 %v2078_v47  ;;  %v179_v55 = vld [vmem:[%s2287_s16 + $0x40] sm:$0xff]  ;;  %v2470_v57 = vld [vmem:[%s2287_s16 + $0x53] sm:$0xff]  ;;  %v180_v59 = vld [vmem:[%s2287_s16 + $0x48] sm:$0xff] }
  0x1f   : > { %v2484_v60 = vld [vmem:[%s2287_s16 + $0xc] sm:$0xff]  ;;  %v619_v61 = vld [vmem:[%s2287_s16 + $0x2] sm:$0xff]  ;;  %v2495_v62 = vld [vmem:[%s2287_s16 + $0x14] sm:$0xff] }
  0x20   : > { %v2101_v63 = vld [vmem:[%s2969_s1 + $0xa0] sm:$0xff]  ;;  %v2113_v0 = vld [vmem:[%s2969_s1 + $0xb0] sm:$0xff]  ;;  %v2160_v20 = vld [vmem:[%s2969_s1 + $0xe8] sm:$0xff] }
  0x21   : > { %v2079_v1 = vld [vmem:[%s2969_s1 + $0x90] sm:$0xff]  ;;  %v2077_v2 = vld [vmem:[%s2969_s1 + $0x80] sm:$0xff]  ;;  %1279 = vmatpush.msra.mxu2 %v2101_v63  ;;  %1379 = vmatpush.msra.mxu3 %v2113_v0  ;;  %v2172_v21 = vld [vmem:[%s2969_s1 + $0xf8] sm:$0xff] }
  0x22   : > { %1999 = vmatmul.msk.f32.gmra.mxu2 %vm196_vm0, %v2336_v24  ;;  %1112 = vmatpush.msra.mxu0 %v2079_v1  ;;  %v2518_v3 = vld [vmem:[%s2287_s16 + $0x1c] sm:$0xff]  ;;  %v2529_v4 = vld [vmem:[%s2287_s16 + $0x24] sm:$0xff]  ;;  %v2540_v5 = vld [vmem:[%s2287_s16 + $0x2c] sm:$0xff] }
  0x23   : > { %2011 = vmatmul.msk.f32.gmra.mxu3 %vm196_vm0, %v2339_v25  ;;  %1977 = vmatmul.msk.f32.gmra.mxu0 %vm196_vm0, %v2342_v26  ;;  %v2551_v6 = vld [vmem:[%s2287_s16 + $0x34] sm:$0xff]  ;;  %v2562_v7 = vld [vmem:[%s2287_s16 + $0x3c] sm:$0xff]  ;;  %v2578_v19 = vld [vmem:[%s2287_s16 + $0x44] sm:$0xff] }
  0x24   : > { %1987 = vmatmul.msk.f32.gmra.mxu1 %vm196_vm0, %v173_v27  ;;  %v2138_v22 = vld [vmem:[%s2969_s1 + $0xd8] sm:$0xff]  ;;  %v2610_v44 = vld [vmem:[%s2287_s16 + $0x4c] sm:$0xff] }
  0x25   : > { %1189 = vmatpush.msra.mxu1 %v2077_v2  ;;  %v2624_v1 = vld [vmem:[%s2287_s16 + $0x54] sm:$0xff] }
  0x2a   : > { %2000 = vmatmul.msk.f32.gmra.mxu2 %vm196_vm0, %v2353_v28 }
  0x2b   : > { %2012 = vmatmul.msk.f32.gmra.mxu3 %vm196_vm0, %v2356_v29  ;;  %1978 = vmatmul.msk.f32.gmra.mxu0 %vm196_vm0, %v2359_v30 }
  0x2c   : > { %1988 = vmatmul.msk.f32.gmra.mxu1 %vm196_vm0, %v174_v31 }
  0x32   : > { %2001 = vmatmul.msk.f32.gmra.mxu2 %vm196_vm0, %v2370_v32 }
  0x33   : > { %2013 = vmatmul.msk.f32.gmra.mxu3 %vm196_vm0, %v2373_v33  ;;  %1979 = vmatmul.msk.f32.gmra.mxu0 %vm196_vm0, %v2376_v34 }
  0x34   : > { %1989 = vmatmul.msk.f32.gmra.mxu1 %vm196_vm0, %v175_v35 }
  0x3a   : > { %2002 = vmatmul.msk.f32.gmra.mxu2 %vm196_vm0, %v2387_v36 }
  0x3b   : > { %2014 = vmatmul.msk.f32.gmra.mxu3 %vm196_vm0, %v2390_v37  ;;  %1980 = vmatmul.msk.f32.gmra.mxu0 %vm196_vm0, %v2393_v38 }
  0x3c   : > { %1990 = vmatmul.msk.f32.gmra.mxu1 %vm196_vm0, %v176_v39 }
  0x42   : > { %2003 = vmatmul.msk.f32.gmra.mxu2 %vm196_vm0, %v2404_v40 }
  0x43   : > { %2015 = vmatmul.msk.f32.gmra.mxu3 %vm196_vm0, %v2407_v41  ;;  %1981 = vmatmul.msk.f32.gmra.mxu0 %vm196_vm0, %v2410_v42 }
  0x44   : > { %1991 = vmatmul.msk.f32.gmra.mxu1 %vm196_vm0, %v177_v43 }
  0x4a   : > { %2004 = vmatmul.msk.f32.gmra.mxu2 %vm196_vm0, %v2433_v48 }
  0x4b   : > { %2016 = vmatmul.msk.f32.gmra.mxu3 %vm196_vm0, %v2436_v49  ;;  %1982 = vmatmul.msk.f32.gmra.mxu0 %vm196_vm0, %v2439_v50 }
  0x4c   : > { %1992 = vmatmul.msk.f32.gmra.mxu1 %vm196_vm0, %v178_v51 }
  0x52   : > { %2005 = vmatmul.msk.f32.gmra.mxu2 %vm196_vm0, %v2450_v52 }
  0x53   : > { %2017 = vmatmul.msk.f32.gmra.mxu3 %vm196_vm0, %v2453_v53  ;;  %1983 = vmatmul.msk.f32.gmra.mxu0 %vm196_vm0, %v2456_v54 }
  0x54   : > { %1993 = vmatmul.msk.f32.gmra.mxu1 %vm196_vm0, %v179_v55 }
  0x5a   : > { %2006 = vmatmul.msk.f32.gmra.mxu2 %vm196_vm0, %v2467_v56 }
  0x5b   : > { %2018 = vmatmul.msk.f32.gmra.mxu3 %vm196_vm0, %v2470_v57  ;;  %1984 = vmatmul.msk.f32.gmra.mxu0 %vm196_vm0, %v2473_v58 }
  0x5c   : > { %1994 = vmatmul.msk.f32.gmra.mxu1 %vm196_vm0, %v180_v59 }
  0x62   : > { %2045 = vmatmul.msk.f32.vlgmr.msrb.gmra.mxu2 %vm196_vm0, %v2293_v13 }
  0x63   : > { %2057 = vmatmul.msk.f32.vlgmr.msrb.gmra.mxu3 %vm196_vm0, %v2484_v60  ;;  %2023 = vmatmul.msk.f32.vlgmr.msrb.gmra.mxu0 %vm196_vm0, %v619_v61 }
  0x64   : > { %2033 = vmatmul.msk.f32.vlgmr.msrb.gmra.mxu1 %vm196_vm0, %v2296_v14  ;;  %1713 = vmatpush.msrb.mxu2 %v2160_v20 }
  0x65   : > { %1813 = vmatpush.msrb.mxu3 %v2172_v21  ;;  %1546 = vmatpush.msrb.mxu0 %v2138_v22  ;;  %v2638_v22 = vld [vmem:[%s2287_s16 + $0x15] sm:$0xff] }
  0x6a   : > { %2046 = vmatmul.msk.f32.gmra.mxu2 %vm196_vm0, %v2310_v17 }
  0x6b   : > { %2058 = vmatmul.msk.f32.gmra.mxu3 %vm196_vm0, %v2495_v62  ;;  %2024 = vmatmul.msk.f32.gmra.mxu0 %vm196_vm0, %v2290_v12 }
  0x6c   : > { %2034 = vmatmul.msk.f32.gmra.mxu1 %vm196_vm0, %v2313_v18  ;;  %v2575_v18 = vld [vmem:[%s2970_s2] ss:$0 sm:$0xff] }
  0x72   : > { %2047 = vmatmul.msk.f32.gmra.mxu2 %vm196_vm0, %v2339_v25 }
  0x73   : > { %2059 = vmatmul.msk.f32.gmra.mxu3 %vm196_vm0, %v2518_v3  ;;  %2025 = vmatmul.msk.f32.gmra.mxu0 %vm196_vm0, %v2307_v16 }
  0x74   : > { %2035 = vmatmul.msk.f32.gmra.mxu1 %vm196_vm0, %v2342_v26 }
  0x7a   : > { %2048 = vmatmul.msk.f32.gmra.mxu2 %vm196_vm0, %v2356_v29 }
  0x7b   : > { %2060 = vmatmul.msk.f32.gmra.mxu3 %vm196_vm0, %v2529_v4  ;;  %2026 = vmatmul.msk.f32.gmra.mxu0 %vm196_vm0, %v2336_v24 }
  0x7c   : > { %2036 = vmatmul.msk.f32.gmra.mxu1 %vm196_vm0, %v2359_v30  ;;  %v2136_v30 = vld [vmem:[%s2969_s1 + $0xc8] sm:$0xff] }
  0x7d   : > { %1623 = vmatpush.msrb.mxu1 %v2136_v30 }
  0x82   : > { %2049 = vmatmul.msk.f32.gmra.mxu2 %vm196_vm0, %v2373_v33 }
  0x83   : > { %2061 = vmatmul.msk.f32.gmra.mxu3 %vm196_vm0, %v2540_v5  ;;  %2027 = vmatmul.msk.f32.gmra.mxu0 %vm196_vm0, %v2353_v28 }
  0x84   : > { %2037 = vmatmul.msk.f32.gmra.mxu1 %vm196_vm0, %v2376_v34 }
  0x8a   : > { %2050 = vmatmul.msk.f32.gmra.mxu2 %vm196_vm0, %v2390_v37 }
  0x8b   : > { %2062 = vmatmul.msk.f32.gmra.mxu3 %vm196_vm0, %v2551_v6  ;;  %2028 = vmatmul.msk.f32.gmra.mxu0 %vm196_vm0, %v2370_v32 }
  0x8c   : > { %2038 = vmatmul.msk.f32.gmra.mxu1 %vm196_vm0, %v2393_v38 }
  0x90   : > { %v244_v8 = vpop.f32.mrf.mxu0 }
  0x91   : > { %v321_v9 = vpop.f32.mrf.mxu1 }
  0x92   : > { %2051 = vmatmul.msk.f32.gmra.mxu2 %vm196_vm0, %v2407_v41  ;;  %v322_v10 = vadd.f32 %v321_v9, %v244_v8 }
  0x93   : > { %2063 = vmatmul.msk.f32.gmra.mxu3 %vm196_vm0, %v2562_v7  ;;  %2029 = vmatmul.msk.f32.gmra.mxu0 %vm196_vm0, %v2387_v36 }
  0x94   : > { %2039 = vmatmul.msk.f32.gmra.mxu1 %vm196_vm0, %v2410_v42 }
  0x95   : > { %v411_v11 = vpop.f32.mrf.mxu2 }
  0x96   : > { %v511_v14 = vpop.f32.mrf.mxu3  ;;  %v441_v15 = vadd.f32 %v411_v11, %v322_v10 }
  0x98   : > { %v541_v23 = vadd.f32 %v511_v14, %v441_v15  ;;  %v247_v26 = vpop.f32.mrf.mxu0 }
  0x99   : > { %v324_v27 = vpop.f32.mrf.mxu1 }
  0x9a   : > { %v555_v31 = vadd.f32 %v2575_v18, %v541_v23  ;;  %2052 = vmatmul.msk.f32.gmra.mxu2 %vm196_vm0, %v2436_v49  ;;  %v325_v34 = vadd.f32 %v324_v27, %v247_v26 }
  0x9b   : > { %2064 = vmatmul.msk.f32.gmra.mxu3 %vm196_vm0, %v2578_v19  ;;  %2030 = vmatmul.msk.f32.gmra.mxu0 %vm196_vm0, %v2404_v40 }
  0x9c   : > { %2040 = vmatmul.msk.f32.gmra.mxu1 %vm196_vm0, %v2439_v50  ;;  %vm565_vm1 = vcmp.gt.f32.partialorder %v555_v31, 0.0  ;;  %v575_v35 = vmul.f32 0.2, %v555_v31 }
  0x9d   : > { %v414_v38 = vpop.f32.mrf.mxu2 }
  0x9e   : > { %v514_v39 = vpop.f32.mrf.mxu3  ;;  %v585_v42 = vsel %vm565_vm1, %v555_v31, %v575_v35  ;;  %v442_v43 = vadd.f32 %v414_v38, %v325_v34 }
  0x9f   : > { %596 = vst.msk [vmem:[%s2605_s29] sm:$0xff] %vm595_vm2, %v585_v42  ;;  %v2652_v42 = vld [vmem:[%s2287_s16 + $0x1d] sm:$0xff] }
  0xa0   : > { %v542_v45 = vadd.f32 %v514_v39, %v442_v43  ;;  %v250_v46 = vpop.f32.mrf.mxu0 }
  0xa1   : > { %v327_v47 = vpop.f32.mrf.mxu1 }
  0xa2   : > { %v556_v50 = vadd.f32 %v2575_v18, %v542_v45  ;;  %2053 = vmatmul.msk.f32.gmra.mxu2 %vm196_vm0, %v2453_v53  ;;  %v328_v51 = vadd.f32 %v327_v47, %v250_v46 }
  0xa3   : > { %2065 = vmatmul.msk.f32.gmra.mxu3 %vm196_vm0, %v2610_v44  ;;  %2031 = vmatmul.msk.f32.gmra.mxu0 %vm196_vm0, %v2433_v48 }
  0xa4   : > { %2041 = vmatmul.msk.f32.gmra.mxu1 %vm196_vm0, %v2456_v54  ;;  %vm566_vm3 = vcmp.gt.f32.partialorder %v556_v50, 0.0  ;;  %v576_v55 = vmul.f32 0.2, %v556_v50 }
  0xa5   : > { %v417_v59 = vpop.f32.mrf.mxu2 }
  0xa6   : > { %v517_v61 = vpop.f32.mrf.mxu3  ;;  %v586_v63 = vsel %vm566_vm3, %v556_v50, %v576_v55  ;;  %v443_v0 = vadd.f32 %v417_v59, %v328_v51 }
  0xa7   : > { %597 = vst.msk [vmem:[%s2605_s29 + $0x8] sm:$0xff] %vm595_vm2, %v586_v63  ;;  %v2664_v63 = vld [vmem:[%s2287_s16 + $0x25] sm:$0xff] }
  0xa8   : > { %v543_v2 = vadd.f32 %v517_v61, %v443_v0  ;;  %v253_v8 = vpop.f32.mrf.mxu0  ;;  %v2159_v0 = vld [vmem:[%s2969_s1 + $0xe0] sm:$0xff] }
  0xa9   : > { %v330_v9 = vpop.f32.mrf.mxu1  ;;  %1714 = vmatpush.msrb.mxu2 %v2159_v0 }
  0xaa   : > { %v557_v10 = vadd.f32 %v2575_v18, %v543_v2  ;;  %2054 = vmatmul.msk.f32.gmra.mxu2 %vm196_vm0, %v2470_v57  ;;  %v331_v54 = vadd.f32 %v330_v9, %v253_v8  ;;  %v2171_v2 = vld [vmem:[%s2969_s1 + $0xf0] sm:$0xff] }
  0xab   : > { %2066 = vmatmul.msk.f32.gmra.mxu3 %vm196_vm0, %v2624_v1  ;;  %2032 = vmatmul.msk.f32.gmra.mxu0 %vm196_vm0, %v2450_v52 }
  0xac   : > { %2042 = vmatmul.msk.f32.gmra.mxu1 %vm196_vm0, %v2473_v58  ;;  %vm567_vm4 = vcmp.gt.f32.partialorder %v557_v10, 0.0  ;;  %v577_v11 = vmul.f32 0.2, %v557_v10  ;;  %1814 = vmatpush.msrb.mxu3 %v2171_v2 }
  0xad   : > { %v420_v14 = vpop.f32.mrf.mxu2 }
  0xae   : > { %v520_v15 = vpop.f32.mrf.mxu3  ;;  %v587_v20 = vsel %vm567_vm4, %v557_v10, %v577_v11  ;;  %v444_v21 = vadd.f32 %v420_v14, %v331_v54  ;;  %v2135_v54 = vld [vmem:[%s2969_s1 + $0xc0] sm:$0xff] }
  0xaf   : > { %598 = vst.msk [vmem:[%s2605_s29 + $0x10] sm:$0xff] %vm595_vm2, %v587_v20  ;;  %1624 = vmatpush.msrb.mxu1 %v2135_v54 }
  0xb0   : > { %v544_v23 = vadd.f32 %v520_v15, %v444_v21  ;;  %v256_v26 = vpop.f32.mrf.mxu0 }
  0xb1   : > { %v333_v27 = vpop.f32.mrf.mxu1 }
  0xb2   : > { %v558_v30 = vadd.f32 %v2575_v18, %v544_v23  ;;  %2103 = vmatmul.msk.f32.vlgmr.msra.gmra.mxu2 %vm196_vm0, %v2495_v62  ;;  %v334_v58 = vadd.f32 %v333_v27, %v256_v26  ;;  %v2692_v27 = vld [vmem:[%s2287_s16 + $0x2d] sm:$0xff] }
  0xb3   : > { %2115 = vmatmul.msk.f32.vlgmr.msra.gmra.mxu3 %vm196_vm0, %v2638_v22  ;;  %2081 = vmatmul.msk.f32.vlgmr.msra.gmra.mxu0 %vm196_vm0, %v2293_v13 }
  0xb4   : > { %2091 = vmatmul.msk.f32.vlgmr.msra.gmra.mxu1 %vm196_vm0, %v2290_v12  ;;  %vm568_vm5 = vcmp.gt.f32.partialorder %v558_v30, 0.0  ;;  %v578_v31 = vmul.f32 0.2, %v558_v30 }
  0xb5   : > { %v423_v34 = vpop.f32.mrf.mxu2 }
  0xb6   : > { %v523_v35 = vpop.f32.mrf.mxu3  ;;  %v588_v38 = vsel %vm568_vm5, %v558_v30, %v578_v31  ;;  %v445_v39 = vadd.f32 %v423_v34, %v334_v58 }
  0xb7   : > { %599 = vst.msk [vmem:[%s2605_s29 + $0x18] sm:$0xff] %vm595_vm2, %v588_v38 }
  0xb8   : > { %v545_v43 = vadd.f32 %v523_v35, %v445_v39  ;;  %v259_v45 = vpop.f32.mrf.mxu0 }
  0xb9   : > { %v336_v46 = vpop.f32.mrf.mxu1 }
  0xba   : > { %v559_v47 = vadd.f32 %v2575_v18, %v545_v43  ;;  %2104 = vmatmul.msk.f32.gmra.mxu2 %vm196_vm0, %v2518_v3  ;;  %v337_v12 = vadd.f32 %v336_v46, %v259_v45  ;;  %v2706_v46 = vld [vmem:[%s2287_s16 + $0x35] sm:$0xff] }
  0xbb   : > { %2116 = vmatmul.msk.f32.gmra.mxu3 %vm196_vm0, %v2652_v42  ;;  %2082 = vmatmul.msk.f32.gmra.mxu0 %vm196_vm0, %v2310_v17 }
  0xbc   : > { %2092 = vmatmul.msk.f32.gmra.mxu1 %vm196_vm0, %v2307_v16  ;;  %vm569_vm6 = vcmp.gt.f32.partialorder %v559_v47, 0.0  ;;  %v579_v50 = vmul.f32 0.2, %v559_v47  ;;  %v2137_v16 = vld [vmem:[%s2969_s1 + $0xd0] sm:$0xff] }
  0xbd   : > { %v426_v51 = vpop.f32.mrf.mxu2  ;;  %1547 = vmatpush.msrb.mxu0 %v2137_v16  ;;  %v2720_v16 = vld [vmem:[%s2287_s16 + $0x3d] sm:$0xff] }
  0xbe   : > { %v526_v55 = vpop.f32.mrf.mxu3  ;;  %v589_v59 = vsel %vm569_vm6, %v559_v47, %v579_v50  ;;  %v446_v61 = vadd.f32 %v426_v51, %v337_v12 }
  0xbf   : > { %600 = vst.msk [vmem:[%s2605_s29 + $0x20] sm:$0xff] %vm595_vm2, %v589_v59 }
  0xc0   : > { %v546_v8 = vadd.f32 %v526_v55, %v446_v61  ;;  %v262_v9 = vpop.f32.mrf.mxu0 }
  0xc1   : > { %v339_v10 = vpop.f32.mrf.mxu1 }
  0xc2   : > { %v560_v11 = vadd.f32 %v2575_v18, %v546_v8  ;;  %2105 = vmatmul.msk.f32.gmra.mxu2 %vm196_vm0, %v2529_v4  ;;  %v340_v14 = vadd.f32 %v339_v10, %v262_v9 }
  0xc3   : > { %2117 = vmatmul.msk.f32.gmra.mxu3 %vm196_vm0, %v2664_v63  ;;  %2083 = vmatmul.msk.f32.gmra.mxu0 %vm196_vm0, %v2339_v25 }
  0xc4   : > { %2093 = vmatmul.msk.f32.gmra.mxu1 %vm196_vm0, %v2336_v24  ;;  %vm570_vm7 = vcmp.gt.f32.partialorder %v560_v11, 0.0  ;;  %v580_v15 = vmul.f32 0.2, %v560_v11 }
  0xc5   : > { %v429_v20 = vpop.f32.mrf.mxu2 }
  0xc6   : > { %v529_v21 = vpop.f32.mrf.mxu3  ;;  %v590_v23 = vsel %vm570_vm7, %v560_v11, %v580_v15  ;;  %v447_v26 = vadd.f32 %v429_v20, %v340_v14 }
  0xc7   : > { %601 = vst.msk [vmem:[%s2605_s29 + $0x28] sm:$0xff] %vm595_vm2, %v590_v23  ;;  %v2734_v23 = vld [vmem:[%s2287_s16 + $0x45] sm:$0xff] }
  0xc8   : > { %v547_v30 = vadd.f32 %v529_v21, %v447_v26  ;;  %v265_v58 = vpop.f32.mrf.mxu0 }
  0xc9   : > { %v342_v31 = vpop.f32.mrf.mxu1 }
  0xca   : > { %v561_v34 = vadd.f32 %v2575_v18, %v547_v30  ;;  %2106 = vmatmul.msk.f32.gmra.mxu2 %vm196_vm0, %v2540_v5  ;;  %v343_v24 = vadd.f32 %v342_v31, %v265_v58 }
  0xcb   : > { %2118 = vmatmul.msk.f32.gmra.mxu3 %vm196_vm0, %v2692_v27  ;;  %2084 = vmatmul.msk.f32.gmra.mxu0 %vm196_vm0, %v2356_v29 }
  0xcc   : > { %2094 = vmatmul.msk.f32.gmra.mxu1 %vm196_vm0, %v2353_v28  ;;  %vm571_vm8 = vcmp.gt.f32.partialorder %v561_v34, 0.0  ;;  %v581_v35 = vmul.f32 0.2, %v561_v34 }
  0xcd   : > { %v432_v38 = vpop.f32.mrf.mxu2 }
  0xce   : > { %v532_v39 = vpop.f32.mrf.mxu3  ;;  %v591_v43 = vsel %vm571_vm8, %v561_v34, %v581_v35  ;;  %v448_v45 = vadd.f32 %v432_v38, %v343_v24 }
  0xcf   : > { %602 = vst.msk [vmem:[%s2605_s29 + $0x30] sm:$0xff] %vm595_vm2, %v591_v43 }
  0xd0   : > { %v548_v47 = vadd.f32 %v532_v39, %v448_v45  ;;  %v268_v12 = vpop.f32.mrf.mxu0  ;;  %v2753_v39 = vld [vmem:[%s2287_s16 + $0x4d] sm:$0xff] }
  0xd1   : > { %v345_v50 = vpop.f32.mrf.mxu1 }
  0xd2   : > { %v562_v51 = vadd.f32 %v2575_v18, %v548_v47  ;;  %2107 = vmatmul.msk.f32.gmra.mxu2 %vm196_vm0, %v2551_v6  ;;  %v346_v28 = vadd.f32 %v345_v50, %v268_v12 }
  0xd3   : > { %2119 = vmatmul.msk.f32.gmra.mxu3 %vm196_vm0, %v2706_v46  ;;  %2085 = vmatmul.msk.f32.gmra.mxu0 %vm196_vm0, %v2373_v33 }
  0xd4   : > { %2095 = vmatmul.msk.f32.gmra.mxu1 %vm196_vm0, %v2370_v32  ;;  %vm572_vm9 = vcmp.gt.f32.partialorder %v562_v51, 0.0  ;;  %v582_v55 = vmul.f32 0.2, %v562_v51 }
  0xd5   : > { %v435_v59 = vpop.f32.mrf.mxu2 }
  0xd6   : > { %v535_v61 = vpop.f32.mrf.mxu3  ;;  %v592_v0 = vsel %vm572_vm9, %v562_v51, %v582_v55  ;;  %v449_v2 = vadd.f32 %v435_v59, %v346_v28  ;;  %v2767_v59 = vld [vmem:[%s2287_s16 + $0x55] sm:$0xff] }
  0xd7   : > { %603 = vst.msk [vmem:[%s2605_s29 + $0x38] sm:$0xff] %vm595_vm2, %v592_v0 }
  0xd8   : > { %v549_v8 = vadd.f32 %v535_v61, %v449_v2  ;;  %v271_v9 = vpop.f32.mrf.mxu0 }
  0xd9   : > { %v348_v10 = vpop.f32.mrf.mxu1 }
  0xda   : > { %v563_v54 = vadd.f32 %v2575_v18, %v549_v8  ;;  %2108 = vmatmul.msk.f32.gmra.mxu2 %vm196_vm0, %v2562_v7  ;;  %v349_v32 = vadd.f32 %v348_v10, %v271_v9 }
  0xdb   : > { %2120 = vmatmul.msk.f32.gmra.mxu3 %vm196_vm0, %v2720_v16  ;;  %2086 = vmatmul.msk.f32.gmra.mxu0 %vm196_vm0, %v2390_v37 }
  0xdc   : > { %2096 = vmatmul.msk.f32.gmra.mxu1 %vm196_vm0, %v2387_v36  ;;  %vm573_vm10 = vcmp.gt.f32.partialorder %v563_v54, 0.0  ;;  %v583_v11 = vmul.f32 0.2, %v563_v54 }
  0xdd   : > { %v438_v14 = vpop.f32.mrf.mxu2 }
  0xde   : > { %v538_v15 = vpop.f32.mrf.mxu3  ;;  %v593_v20 = vsel %vm573_vm10, %v563_v54, %v583_v11  ;;  %v450_v21 = vadd.f32 %v438_v14, %v349_v32  ;;  %v1230_v11 = vld [vmem:[%s2287_s16 + $0x5c] sm:$0xff] }
  0xdf   : > { %604 = vst.msk [vmem:[%s2605_s29 + $0x40] sm:$0xff] %vm595_vm2, %v593_v20  ;;  %v2782_v14 = vld [vmem:[%s2287_s16 + $0x5d] sm:$0xff] }
  0xe0   : > { %v550_v26 = vadd.f32 %v538_v15, %v450_v21  ;;  %v679_v30 = vpop.f32.mrf.mxu0 }
  0xe1   : > { %v756_v58 = vpop.f32.mrf.mxu1 }
  0xe2   : > { %v564_v37 = vadd.f32 %v2575_v18, %v550_v26  ;;  %2109 = vmatmul.msk.f32.gmra.mxu2 %vm196_vm0, %v2578_v19  ;;  %v757_v36 = vadd.f32 %v756_v58, %v679_v30  ;;  %v2748_v18 = vld [vmem:[%s2970_s2] ss:$0 sm:$0xff] }
  0xe3   : > { %2121 = vmatmul.msk.f32.gmra.mxu3 %vm196_vm0, %v2734_v23  ;;  %2087 = vmatmul.msk.f32.gmra.mxu0 %vm196_vm0, %v2407_v41 }
  0xe4   : > { %2097 = vmatmul.msk.f32.gmra.mxu1 %vm196_vm0, %v2404_v40  ;;  %vm574_vm11 = vcmp.gt.f32.partialorder %v564_v37, 0.0  ;;  %v584_v31 = vmul.f32 0.2, %v564_v37 }
  0xe5   : > { %v846_v34 = vpop.f32.mrf.mxu2 }
  0xe6   : > { %v946_v24 = vpop.f32.mrf.mxu3  ;;  %v594_v35 = vsel %vm574_vm11, %v564_v37, %v584_v31  ;;  %v876_v38 = vadd.f32 %v846_v34, %v757_v36  ;;  %v1756_v31 = vld [vmem:[%s2287_s16 + $0x16] sm:$0xff] }
  0xe7   : > { %605 = vst.msk [vmem:[%s2605_s29 + $0x48] sm:$0xff] %vm595_vm2, %v594_v35 }
  0xe8   : > { %v976_v41 = vadd.f32 %v946_v24, %v876_v38  ;;  %v682_v43 = vpop.f32.mrf.mxu0 }
  0xe9   : > { %v759_v40 = vpop.f32.mrf.mxu1 }
  0xea   : > { %v990_v45 = vadd.f32 %v2748_v18, %v976_v41  ;;  %2110 = vmatmul.msk.f32.gmra.mxu2 %vm196_vm0, %v2610_v44  ;;  %v760_v47 = vadd.f32 %v759_v40, %v682_v43 }
  0xeb   : > { %2122 = vmatmul.msk.f32.gmra.mxu3 %vm196_vm0, %v2753_v39  ;;  %2088 = vmatmul.msk.f32.gmra.mxu0 %vm196_vm0, %v2436_v49 }
  0xec   : > { %2098 = vmatmul.msk.f32.gmra.mxu1 %vm196_vm0, %v2433_v48  ;;  %vm1000_vm12 = vcmp.gt.f32.partialorder %v990_v45, 0.0  ;;  %v1010_v12 = vmul.f32 0.2, %v990_v45 }
  0xed   : > { %v849_v50 = vpop.f32.mrf.mxu2 }
  0xee   : > { %v949_v51 = vpop.f32.mrf.mxu3  ;;  %v1020_v28 = vsel %vm1000_vm12, %v990_v45, %v1010_v12  ;;  %v877_v55 = vadd.f32 %v849_v50, %v760_v47  ;;  %v1757_v47 = vld [vmem:[%s2287_s16 + $0x1e] sm:$0xff] }
  0xef   : > { %2067 = vst.msk [vmem:[%s2605_s29 + $0x50] sm:$0xff] %vm595_vm2, %v1020_v28 }
  0xf0   : > { %v977_v61 = vadd.f32 %v949_v51, %v877_v55  ;;  %v685_v0 = vpop.f32.mrf.mxu0 }
  0xf1   : > { %v762_v2 = vpop.f32.mrf.mxu1 }
  0xf2   : > { %v991_v49 = vadd.f32 %v2748_v18, %v977_v61  ;;  %2111 = vmatmul.msk.f32.gmra.mxu2 %vm196_vm0, %v2624_v1  ;;  %v763_v48 = vadd.f32 %v762_v2, %v685_v0  ;;  %v1758_v2 = vld [vmem:[%s2287_s16 + $0x26] sm:$0xff] }
  0xf3   : > { %2123 = vmatmul.msk.f32.gmra.mxu3 %vm196_vm0, %v2767_v59  ;;  %2089 = vmatmul.msk.f32.gmra.mxu0 %vm196_vm0, %v2453_v53 }
  0xf4   : > { %2099 = vmatmul.msk.f32.gmra.mxu1 %vm196_vm0, %v2450_v52  ;;  %vm1001_vm13 = vcmp.gt.f32.partialorder %v991_v49, 0.0  ;;  %v1011_v8 = vmul.f32 0.2, %v991_v49 }
  0xf5   : > { %v852_v9 = vpop.f32.mrf.mxu2 }
  0xf6   : > { %v952_v10 = vpop.f32.mrf.mxu3  ;;  %v1021_v54 = vsel %vm1001_vm13, %v991_v49, %v1011_v8  ;;  %v878_v32 = vadd.f32 %v852_v9, %v763_v48 }
  0xf7   : > { %2068 = vst.msk [vmem:[%s2605_s29 + $0x58] sm:$0xff] %vm595_vm2, %v1021_v54 }
  0xf8   : > { %v978_v15 = vadd.f32 %v952_v10, %v878_v32  ;;  %v688_v20 = vpop.f32.mrf.mxu0 }
  0xf9   : > { %v765_v21 = vpop.f32.mrf.mxu1 }
  0xfa   : > { %v992_v53 = vadd.f32 %v2748_v18, %v978_v15  ;;  %2112 = vmatmul.msk.f32.gmra.mxu2 %vm196_vm0, %v1230_v11  ;;  %v766_v52 = vadd.f32 %v765_v21, %v688_v20  ;;  %v1759_v11 = vld [vmem:[%s2287_s16 + $0x2e] sm:$0xff] }
  0xfb   : > { %2124 = vmatmul.msk.f32.gmra.mxu3 %vm196_vm0, %v2782_v14  ;;  %2090 = vmatmul.msk.f32.gmra.mxu0 %vm196_vm0, %v2470_v57 }
  0xfc   : > { %2100 = vmatmul.msk.f32.gmra.mxu1 %vm196_vm0, %v2467_v56  ;;  %vm1002_vm14 = vcmp.gt.f32.partialorder %v992_v53, 0.0  ;;  %v1012_v26 = vmul.f32 0.2, %v992_v53 }
  0xfd   : > { %v855_v30 = vpop.f32.mrf.mxu2 }
  0xfe   : > { %v955_v58 = vpop.f32.mrf.mxu3  ;;  %v1022_v37 = vsel %vm1002_vm14, %v992_v53, %v1012_v26  ;;  %v879_v36 = vadd.f32 %v855_v30, %v766_v52 }
  0xff   : > { %2069 = vst.msk [vmem:[%s2605_s29 + $0x60] sm:$0xff] %vm595_vm2, %v1022_v37 }
 0x100   : > { %v979_v34 = vadd.f32 %v955_v58, %v879_v36  ;;  %v691_v24 = vpop.f32.mrf.mxu0  ;;  %v1760_v58 = vld [vmem:[%s2287_s16 + $0x36] sm:$0xff] }
 0x101   : > { %v768_v35 = vpop.f32.mrf.mxu1 }
 0x102   : > { %v993_v38 = vadd.f32 %v2748_v18, %v979_v34  ;;  %2161 = vmatmul.msk.f32.vlgmr.msrb.gmra.mxu2 %vm196_vm0, %v2638_v22  ;;  %v769_v56 = vadd.f32 %v768_v35, %v691_v24 }
 0x103   : > { %2173 = vmatmul.msk.f32.vlgmr.msrb.gmra.mxu3 %vm196_vm0, %v1756_v31  ;;  %2139 = vmatmul.msk.f32.vlgmr.msrb.gmra.mxu0 %vm196_vm0, %v2484_v60 }
 0x104   : > { %2149 = vmatmul.msk.f32.vlgmr.msrb.gmra.mxu1 %vm196_vm0, %v2293_v13  ;;  %vm1003_vm15 = vcmp.gt.f32.partialorder %v993_v38, 0.0  ;;  %v1013_v57 = vmul.f32 0.2, %v993_v38 }
 0x105   : > { %v858_v41 = vpop.f32.mrf.mxu2 }
 0x106   : > { %v958_v43 = vpop.f32.mrf.mxu3  ;;  %v1023_v40 = vsel %vm1003_vm15, %v993_v38, %v1013_v57  ;;  %v880_v45 = vadd.f32 %v858_v41, %v769_v56  ;;  %v1761_v56 = vld [vmem:[%s2287_s16 + $0x3e] sm:$0xff] }
 0x107   : > { %2070 = vst.msk [vmem:[%s2605_s29 + $0x68] sm:$0xff] %vm595_vm2, %v1023_v40 }
 0x108   : > { %v980_v22 = vadd.f32 %v958_v43, %v880_v45  ;;  %v694_v12 = vpop.f32.mrf.mxu0  ;;  %v1481_v43 = vld [vmem:[%s2287_s16 + $0x33] sm:$0xff] }
 0x109   : > { %v771_v50 = vpop.f32.mrf.mxu1 }
 0x10a   : > { %v994_v51 = vadd.f32 %v2748_v18, %v980_v22  ;;  %2162 = vmatmul.msk.f32.gmra.mxu2 %vm196_vm0, %v2652_v42  ;;  %v772_v13 = vadd.f32 %v771_v50, %v694_v12  ;;  %v1762_v50 = vld [vmem:[%s2287_s16 + $0x46] sm:$0xff] }
 0x10b   : > { %2174 = vmatmul.msk.f32.gmra.mxu3 %vm196_vm0, %v1757_v47  ;;  %2140 = vmatmul.msk.f32.gmra.mxu0 %vm196_vm0, %v2495_v62 }
 0x10c   : > { %2150 = vmatmul.msk.f32.gmra.mxu1 %vm196_vm0, %v2310_v17  ;;  %vm1004_vm1 = vcmp.gt.f32.partialorder %v994_v51, 0.0  ;;  %v1014_v60 = vmul.f32 0.2, %v994_v51 }
 0x10d   : > { %v861_v28 = vpop.f32.mrf.mxu2 }
 0x10e   : > { %v961_v55 = vpop.f32.mrf.mxu3  ;;  %v1024_v61 = vsel %vm1004_vm1, %v994_v51, %v1014_v60  ;;  %v881_v0 = vadd.f32 %v861_v28, %v772_v13  ;;  %v1482_v60 = vld [vmem:[%s2287_s16 + $0x3b] sm:$0xff] }
 0x10f   : > { %2071 = vst.msk [vmem:[%s2605_s29 + $0x70] sm:$0xff] %vm595_vm2, %v1024_v61 }
 0x110   : > { %v981_v42 = vadd.f32 %v961_v55, %v881_v0  ;;  %v697_v49 = vpop.f32.mrf.mxu0 }
 0x111   : > { %v774_v48 = vpop.f32.mrf.mxu1 }
 0x112   : > { %v995_v8 = vadd.f32 %v2748_v18, %v981_v42  ;;  %2163 = vmatmul.msk.f32.gmra.mxu2 %vm196_vm0, %v2664_v63  ;;  %v775_v17 = vadd.f32 %v774_v48, %v697_v49 }
 0x113   : > { %2175 = vmatmul.msk.f32.gmra.mxu3 %vm196_vm0, %v1758_v2  ;;  %2141 = vmatmul.msk.f32.gmra.mxu0 %vm196_vm0, %v2518_v3 }
 0x114   : > { %2151 = vmatmul.msk.f32.gmra.mxu1 %vm196_vm0, %v2339_v25  ;;  %vm1005_vm3 = vcmp.gt.f32.partialorder %v995_v8, 0.0  ;;  %v1015_v62 = vmul.f32 0.2, %v995_v8 }
 0x115   : > { %v864_v9 = vpop.f32.mrf.mxu2 }
 0x116   : > { %v964_v10 = vpop.f32.mrf.mxu3  ;;  %v1025_v54 = vsel %vm1005_vm3, %v995_v8, %v1015_v62  ;;  %v882_v32 = vadd.f32 %v864_v9, %v775_v17  ;;  %v1483_v8 = vld [vmem:[%s2287_s16 + $0x43] sm:$0xff] }
 0x117   : > { %2072 = vst.msk [vmem:[%s2605_s29 + $0x78] sm:$0xff] %vm595_vm2, %v1025_v54 }
 0x118   : > { %v982_v63 = vadd.f32 %v964_v10, %v882_v32  ;;  %v700_v15 = vpop.f32.mrf.mxu0 }
 0x119   : > { %v777_v20 = vpop.f32.mrf.mxu1 }
 0x11a   : > { %v996_v21 = vadd.f32 %v2748_v18, %v982_v63  ;;  %2164 = vmatmul.msk.f32.gmra.mxu2 %vm196_vm0, %v2692_v27  ;;  %v778_v25 = vadd.f32 %v777_v20, %v700_v15  ;;  %v1764_v63 = vld [vmem:[%s2287_s16 + $0x56] sm:$0xff] }
 0x11b   : > { %2176 = vmatmul.msk.f32.gmra.mxu3 %vm196_vm0, %v1759_v11  ;;  %2142 = vmatmul.msk.f32.gmra.mxu0 %vm196_vm0, %v2529_v4 }
 0x11c   : > { %2152 = vmatmul.msk.f32.gmra.mxu1 %vm196_vm0, %v2356_v29  ;;  %vm1006_vm4 = vcmp.gt.f32.partialorder %v996_v21, 0.0  ;;  %v1016_v3 = vmul.f32 0.2, %v996_v21 }
 0x11d   : > { %v867_v53 = vpop.f32.mrf.mxu2 }
 0x11e   : > { %v967_v52 = vpop.f32.mrf.mxu3  ;;  %v1026_v26 = vsel %vm1006_vm4, %v996_v21, %v1016_v3  ;;  %v883_v30 = vadd.f32 %v867_v53, %v778_v25  ;;  %v1484_v21 = vld [vmem:[%s2287_s16 + $0x4b] sm:$0xff] }
 0x11f   : > { %2073 = vst.msk [vmem:[%s2605_s29 + $0x80] sm:$0xff] %vm595_vm2, %v1026_v26 }
 0x120   : > { %v983_v27 = vadd.f32 %v967_v52, %v883_v30  ;;  %v703_v37 = vpop.f32.mrf.mxu0 }
 0x121   : > { %v780_v36 = vpop.f32.mrf.mxu1 }
 0x122   : > { %v997_v31 = vadd.f32 %v2748_v18, %v983_v27  ;;  %2165 = vmatmul.msk.f32.gmra.mxu2 %vm196_vm0, %v2706_v46  ;;  %v781_v29 = vadd.f32 %v780_v36, %v703_v37  ;;  %v1485_v36 = vld [vmem:[%s2287_s16 + $0x53] sm:$0xff] }
 0x123   : > { %2177 = vmatmul.msk.f32.gmra.mxu3 %vm196_vm0, %v1760_v58  ;;  %2143 = vmatmul.msk.f32.gmra.mxu0 %vm196_vm0, %v2540_v5  ;;  %v1765_v58 = vld [vmem:[%s2287_s16 + $0x5e] sm:$0xff] }
 0x124   : > { %2153 = vmatmul.msk.f32.gmra.mxu1 %vm196_vm0, %v2373_v33  ;;  %vm1007_vm5 = vcmp.gt.f32.partialorder %v997_v31, 0.0  ;;  %v1017_v4 = vmul.f32 0.2, %v997_v31 }
 0x125   : > { %v870_v34 = vpop.f32.mrf.mxu2 }
 0x126   : > { %v970_v24 = vpop.f32.mrf.mxu3  ;;  %v1027_v35 = vsel %vm1007_vm5, %v997_v31, %v1017_v4  ;;  %v884_v38 = vadd.f32 %v870_v34, %v781_v29 }
 0x127   : > { %2074 = vst.msk [vmem:[%s2605_s29 + $0x88] sm:$0xff] %vm595_vm2, %v1027_v35 }
 0x128   : > { %v984_v46 = vadd.f32 %v970_v24, %v884_v38  ;;  %v706_v57 = vpop.f32.mrf.mxu0 }
 0x129   : > { %v783_v41 = vpop.f32.mrf.mxu1 }
 0x12a   : > { %v998_v5 = vadd.f32 %v2748_v18, %v984_v46  ;;  %2166 = vmatmul.msk.f32.gmra.mxu2 %vm196_vm0, %v2720_v16  ;;  %v784_v33 = vadd.f32 %v783_v41, %v706_v57 }
 0x12b   : > { %2178 = vmatmul.msk.f32.gmra.mxu3 %vm196_vm0, %v1761_v56  ;;  %2144 = vmatmul.msk.f32.gmra.mxu0 %vm196_vm0, %v2551_v6 }
 0x12c   : > { %2154 = vmatmul.msk.f32.gmra.mxu1 %vm196_vm0, %v1481_v43  ;;  %vm1008_vm6 = vcmp.gt.f32.partialorder %v998_v5, 0.0  ;;  %v1018_v40 = vmul.f32 0.2, %v998_v5 }
 0x12d   : > { %v873_v45 = vpop.f32.mrf.mxu2 }
 0x12e   : > { %v973_v47 = vpop.f32.mrf.mxu3  ;;  %v1028_v22 = vsel %vm1008_vm6, %v998_v5, %v1018_v40  ;;  %v885_v12 = vadd.f32 %v873_v45, %v784_v33 }
 0x12f   : > { %2075 = vst.msk [vmem:[%s2605_s29 + $0x90] sm:$0xff] %vm595_vm2, %v1028_v22 }
 0x130   : > { %v985_v51 = vadd.f32 %v973_v47, %v885_v12  ;;  %v1114_v16 = vpop.f32.mrf.mxu0 }
 0x131   : > { %v1191_v13 = vpop.f32.mrf.mxu1 }
 0x132   : > { %v999_v28 = vadd.f32 %v2748_v18, %v985_v51  ;;  %2167 = vmatmul.msk.f32.gmra.mxu2 %vm196_vm0, %v2734_v23  ;;  %v1192_v6 = vadd.f32 %v1191_v13, %v1114_v16  ;;  %v2872_v18 = vld [vmem:[%s2970_s2] ss:$0 sm:$0xff]  ;;  %v1763_v23 = vld [vmem:[%s2287_s16 + $0x4e] sm:$0xff] }
 0x133   : > { %2179 = vmatmul.msk.f32.gmra.mxu3 %vm196_vm0, %v1762_v50  ;;  %2145 = vmatmul.msk.f32.gmra.mxu0 %vm196_vm0, %v2562_v7 }
 0x134   : > { %2155 = vmatmul.msk.f32.gmra.mxu1 %vm196_vm0, %v1482_v60  ;;  %vm1009_vm7 = vcmp.gt.f32.partialorder %v999_v28, 0.0  ;;  %v1019_v55 = vmul.f32 0.2, %v999_v28 }
 0x135   : > { %v1281_v61 = vpop.f32.mrf.mxu2 }
 0x136   : > { %v1381_v0 = vpop.f32.mrf.mxu3  ;;  %v1029_v2 = vsel %vm1009_vm7, %v999_v28, %v1019_v55  ;;  %v1311_v42 = vadd.f32 %v1281_v61, %v1192_v6 }
 0x137   : > { %2076 = vst.msk [vmem:[%s2605_s29 + $0x98] sm:$0xff] %vm595_vm2, %v1029_v2 }
 0x138   : > { %v1411_v49 = vadd.f32 %v1381_v0, %v1311_v42  ;;  %v1117_v48 = vpop.f32.mrf.mxu0 }
 0x139   : > { %v1194_v7 = vpop.f32.mrf.mxu1 }
 0x13a   : > { %v1425_v17 = vadd.f32 %v2872_v18, %v1411_v49  ;;  %2168 = vmatmul.msk.f32.gmra.mxu2 %vm196_vm0, %v2753_v39  ;;  %v1195_v62 = vadd.f32 %v1194_v7, %v1117_v48 }
 0x13b   : > { %2180 = vmatmul.msk.f32.gmra.mxu3 %vm196_vm0, %v1763_v23  ;;  %2146 = vmatmul.msk.f32.gmra.mxu0 %vm196_vm0, %v2578_v19 }
 0x13c   : > { %2156 = vmatmul.msk.f32.gmra.mxu1 %vm196_vm0, %v1483_v8  ;;  %vm1435_vm8 = vcmp.gt.f32.partialorder %v1425_v17, 0.0  ;;  %v1445_v9 = vmul.f32 0.2, %v1425_v17 }
 0x13d   : > { %v1284_v10 = vpop.f32.mrf.mxu2 }
 0x13e   : > { %v1384_v54 = vpop.f32.mrf.mxu3  ;;  %v1455_v32 = vsel %vm1435_vm8, %v1425_v17, %v1445_v9  ;;  %v1312_v11 = vadd.f32 %v1284_v10, %v1195_v62 }
 0x13f   : > { %2125 = vst.msk [vmem:[%s2605_s29 + $0xa0] sm:$0xff] %vm595_vm2, %v1455_v32 }
 0x140   : > { %v1412_v15 = vadd.f32 %v1384_v54, %v1312_v11  ;;  %v1120_v39 = vpop.f32.mrf.mxu0 }
 0x141   : > { %v1197_v20 = vpop.f32.mrf.mxu1 }
 0x142   : > { %v1426_v25 = vadd.f32 %v2872_v18, %v1412_v15  ;;  %2169 = vmatmul.msk.f32.gmra.mxu2 %vm196_vm0, %v2767_v59  ;;  %v1198_v19 = vadd.f32 %v1197_v20, %v1120_v39 }
 0x143   : > { %2181 = vmatmul.msk.f32.gmra.mxu3 %vm196_vm0, %v1764_v63  ;;  %2147 = vmatmul.msk.f32.gmra.mxu0 %vm196_vm0, %v2610_v44 }
 0x144   : > { %2157 = vmatmul.msk.f32.gmra.mxu1 %vm196_vm0, %v1484_v21  ;;  %vm1436_vm9 = vcmp.gt.f32.partialorder %v1426_v25, 0.0  ;;  %v1446_v3 = vmul.f32 0.2, %v1426_v25 }
 0x145   : > { %v1287_v53 = vpop.f32.mrf.mxu2 }
 0x146   : > { %v1387_v52 = vpop.f32.mrf.mxu3  ;;  %v1456_v26 = vsel %vm1436_vm9, %v1426_v25, %v1446_v3  ;;  %v1313_v30 = vadd.f32 %v1287_v53, %v1198_v19 }
 0x147   : > { %2126 = vst.msk [vmem:[%s2605_s29 + $0xa8] sm:$0xff] %vm595_vm2, %v1456_v26 }
 0x148   : > { %v1413_v27 = vadd.f32 %v1387_v52, %v1313_v30  ;;  %v1123_v59 = vpop.f32.mrf.mxu0 }
 0x149   : > { %v1200_v37 = vpop.f32.mrf.mxu1 }
 0x14a   : > { %v1427_v31 = vadd.f32 %v2872_v18, %v1413_v27  ;;  %2170 = vmatmul.msk.f32.gmra.mxu2 %vm196_vm0, %v2782_v14  ;;  %v1201_v44 = vadd.f32 %v1200_v37, %v1123_v59 }
 0x14b   : > { %2182 = vmatmul.msk.f32.gmra.mxu3 %vm196_vm0, %v1765_v58  ;;  %2148 = vmatmul.msk.f32.gmra.mxu0 %vm196_vm0, %v2624_v1 }
 0x14c   : > { %2158 = vmatmul.msk.f32.gmra.mxu1 %vm196_vm0, %v1485_v36  ;;  %vm1437_vm10 = vcmp.gt.f32.partialorder %v1427_v31, 0.0  ;;  %v1447_v29 = vmul.f32 0.2, %v1427_v31 }
 0x14d   : > { %v1290_v4 = vpop.f32.mrf.mxu2 }
 0x14e   : > { %v1390_v34 = vpop.f32.mrf.mxu3  ;;  %v1457_v24 = vsel %vm1437_vm10, %v1427_v31, %v1447_v29  ;;  %v1314_v35 = vadd.f32 %v1290_v4, %v1201_v44 }
 0x14f   : > { %2127 = vst.msk [vmem:[%s2605_s29 + $0xb0] sm:$0xff] %vm595_vm2, %v1457_v24 }
 0x150   : > { %v1414_v38 = vadd.f32 %v1390_v34, %v1314_v35  ;;  %v1126_v56 = vpop.f32.mrf.mxu0 }
 0x151   : > { %v1203_v14 = vpop.f32.mrf.mxu1 }
 0x152   : > { %v1428_v46 = vadd.f32 %v2872_v18, %v1414_v38  ;;  %v1204_v57 = vadd.f32 %v1203_v14, %v1126_v56 }
 0x154   : > { %vm1438_vm11 = vcmp.gt.f32.partialorder %v1428_v46, 0.0  ;;  %v1448_v41 = vmul.f32 0.2, %v1428_v46 }
 0x155   : > { %v1293_v1 = vpop.f32.mrf.mxu2 }
 0x156   : > { %v1393_v43 = vpop.f32.mrf.mxu3  ;;  %v1458_v5 = vsel %vm1438_vm11, %v1428_v46, %v1448_v41  ;;  %v1315_v33 = vadd.f32 %v1293_v1, %v1204_v57 }
 0x157   : > { %2128 = vst.msk [vmem:[%s2605_s29 + $0xb8] sm:$0xff] %vm595_vm2, %v1458_v5 }
 0x158   : > { %v1415_v40 = vadd.f32 %v1393_v43, %v1315_v33  ;;  %v1129_v45 = vpop.f32.mrf.mxu0  ;;  %v2931_v43 = vld [vmem:[%s2970_s2] ss:$0 sm:$0xff] }
 0x159   : > { %v1206_v47 = vpop.f32.mrf.mxu1 }
 0x15a   : > { %v1429_v22 = vadd.f32 %v2872_v18, %v1415_v40  ;;  %v1207_v12 = vadd.f32 %v1206_v47, %v1129_v45 }
 0x15c   : > { %vm1439_vm0 = vcmp.gt.f32.partialorder %v1429_v22, 0.0  ;;  %v1449_v50 = vmul.f32 0.2, %v1429_v22 }
 0x15d   : > { %v1296_v51 = vpop.f32.mrf.mxu2 }
 0x15e   : > { %v1396_v16 = vpop.f32.mrf.mxu3  ;;  %v1459_v13 = vsel %vm1439_vm0, %v1429_v22, %v1449_v50  ;;  %v1316_v60 = vadd.f32 %v1296_v51, %v1207_v12 }
 0x15f   : > { %2129 = vst.msk [vmem:[%s2605_s29 + $0xc0] sm:$0xff] %vm595_vm2, %v1459_v13 }
 0x160   : > { %v1416_v28 = vadd.f32 %v1396_v16, %v1316_v60  ;;  %v1132_v6 = vpop.f32.mrf.mxu0 }
 0x161   : > { %v1209_v55 = vpop.f32.mrf.mxu1 }
 0x162   : > { %v1430_v61 = vadd.f32 %v2872_v18, %v1416_v28  ;;  %v1210_v0 = vadd.f32 %v1209_v55, %v1132_v6 }
 0x164   : > { %vm1440_vm12 = vcmp.gt.f32.partialorder %v1430_v61, 0.0  ;;  %v1450_v2 = vmul.f32 0.2, %v1430_v61 }
 0x165   : > { %v1299_v42 = vpop.f32.mrf.mxu2 }
 0x166   : > { %v1399_v23 = vpop.f32.mrf.mxu3  ;;  %v1460_v49 = vsel %vm1440_vm12, %v1430_v61, %v1450_v2  ;;  %v1317_v48 = vadd.f32 %v1299_v42, %v1210_v0 }
 0x167   : > { %2130 = vst.msk [vmem:[%s2605_s29 + $0xc8] sm:$0xff] %vm595_vm2, %v1460_v49 }
 0x168   : > { %v1417_v7 = vadd.f32 %v1399_v23, %v1317_v48  ;;  %v1135_v8 = vpop.f32.mrf.mxu0 }
 0x169   : > { %v1212_v17 = vpop.f32.mrf.mxu1 }
 0x16a   : > { %v1431_v62 = vadd.f32 %v2872_v18, %v1417_v7  ;;  %v1213_v9 = vadd.f32 %v1212_v17, %v1135_v8 }
 0x16c   : > { %vm1441_vm13 = vcmp.gt.f32.partialorder %v1431_v62, 0.0  ;;  %v1451_v10 = vmul.f32 0.2, %v1431_v62 }
 0x16d   : > { %v1302_v54 = vpop.f32.mrf.mxu2 }
 0x16e   : > { %v1402_v32 = vpop.f32.mrf.mxu3  ;;  %v1461_v11 = vsel %vm1441_vm13, %v1431_v62, %v1451_v10  ;;  %v1318_v63 = vadd.f32 %v1302_v54, %v1213_v9 }
 0x16f   : > { %2131 = vst.msk [vmem:[%s2605_s29 + $0xd0] sm:$0xff] %vm595_vm2, %v1461_v11 }
 0x170   : > { %v1418_v15 = vadd.f32 %v1402_v32, %v1318_v63  ;;  %v1138_v39 = vpop.f32.mrf.mxu0 }
 0x171   : > { %v1215_v20 = vpop.f32.mrf.mxu1 }
 0x172   : > { %v1432_v21 = vadd.f32 %v2872_v18, %v1418_v15  ;;  %v1216_v25 = vadd.f32 %v1215_v20, %v1138_v39 }
 0x174   : > { %vm1442_vm14 = vcmp.gt.f32.partialorder %v1432_v21, 0.0  ;;  %v1452_v19 = vmul.f32 0.2, %v1432_v21 }
 0x175   : > { %v1305_v3 = vpop.f32.mrf.mxu2 }
 0x176   : > { %v1405_v53 = vpop.f32.mrf.mxu3  ;;  %v1462_v52 = vsel %vm1442_vm14, %v1432_v21, %v1452_v19  ;;  %v1319_v26 = vadd.f32 %v1305_v3, %v1216_v25 }
 0x177   : > { %2132 = vst.msk [vmem:[%s2605_s29 + $0xd8] sm:$0xff] %vm595_vm2, %v1462_v52 }
 0x178   : > { %v1419_v30 = vadd.f32 %v1405_v53, %v1319_v26  ;;  %v1141_v58 = vpop.f32.mrf.mxu0 }
 0x179   : > { %v1218_v27 = vpop.f32.mrf.mxu1 }
 0x17a   : > { %v1433_v59 = vadd.f32 %v2872_v18, %v1419_v30  ;;  %v1219_v37 = vadd.f32 %v1218_v27, %v1141_v58 }
 0x17c   : > { %vm1443_vm15 = vcmp.gt.f32.partialorder %v1433_v59, 0.0  ;;  %v1453_v36 = vmul.f32 0.2, %v1433_v59 }
 0x17d   : > { %v1308_v31 = vpop.f32.mrf.mxu2 }
 0x17e   : > { %v1408_v44 = vpop.f32.mrf.mxu3  ;;  %v1463_v29 = vsel %vm1443_vm15, %v1433_v59, %v1453_v36  ;;  %v1320_v4 = vadd.f32 %v1308_v31, %v1219_v37 }
 0x17f   : > { %2133 = vst.msk [vmem:[%s2605_s29 + $0xe0] sm:$0xff] %vm595_vm2, %v1463_v29 }
 0x180   : > { %v1420_v34 = vadd.f32 %v1408_v44, %v1320_v4  ;;  %v1549_v24 = vpop.f32.mrf.mxu0 }
 0x181   : > { %v1626_v35 = vpop.f32.mrf.mxu1 }
 0x182   : > { %v1434_v38 = vadd.f32 %v2872_v18, %v1420_v34  ;;  %v1627_v56 = vadd.f32 %v1626_v35, %v1549_v24 }
 0x184   : > { %vm1444_vm1 = vcmp.gt.f32.partialorder %v1434_v38, 0.0  ;;  %v1454_v14 = vmul.f32 0.2, %v1434_v38 }
 0x185   : > { %v1716_v46 = vpop.f32.mrf.mxu2 }
 0x186   : > { %v1816_v57 = vpop.f32.mrf.mxu3  ;;  %v1464_v41 = vsel %vm1444_vm1, %v1434_v38, %v1454_v14  ;;  %v1746_v1 = vadd.f32 %v1716_v46, %v1627_v56 }
 0x187   : > { %2134 = vst.msk [vmem:[%s2605_s29 + $0xe8] sm:$0xff] %vm595_vm2, %v1464_v41 }
 0x188   : > { %v1846_v5 = vadd.f32 %v1816_v57, %v1746_v1  ;;  %v1552_v33 = vpop.f32.mrf.mxu0 }
 0x189   : > { %v1629_v40 = vpop.f32.mrf.mxu1 }
 0x18a   : > { %v1860_v18 = vadd.f32 %v2931_v43, %v1846_v5  ;;  %v1630_v45 = vadd.f32 %v1629_v40, %v1552_v33 }
 0x18c   : > { %vm1870_vm3 = vcmp.gt.f32.partialorder %v1860_v18, 0.0  ;;  %v1880_v47 = vmul.f32 0.2, %v1860_v18 }
 0x18d   : > { %v1719_v22 = vpop.f32.mrf.mxu2 }
 0x18e   : > { %v1819_v12 = vpop.f32.mrf.mxu3  ;;  %v1890_v50 = vsel %vm1870_vm3, %v1860_v18, %v1880_v47  ;;  %v1747_v51 = vadd.f32 %v1719_v22, %v1630_v45 }
 0x18f   : > { %2183 = vst.msk [vmem:[%s2605_s29 + $0xf0] sm:$0xff] %vm595_vm2, %v1890_v50 }
 0x190   : > { %v1847_v16 = vadd.f32 %v1819_v12, %v1747_v51  ;;  %v1555_v13 = vpop.f32.mrf.mxu0 }
 0x191   : > { %v1632_v60 = vpop.f32.mrf.mxu1 }
 0x192   : > { %v1861_v28 = vadd.f32 %v2931_v43, %v1847_v16  ;;  %v1633_v6 = vadd.f32 %v1632_v60, %v1555_v13 }
 0x194   : > { %vm1871_vm4 = vcmp.gt.f32.partialorder %v1861_v28, 0.0  ;;  %v1881_v55 = vmul.f32 0.2, %v1861_v28 }
 0x195   : > { %v1722_v61 = vpop.f32.mrf.mxu2 }
 0x196   : > { %v1822_v0 = vpop.f32.mrf.mxu3  ;;  %v1891_v2 = vsel %vm1871_vm4, %v1861_v28, %v1881_v55  ;;  %v1748_v42 = vadd.f32 %v1722_v61, %v1633_v6 }
 0x197   : > { %2184 = vst.msk [vmem:[%s2605_s29 + $0xf8] sm:$0xff] %vm595_vm2, %v1891_v2 }
 0x198   : > { %v1848_v23 = vadd.f32 %v1822_v0, %v1748_v42  ;;  %v1558_v49 = vpop.f32.mrf.mxu0 }
 0x199   : > { %v1635_v48 = vpop.f32.mrf.mxu1 }
 0x19a   : > { %v1862_v7 = vadd.f32 %v2931_v43, %v1848_v23  ;;  %v1636_v8 = vadd.f32 %v1635_v48, %v1558_v49 }
 0x19c   : > { %vm1872_vm5 = vcmp.gt.f32.partialorder %v1862_v7, 0.0  ;;  %v1882_v17 = vmul.f32 0.2, %v1862_v7 }
 0x19d   : > { %v1725_v62 = vpop.f32.mrf.mxu2 }
 0x19e   : > { %v1825_v9 = vpop.f32.mrf.mxu3  ;;  %v1892_v10 = vsel %vm1872_vm5, %v1862_v7, %v1882_v17  ;;  %v1749_v54 = vadd.f32 %v1725_v62, %v1636_v8 }
 0x19f   : > { %2185 = vst.msk [vmem:[%s2605_s29 + $0x100] sm:$0xff] %vm595_vm2, %v1892_v10 }
 0x1a0   : > { %v1849_v32 = vadd.f32 %v1825_v9, %v1749_v54  ;;  %v1561_v11 = vpop.f32.mrf.mxu0 }
 0x1a1   : > { %v1638_v63 = vpop.f32.mrf.mxu1 }
 0x1a2   : > { %v1863_v15 = vadd.f32 %v2931_v43, %v1849_v32  ;;  %v1639_v39 = vadd.f32 %v1638_v63, %v1561_v11 }
 0x1a4   : > { %vm1873_vm6 = vcmp.gt.f32.partialorder %v1863_v15, 0.0  ;;  %v1883_v20 = vmul.f32 0.2, %v1863_v15 }
 0x1a5   : > { %v1728_v21 = vpop.f32.mrf.mxu2 }
 0x1a6   : > { %v1828_v25 = vpop.f32.mrf.mxu3  ;;  %v1893_v19 = vsel %vm1873_vm6, %v1863_v15, %v1883_v20  ;;  %v1750_v3 = vadd.f32 %v1728_v21, %v1639_v39 }
 0x1a7   : > { %2186 = vst.msk [vmem:[%s2605_s29 + $0x108] sm:$0xff] %vm595_vm2, %v1893_v19 }
 0x1a8   : > { %v1850_v53 = vadd.f32 %v1828_v25, %v1750_v3  ;;  %v1564_v52 = vpop.f32.mrf.mxu0 }
 0x1a9   : > { %v1641_v26 = vpop.f32.mrf.mxu1 }
 0x1aa   : > { %v1864_v30 = vadd.f32 %v2931_v43, %v1850_v53  ;;  %v1642_v58 = vadd.f32 %v1641_v26, %v1564_v52 }
 0x1ac   : > { %vm1874_vm7 = vcmp.gt.f32.partialorder %v1864_v30, 0.0  ;;  %v1884_v27 = vmul.f32 0.2, %v1864_v30 }
 0x1ad   : > { %v1731_v59 = vpop.f32.mrf.mxu2 }
 0x1ae   : > { %v1831_v37 = vpop.f32.mrf.mxu3  ;;  %v1894_v36 = vsel %vm1874_vm7, %v1864_v30, %v1884_v27  ;;  %v1751_v31 = vadd.f32 %v1731_v59, %v1642_v58 }
 0x1af   : > { %2187 = vst.msk [vmem:[%s2605_s29 + $0x110] sm:$0xff] %vm595_vm2, %v1894_v36 }
 0x1b0   : > { %v1851_v44 = vadd.f32 %v1831_v37, %v1751_v31  ;;  %v1567_v29 = vpop.f32.mrf.mxu0 }
 0x1b1   : > { %v1644_v4 = vpop.f32.mrf.mxu1 }
 0x1b2   : > { %v1865_v34 = vadd.f32 %v2931_v43, %v1851_v44  ;;  %v1645_v24 = vadd.f32 %v1644_v4, %v1567_v29 }
 0x1b4   : > { %vm1875_vm8 = vcmp.gt.f32.partialorder %v1865_v34, 0.0  ;;  %v1885_v35 = vmul.f32 0.2, %v1865_v34 }
 0x1b5   : > { %v1734_v38 = vpop.f32.mrf.mxu2 }
 0x1b6   : > { %v1834_v56 = vpop.f32.mrf.mxu3  ;;  %v1895_v14 = vsel %vm1875_vm8, %v1865_v34, %v1885_v35  ;;  %v1752_v46 = vadd.f32 %v1734_v38, %v1645_v24 }
 0x1b7   : > { %2188 = vst.msk [vmem:[%s2605_s29 + $0x118] sm:$0xff] %vm595_vm2, %v1895_v14 }
 0x1b8   : > { %v1852_v57 = vadd.f32 %v1834_v56, %v1752_v46  ;;  %v1570_v41 = vpop.f32.mrf.mxu0 }
 0x1b9   : > { %v1647_v1 = vpop.f32.mrf.mxu1 }
 0x1ba   : > { %v1866_v5 = vadd.f32 %v2931_v43, %v1852_v57  ;;  %v1648_v33 = vadd.f32 %v1647_v1, %v1570_v41 }
 0x1bc   : > { %vm1876_vm9 = vcmp.gt.f32.partialorder %v1866_v5, 0.0  ;;  %v1886_v40 = vmul.f32 0.2, %v1866_v5 }
 0x1bd   : > { %v1737_v18 = vpop.f32.mrf.mxu2 }
 0x1be   : > { %v1837_v45 = vpop.f32.mrf.mxu3  ;;  %v1896_v47 = vsel %vm1876_vm9, %v1866_v5, %v1886_v40  ;;  %v1753_v22 = vadd.f32 %v1737_v18, %v1648_v33 }
 0x1bf   : > { %2189 = vst.msk [vmem:[%s2605_s29 + $0x120] sm:$0xff] %vm595_vm2, %v1896_v47 }
 0x1c0   : > { %v1853_v12 = vadd.f32 %v1837_v45, %v1753_v22  ;;  %v1573_v50 = vpop.f32.mrf.mxu0 }
 0x1c1   : > { %v1650_v51 = vpop.f32.mrf.mxu1 }
 0x1c2   : > { %v1867_v16 = vadd.f32 %v2931_v43, %v1853_v12  ;;  %v1651_v13 = vadd.f32 %v1650_v51, %v1573_v50 }
 0x1c4   : > { %vm1877_vm10 = vcmp.gt.f32.partialorder %v1867_v16, 0.0  ;;  %v1887_v60 = vmul.f32 0.2, %v1867_v16 }
 0x1c5   : > { %v1740_v28 = vpop.f32.mrf.mxu2 }
 0x1c6   : > { %v1840_v6 = vpop.f32.mrf.mxu3  ;;  %v1897_v55 = vsel %vm1877_vm10, %v1867_v16, %v1887_v60  ;;  %v1754_v61 = vadd.f32 %v1740_v28, %v1651_v13 }
 0x1c7   : > { %2190 = vst.msk [vmem:[%s2605_s29 + $0x128] sm:$0xff] %vm595_vm2, %v1897_v55 }
 0x1c8   : > { %v1854_v0 = vadd.f32 %v1840_v6, %v1754_v61  ;;  %v1576_v2 = vpop.f32.mrf.mxu0 }
 0x1c9   : > { %v1653_v42 = vpop.f32.mrf.mxu1 }
 0x1ca   : > { %v1868_v23 = vadd.f32 %v2931_v43, %v1854_v0  ;;  %v1654_v49 = vadd.f32 %v1653_v42, %v1576_v2 }
 0x1cc   : > { %vm1878_vm11 = vcmp.gt.f32.partialorder %v1868_v23, 0.0  ;;  %v1888_v48 = vmul.f32 0.2, %v1868_v23 }
 0x1cd   : > { %v1743_v7 = vpop.f32.mrf.mxu2 }
 0x1ce   : > { %v1843_v8 = vpop.f32.mrf.mxu3  ;;  %v1898_v17 = vsel %vm1878_vm11, %v1868_v23, %v1888_v48  ;;  %v1755_v62 = vadd.f32 %v1743_v7, %v1654_v49 }
 0x1cf   : > { %2191 = vst.msk [vmem:[%s2605_s29 + $0x130] sm:$0xff] %vm595_vm2, %v1898_v17 }
 0x1d0   : > { %v1855_v9 = vadd.f32 %v1843_v8, %v1755_v62 }
 0x1d2   : > { %v1869_v10 = vadd.f32 %v2931_v43, %v1855_v9 }
 0x1d4   : > { %vm1879_vm0 = vcmp.gt.f32.partialorder %v1869_v10, 0.0  ;;  %v1889_v54 = vmul.f32 0.2, %v1869_v10 }
 0x1d6   : > { %v1899_v32 = vsel %vm1879_vm0, %v1869_v10, %v1889_v54 }
 0x1d7   : > { %2192 = vst.msk [vmem:[%s2605_s29 + $0x138] sm:$0xff] %vm595_vm2, %v1899_v32 }
 0x1d8 PF: > { %s13_s12 = sadd.s32 1, %s2215_s12  }
 0x1d9   : > { %p10_p4 = scmp.ge.s32.totalorder %s13_s12, 6  }
 0x1db   :  { %12 = sbr.rel (!%p10_p4) target bundleno = 1 (0x1), region = 80 }

// kernel: keyp_to_images_decoder_no_first.11
= control target key start
LH: loop header
LB: loop body
LE: loop exit
PB: predicated region body
PF: predicated region fallthrough
CT: control target
= control target key end

     0   :  { %s591_s12 = smov 0   ;;  %s787_s0 = inlined_call_operand.vmem [shape: f32[4,256,8], index: 0, kind: input, shape index: {}]   ;;  %s788_s1 = inlined_call_operand.vmem [shape: f32[8,3], index: 1, kind: input, shape index: {}]   ;;  %s789_s2 = inlined_call_operand.vmem [shape: f32[1,3], index: 2, kind: input, shape index: {}]   ;;  %s790_s3 = inlined_call_operand.vmem [shape: f32[4,256,3], index: 3, kind: output, shape index: {}]  }
   0x1 LB: > { %s506_s13 = sadd.s32 4294967295, %s569_s12   ;;  %p510_p0 = scmp.ge.s32.totalorder %s569_s12, 1  ;;  %s569_s12 = sphi %s591_s12, %s13_s12  }
   0x2   : > { %p137_p1 = scmp.lt.s32.totalorder %s569_s12, 5 }
   0x4   : > { %p138_p2 = pnand %p510_p0, %p137_p1 }
   0x5   : > { %p161_p3 = scmp.lt.s32.totalorder (!%p138_p2), %s506_s13, 3 }
   0x6   : > { %141 = sbr.rel (%p138_p2) target bundleno = 207 (0xcf), region = 32 }
   0xb   : > { %v203_v0 = vld [vmem:[%s788_s1] sm:$0xff]  ;;  %s792_s13 = smov (!%p161_p3, %s506_s13), 3  ;;  %vm208_vm0 = vcmask 64512   ;;  %vm418_vm1 = vcmask 23552  }
   0xc   : > { %552 = vmatpush.msra.mxu2 %v203_v0  ;;  %553 = vmatpush.msra.mxu3 %v203_v0  ;;  %s549_s16 = sshll.u32 %s792_s13, 8  ;;  %v679_v33 = vld [vmem:[%s789_s2] ss:$0 sm:$0xff] }
   0xd   : > { %320 = vmatpush.msra.mxu0 %v203_v0  ;;  %551 = vmatpush.msra.mxu1 %v203_v0  ;;  %s610_s19 = scalar_lea.vmem %s787_s0, %s549_s16  ;;  %s686_s24 = scalar_lea.vmem %s790_s3, %s549_s16 }
   0xe   : > { %v187_v1 = vld [vmem:[%s610_s19 + $0x80] sm:$0xff]  ;;  %v188_v5 = vld [vmem:[%s610_s19 + $0x88] sm:$0xff]  ;;  %v189_v9 = vld [vmem:[%s610_s19 + $0x90] sm:$0xff] }
   0xf   : > { %v195_v2 = vld [vmem:[%s610_s19 + $0xc0] sm:$0xff]  ;;  %531 = vmatmul.msk.f32.vlgmr.msra.gmra.mxu2 %vm208_vm0, %v187_v1  ;;  %v196_v6 = vld [vmem:[%s610_s19 + $0xc8] sm:$0xff]  ;;  %v197_v10 = vld [vmem:[%s610_s19 + $0xd0] sm:$0xff] }
  0x10   : > { %v171_v3 = vld [vmem:[%s610_s19] sm:$0xff]  ;;  %539 = vmatmul.msk.f32.vlgmr.msra.gmra.mxu3 %vm208_vm0, %v195_v2  ;;  %v172_v7 = vld [vmem:[%s610_s19 + $0x8] sm:$0xff]  ;;  %v173_v11 = vld [vmem:[%s610_s19 + $0x10] sm:$0xff] }
  0x11   : > { %v179_v4 = vld [vmem:[%s610_s19 + $0x40] sm:$0xff]  ;;  %515 = vmatmul.msk.f32.vlgmr.msra.gmra.mxu0 %vm208_vm0, %v171_v3  ;;  %v180_v8 = vld [vmem:[%s610_s19 + $0x48] sm:$0xff]  ;;  %v181_v12 = vld [vmem:[%s610_s19 + $0x50] sm:$0xff] }
  0x12   : > { %523 = vmatmul.msk.f32.vlgmr.msra.gmra.mxu1 %vm208_vm0, %v179_v4  ;;  %v190_v13 = vld [vmem:[%s610_s19 + $0x98] sm:$0xff]  ;;  %v191_v17 = vld [vmem:[%s610_s19 + $0xa0] sm:$0xff]  ;;  %v192_v21 = vld [vmem:[%s610_s19 + $0xa8] sm:$0xff] }
  0x13   : > { %v198_v14 = vld [vmem:[%s610_s19 + $0xd8] sm:$0xff]  ;;  %v199_v18 = vld [vmem:[%s610_s19 + $0xe0] sm:$0xff]  ;;  %v200_v22 = vld [vmem:[%s610_s19 + $0xe8] sm:$0xff] }
  0x14   : > { %v174_v15 = vld [vmem:[%s610_s19 + $0x18] sm:$0xff]  ;;  %v175_v19 = vld [vmem:[%s610_s19 + $0x20] sm:$0xff]  ;;  %v176_v23 = vld [vmem:[%s610_s19 + $0x28] sm:$0xff] }
  0x15   : > { %v182_v16 = vld [vmem:[%s610_s19 + $0x58] sm:$0xff]  ;;  %v183_v20 = vld [vmem:[%s610_s19 + $0x60] sm:$0xff]  ;;  %v184_v24 = vld [vmem:[%s610_s19 + $0x68] sm:$0xff] }
  0x16   : > { %v193_v25 = vld [vmem:[%s610_s19 + $0xb0] sm:$0xff]  ;;  %v194_v29 = vld [vmem:[%s610_s19 + $0xb8] sm:$0xff] }
  0x17   : > { %532 = vmatmul.msk.f32.gmra.mxu2 %vm208_vm0, %v188_v5  ;;  %v201_v26 = vld [vmem:[%s610_s19 + $0xf0] sm:$0xff]  ;;  %v202_v30 = vld [vmem:[%s610_s19 + $0xf8] sm:$0xff] }
  0x18   : > { %540 = vmatmul.msk.f32.gmra.mxu3 %vm208_vm0, %v196_v6  ;;  %v177_v27 = vld [vmem:[%s610_s19 + $0x30] sm:$0xff]  ;;  %v178_v31 = vld [vmem:[%s610_s19 + $0x38] sm:$0xff] }
  0x19   : > { %516 = vmatmul.msk.f32.gmra.mxu0 %vm208_vm0, %v172_v7  ;;  %v185_v28 = vld [vmem:[%s610_s19 + $0x70] sm:$0xff]  ;;  %v186_v32 = vld [vmem:[%s610_s19 + $0x78] sm:$0xff] }
  0x1a   : > { %524 = vmatmul.msk.f32.gmra.mxu1 %vm208_vm0, %v180_v8 }
  0x1f   : > { %533 = vmatmul.msk.f32.gmra.mxu2 %vm208_vm0, %v189_v9 }
  0x20   : > { %541 = vmatmul.msk.f32.gmra.mxu3 %vm208_vm0, %v197_v10 }
  0x21   : > { %517 = vmatmul.msk.f32.gmra.mxu0 %vm208_vm0, %v173_v11 }
  0x22   : > { %525 = vmatmul.msk.f32.gmra.mxu1 %vm208_vm0, %v181_v12 }
  0x27   : > { %534 = vmatmul.msk.f32.gmra.mxu2 %vm208_vm0, %v190_v13 }
  0x28   : > { %542 = vmatmul.msk.f32.gmra.mxu3 %vm208_vm0, %v198_v14 }
  0x29   : > { %518 = vmatmul.msk.f32.gmra.mxu0 %vm208_vm0, %v174_v15 }
  0x2a   : > { %526 = vmatmul.msk.f32.gmra.mxu1 %vm208_vm0, %v182_v16 }
  0x2f   : > { %535 = vmatmul.msk.f32.gmra.mxu2 %vm208_vm0, %v191_v17 }
  0x30   : > { %543 = vmatmul.msk.f32.gmra.mxu3 %vm208_vm0, %v199_v18 }
  0x31   : > { %519 = vmatmul.msk.f32.gmra.mxu0 %vm208_vm0, %v175_v19 }
  0x32   : > { %527 = vmatmul.msk.f32.gmra.mxu1 %vm208_vm0, %v183_v20 }
  0x37   : > { %536 = vmatmul.msk.f32.gmra.mxu2 %vm208_vm0, %v192_v21 }
  0x38   : > { %544 = vmatmul.msk.f32.gmra.mxu3 %vm208_vm0, %v200_v22 }
  0x39   : > { %520 = vmatmul.msk.f32.gmra.mxu0 %vm208_vm0, %v176_v23 }
  0x3a   : > { %528 = vmatmul.msk.f32.gmra.mxu1 %vm208_vm0, %v184_v24 }
  0x3f   : > { %537 = vmatmul.msk.f32.gmra.mxu2 %vm208_vm0, %v193_v25 }
  0x40   : > { %545 = vmatmul.msk.f32.gmra.mxu3 %vm208_vm0, %v201_v26 }
  0x41   : > { %521 = vmatmul.msk.f32.gmra.mxu0 %vm208_vm0, %v177_v27 }
  0x42   : > { %529 = vmatmul.msk.f32.gmra.mxu1 %vm208_vm0, %v185_v28 }
  0x47   : > { %538 = vmatmul.msk.f32.gmra.mxu2 %vm208_vm0, %v194_v29 }
  0x48   : > { %546 = vmatmul.msk.f32.gmra.mxu3 %vm208_vm0, %v202_v30 }
  0x49   : > { %522 = vmatmul.msk.f32.gmra.mxu0 %vm208_vm0, %v178_v31 }
  0x4a   : > { %530 = vmatmul.msk.f32.gmra.mxu1 %vm208_vm0, %v186_v32 }
  0x8e   : > { %v322_v34 = vpop.f32.mrf.mxu0 }
  0x8f   : > { %v346_v35 = vpop.f32.mrf.mxu1  ;;  %v323_v36 = vadd.f32 %v679_v33, %v322_v34 }
  0x90   : > { %v347_v37 = vadd.f32 %v679_v33, %v346_v35 }
  0x91   : > { %419 = vst.msk [vmem:[%s686_s24] sm:$0xff] %vm418_vm1, %v323_v36 }
  0x92   : > { %427 = vst.msk [vmem:[%s686_s24 + $0x40] sm:$0xff] %vm418_vm1, %v347_v37  ;;  %v370_v38 = vpop.f32.mrf.mxu2 }
  0x93   : > { %v394_v39 = vpop.f32.mrf.mxu3  ;;  %v371_v40 = vadd.f32 %v679_v33, %v370_v38 }
  0x94   : > { %v395_v41 = vadd.f32 %v679_v33, %v394_v39 }
  0x95   : > { %435 = vst.msk [vmem:[%s686_s24 + $0x80] sm:$0xff] %vm418_vm1, %v371_v40 }
  0x96   : > { %v325_v42 = vpop.f32.mrf.mxu0  ;;  %443 = vst.msk [vmem:[%s686_s24 + $0xc0] sm:$0xff] %vm418_vm1, %v395_v41 }
  0x97   : > { %v349_v43 = vpop.f32.mrf.mxu1  ;;  %v326_v44 = vadd.f32 %v679_v33, %v325_v42 }
  0x98   : > { %v350_v45 = vadd.f32 %v679_v33, %v349_v43 }
  0x99   : > { %420 = vst.msk [vmem:[%s686_s24 + $0x8] sm:$0xff] %vm418_vm1, %v326_v44 }
  0x9a   : > { %428 = vst.msk [vmem:[%s686_s24 + $0x48] sm:$0xff] %vm418_vm1, %v350_v45  ;;  %v373_v46 = vpop.f32.mrf.mxu2 }
  0x9b   : > { %v397_v47 = vpop.f32.mrf.mxu3  ;;  %v374_v48 = vadd.f32 %v679_v33, %v373_v46 }
  0x9c   : > { %v398_v49 = vadd.f32 %v679_v33, %v397_v47 }
  0x9d   : > { %436 = vst.msk [vmem:[%s686_s24 + $0x88] sm:$0xff] %vm418_vm1, %v374_v48 }
  0x9e   : > { %v328_v50 = vpop.f32.mrf.mxu0  ;;  %444 = vst.msk [vmem:[%s686_s24 + $0xc8] sm:$0xff] %vm418_vm1, %v398_v49 }
  0x9f   : > { %v352_v51 = vpop.f32.mrf.mxu1  ;;  %v329_v52 = vadd.f32 %v679_v33, %v328_v50 }
  0xa0   : > { %v353_v53 = vadd.f32 %v679_v33, %v352_v51 }
  0xa1   : > { %421 = vst.msk [vmem:[%s686_s24 + $0x10] sm:$0xff] %vm418_vm1, %v329_v52 }
  0xa2   : > { %429 = vst.msk [vmem:[%s686_s24 + $0x50] sm:$0xff] %vm418_vm1, %v353_v53  ;;  %v376_v54 = vpop.f32.mrf.mxu2 }
  0xa3   : > { %v400_v55 = vpop.f32.mrf.mxu3  ;;  %v377_v56 = vadd.f32 %v679_v33, %v376_v54 }
  0xa4   : > { %v401_v57 = vadd.f32 %v679_v33, %v400_v55 }
  0xa5   : > { %437 = vst.msk [vmem:[%s686_s24 + $0x90] sm:$0xff] %vm418_vm1, %v377_v56 }
  0xa6   : > { %v331_v58 = vpop.f32.mrf.mxu0  ;;  %445 = vst.msk [vmem:[%s686_s24 + $0xd0] sm:$0xff] %vm418_vm1, %v401_v57 }
  0xa7   : > { %v355_v59 = vpop.f32.mrf.mxu1  ;;  %v332_v60 = vadd.f32 %v679_v33, %v331_v58 }
  0xa8   : > { %v356_v61 = vadd.f32 %v679_v33, %v355_v59 }
  0xa9   : > { %422 = vst.msk [vmem:[%s686_s24 + $0x18] sm:$0xff] %vm418_vm1, %v332_v60 }
  0xaa   : > { %430 = vst.msk [vmem:[%s686_s24 + $0x58] sm:$0xff] %vm418_vm1, %v356_v61  ;;  %v379_v62 = vpop.f32.mrf.mxu2 }
  0xab   : > { %v403_v63 = vpop.f32.mrf.mxu3  ;;  %v380_v0 = vadd.f32 %v679_v33, %v379_v62 }
  0xac   : > { %v404_v1 = vadd.f32 %v679_v33, %v403_v63 }
  0xad   : > { %438 = vst.msk [vmem:[%s686_s24 + $0x98] sm:$0xff] %vm418_vm1, %v380_v0 }
  0xae   : > { %v334_v2 = vpop.f32.mrf.mxu0  ;;  %446 = vst.msk [vmem:[%s686_s24 + $0xd8] sm:$0xff] %vm418_vm1, %v404_v1 }
  0xaf   : > { %v358_v3 = vpop.f32.mrf.mxu1  ;;  %v335_v4 = vadd.f32 %v679_v33, %v334_v2 }
  0xb0   : > { %v359_v5 = vadd.f32 %v679_v33, %v358_v3 }
  0xb1   : > { %423 = vst.msk [vmem:[%s686_s24 + $0x20] sm:$0xff] %vm418_vm1, %v335_v4 }
  0xb2   : > { %431 = vst.msk [vmem:[%s686_s24 + $0x60] sm:$0xff] %vm418_vm1, %v359_v5  ;;  %v382_v6 = vpop.f32.mrf.mxu2 }
  0xb3   : > { %v406_v7 = vpop.f32.mrf.mxu3  ;;  %v383_v8 = vadd.f32 %v679_v33, %v382_v6 }
  0xb4   : > { %v407_v9 = vadd.f32 %v679_v33, %v406_v7 }
  0xb5   : > { %439 = vst.msk [vmem:[%s686_s24 + $0xa0] sm:$0xff] %vm418_vm1, %v383_v8 }
  0xb6   : > { %v337_v10 = vpop.f32.mrf.mxu0  ;;  %447 = vst.msk [vmem:[%s686_s24 + $0xe0] sm:$0xff] %vm418_vm1, %v407_v9 }
  0xb7   : > { %v361_v11 = vpop.f32.mrf.mxu1  ;;  %v338_v12 = vadd.f32 %v679_v33, %v337_v10 }
  0xb8   : > { %v362_v13 = vadd.f32 %v679_v33, %v361_v11 }
  0xb9   : > { %424 = vst.msk [vmem:[%s686_s24 + $0x28] sm:$0xff] %vm418_vm1, %v338_v12 }
  0xba   : > { %432 = vst.msk [vmem:[%s686_s24 + $0x68] sm:$0xff] %vm418_vm1, %v362_v13  ;;  %v385_v14 = vpop.f32.mrf.mxu2 }
  0xbb   : > { %v409_v15 = vpop.f32.mrf.mxu3  ;;  %v386_v16 = vadd.f32 %v679_v33, %v385_v14 }
  0xbc   : > { %v410_v17 = vadd.f32 %v679_v33, %v409_v15 }
  0xbd   : > { %440 = vst.msk [vmem:[%s686_s24 + $0xa8] sm:$0xff] %vm418_vm1, %v386_v16 }
  0xbe   : > { %v340_v18 = vpop.f32.mrf.mxu0  ;;  %448 = vst.msk [vmem:[%s686_s24 + $0xe8] sm:$0xff] %vm418_vm1, %v410_v17 }
  0xbf   : > { %v364_v19 = vpop.f32.mrf.mxu1  ;;  %v341_v20 = vadd.f32 %v679_v33, %v340_v18 }
  0xc0   : > { %v365_v21 = vadd.f32 %v679_v33, %v364_v19 }
  0xc1   : > { %425 = vst.msk [vmem:[%s686_s24 + $0x30] sm:$0xff] %vm418_vm1, %v341_v20 }
  0xc2   : > { %433 = vst.msk [vmem:[%s686_s24 + $0x70] sm:$0xff] %vm418_vm1, %v365_v21  ;;  %v388_v22 = vpop.f32.mrf.mxu2 }
  0xc3   : > { %v412_v23 = vpop.f32.mrf.mxu3  ;;  %v389_v24 = vadd.f32 %v679_v33, %v388_v22 }
  0xc4   : > { %v413_v25 = vadd.f32 %v679_v33, %v412_v23 }
  0xc5   : > { %441 = vst.msk [vmem:[%s686_s24 + $0xb0] sm:$0xff] %vm418_vm1, %v389_v24 }
  0xc6   : > { %v343_v26 = vpop.f32.mrf.mxu0  ;;  %449 = vst.msk [vmem:[%s686_s24 + $0xf0] sm:$0xff] %vm418_vm1, %v413_v25 }
  0xc7   : > { %v367_v27 = vpop.f32.mrf.mxu1  ;;  %v344_v28 = vadd.f32 %v679_v33, %v343_v26 }
  0xc8   : > { %v368_v29 = vadd.f32 %v679_v33, %v367_v27 }
  0xc9   : > { %426 = vst.msk [vmem:[%s686_s24 + $0x38] sm:$0xff] %vm418_vm1, %v344_v28 }
  0xca   : > { %434 = vst.msk [vmem:[%s686_s24 + $0x78] sm:$0xff] %vm418_vm1, %v368_v29  ;;  %v391_v30 = vpop.f32.mrf.mxu2 }
  0xcb   : > { %v415_v31 = vpop.f32.mrf.mxu3  ;;  %v392_v32 = vadd.f32 %v679_v33, %v391_v30 }
  0xcc   : > { %v416_v34 = vadd.f32 %v679_v33, %v415_v31 }
  0xcd   : > { %442 = vst.msk [vmem:[%s686_s24 + $0xb8] sm:$0xff] %vm418_vm1, %v392_v32 }
  0xce   : > { %450 = vst.msk [vmem:[%s686_s24 + $0xf8] sm:$0xff] %vm418_vm1, %v416_v34 }
  0xcf PF: > { %s13_s12 = sadd.s32 1, %s569_s12  }
  0xd0   : > { %p10_p4 = scmp.ge.s32.totalorder %s13_s12, 6  }
  0xd2   :  { %12 = sbr.rel (!%p10_p4) target bundleno = 1 (0x1), region = 62 }

// kernel: keyp_to_images_decoder_no_first.10
= control target key start
LH: loop header
LB: loop body
LE: loop exit
PB: predicated region body
PF: predicated region fallthrough
CT: control target
= control target key end

     0   :  { %s3485_s12 = smov 0   ;;  %s4451_s0 = inlined_call_operand.vmem [shape: f32[4,326,8], index: 0, kind: input, shape index: {}]   ;;  %s4452_s1 = inlined_call_operand.vmem [shape: f32[9,8,8], index: 1, kind: input, shape index: {}]   ;;  %s4453_s2 = inlined_call_operand.vmem [shape: f32[1,8], index: 2, kind: input, shape index: {}]   ;;  %s4454_s3 = inlined_call_operand.vmem [shape: f32[4,288,8], index: 3, kind: output, shape index: {}]  }
   0x1 LB: > { %s3101_s13 = sadd.s32 4294967295, %s3463_s12   ;;  %p3105_p0 = scmp.ge.s32.totalorder %s3463_s12, 1  ;;  %s3463_s12 = sphi %s3485_s12, %s13_s12  }
   0x2   : > { %p137_p1 = scmp.lt.s32.totalorder %s3463_s12, 5 }
   0x4   : > { %p138_p2 = pnand %p3105_p0, %p137_p1 }
   0x5   : > { %p161_p3 = scmp.lt.s32.totalorder (!%p138_p2), %s3101_s13, 3 }
   0x6   : > { %141 = sbr.rel (%p138_p2) target bundleno = 800 (0x320), region = 32 }
   0xb   : > { %v3108_v0 = vld [vmem:[%s4452_s1 + $0x8] sm:$0xff]  ;;  %v3181_v1 = vld [vmem:[%s4452_s1 + $0x10] sm:$0xff]  ;;  %v3218_v2 = vld [vmem:[%s4452_s1 + $0x18] sm:$0xff]  ;;  %s4456_s13 = smov (!%p161_p3, %s3101_s13), 3  ;;  %vm246_vm0 = vcmask 64512  }
   0xc   : > { %3442 = vmatpush.msra.mxu1 %v3108_v0  ;;  %3443 = vmatpush.msra.mxu2 %v3108_v0  ;;  %v207_v3 = vld [vmem:[%s4452_s1] sm:$0xff]  ;;  %s3445_s24 = smul.u32 328, %s4456_s13  ;;  %v3329_v29 = vld [vmem:[%s4452_s1 + $0x30] sm:$0xff]  ;;  %v3366_v30 = vld [vmem:[%s4452_s1 + $0x38] sm:$0xff] }
   0xd   : > { %3444 = vmatpush.msra.mxu3 %v3108_v0  ;;  %v3255_v4 = vld [vmem:[%s4452_s1 + $0x20] sm:$0xff]  ;;  %370 = vmatpush.msra.mxu0 %v3108_v0  ;;  %v3292_v31 = vld [vmem:[%s4452_s1 + $0x28] sm:$0xff]  ;;  %s3446_s11 = smul.u32 288, %s4456_s13 }
   0xe   : > { %874 = vmatpush.msrb.mxu2 %v3181_v1  ;;  %603 = vmatpush.msrb.mxu1 %v207_v3  ;;  %s3514_s27 = scalar_lea.vmem %s4451_s0, %s3445_s24  ;;  %v3403_v36 = vld [vmem:[%s4452_s1 + $0x40] sm:$0xff] }
   0xf   : > { %1181 = vmatpush.msrb.mxu3 %v3218_v2  ;;  %1488 = vmatpush.msrb.mxu0 %v3255_v4  ;;  %v217_v5 = vld [vmem:[%s3514_s27 + $0x49] sm:$0xff]  ;;  %v226_v6 = vld [vmem:[%s3514_s27 + $0x91] sm:$0xff]  ;;  %v235_v7 = vld [vmem:[%s3514_s27 + $0xd9] sm:$0xff]  ;;  %s4174_s13 = scalar_lea.vmem %s4454_s3, %s3446_s11 }
  0x10   : > { %3118 = vmatmul.msk.f32.vlgmr.msra.gmra.mxu1 %vm246_vm0, %v217_v5  ;;  %3127 = vmatmul.msk.f32.vlgmr.msra.gmra.mxu2 %vm246_vm0, %v226_v6  ;;  %v208_v8 = vld [vmem:[%s3514_s27 + $0x1] sm:$0xff]  ;;  %v218_v9 = vld [vmem:[%s3514_s27 + $0x51] sm:$0xff]  ;;  %v227_v10 = vld [vmem:[%s3514_s27 + $0x99] sm:$0xff] }
  0x11   : > { %3136 = vmatmul.msk.f32.vlgmr.msra.gmra.mxu3 %vm246_vm0, %v235_v7  ;;  %3109 = vmatmul.msk.f32.vlgmr.msra.gmra.mxu0 %vm246_vm0, %v208_v8  ;;  %v236_v11 = vld [vmem:[%s3514_s27 + $0xe1] sm:$0xff]  ;;  %v209_v12 = vld [vmem:[%s3514_s27 + $0x9] sm:$0xff]  ;;  %v219_v13 = vld [vmem:[%s3514_s27 + $0x59] sm:$0xff] }
  0x12   : > { %v228_v14 = vld [vmem:[%s3514_s27 + $0xa1] sm:$0xff]  ;;  %v237_v15 = vld [vmem:[%s3514_s27 + $0xe9] sm:$0xff]  ;;  %v210_v16 = vld [vmem:[%s3514_s27 + $0x11] sm:$0xff]  ;;  %2102 = vmatpush.msra.mxu2 %v3329_v29  ;;  %2409 = vmatpush.msra.mxu3 %v3366_v30 }
  0x13   : > { %v220_v17 = vld [vmem:[%s3514_s27 + $0x61] sm:$0xff]  ;;  %v229_v18 = vld [vmem:[%s3514_s27 + $0xa9] sm:$0xff]  ;;  %v238_v19 = vld [vmem:[%s3514_s27 + $0xf1] sm:$0xff]  ;;  %1795 = vmatpush.msra.mxu1 %v3292_v31  ;;  %2716 = vmatpush.msra.mxu0 %v3403_v36 }
  0x14   : > { %v211_v20 = vld [vmem:[%s3514_s27 + $0x19] sm:$0xff]  ;;  %v221_v21 = vld [vmem:[%s3514_s27 + $0x69] sm:$0xff]  ;;  %v230_v22 = vld [vmem:[%s3514_s27 + $0xb1] sm:$0xff] }
  0x15   : > { %v239_v23 = vld [vmem:[%s3514_s27 + $0xf9] sm:$0xff]  ;;  %v212_v24 = vld [vmem:[%s3514_s27 + $0x21] sm:$0xff]  ;;  %v222_v25 = vld [vmem:[%s3514_s27 + $0x71] sm:$0xff] }
  0x16   : > { %v231_v26 = vld [vmem:[%s3514_s27 + $0xb9] sm:$0xff]  ;;  %v240_v27 = vld [vmem:[%s3514_s27 + $0x101] sm:$0xff]  ;;  %v213_v28 = vld [vmem:[%s3514_s27 + $0x29] sm:$0xff] }
  0x17   : > { %v223_v32 = vld [vmem:[%s3514_s27 + $0x79] sm:$0xff]  ;;  %v232_v33 = vld [vmem:[%s3514_s27 + $0xc1] sm:$0xff]  ;;  %v241_v34 = vld [vmem:[%s3514_s27 + $0x109] sm:$0xff] }
  0x18   : > { %3119 = vmatmul.msk.f32.gmra.mxu1 %vm246_vm0, %v218_v9  ;;  %3128 = vmatmul.msk.f32.gmra.mxu2 %vm246_vm0, %v227_v10  ;;  %v214_v35 = vld [vmem:[%s3514_s27 + $0x31] sm:$0xff]  ;;  %v224_v37 = vld [vmem:[%s3514_s27 + $0x81] sm:$0xff]  ;;  %v233_v38 = vld [vmem:[%s3514_s27 + $0xc9] sm:$0xff] }
  0x19   : > { %3137 = vmatmul.msk.f32.gmra.mxu3 %vm246_vm0, %v236_v11  ;;  %3110 = vmatmul.msk.f32.gmra.mxu0 %vm246_vm0, %v209_v12  ;;  %v242_v39 = vld [vmem:[%s3514_s27 + $0x111] sm:$0xff]  ;;  %v215_v40 = vld [vmem:[%s3514_s27 + $0x39] sm:$0xff]  ;;  %v225_v41 = vld [vmem:[%s3514_s27 + $0x89] sm:$0xff] }
  0x1a   : > { %v234_v42 = vld [vmem:[%s3514_s27 + $0xd1] sm:$0xff]  ;;  %v243_v43 = vld [vmem:[%s3514_s27 + $0x119] sm:$0xff]  ;;  %v216_v44 = vld [vmem:[%s3514_s27 + $0x41] sm:$0xff] }
  0x1b   : > { %v171_v45 = vld [vmem:[%s3514_s27] sm:$0xff]  ;;  %v1020_v47 = vld [vmem:[%s3514_s27 + $0x12] sm:$0xff]  ;;  %v172_v49 = vld [vmem:[%s3514_s27 + $0x8] sm:$0xff] }
  0x1c   : > { %v713_v46 = vld [vmem:[%s3514_s27 + $0x2] sm:$0xff]  ;;  %v1327_v48 = vld [vmem:[%s3514_s27 + $0x13] sm:$0xff]  ;;  %v714_v50 = vld [vmem:[%s3514_s27 + $0xa] sm:$0xff] }
  0x1d   : > { %v1021_v51 = vld [vmem:[%s3514_s27 + $0x1a] sm:$0xff]  ;;  %v173_v53 = vld [vmem:[%s3514_s27 + $0x10] sm:$0xff]  ;;  %v1022_v54 = vld [vmem:[%s3514_s27 + $0x22] sm:$0xff] }
  0x1e   : > { %v1328_v52 = vld [vmem:[%s3514_s27 + $0x1b] sm:$0xff]  ;;  %v1329_v55 = vld [vmem:[%s3514_s27 + $0x23] sm:$0xff]  ;;  %v1330_v58 = vld [vmem:[%s3514_s27 + $0x2b] sm:$0xff] }
  0x1f   : > { %v174_v56 = vld [vmem:[%s3514_s27 + $0x18] sm:$0xff]  ;;  %v1023_v57 = vld [vmem:[%s3514_s27 + $0x2a] sm:$0xff]  ;;  %v175_v59 = vld [vmem:[%s3514_s27 + $0x20] sm:$0xff] }
  0x20   : > { %3120 = vmatmul.msk.f32.gmra.mxu1 %vm246_vm0, %v219_v13  ;;  %3129 = vmatmul.msk.f32.gmra.mxu2 %vm246_vm0, %v228_v14  ;;  %v1024_v60 = vld [vmem:[%s3514_s27 + $0x32] sm:$0xff]  ;;  %v176_v62 = vld [vmem:[%s3514_s27 + $0x28] sm:$0xff]  ;;  %v1025_v63 = vld [vmem:[%s3514_s27 + $0x3a] sm:$0xff] }
  0x21   : > { %3138 = vmatmul.msk.f32.gmra.mxu3 %vm246_vm0, %v237_v15  ;;  %3111 = vmatmul.msk.f32.gmra.mxu0 %vm246_vm0, %v210_v16  ;;  %v1331_v61 = vld [vmem:[%s3514_s27 + $0x33] sm:$0xff]  ;;  %v1332_v0 = vld [vmem:[%s3514_s27 + $0x3b] sm:$0xff]  ;;  %v1333_v3 = vld [vmem:[%s3514_s27 + $0x43] sm:$0xff] }
  0x22   : > { %v177_v1 = vld [vmem:[%s3514_s27 + $0x30] sm:$0xff]  ;;  %v1026_v2 = vld [vmem:[%s3514_s27 + $0x42] sm:$0xff]  ;;  %v178_v5 = vld [vmem:[%s3514_s27 + $0x38] sm:$0xff] }
  0x23   : > { %v1027_v6 = vld [vmem:[%s3514_s27 + $0x4a] sm:$0xff]  ;;  %v179_v12 = vld [vmem:[%s3514_s27 + $0x40] sm:$0xff]  ;;  %v1028_v13 = vld [vmem:[%s3514_s27 + $0x52] sm:$0xff] }
  0x24   : > { %v1334_v8 = vld [vmem:[%s3514_s27 + $0x4b] sm:$0xff]  ;;  %v1335_v15 = vld [vmem:[%s3514_s27 + $0x53] sm:$0xff]  ;;  %v1337_v29 = vld [vmem:[%s3514_s27 + $0x63] sm:$0xff] }
  0x25   : > { %v1338_v36 = vld [vmem:[%s3514_s27 + $0x6b] sm:$0xff] }
  0x28   : > { %3121 = vmatmul.msk.f32.gmra.mxu1 %vm246_vm0, %v220_v17  ;;  %3130 = vmatmul.msk.f32.gmra.mxu2 %vm246_vm0, %v229_v18 }
  0x29   : > { %3139 = vmatmul.msk.f32.gmra.mxu3 %vm246_vm0, %v238_v19  ;;  %3112 = vmatmul.msk.f32.gmra.mxu0 %vm246_vm0, %v211_v20  ;;  %v180_v19 = vld [vmem:[%s3514_s27 + $0x48] sm:$0xff]  ;;  %v1029_v20 = vld [vmem:[%s3514_s27 + $0x5a] sm:$0xff] }
  0x30   : > { %3122 = vmatmul.msk.f32.gmra.mxu1 %vm246_vm0, %v221_v21  ;;  %3131 = vmatmul.msk.f32.gmra.mxu2 %vm246_vm0, %v230_v22  ;;  %v1336_v22 = vld [vmem:[%s3514_s27 + $0x5b] sm:$0xff] }
  0x31   : > { %3140 = vmatmul.msk.f32.gmra.mxu3 %vm246_vm0, %v239_v23  ;;  %3113 = vmatmul.msk.f32.gmra.mxu0 %vm246_vm0, %v212_v24 }
  0x38   : > { %3123 = vmatmul.msk.f32.gmra.mxu1 %vm246_vm0, %v222_v25  ;;  %3132 = vmatmul.msk.f32.gmra.mxu2 %vm246_vm0, %v231_v26  ;;  %v181_v26 = vld [vmem:[%s3514_s27 + $0x50] sm:$0xff] }
  0x39   : > { %3141 = vmatmul.msk.f32.gmra.mxu3 %vm246_vm0, %v240_v27  ;;  %3114 = vmatmul.msk.f32.gmra.mxu0 %vm246_vm0, %v213_v28  ;;  %v1030_v27 = vld [vmem:[%s3514_s27 + $0x62] sm:$0xff] }
  0x40   : > { %3124 = vmatmul.msk.f32.gmra.mxu1 %vm246_vm0, %v223_v32  ;;  %3133 = vmatmul.msk.f32.gmra.mxu2 %vm246_vm0, %v232_v33  ;;  %v182_v33 = vld [vmem:[%s3514_s27 + $0x58] sm:$0xff] }
  0x41   : > { %3142 = vmatmul.msk.f32.gmra.mxu3 %vm246_vm0, %v241_v34  ;;  %3115 = vmatmul.msk.f32.gmra.mxu0 %vm246_vm0, %v214_v35  ;;  %v1031_v34 = vld [vmem:[%s3514_s27 + $0x6a] sm:$0xff] }
  0x48   : > { %3125 = vmatmul.msk.f32.gmra.mxu1 %vm246_vm0, %v224_v37  ;;  %3134 = vmatmul.msk.f32.gmra.mxu2 %vm246_vm0, %v233_v38 }
  0x49   : > { %3143 = vmatmul.msk.f32.gmra.mxu3 %vm246_vm0, %v242_v39  ;;  %3116 = vmatmul.msk.f32.gmra.mxu0 %vm246_vm0, %v215_v40  ;;  %v183_v40 = vld [vmem:[%s3514_s27 + $0x60] sm:$0xff] }
  0x50   : > { %3126 = vmatmul.msk.f32.gmra.mxu1 %vm246_vm0, %v225_v41  ;;  %3135 = vmatmul.msk.f32.gmra.mxu2 %vm246_vm0, %v234_v42  ;;  %v1032_v41 = vld [vmem:[%s3514_s27 + $0x72] sm:$0xff] }
  0x51   : > { %3144 = vmatmul.msk.f32.gmra.mxu3 %vm246_vm0, %v243_v43  ;;  %3117 = vmatmul.msk.f32.gmra.mxu0 %vm246_vm0, %v216_v44  ;;  %v1339_v43 = vld [vmem:[%s3514_s27 + $0x73] sm:$0xff] }
  0x58   : > { %3145 = vmatmul.msk.f32.vlgmr.msrb.gmra.mxu1 %vm246_vm0, %v171_v45  ;;  %3182 = vmatmul.msk.f32.vlgmr.msrb.gmra.mxu2 %vm246_vm0, %v713_v46 }
  0x59   : > { %3219 = vmatmul.msk.f32.vlgmr.msrb.gmra.mxu3 %vm246_vm0, %v1020_v47  ;;  %3256 = vmatmul.msk.f32.vlgmr.msrb.gmra.mxu0 %vm246_vm0, %v1327_v48  ;;  %v1033_v48 = vld [vmem:[%s3514_s27 + $0x7a] sm:$0xff] }
  0x60   : > { %3146 = vmatmul.msk.f32.gmra.mxu1 %vm246_vm0, %v172_v49  ;;  %3183 = vmatmul.msk.f32.gmra.mxu2 %vm246_vm0, %v714_v50  ;;  %v1340_v50 = vld [vmem:[%s3514_s27 + $0x7b] sm:$0xff] }
  0x61   : > { %3220 = vmatmul.msk.f32.gmra.mxu3 %vm246_vm0, %v1021_v51  ;;  %3257 = vmatmul.msk.f32.gmra.mxu0 %vm246_vm0, %v1328_v52 }
  0x68   : > { %3147 = vmatmul.msk.f32.gmra.mxu1 %vm246_vm0, %v173_v53  ;;  %3184 = vmatmul.msk.f32.gmra.mxu2 %vm246_vm0, %v1020_v47  ;;  %v184_v47 = vld [vmem:[%s3514_s27 + $0x68] sm:$0xff] }
  0x69   : > { %3221 = vmatmul.msk.f32.gmra.mxu3 %vm246_vm0, %v1022_v54  ;;  %3258 = vmatmul.msk.f32.gmra.mxu0 %vm246_vm0, %v1329_v55  ;;  %v1034_v55 = vld [vmem:[%s3514_s27 + $0x82] sm:$0xff] }
  0x70   : > { %3148 = vmatmul.msk.f32.gmra.mxu1 %vm246_vm0, %v174_v56  ;;  %3185 = vmatmul.msk.f32.gmra.mxu2 %vm246_vm0, %v1021_v51 }
  0x71   : > { %3222 = vmatmul.msk.f32.gmra.mxu3 %vm246_vm0, %v1023_v57  ;;  %3259 = vmatmul.msk.f32.gmra.mxu0 %vm246_vm0, %v1330_v58 }
  0x78   : > { %3149 = vmatmul.msk.f32.gmra.mxu1 %vm246_vm0, %v175_v59  ;;  %3186 = vmatmul.msk.f32.gmra.mxu2 %vm246_vm0, %v1022_v54  ;;  %v185_v54 = vld [vmem:[%s3514_s27 + $0x70] sm:$0xff] }
  0x79   : > { %3223 = vmatmul.msk.f32.gmra.mxu3 %vm246_vm0, %v1024_v60  ;;  %3260 = vmatmul.msk.f32.gmra.mxu0 %vm246_vm0, %v1331_v61  ;;  %v186_v61 = vld [vmem:[%s3514_s27 + $0x78] sm:$0xff] }
  0x80   : > { %3150 = vmatmul.msk.f32.gmra.mxu1 %vm246_vm0, %v176_v62  ;;  %3187 = vmatmul.msk.f32.gmra.mxu2 %vm246_vm0, %v1023_v57  ;;  %v1341_v57 = vld [vmem:[%s3514_s27 + $0x83] sm:$0xff] }
  0x81   : > { %3224 = vmatmul.msk.f32.gmra.mxu3 %vm246_vm0, %v1025_v63  ;;  %3261 = vmatmul.msk.f32.gmra.mxu0 %vm246_vm0, %v1332_v0  ;;  %v1035_v62 = vld [vmem:[%s3514_s27 + $0x8a] sm:$0xff] }
  0x82   : > { %v1342_v0 = vld [vmem:[%s3514_s27 + $0x8b] sm:$0xff] }
  0x88   : > { %3151 = vmatmul.msk.f32.gmra.mxu1 %vm246_vm0, %v177_v1  ;;  %3188 = vmatmul.msk.f32.gmra.mxu2 %vm246_vm0, %v1024_v60 }
  0x89   : > { %3225 = vmatmul.msk.f32.gmra.mxu3 %vm246_vm0, %v1026_v2  ;;  %3262 = vmatmul.msk.f32.gmra.mxu0 %vm246_vm0, %v1333_v3 }
  0x8d   : > { %v3651_v4 = vpop.f32.mrf.mxu1 }
  0x8e   : > { %v3655_v7 = vpop.f32.mrf.mxu0 }
  0x90   : > { %3152 = vmatmul.msk.f32.gmra.mxu1 %vm246_vm0, %v178_v5  ;;  %3189 = vmatmul.msk.f32.gmra.mxu2 %vm246_vm0, %v1025_v63  ;;  %v187_v5 = vld [vmem:[%s3514_s27 + $0x80] sm:$0xff] }
  0x91   : > { %3226 = vmatmul.msk.f32.gmra.mxu3 %vm246_vm0, %v1027_v6  ;;  %3263 = vmatmul.msk.f32.gmra.mxu0 %vm246_vm0, %v1334_v8 }
  0x93   : > { %v3662_v9 = vpop.f32.mrf.mxu2 }
  0x94   : > { %v3664_v10 = vpop.f32.mrf.mxu3 }
  0x95   : > { %v3666_v11 = vpop.f32.mrf.mxu1 }
  0x96   : > { %v3670_v14 = vpop.f32.mrf.mxu0 }
  0x98   : > { %3153 = vmatmul.msk.f32.gmra.mxu1 %vm246_vm0, %v179_v12  ;;  %3190 = vmatmul.msk.f32.gmra.mxu2 %vm246_vm0, %v1026_v2  ;;  %v1343_v12 = vld [vmem:[%s3514_s27 + $0x93] sm:$0xff] }
  0x99   : > { %3227 = vmatmul.msk.f32.gmra.mxu3 %vm246_vm0, %v1028_v13  ;;  %3264 = vmatmul.msk.f32.gmra.mxu0 %vm246_vm0, %v1335_v15 }
  0x9b   : > { %v3677_v16 = vpop.f32.mrf.mxu2 }
  0x9c   : > { %v3679_v17 = vpop.f32.mrf.mxu3 }
  0x9d   : > { %v3681_v18 = vpop.f32.mrf.mxu1 }
  0x9e   : > { %v3685_v21 = vpop.f32.mrf.mxu0 }
  0xa0   : > { %3154 = vmatmul.msk.f32.gmra.mxu1 %vm246_vm0, %v180_v19  ;;  %3191 = vmatmul.msk.f32.gmra.mxu2 %vm246_vm0, %v1027_v6  ;;  %v1036_v6 = vld [vmem:[%s3514_s27 + $0x92] sm:$0xff] }
  0xa1   : > { %3228 = vmatmul.msk.f32.gmra.mxu3 %vm246_vm0, %v1029_v20  ;;  %3265 = vmatmul.msk.f32.gmra.mxu0 %vm246_vm0, %v1336_v22 }
  0xa3   : > { %v3692_v23 = vpop.f32.mrf.mxu2 }
  0xa4   : > { %v3694_v24 = vpop.f32.mrf.mxu3 }
  0xa5   : > { %v3696_v25 = vpop.f32.mrf.mxu1 }
  0xa6   : > { %v3700_v28 = vpop.f32.mrf.mxu0 }
  0xa8   : > { %3155 = vmatmul.msk.f32.gmra.mxu1 %vm246_vm0, %v181_v26  ;;  %3192 = vmatmul.msk.f32.gmra.mxu2 %vm246_vm0, %v1028_v13  ;;  %v188_v26 = vld [vmem:[%s3514_s27 + $0x88] sm:$0xff] }
  0xa9   : > { %3229 = vmatmul.msk.f32.gmra.mxu3 %vm246_vm0, %v1030_v27  ;;  %3266 = vmatmul.msk.f32.gmra.mxu0 %vm246_vm0, %v1337_v29  ;;  %v1037_v29 = vld [vmem:[%s3514_s27 + $0x9a] sm:$0xff] }
  0xab   : > { %v3707_v30 = vpop.f32.mrf.mxu2 }
  0xac   : > { %v3709_v31 = vpop.f32.mrf.mxu3 }
  0xad   : > { %v3711_v32 = vpop.f32.mrf.mxu1 }
  0xae   : > { %v3715_v35 = vpop.f32.mrf.mxu0 }
  0xb0   : > { %3156 = vmatmul.msk.f32.gmra.mxu1 %vm246_vm0, %v182_v33  ;;  %3193 = vmatmul.msk.f32.gmra.mxu2 %vm246_vm0, %v1029_v20 }
  0xb1   : > { %3230 = vmatmul.msk.f32.gmra.mxu3 %vm246_vm0, %v1031_v34  ;;  %3267 = vmatmul.msk.f32.gmra.mxu0 %vm246_vm0, %v1338_v36 }
  0xb3   : > { %v3722_v37 = vpop.f32.mrf.mxu2 }
  0xb4   : > { %v3724_v38 = vpop.f32.mrf.mxu3 }
  0xb5   : > { %v3726_v39 = vpop.f32.mrf.mxu1 }
  0xb6   : > { %v3730_v42 = vpop.f32.mrf.mxu0 }
  0xb8   : > { %3157 = vmatmul.msk.f32.gmra.mxu1 %vm246_vm0, %v183_v40  ;;  %3194 = vmatmul.msk.f32.gmra.mxu2 %vm246_vm0, %v1030_v27 }
  0xb9   : > { %3231 = vmatmul.msk.f32.gmra.mxu3 %vm246_vm0, %v1032_v41  ;;  %3268 = vmatmul.msk.f32.gmra.mxu0 %vm246_vm0, %v1339_v43 }
  0xbb   : > { %v3737_v44 = vpop.f32.mrf.mxu2 }
  0xbc   : > { %v3739_v45 = vpop.f32.mrf.mxu3 }
  0xbd   : > { %v3741_v46 = vpop.f32.mrf.mxu1 }
  0xbe   : > { %v3745_v49 = vpop.f32.mrf.mxu0 }
  0xc0   : > { %3158 = vmatmul.msk.f32.gmra.mxu1 %vm246_vm0, %v184_v47  ;;  %3195 = vmatmul.msk.f32.gmra.mxu2 %vm246_vm0, %v1031_v34  ;;  %v1344_v34 = vld [vmem:[%s3514_s27 + $0x9b] sm:$0xff] }
  0xc1   : > { %3232 = vmatmul.msk.f32.gmra.mxu3 %vm246_vm0, %v1033_v48  ;;  %3269 = vmatmul.msk.f32.gmra.mxu0 %vm246_vm0, %v1340_v50 }
  0xc3   : > { %v3752_v51 = vpop.f32.mrf.mxu2 }
  0xc4   : > { %v3754_v52 = vpop.f32.mrf.mxu3 }
  0xc5   : > { %v3756_v53 = vpop.f32.mrf.mxu1 }
  0xc6   : > { %v3760_v56 = vpop.f32.mrf.mxu0 }
  0xc8   : > { %3159 = vmatmul.msk.f32.gmra.mxu1 %vm246_vm0, %v185_v54  ;;  %3196 = vmatmul.msk.f32.gmra.mxu2 %vm246_vm0, %v1032_v41  ;;  %v1038_v54 = vld [vmem:[%s3514_s27 + $0xa2] sm:$0xff] }
  0xc9   : > { %3233 = vmatmul.msk.f32.gmra.mxu3 %vm246_vm0, %v1034_v55  ;;  %3270 = vmatmul.msk.f32.gmra.mxu0 %vm246_vm0, %v1341_v57  ;;  %v1345_v57 = vld [vmem:[%s3514_s27 + $0xa3] sm:$0xff] }
  0xcb   : > { %v3767_v58 = vpop.f32.mrf.mxu2 }
  0xcc   : > { %v3769_v59 = vpop.f32.mrf.mxu3 }
  0xcd   : > { %v3771_v60 = vpop.f32.mrf.mxu1 }
  0xce   : > { %v3775_v63 = vpop.f32.mrf.mxu0 }
  0xd0   : > { %3160 = vmatmul.msk.f32.gmra.mxu1 %vm246_vm0, %v186_v61  ;;  %3197 = vmatmul.msk.f32.gmra.mxu2 %vm246_vm0, %v1033_v48  ;;  %v189_v48 = vld [vmem:[%s3514_s27 + $0x90] sm:$0xff] }
  0xd1   : > { %3234 = vmatmul.msk.f32.gmra.mxu3 %vm246_vm0, %v1035_v62  ;;  %3271 = vmatmul.msk.f32.gmra.mxu0 %vm246_vm0, %v1342_v0 }
  0xd3   : > { %v3782_v1 = vpop.f32.mrf.mxu2 }
  0xd4   : > { %v3784_v2 = vpop.f32.mrf.mxu3 }
  0xd5   : > { %v605_v3 = vpop.f32.mrf.mxu1 }
  0xd6   : > { %v1490_v8 = vpop.f32.mrf.mxu0  ;;  %v606_v13 = vadd.f32 %v605_v3, %v3655_v7 }
  0xd8   : > { %3161 = vmatmul.msk.f32.gmra.mxu1 %vm246_vm0, %v187_v5  ;;  %3198 = vmatmul.msk.f32.gmra.mxu2 %vm246_vm0, %v1034_v55 }
  0xd9   : > { %3235 = vmatmul.msk.f32.gmra.mxu3 %vm246_vm0, %v1036_v6  ;;  %3272 = vmatmul.msk.f32.gmra.mxu0 %vm246_vm0, %v1343_v12 }
  0xdb   : > { %v876_v15 = vpop.f32.mrf.mxu2 }
  0xdc   : > { %v984_v19 = vadd.f32 %v876_v15, %v606_v13  ;;  %v1183_v20 = vpop.f32.mrf.mxu3  ;;  %v1039_v13 = vld [vmem:[%s3514_s27 + $0xaa] sm:$0xff] }
  0xdd   : > { %v608_v22 = vpop.f32.mrf.mxu1 }
  0xde   : > { %v1291_v27 = vadd.f32 %v1183_v20, %v984_v19  ;;  %v1493_v33 = vpop.f32.mrf.mxu0  ;;  %v609_v7 = vadd.f32 %v608_v22, %v3670_v14  ;;  %v1346_v19 = vld [vmem:[%s3514_s27 + $0xab] sm:$0xff] }
  0xe0   : > { %v3797_v36 = vadd.f32 %v1490_v8, %v1291_v27  ;;  %3162 = vmatmul.msk.f32.gmra.mxu1 %vm246_vm0, %v188_v26  ;;  %3199 = vmatmul.msk.f32.gmra.mxu2 %vm246_vm0, %v1035_v62  ;;  %v190_v8 = vld [vmem:[%s3514_s27 + $0x98] sm:$0xff] }
  0xe1   : > { %3236 = vmatmul.msk.f32.gmra.mxu3 %vm246_vm0, %v1037_v29  ;;  %3273 = vmatmul.msk.f32.gmra.mxu0 %vm246_vm0, %v1344_v34 }
  0xe3   : > { %v879_v40 = vpop.f32.mrf.mxu2 }
  0xe4   : > { %v985_v41 = vadd.f32 %v879_v40, %v609_v7  ;;  %v1186_v43 = vpop.f32.mrf.mxu3  ;;  %v1040_v7 = vld [vmem:[%s3514_s27 + $0xb2] sm:$0xff] }
  0xe5   : > { %v611_v47 = vpop.f32.mrf.mxu1 }
  0xe6   : > { %v1292_v50 = vadd.f32 %v1186_v43, %v985_v41  ;;  %v1496_v55 = vpop.f32.mrf.mxu0  ;;  %v612_v14 = vadd.f32 %v611_v47, %v3685_v21  ;;  %v1347_v41 = vld [vmem:[%s3514_s27 + $0xb3] sm:$0xff] }
  0xe8   : > { %v3807_v61 = vadd.f32 %v1493_v33, %v1292_v50  ;;  %3163 = vmatmul.msk.f32.gmra.mxu1 %vm246_vm0, %v189_v48  ;;  %3200 = vmatmul.msk.f32.gmra.mxu2 %vm246_vm0, %v1036_v6  ;;  %v191_v33 = vld [vmem:[%s3514_s27 + $0xa0] sm:$0xff] }
  0xe9   : > { %3237 = vmatmul.msk.f32.gmra.mxu3 %vm246_vm0, %v1038_v54  ;;  %3274 = vmatmul.msk.f32.gmra.mxu0 %vm246_vm0, %v1345_v57 }
  0xeb   : > { %v882_v62 = vpop.f32.mrf.mxu2 }
  0xec   : > { %v986_v0 = vadd.f32 %v882_v62, %v612_v14  ;;  %v1189_v3 = vpop.f32.mrf.mxu3  ;;  %v1041_v14 = vld [vmem:[%s3514_s27 + $0xba] sm:$0xff] }
  0xed   : > { %v614_v5 = vpop.f32.mrf.mxu1 }
  0xee   : > { %v1293_v12 = vadd.f32 %v1189_v3, %v986_v0  ;;  %v1499_v15 = vpop.f32.mrf.mxu0  ;;  %v615_v21 = vadd.f32 %v614_v5, %v3700_v28  ;;  %v1348_v0 = vld [vmem:[%s3514_s27 + $0xbb] sm:$0xff] }
  0xf0   : > { %v3817_v20 = vadd.f32 %v1496_v55, %v1293_v12  ;;  %3164 = vmatmul.msk.f32.gmra.mxu1 %vm246_vm0, %v190_v8  ;;  %3201 = vmatmul.msk.f32.gmra.mxu2 %vm246_vm0, %v1037_v29  ;;  %v192_v55 = vld [vmem:[%s3514_s27 + $0xa8] sm:$0xff] }
  0xf1   : > { %3238 = vmatmul.msk.f32.gmra.mxu3 %vm246_vm0, %v1039_v13  ;;  %3275 = vmatmul.msk.f32.gmra.mxu0 %vm246_vm0, %v1346_v19 }
  0xf3   : > { %v885_v6 = vpop.f32.mrf.mxu2 }
  0xf4   : > { %v987_v22 = vadd.f32 %v885_v6, %v615_v21  ;;  %v1192_v26 = vpop.f32.mrf.mxu3  ;;  %v1042_v21 = vld [vmem:[%s3514_s27 + $0xc2] sm:$0xff] }
  0xf5   : > { %v617_v27 = vpop.f32.mrf.mxu1 }
  0xf6   : > { %v1294_v34 = vadd.f32 %v1192_v26, %v987_v22  ;;  %v1502_v40 = vpop.f32.mrf.mxu0  ;;  %v618_v28 = vadd.f32 %v617_v27, %v3715_v35  ;;  %v1349_v22 = vld [vmem:[%s3514_s27 + $0xc3] sm:$0xff] }
  0xf8   : > { %v3827_v43 = vadd.f32 %v1499_v15, %v1294_v34  ;;  %3165 = vmatmul.msk.f32.gmra.mxu1 %vm246_vm0, %v191_v33  ;;  %3202 = vmatmul.msk.f32.gmra.mxu2 %vm246_vm0, %v1038_v54  ;;  %v193_v15 = vld [vmem:[%s3514_s27 + $0xb0] sm:$0xff] }
  0xf9   : > { %3239 = vmatmul.msk.f32.gmra.mxu3 %vm246_vm0, %v1040_v7  ;;  %3276 = vmatmul.msk.f32.gmra.mxu0 %vm246_vm0, %v1347_v41 }
  0xfb   : > { %v888_v29 = vpop.f32.mrf.mxu2 }
  0xfc   : > { %v988_v47 = vadd.f32 %v888_v29, %v618_v28  ;;  %v1195_v48 = vpop.f32.mrf.mxu3  ;;  %v1043_v28 = vld [vmem:[%s3514_s27 + $0xca] sm:$0xff] }
  0xfd   : > { %v620_v50 = vpop.f32.mrf.mxu1 }
  0xfe   : > { %v1295_v57 = vadd.f32 %v1195_v48, %v988_v47  ;;  %v1505_v62 = vpop.f32.mrf.mxu0  ;;  %v621_v35 = vadd.f32 %v620_v50, %v3730_v42  ;;  %v1350_v47 = vld [vmem:[%s3514_s27 + $0xcb] sm:$0xff] }
 0x100   : > { %v3837_v3 = vadd.f32 %v1502_v40, %v1295_v57  ;;  %3166 = vmatmul.msk.f32.gmra.mxu1 %vm246_vm0, %v192_v55  ;;  %3203 = vmatmul.msk.f32.gmra.mxu2 %vm246_vm0, %v1039_v13  ;;  %v194_v40 = vld [vmem:[%s3514_s27 + $0xb8] sm:$0xff] }
 0x101   : > { %3240 = vmatmul.msk.f32.gmra.mxu3 %vm246_vm0, %v1041_v14  ;;  %3277 = vmatmul.msk.f32.gmra.mxu0 %vm246_vm0, %v1348_v0 }
 0x103   : > { %v891_v54 = vpop.f32.mrf.mxu2 }
 0x104   : > { %v989_v5 = vadd.f32 %v891_v54, %v621_v35  ;;  %v1198_v8 = vpop.f32.mrf.mxu3  ;;  %v1044_v35 = vld [vmem:[%s3514_s27 + $0xd2] sm:$0xff] }
 0x105   : > { %v623_v12 = vpop.f32.mrf.mxu1 }
 0x106   : > { %v1296_v19 = vadd.f32 %v1198_v8, %v989_v5  ;;  %v1508_v6 = vpop.f32.mrf.mxu0  ;;  %v624_v42 = vadd.f32 %v623_v12, %v3745_v49  ;;  %v1351_v5 = vld [vmem:[%s3514_s27 + $0xd3] sm:$0xff] }
 0x108   : > { %v3847_v26 = vadd.f32 %v1505_v62, %v1296_v19  ;;  %3167 = vmatmul.msk.f32.gmra.mxu1 %vm246_vm0, %v193_v15  ;;  %3204 = vmatmul.msk.f32.gmra.mxu2 %vm246_vm0, %v1040_v7  ;;  %v195_v62 = vld [vmem:[%s3514_s27 + $0xc0] sm:$0xff] }
 0x109   : > { %3241 = vmatmul.msk.f32.gmra.mxu3 %vm246_vm0, %v1042_v21  ;;  %3278 = vmatmul.msk.f32.gmra.mxu0 %vm246_vm0, %v1349_v22 }
 0x10b   : > { %v894_v13 = vpop.f32.mrf.mxu2 }
 0x10c   : > { %v990_v27 = vadd.f32 %v894_v13, %v624_v42  ;;  %v1201_v33 = vpop.f32.mrf.mxu3  ;;  %v1045_v42 = vld [vmem:[%s3514_s27 + $0xda] sm:$0xff] }
 0x10d   : > { %v626_v34 = vpop.f32.mrf.mxu1 }
 0x10e   : > { %v1297_v41 = vadd.f32 %v1201_v33, %v990_v27  ;;  %v1511_v29 = vpop.f32.mrf.mxu0  ;;  %v627_v49 = vadd.f32 %v626_v34, %v3760_v56  ;;  %v1352_v27 = vld [vmem:[%s3514_s27 + $0xdb] sm:$0xff] }
 0x110   : > { %v3857_v48 = vadd.f32 %v1508_v6, %v1297_v41  ;;  %3168 = vmatmul.msk.f32.gmra.mxu1 %vm246_vm0, %v194_v40  ;;  %3205 = vmatmul.msk.f32.gmra.mxu2 %vm246_vm0, %v1041_v14  ;;  %v196_v6 = vld [vmem:[%s3514_s27 + $0xc8] sm:$0xff] }
 0x111   : > { %3242 = vmatmul.msk.f32.gmra.mxu3 %vm246_vm0, %v1043_v28  ;;  %3279 = vmatmul.msk.f32.gmra.mxu0 %vm246_vm0, %v1350_v47 }
 0x113   : > { %v897_v7 = vpop.f32.mrf.mxu2 }
 0x114   : > { %v991_v50 = vadd.f32 %v897_v7, %v627_v49  ;;  %v1204_v55 = vpop.f32.mrf.mxu3  ;;  %v1046_v49 = vld [vmem:[%s3514_s27 + $0xe2] sm:$0xff] }
 0x115   : > { %v629_v57 = vpop.f32.mrf.mxu1 }
 0x116   : > { %v1298_v0 = vadd.f32 %v1204_v55, %v991_v50  ;;  %v1514_v54 = vpop.f32.mrf.mxu0  ;;  %v630_v56 = vadd.f32 %v629_v57, %v3775_v63  ;;  %v1353_v50 = vld [vmem:[%s3514_s27 + $0xe3] sm:$0xff] }
 0x118   : > { %v3867_v8 = vadd.f32 %v1511_v29, %v1298_v0  ;;  %3169 = vmatmul.msk.f32.gmra.mxu1 %vm246_vm0, %v195_v62  ;;  %3206 = vmatmul.msk.f32.gmra.mxu2 %vm246_vm0, %v1042_v21  ;;  %v197_v29 = vld [vmem:[%s3514_s27 + $0xd0] sm:$0xff] }
 0x119   : > { %3243 = vmatmul.msk.f32.gmra.mxu3 %vm246_vm0, %v1044_v35  ;;  %3280 = vmatmul.msk.f32.gmra.mxu0 %vm246_vm0, %v1351_v5 }
 0x11b   : > { %v900_v14 = vpop.f32.mrf.mxu2 }
 0x11c   : > { %v992_v12 = vadd.f32 %v900_v14, %v630_v56  ;;  %v1207_v15 = vpop.f32.mrf.mxu3  ;;  %v1047_v56 = vld [vmem:[%s3514_s27 + $0xea] sm:$0xff] }
 0x11d   : > { %v632_v19 = vpop.f32.mrf.mxu1 }
 0x11e   : > { %v1299_v22 = vadd.f32 %v1207_v15, %v992_v12  ;;  %v1517_v13 = vpop.f32.mrf.mxu0  ;;  %v633_v63 = vadd.f32 %v632_v19, %v3651_v4  ;;  %v1354_v12 = vld [vmem:[%s3514_s27 + $0xeb] sm:$0xff] }
 0x120   : > { %v3877_v33 = vadd.f32 %v1514_v54, %v1299_v22  ;;  %3170 = vmatmul.msk.f32.gmra.mxu1 %vm246_vm0, %v196_v6  ;;  %3207 = vmatmul.msk.f32.gmra.mxu2 %vm246_vm0, %v1043_v28  ;;  %v198_v54 = vld [vmem:[%s3514_s27 + $0xd8] sm:$0xff] }
 0x121   : > { %3244 = vmatmul.msk.f32.gmra.mxu3 %vm246_vm0, %v1045_v42  ;;  %3281 = vmatmul.msk.f32.gmra.mxu0 %vm246_vm0, %v1352_v27 }
 0x123   : > { %v903_v21 = vpop.f32.mrf.mxu2 }
 0x124   : > { %v993_v34 = vadd.f32 %v903_v21, %v633_v63  ;;  %v1210_v40 = vpop.f32.mrf.mxu3  ;;  %v1048_v63 = vld [vmem:[%s3514_s27 + $0xf2] sm:$0xff] }
 0x125   : > { %v635_v41 = vpop.f32.mrf.mxu1 }
 0x126   : > { %v1300_v47 = vadd.f32 %v1210_v40, %v993_v34  ;;  %v1520_v7 = vpop.f32.mrf.mxu0  ;;  %v636_v4 = vadd.f32 %v635_v41, %v3666_v11  ;;  %v1355_v34 = vld [vmem:[%s3514_s27 + $0xf3] sm:$0xff] }
 0x128   : > { %v3887_v55 = vadd.f32 %v1517_v13, %v1300_v47  ;;  %3171 = vmatmul.msk.f32.gmra.mxu1 %vm246_vm0, %v197_v29  ;;  %3208 = vmatmul.msk.f32.gmra.mxu2 %vm246_vm0, %v1044_v35  ;;  %v199_v13 = vld [vmem:[%s3514_s27 + $0xe0] sm:$0xff] }
 0x129   : > { %3245 = vmatmul.msk.f32.gmra.mxu3 %vm246_vm0, %v1046_v49  ;;  %3282 = vmatmul.msk.f32.gmra.mxu0 %vm246_vm0, %v1353_v50 }
 0x12b   : > { %v906_v28 = vpop.f32.mrf.mxu2 }
 0x12c   : > { %v994_v57 = vadd.f32 %v906_v28, %v636_v4  ;;  %v1213_v62 = vpop.f32.mrf.mxu3  ;;  %v1049_v4 = vld [vmem:[%s3514_s27 + $0xfa] sm:$0xff] }
 0x12d   : > { %v638_v0 = vpop.f32.mrf.mxu1 }
 0x12e   : > { %v1301_v5 = vadd.f32 %v1213_v62, %v994_v57  ;;  %v1523_v14 = vpop.f32.mrf.mxu0  ;;  %v639_v11 = vadd.f32 %v638_v0, %v3681_v18  ;;  %v1356_v57 = vld [vmem:[%s3514_s27 + $0xfb] sm:$0xff] }
 0x130   : > { %v3897_v15 = vadd.f32 %v1520_v7, %v1301_v5  ;;  %3172 = vmatmul.msk.f32.gmra.mxu1 %vm246_vm0, %v198_v54  ;;  %3209 = vmatmul.msk.f32.gmra.mxu2 %vm246_vm0, %v1045_v42  ;;  %v200_v7 = vld [vmem:[%s3514_s27 + $0xe8] sm:$0xff] }
 0x131   : > { %3246 = vmatmul.msk.f32.gmra.mxu3 %vm246_vm0, %v1047_v56  ;;  %3283 = vmatmul.msk.f32.gmra.mxu0 %vm246_vm0, %v1354_v12 }
 0x133   : > { %v909_v35 = vpop.f32.mrf.mxu2 }
 0x134   : > { %v995_v19 = vadd.f32 %v909_v35, %v639_v11  ;;  %v1216_v6 = vpop.f32.mrf.mxu3  ;;  %v1050_v11 = vld [vmem:[%s3514_s27 + $0x102] sm:$0xff] }
 0x135   : > { %v641_v22 = vpop.f32.mrf.mxu1 }
 0x136   : > { %v1302_v27 = vadd.f32 %v1216_v6, %v995_v19  ;;  %v1526_v21 = vpop.f32.mrf.mxu0  ;;  %v642_v18 = vadd.f32 %v641_v22, %v3696_v25  ;;  %v1357_v19 = vld [vmem:[%s3514_s27 + $0x103] sm:$0xff] }
 0x138   : > { %v3907_v40 = vadd.f32 %v1523_v14, %v1302_v27  ;;  %3173 = vmatmul.msk.f32.gmra.mxu1 %vm246_vm0, %v199_v13  ;;  %3210 = vmatmul.msk.f32.gmra.mxu2 %vm246_vm0, %v1046_v49  ;;  %v201_v14 = vld [vmem:[%s3514_s27 + $0xf0] sm:$0xff] }
 0x139   : > { %3247 = vmatmul.msk.f32.gmra.mxu3 %vm246_vm0, %v1048_v63  ;;  %3284 = vmatmul.msk.f32.gmra.mxu0 %vm246_vm0, %v1355_v34 }
 0x13b   : > { %v912_v42 = vpop.f32.mrf.mxu2 }
 0x13c   : > { %v996_v41 = vadd.f32 %v912_v42, %v642_v18  ;;  %v1219_v29 = vpop.f32.mrf.mxu3  ;;  %v1051_v18 = vld [vmem:[%s3514_s27 + $0x10a] sm:$0xff] }
 0x13d   : > { %v644_v47 = vpop.f32.mrf.mxu1 }
 0x13e   : > { %v1303_v50 = vadd.f32 %v1219_v29, %v996_v41  ;;  %v1529_v28 = vpop.f32.mrf.mxu0  ;;  %v645_v25 = vadd.f32 %v644_v47, %v3711_v32  ;;  %v1358_v41 = vld [vmem:[%s3514_s27 + $0x10b] sm:$0xff] }
 0x140   : > { %v3917_v62 = vadd.f32 %v1526_v21, %v1303_v50  ;;  %3174 = vmatmul.msk.f32.gmra.mxu1 %vm246_vm0, %v200_v7  ;;  %3211 = vmatmul.msk.f32.gmra.mxu2 %vm246_vm0, %v1047_v56  ;;  %v202_v21 = vld [vmem:[%s3514_s27 + $0xf8] sm:$0xff] }
 0x141   : > { %3248 = vmatmul.msk.f32.gmra.mxu3 %vm246_vm0, %v1049_v4  ;;  %3285 = vmatmul.msk.f32.gmra.mxu0 %vm246_vm0, %v1356_v57 }
 0x143   : > { %v915_v49 = vpop.f32.mrf.mxu2 }
 0x144   : > { %v997_v0 = vadd.f32 %v915_v49, %v645_v25  ;;  %v1222_v54 = vpop.f32.mrf.mxu3  ;;  %v1052_v25 = vld [vmem:[%s3514_s27 + $0x112] sm:$0xff] }
 0x145   : > { %v647_v5 = vpop.f32.mrf.mxu1 }
 0x146   : > { %v1304_v12 = vadd.f32 %v1222_v54, %v997_v0  ;;  %v1532_v35 = vpop.f32.mrf.mxu0  ;;  %v648_v32 = vadd.f32 %v647_v5, %v3726_v39  ;;  %v1359_v0 = vld [vmem:[%s3514_s27 + $0x113] sm:$0xff] }
 0x148   : > { %v3927_v6 = vadd.f32 %v1529_v28, %v1304_v12  ;;  %3175 = vmatmul.msk.f32.gmra.mxu1 %vm246_vm0, %v201_v14  ;;  %3212 = vmatmul.msk.f32.gmra.mxu2 %vm246_vm0, %v1048_v63  ;;  %v203_v28 = vld [vmem:[%s3514_s27 + $0x100] sm:$0xff] }
 0x149   : > { %3249 = vmatmul.msk.f32.gmra.mxu3 %vm246_vm0, %v1050_v11  ;;  %3286 = vmatmul.msk.f32.gmra.mxu0 %vm246_vm0, %v1357_v19 }
 0x14b   : > { %v918_v56 = vpop.f32.mrf.mxu2 }
 0x14c   : > { %v998_v22 = vadd.f32 %v918_v56, %v648_v32  ;;  %v1225_v13 = vpop.f32.mrf.mxu3  ;;  %v1053_v32 = vld [vmem:[%s3514_s27 + $0x11a] sm:$0xff] }
 0x14d   : > { %v650_v27 = vpop.f32.mrf.mxu1 }
 0x14e   : > { %v1305_v34 = vadd.f32 %v1225_v13, %v998_v22  ;;  %v1535_v42 = vpop.f32.mrf.mxu0  ;;  %v651_v39 = vadd.f32 %v650_v27, %v3741_v46  ;;  %v1360_v22 = vld [vmem:[%s3514_s27 + $0x11b] sm:$0xff] }
 0x150   : > { %v3937_v29 = vadd.f32 %v1532_v35, %v1305_v34  ;;  %3176 = vmatmul.msk.f32.gmra.mxu1 %vm246_vm0, %v202_v21  ;;  %3213 = vmatmul.msk.f32.gmra.mxu2 %vm246_vm0, %v1049_v4  ;;  %v204_v35 = vld [vmem:[%s3514_s27 + $0x108] sm:$0xff] }
 0x151   : > { %3250 = vmatmul.msk.f32.gmra.mxu3 %vm246_vm0, %v1051_v18  ;;  %3287 = vmatmul.msk.f32.gmra.mxu0 %vm246_vm0, %v1358_v41 }
 0x153   : > { %v921_v63 = vpop.f32.mrf.mxu2 }
 0x154   : > { %v999_v47 = vadd.f32 %v921_v63, %v651_v39  ;;  %v1228_v7 = vpop.f32.mrf.mxu3  ;;  %v1054_v39 = vld [vmem:[%s3514_s27 + $0x122] sm:$0xff] }
 0x155   : > { %v653_v50 = vpop.f32.mrf.mxu1 }
 0x156   : > { %v1306_v57 = vadd.f32 %v1228_v7, %v999_v47  ;;  %v1538_v49 = vpop.f32.mrf.mxu0  ;;  %v654_v46 = vadd.f32 %v653_v50, %v3756_v53  ;;  %v1361_v47 = vld [vmem:[%s3514_s27 + $0x123] sm:$0xff] }
 0x158   : > { %v3947_v54 = vadd.f32 %v1535_v42, %v1306_v57  ;;  %3177 = vmatmul.msk.f32.gmra.mxu1 %vm246_vm0, %v203_v28  ;;  %3214 = vmatmul.msk.f32.gmra.mxu2 %vm246_vm0, %v1050_v11  ;;  %v205_v42 = vld [vmem:[%s3514_s27 + $0x110] sm:$0xff] }
 0x159   : > { %3251 = vmatmul.msk.f32.gmra.mxu3 %vm246_vm0, %v1052_v25  ;;  %3288 = vmatmul.msk.f32.gmra.mxu0 %vm246_vm0, %v1359_v0 }
 0x15b   : > { %v924_v4 = vpop.f32.mrf.mxu2 }
 0x15c   : > { %v1000_v5 = vadd.f32 %v924_v4, %v654_v46  ;;  %v1231_v14 = vpop.f32.mrf.mxu3  ;;  %v1055_v46 = vld [vmem:[%s3514_s27 + $0x12a] sm:$0xff] }
 0x15d   : > { %v656_v12 = vpop.f32.mrf.mxu1 }
 0x15e   : > { %v1307_v19 = vadd.f32 %v1231_v14, %v1000_v5  ;;  %v1541_v56 = vpop.f32.mrf.mxu0  ;;  %v657_v53 = vadd.f32 %v656_v12, %v3771_v60  ;;  %v1362_v5 = vld [vmem:[%s3514_s27 + $0x12b] sm:$0xff] }
 0x160   : > { %v3957_v13 = vadd.f32 %v1538_v49, %v1307_v19  ;;  %3178 = vmatmul.msk.f32.gmra.mxu1 %vm246_vm0, %v204_v35  ;;  %3215 = vmatmul.msk.f32.gmra.mxu2 %vm246_vm0, %v1051_v18  ;;  %v206_v49 = vld [vmem:[%s3514_s27 + $0x118] sm:$0xff] }
 0x161   : > { %3252 = vmatmul.msk.f32.gmra.mxu3 %vm246_vm0, %v1053_v32  ;;  %3289 = vmatmul.msk.f32.gmra.mxu0 %vm246_vm0, %v1360_v22  ;;  %v1941_v22 = vld [vmem:[%s3514_s27 + $0x24] sm:$0xff] }
 0x163   : > { %v927_v11 = vpop.f32.mrf.mxu2 }
 0x164   : > { %v1001_v27 = vadd.f32 %v927_v11, %v657_v53  ;;  %v1234_v21 = vpop.f32.mrf.mxu3  ;;  %v2248_v11 = vld [vmem:[%s3514_s27 + $0x25] sm:$0xff] }
 0x165   : > { %v659_v34 = vpop.f32.mrf.mxu1 }
 0x166   : > { %v1308_v41 = vadd.f32 %v1234_v21, %v1001_v27  ;;  %v1544_v63 = vpop.f32.mrf.mxu0  ;;  %v660_v60 = vadd.f32 %v659_v34, %v3662_v9  ;;  %v2555_v21 = vld [vmem:[%s3514_s27 + $0x26] sm:$0xff] }
 0x168   : > { %v3967_v7 = vadd.f32 %v1541_v56, %v1308_v41  ;;  %3179 = vmatmul.msk.f32.gmra.mxu1 %vm246_vm0, %v205_v42  ;;  %3216 = vmatmul.msk.f32.gmra.mxu2 %vm246_vm0, %v1052_v25  ;;  %v1634_v56 = vld [vmem:[%s3514_s27 + $0x14] sm:$0xff] }
 0x169   : > { %3253 = vmatmul.msk.f32.gmra.mxu3 %vm246_vm0, %v1054_v39  ;;  %3290 = vmatmul.msk.f32.gmra.mxu0 %vm246_vm0, %v1361_v47  ;;  %v1942_v47 = vld [vmem:[%s3514_s27 + $0x2c] sm:$0xff] }
 0x16b   : > { %v930_v18 = vpop.f32.mrf.mxu2 }
 0x16c   : > { %v1002_v50 = vadd.f32 %v930_v18, %v660_v60  ;;  %v1237_v28 = vpop.f32.mrf.mxu3  ;;  %v2249_v18 = vld [vmem:[%s3514_s27 + $0x2d] sm:$0xff] }
 0x16d   : > { %v662_v57 = vpop.f32.mrf.mxu1 }
 0x16e   : > { %v1309_v0 = vadd.f32 %v1237_v28, %v1002_v50  ;;  %v1547_v4 = vpop.f32.mrf.mxu0  ;;  %v663_v9 = vadd.f32 %v662_v57, %v3677_v16  ;;  %v2556_v28 = vld [vmem:[%s3514_s27 + $0x2e] sm:$0xff] }
 0x170   : > { %v3977_v25 = vadd.f32 %v1544_v63, %v1309_v0  ;;  %3180 = vmatmul.msk.f32.gmra.mxu1 %vm246_vm0, %v206_v49  ;;  %3217 = vmatmul.msk.f32.gmra.mxu2 %vm246_vm0, %v1053_v32  ;;  %v1635_v63 = vld [vmem:[%s3514_s27 + $0x1c] sm:$0xff] }
 0x171   : > { %3254 = vmatmul.msk.f32.gmra.mxu3 %vm246_vm0, %v1055_v46  ;;  %3291 = vmatmul.msk.f32.gmra.mxu0 %vm246_vm0, %v1362_v5  ;;  %v1943_v5 = vld [vmem:[%s3514_s27 + $0x34] sm:$0xff] }
 0x173   : > { %v933_v14 = vpop.f32.mrf.mxu2 }
 0x174   : > { %v1003_v12 = vadd.f32 %v933_v14, %v663_v9  ;;  %v1240_v35 = vpop.f32.mrf.mxu3  ;;  %v2250_v14 = vld [vmem:[%s3514_s27 + $0x35] sm:$0xff] }
 0x175   : > { %v665_v19 = vpop.f32.mrf.mxu1 }
 0x176   : > { %v1310_v53 = vadd.f32 %v1240_v35, %v1003_v12  ;;  %v1550_v27 = vpop.f32.mrf.mxu0  ;;  %v666_v16 = vadd.f32 %v665_v19, %v3692_v23  ;;  %v2557_v35 = vld [vmem:[%s3514_s27 + $0x36] sm:$0xff] }
 0x178   : > { %v3988_v32 = vadd.f32 %v1547_v4, %v1310_v53  ;;  %3293 = vmatmul.msk.f32.vlgmr.msra.gmra.mxu1 %vm246_vm0, %v1634_v56  ;;  %3330 = vmatmul.msk.f32.vlgmr.msra.gmra.mxu2 %vm246_vm0, %v1941_v22 }
 0x179   : > { %3367 = vmatmul.msk.f32.vlgmr.msra.gmra.mxu3 %vm246_vm0, %v2248_v11  ;;  %3404 = vmatmul.msk.f32.vlgmr.msra.gmra.mxu0 %vm246_vm0, %v2555_v21  ;;  %v1944_v21 = vld [vmem:[%s3514_s27 + $0x3c] sm:$0xff] }
 0x17b   : > { %v936_v34 = vpop.f32.mrf.mxu2 }
 0x17c   : > { %v1004_v42 = vadd.f32 %v936_v34, %v666_v16  ;;  %v1243_v41 = vpop.f32.mrf.mxu3  ;;  %v2251_v34 = vld [vmem:[%s3514_s27 + $0x3d] sm:$0xff] }
 0x17d   : > { %v668_v39 = vpop.f32.mrf.mxu1 }
 0x17e   : > { %v1311_v60 = vadd.f32 %v1243_v41, %v1004_v42  ;;  %v1553_v50 = vpop.f32.mrf.mxu0  ;;  %v669_v23 = vadd.f32 %v668_v39, %v3707_v30 }
 0x180   : > { %v3999_v57 = vadd.f32 %v1550_v27, %v1311_v60  ;;  %3294 = vmatmul.msk.f32.gmra.mxu1 %vm246_vm0, %v1635_v63  ;;  %3331 = vmatmul.msk.f32.gmra.mxu2 %vm246_vm0, %v1942_v47 }
 0x181   : > { %3368 = vmatmul.msk.f32.gmra.mxu3 %vm246_vm0, %v2249_v18  ;;  %3405 = vmatmul.msk.f32.gmra.mxu0 %vm246_vm0, %v2556_v28 }
 0x183   : > { %v939_v49 = vpop.f32.mrf.mxu2 }
 0x184   : > { %v1005_v0 = vadd.f32 %v939_v49, %v669_v23  ;;  %v1246_v46 = vpop.f32.mrf.mxu3  ;;  %v2252_v23 = vld [vmem:[%s3514_s27 + $0x45] sm:$0xff] }
 0x185   : > { %v671_v4 = vpop.f32.mrf.mxu1 }
 0x186   : > { %v1312_v9 = vadd.f32 %v1246_v46, %v1005_v0  ;;  %v1556_v12 = vpop.f32.mrf.mxu0  ;;  %v672_v30 = vadd.f32 %v671_v4, %v3722_v37 }
 0x188   : > { %v4009_v19 = vadd.f32 %v1553_v50, %v1312_v9  ;;  %3295 = vmatmul.msk.f32.gmra.mxu1 %vm246_vm0, %v1941_v22  ;;  %3332 = vmatmul.msk.f32.gmra.mxu2 %vm246_vm0, %v1943_v5  ;;  %v2558_v22 = vld [vmem:[%s3514_s27 + $0x3e] sm:$0xff] }
 0x189   : > { %3369 = vmatmul.msk.f32.gmra.mxu3 %vm246_vm0, %v2250_v14  ;;  %3406 = vmatmul.msk.f32.gmra.mxu0 %vm246_vm0, %v2557_v35  ;;  %v1945_v50 = vld [vmem:[%s3514_s27 + $0x44] sm:$0xff] }
 0x18b   : > { %v942_v56 = vpop.f32.mrf.mxu2 }
 0x18c   : > { %v1006_v53 = vadd.f32 %v942_v56, %v672_v30  ;;  %v1249_v11 = vpop.f32.mrf.mxu3  ;;  %v2253_v30 = vld [vmem:[%s3514_s27 + $0x4d] sm:$0xff] }
 0x18d   : > { %v674_v27 = vpop.f32.mrf.mxu1 }
 0x18e   : > { %v1313_v16 = vadd.f32 %v1249_v11, %v1006_v53  ;;  %v1559_v42 = vpop.f32.mrf.mxu0  ;;  %v675_v37 = vadd.f32 %v674_v27, %v3737_v44 }
 0x190   : > { %v4019_v41 = vadd.f32 %v1556_v12, %v1313_v16  ;;  %3296 = vmatmul.msk.f32.gmra.mxu1 %vm246_vm0, %v1942_v47  ;;  %3333 = vmatmul.msk.f32.gmra.mxu2 %vm246_vm0, %v1944_v21  ;;  %v2559_v47 = vld [vmem:[%s3514_s27 + $0x46] sm:$0xff] }
 0x191   : > { %3370 = vmatmul.msk.f32.gmra.mxu3 %vm246_vm0, %v2251_v34  ;;  %3407 = vmatmul.msk.f32.gmra.mxu0 %vm246_vm0, %v2558_v22  ;;  %v1946_v12 = vld [vmem:[%s3514_s27 + $0x4c] sm:$0xff] }
 0x193   : > { %v945_v39 = vpop.f32.mrf.mxu2 }
 0x194   : > { %v1007_v63 = vadd.f32 %v945_v39, %v675_v37  ;;  %v1252_v60 = vpop.f32.mrf.mxu3  ;;  %v2254_v37 = vld [vmem:[%s3514_s27 + $0x55] sm:$0xff] }
 0x195   : > { %v677_v18 = vpop.f32.mrf.mxu1 }
 0x196   : > { %v1314_v28 = vadd.f32 %v1252_v60, %v1007_v63  ;;  %v1562_v49 = vpop.f32.mrf.mxu0  ;;  %v678_v44 = vadd.f32 %v677_v18, %v3752_v51 }
 0x198   : > { %v4029_v0 = vadd.f32 %v1559_v42, %v1314_v28  ;;  %3297 = vmatmul.msk.f32.gmra.mxu1 %vm246_vm0, %v1943_v5  ;;  %3334 = vmatmul.msk.f32.gmra.mxu2 %vm246_vm0, %v1945_v50  ;;  %v2560_v5 = vld [vmem:[%s3514_s27 + $0x4e] sm:$0xff] }
 0x199   : > { %3371 = vmatmul.msk.f32.gmra.mxu3 %vm246_vm0, %v2252_v23  ;;  %3408 = vmatmul.msk.f32.gmra.mxu0 %vm246_vm0, %v2559_v47  ;;  %v1947_v42 = vld [vmem:[%s3514_s27 + $0x54] sm:$0xff] }
 0x19b   : > { %v948_v46 = vpop.f32.mrf.mxu2 }
 0x19c   : > { %v1008_v4 = vadd.f32 %v948_v46, %v678_v44  ;;  %v1255_v9 = vpop.f32.mrf.mxu3  ;;  %v2255_v44 = vld [vmem:[%s3514_s27 + $0x5d] sm:$0xff] }
 0x19d   : > { %v680_v14 = vpop.f32.mrf.mxu1 }
 0x19e   : > { %v1315_v35 = vadd.f32 %v1255_v9, %v1008_v4  ;;  %v1565_v56 = vpop.f32.mrf.mxu0  ;;  %v681_v51 = vadd.f32 %v680_v14, %v3767_v58 }
 0x1a0   : > { %v4039_v53 = vadd.f32 %v1562_v49, %v1315_v35  ;;  %3298 = vmatmul.msk.f32.gmra.mxu1 %vm246_vm0, %v1944_v21  ;;  %3335 = vmatmul.msk.f32.gmra.mxu2 %vm246_vm0, %v1946_v12  ;;  %v2561_v21 = vld [vmem:[%s3514_s27 + $0x56] sm:$0xff] }
 0x1a1   : > { %3372 = vmatmul.msk.f32.gmra.mxu3 %vm246_vm0, %v2253_v30  ;;  %3409 = vmatmul.msk.f32.gmra.mxu0 %vm246_vm0, %v2560_v5  ;;  %v1948_v49 = vld [vmem:[%s3514_s27 + $0x5c] sm:$0xff] }
 0x1a3   : > { %v951_v11 = vpop.f32.mrf.mxu2 }
 0x1a4   : > { %v1009_v27 = vadd.f32 %v951_v11, %v681_v51  ;;  %v1258_v16 = vpop.f32.mrf.mxu3  ;;  %v2256_v51 = vld [vmem:[%s3514_s27 + $0x65] sm:$0xff] }
 0x1a5   : > { %v683_v34 = vpop.f32.mrf.mxu1 }
 0x1a6   : > { %v1316_v22 = vadd.f32 %v1258_v16, %v1009_v27  ;;  %v1568_v39 = vpop.f32.mrf.mxu0  ;;  %v684_v58 = vadd.f32 %v683_v34, %v3782_v1 }
 0x1a8   : > { %v4049_v63 = vadd.f32 %v1565_v56, %v1316_v22  ;;  %3299 = vmatmul.msk.f32.gmra.mxu1 %vm246_vm0, %v1945_v50  ;;  %3336 = vmatmul.msk.f32.gmra.mxu2 %vm246_vm0, %v1947_v42  ;;  %v2562_v50 = vld [vmem:[%s3514_s27 + $0x5e] sm:$0xff] }
 0x1a9   : > { %3373 = vmatmul.msk.f32.gmra.mxu3 %vm246_vm0, %v2254_v37  ;;  %3410 = vmatmul.msk.f32.gmra.mxu0 %vm246_vm0, %v2561_v21  ;;  %v1949_v56 = vld [vmem:[%s3514_s27 + $0x64] sm:$0xff] }
 0x1ab   : > { %v954_v60 = vpop.f32.mrf.mxu2 }
 0x1ac   : > { %v1010_v18 = vadd.f32 %v954_v60, %v684_v58  ;;  %v1261_v28 = vpop.f32.mrf.mxu3  ;;  %v2257_v58 = vld [vmem:[%s3514_s27 + $0x6d] sm:$0xff] }
 0x1ad   : > { %v686_v23 = vpop.f32.mrf.mxu1 }
 0x1ae   : > { %v1317_v47 = vadd.f32 %v1261_v28, %v1010_v18  ;;  %v1571_v46 = vpop.f32.mrf.mxu0  ;;  %v687_v1 = vadd.f32 %v686_v23, %v3664_v10 }
 0x1b0   : > { %v4059_v4 = vadd.f32 %v1568_v39, %v1317_v47  ;;  %3300 = vmatmul.msk.f32.gmra.mxu1 %vm246_vm0, %v1946_v12  ;;  %3337 = vmatmul.msk.f32.gmra.mxu2 %vm246_vm0, %v1948_v49  ;;  %v2563_v12 = vld [vmem:[%s3514_s27 + $0x66] sm:$0xff] }
 0x1b1   : > { %3374 = vmatmul.msk.f32.gmra.mxu3 %vm246_vm0, %v2255_v44  ;;  %3411 = vmatmul.msk.f32.gmra.mxu0 %vm246_vm0, %v2562_v50  ;;  %v1950_v39 = vld [vmem:[%s3514_s27 + $0x6c] sm:$0xff] }
 0x1b3   : > { %v957_v9 = vpop.f32.mrf.mxu2 }
 0x1b4   : > { %v1011_v14 = vadd.f32 %v957_v9, %v687_v1  ;;  %v1264_v35 = vpop.f32.mrf.mxu3  ;;  %v2258_v1 = vld [vmem:[%s3514_s27 + $0x75] sm:$0xff] }
 0x1b5   : > { %v689_v30 = vpop.f32.mrf.mxu1 }
 0x1b6   : > { %v1318_v5 = vadd.f32 %v1264_v35, %v1011_v14  ;;  %v1574_v11 = vpop.f32.mrf.mxu0  ;;  %v690_v10 = vadd.f32 %v689_v30, %v3679_v17 }
 0x1b8   : > { %v4069_v27 = vadd.f32 %v1571_v46, %v1318_v5  ;;  %3301 = vmatmul.msk.f32.gmra.mxu1 %vm246_vm0, %v1947_v42  ;;  %3338 = vmatmul.msk.f32.gmra.mxu2 %vm246_vm0, %v1949_v56  ;;  %v2564_v42 = vld [vmem:[%s3514_s27 + $0x6e] sm:$0xff] }
 0x1b9   : > { %3375 = vmatmul.msk.f32.gmra.mxu3 %vm246_vm0, %v2256_v51  ;;  %3412 = vmatmul.msk.f32.gmra.mxu0 %vm246_vm0, %v2563_v12  ;;  %v1951_v46 = vld [vmem:[%s3514_s27 + $0x74] sm:$0xff] }
 0x1bb   : > { %v960_v16 = vpop.f32.mrf.mxu2 }
 0x1bc   : > { %v1012_v34 = vadd.f32 %v960_v16, %v690_v10  ;;  %v1267_v22 = vpop.f32.mrf.mxu3  ;;  %v2259_v10 = vld [vmem:[%s3514_s27 + $0x7d] sm:$0xff] }
 0x1bd   : > { %v692_v37 = vpop.f32.mrf.mxu1 }
 0x1be   : > { %v1319_v21 = vadd.f32 %v1267_v22, %v1012_v34  ;;  %v1577_v60 = vpop.f32.mrf.mxu0  ;;  %v693_v17 = vadd.f32 %v692_v37, %v3694_v24 }
 0x1c0   : > { %v4079_v18 = vadd.f32 %v1574_v11, %v1319_v21  ;;  %3302 = vmatmul.msk.f32.gmra.mxu1 %vm246_vm0, %v1948_v49  ;;  %3339 = vmatmul.msk.f32.gmra.mxu2 %vm246_vm0, %v1950_v39  ;;  %v2565_v49 = vld [vmem:[%s3514_s27 + $0x76] sm:$0xff] }
 0x1c1   : > { %3376 = vmatmul.msk.f32.gmra.mxu3 %vm246_vm0, %v2257_v58  ;;  %3413 = vmatmul.msk.f32.gmra.mxu0 %vm246_vm0, %v2564_v42  ;;  %v1952_v11 = vld [vmem:[%s3514_s27 + $0x7c] sm:$0xff] }
 0x1c3   : > { %v963_v28 = vpop.f32.mrf.mxu2 }
 0x1c4   : > { %v1013_v23 = vadd.f32 %v963_v28, %v693_v17  ;;  %v1270_v47 = vpop.f32.mrf.mxu3  ;;  %v2260_v17 = vld [vmem:[%s3514_s27 + $0x85] sm:$0xff] }
 0x1c5   : > { %v695_v44 = vpop.f32.mrf.mxu1 }
 0x1c6   : > { %v1320_v50 = vadd.f32 %v1270_v47, %v1013_v23  ;;  %v1580_v9 = vpop.f32.mrf.mxu0  ;;  %v696_v24 = vadd.f32 %v695_v44, %v3709_v31 }
 0x1c8   : > { %v4089_v14 = vadd.f32 %v1577_v60, %v1320_v50  ;;  %3303 = vmatmul.msk.f32.gmra.mxu1 %vm246_vm0, %v1949_v56  ;;  %3340 = vmatmul.msk.f32.gmra.mxu2 %vm246_vm0, %v1951_v46  ;;  %v2566_v56 = vld [vmem:[%s3514_s27 + $0x7e] sm:$0xff] }
 0x1c9   : > { %3377 = vmatmul.msk.f32.gmra.mxu3 %vm246_vm0, %v2258_v1  ;;  %3414 = vmatmul.msk.f32.gmra.mxu0 %vm246_vm0, %v2565_v49  ;;  %v1953_v60 = vld [vmem:[%s3514_s27 + $0x84] sm:$0xff] }
 0x1cb   : > { %v966_v35 = vpop.f32.mrf.mxu2 }
 0x1cc   : > { %v1014_v30 = vadd.f32 %v966_v35, %v696_v24  ;;  %v1273_v5 = vpop.f32.mrf.mxu3  ;;  %v2261_v24 = vld [vmem:[%s3514_s27 + $0x8d] sm:$0xff] }
 0x1cd   : > { %v698_v51 = vpop.f32.mrf.mxu1 }
 0x1ce   : > { %v1321_v12 = vadd.f32 %v1273_v5, %v1014_v30  ;;  %v1583_v16 = vpop.f32.mrf.mxu0  ;;  %v699_v31 = vadd.f32 %v698_v51, %v3724_v38 }
 0x1d0   : > { %v4099_v34 = vadd.f32 %v1580_v9, %v1321_v12  ;;  %3304 = vmatmul.msk.f32.gmra.mxu1 %vm246_vm0, %v1950_v39  ;;  %3341 = vmatmul.msk.f32.gmra.mxu2 %vm246_vm0, %v1952_v11  ;;  %v2567_v39 = vld [vmem:[%s3514_s27 + $0x86] sm:$0xff] }
 0x1d1   : > { %3378 = vmatmul.msk.f32.gmra.mxu3 %vm246_vm0, %v2259_v10  ;;  %3415 = vmatmul.msk.f32.gmra.mxu0 %vm246_vm0, %v2566_v56  ;;  %v1954_v9 = vld [vmem:[%s3514_s27 + $0x8c] sm:$0xff] }
 0x1d3   : > { %v969_v22 = vpop.f32.mrf.mxu2 }
 0x1d4   : > { %v1015_v37 = vadd.f32 %v969_v22, %v699_v31  ;;  %v1276_v21 = vpop.f32.mrf.mxu3  ;;  %v2262_v31 = vld [vmem:[%s3514_s27 + $0x95] sm:$0xff] }
 0x1d5   : > { %v701_v58 = vpop.f32.mrf.mxu1 }
 0x1d6   : > { %v1322_v42 = vadd.f32 %v1276_v21, %v1015_v37  ;;  %v1586_v28 = vpop.f32.mrf.mxu0  ;;  %v702_v38 = vadd.f32 %v701_v58, %v3739_v45 }
 0x1d8   : > { %v4109_v23 = vadd.f32 %v1583_v16, %v1322_v42  ;;  %3305 = vmatmul.msk.f32.gmra.mxu1 %vm246_vm0, %v1951_v46  ;;  %3342 = vmatmul.msk.f32.gmra.mxu2 %vm246_vm0, %v1953_v60  ;;  %v2568_v46 = vld [vmem:[%s3514_s27 + $0x8e] sm:$0xff] }
 0x1d9   : > { %3379 = vmatmul.msk.f32.gmra.mxu3 %vm246_vm0, %v2260_v17  ;;  %3416 = vmatmul.msk.f32.gmra.mxu0 %vm246_vm0, %v2567_v39  ;;  %v1955_v16 = vld [vmem:[%s3514_s27 + $0x94] sm:$0xff] }
 0x1db   : > { %v972_v47 = vpop.f32.mrf.mxu2 }
 0x1dc   : > { %v1016_v44 = vadd.f32 %v972_v47, %v702_v38  ;;  %v1279_v50 = vpop.f32.mrf.mxu3  ;;  %v2263_v38 = vld [vmem:[%s3514_s27 + $0x9d] sm:$0xff] }
 0x1dd   : > { %v704_v1 = vpop.f32.mrf.mxu1 }
 0x1de   : > { %v1323_v49 = vadd.f32 %v1279_v50, %v1016_v44  ;;  %v1589_v35 = vpop.f32.mrf.mxu0  ;;  %v705_v45 = vadd.f32 %v704_v1, %v3754_v52 }
 0x1e0   : > { %v4119_v30 = vadd.f32 %v1586_v28, %v1323_v49  ;;  %3306 = vmatmul.msk.f32.gmra.mxu1 %vm246_vm0, %v1952_v11  ;;  %3343 = vmatmul.msk.f32.gmra.mxu2 %vm246_vm0, %v1954_v9  ;;  %v2569_v11 = vld [vmem:[%s3514_s27 + $0x96] sm:$0xff] }
 0x1e1   : > { %3380 = vmatmul.msk.f32.gmra.mxu3 %vm246_vm0, %v2261_v24  ;;  %3417 = vmatmul.msk.f32.gmra.mxu0 %vm246_vm0, %v2568_v46  ;;  %v1956_v28 = vld [vmem:[%s3514_s27 + $0x9c] sm:$0xff] }
 0x1e3   : > { %v975_v5 = vpop.f32.mrf.mxu2 }
 0x1e4   : > { %v1017_v51 = vadd.f32 %v975_v5, %v705_v45  ;;  %v1282_v12 = vpop.f32.mrf.mxu3  ;;  %v2264_v45 = vld [vmem:[%s3514_s27 + $0xa5] sm:$0xff] }
 0x1e5   : > { %v707_v10 = vpop.f32.mrf.mxu1 }
 0x1e6   : > { %v1324_v56 = vadd.f32 %v1282_v12, %v1017_v51  ;;  %v1592_v22 = vpop.f32.mrf.mxu0  ;;  %v708_v52 = vadd.f32 %v707_v10, %v3769_v59  ;;  %v2571_v51 = vld [vmem:[%s3514_s27 + $0xa6] sm:$0xff] }
 0x1e8   : > { %v4129_v37 = vadd.f32 %v1589_v35, %v1324_v56  ;;  %3307 = vmatmul.msk.f32.gmra.mxu1 %vm246_vm0, %v1953_v60  ;;  %3344 = vmatmul.msk.f32.gmra.mxu2 %vm246_vm0, %v1955_v16  ;;  %v2570_v60 = vld [vmem:[%s3514_s27 + $0x9e] sm:$0xff] }
 0x1e9   : > { %3381 = vmatmul.msk.f32.gmra.mxu3 %vm246_vm0, %v2262_v31  ;;  %3418 = vmatmul.msk.f32.gmra.mxu0 %vm246_vm0, %v2569_v11  ;;  %v1957_v35 = vld [vmem:[%s3514_s27 + $0xa4] sm:$0xff] }
 0x1eb   : > { %v978_v21 = vpop.f32.mrf.mxu2 }
 0x1ec   : > { %v1018_v58 = vadd.f32 %v978_v21, %v708_v52  ;;  %v1285_v42 = vpop.f32.mrf.mxu3  ;;  %v4160_v52 = vld [vmem:[%s4453_s2] ss:$0 sm:$0xff] }
 0x1ed   : > { %v710_v17 = vpop.f32.mrf.mxu1 }
 0x1ee   : > { %v1325_v39 = vadd.f32 %v1285_v42, %v1018_v58  ;;  %v1595_v47 = vpop.f32.mrf.mxu0  ;;  %v711_v59 = vadd.f32 %v710_v17, %v3784_v2  ;;  %v2572_v58 = vld [vmem:[%s3514_s27 + $0xae] sm:$0xff] }
 0x1f0   : > { %v4139_v44 = vadd.f32 %v1592_v22, %v1325_v39  ;;  %3308 = vmatmul.msk.f32.gmra.mxu1 %vm246_vm0, %v1954_v9  ;;  %3345 = vmatmul.msk.f32.gmra.mxu2 %vm246_vm0, %v1956_v28  ;;  %v1958_v22 = vld [vmem:[%s3514_s27 + $0xac] sm:$0xff] }
 0x1f1   : > { %3382 = vmatmul.msk.f32.gmra.mxu3 %vm246_vm0, %v2263_v38  ;;  %3419 = vmatmul.msk.f32.gmra.mxu0 %vm246_vm0, %v2570_v60 }
 0x1f3   : > { %v981_v50 = vpop.f32.mrf.mxu2 }
 0x1f4   : > { %v1019_v1 = vadd.f32 %v981_v50, %v711_v59  ;;  %v1288_v49 = vpop.f32.mrf.mxu3  ;;  %v1959_v59 = vld [vmem:[%s3514_s27 + $0xb4] sm:$0xff] }
 0x1f5   : > { %v1797_v24 = vpop.f32.mrf.mxu1 }
 0x1f6   : > { %v1326_v46 = vadd.f32 %v1288_v49, %v1019_v1  ;;  %v2718_v5 = vpop.f32.mrf.mxu0  ;;  %v1905_v2 = vadd.f32 %v1797_v24, %v3797_v36  ;;  %v2266_v49 = vld [vmem:[%s3514_s27 + $0xb5] sm:$0xff] }
 0x1f8   : > { %v4149_v9 = vadd.f32 %v1595_v47, %v1326_v46  ;;  %3309 = vmatmul.msk.f32.gmra.mxu1 %vm246_vm0, %v1955_v16  ;;  %3346 = vmatmul.msk.f32.gmra.mxu2 %vm246_vm0, %v1957_v35  ;;  %v2265_v16 = vld [vmem:[%s3514_s27 + $0xad] sm:$0xff] }
 0x1f9   : > { %3383 = vmatmul.msk.f32.gmra.mxu3 %vm246_vm0, %v2264_v45  ;;  %3420 = vmatmul.msk.f32.gmra.mxu0 %vm246_vm0, %v2571_v51 }
 0x1fb   : > { %v2104_v12 = vpop.f32.mrf.mxu2 }
 0x1fc   : > { %v2212_v10 = vadd.f32 %v2104_v12, %v1905_v2  ;;  %v2411_v56 = vpop.f32.mrf.mxu3 }
 0x1fd   : > { %v1800_v31 = vpop.f32.mrf.mxu1 }
 0x1fe   : > { %v2519_v11 = vadd.f32 %v2411_v56, %v2212_v10  ;;  %v2721_v21 = vpop.f32.mrf.mxu0  ;;  %v1906_v36 = vadd.f32 %v1800_v31, %v3807_v61  ;;  %v2573_v61 = vld [vmem:[%s3514_s27 + $0xb6] sm:$0xff] }
 0x1ff   : > { %v1960_v31 = vld [vmem:[%s3514_s27 + $0xbc] sm:$0xff] }
 0x200   : > { %v2826_v42 = vadd.f32 %v2718_v5, %v2519_v11  ;;  %3310 = vmatmul.msk.f32.gmra.mxu1 %vm246_vm0, %v1956_v28  ;;  %3347 = vmatmul.msk.f32.gmra.mxu2 %vm246_vm0, %v1958_v22 }
 0x201   : > { %3384 = vmatmul.msk.f32.gmra.mxu3 %vm246_vm0, %v2265_v16  ;;  %3421 = vmatmul.msk.f32.gmra.mxu0 %vm246_vm0, %v2572_v58  ;;  %v2267_v16 = vld [vmem:[%s3514_s27 + $0xbd] sm:$0xff] }
 0x202   : > { %v2866_v17 = vadd.f32 %v4160_v52, %v2826_v42  ;;  %v2574_v58 = vld [vmem:[%s3514_s27 + $0xbe] sm:$0xff] }
 0x203   : > { %v2107_v39 = vpop.f32.mrf.mxu2 }
 0x204   : > { %vm2902_vm1 = vcmp.gt.f32.partialorder %v2866_v17, 0.0  ;;  %v2938_v28 = vmul.f32 0.2, %v2866_v17  ;;  %v2213_v38 = vadd.f32 %v2107_v39, %v1906_v36  ;;  %v2414_v47 = vpop.f32.mrf.mxu3 }
 0x205   : > { %v1803_v60 = vpop.f32.mrf.mxu1 }
 0x206   : > { %v2974_v50 = vsel %vm2902_vm1, %v2866_v17, %v2938_v28  ;;  %v2520_v1 = vadd.f32 %v2414_v47, %v2213_v38  ;;  %v2724_v24 = vpop.f32.mrf.mxu0  ;;  %v1907_v45 = vadd.f32 %v1803_v60, %v3817_v20  ;;  %v1961_v60 = vld [vmem:[%s3514_s27 + $0xc4] sm:$0xff] }
 0x207   : > { %3010 = vst.msk [vmem:[%s4174_s13] sm:$0xff] %vm246_vm0, %v2974_v50 }
 0x208   : > { %v2827_v46 = vadd.f32 %v2721_v21, %v2520_v1  ;;  %3311 = vmatmul.msk.f32.gmra.mxu1 %vm246_vm0, %v1957_v35  ;;  %3348 = vmatmul.msk.f32.gmra.mxu2 %vm246_vm0, %v1959_v59  ;;  %v2268_v1 = vld [vmem:[%s3514_s27 + $0xc5] sm:$0xff] }
 0x209   : > { %3385 = vmatmul.msk.f32.gmra.mxu3 %vm246_vm0, %v2266_v49  ;;  %3422 = vmatmul.msk.f32.gmra.mxu0 %vm246_vm0, %v2573_v61 }
 0x20a   : > { %v2867_v5 = vadd.f32 %v4160_v52, %v2827_v46 }
 0x20b   : > { %v2110_v51 = vpop.f32.mrf.mxu2 }
 0x20c   : > { %vm2903_vm2 = vcmp.gt.f32.partialorder %v2867_v5, 0.0  ;;  %v2939_v2 = vmul.f32 0.2, %v2867_v5  ;;  %v2214_v12 = vadd.f32 %v2110_v51, %v1907_v45  ;;  %v2417_v10 = vpop.f32.mrf.mxu3 }
 0x20d   : > { %v1806_v56 = vpop.f32.mrf.mxu1 }
 0x20e   : > { %v2975_v35 = vsel %vm2903_vm2, %v2867_v5, %v2939_v2  ;;  %v2521_v11 = vadd.f32 %v2417_v10, %v2214_v12  ;;  %v2727_v21 = vpop.f32.mrf.mxu0  ;;  %v1908_v20 = vadd.f32 %v1806_v56, %v3827_v43  ;;  %v1962_v10 = vld [vmem:[%s3514_s27 + $0xcc] sm:$0xff] }
 0x20f   : > { %3011 = vst.msk [vmem:[%s4174_s13 + $0x8] sm:$0xff] %vm246_vm0, %v2975_v35  ;;  %v2269_v35 = vld [vmem:[%s3514_s27 + $0xcd] sm:$0xff] }
 0x210   : > { %v2828_v42 = vadd.f32 %v2724_v24, %v2521_v11  ;;  %3312 = vmatmul.msk.f32.gmra.mxu1 %vm246_vm0, %v1958_v22  ;;  %3349 = vmatmul.msk.f32.gmra.mxu2 %vm246_vm0, %v1960_v31  ;;  %v2575_v24 = vld [vmem:[%s3514_s27 + $0xc6] sm:$0xff] }
 0x211   : > { %3386 = vmatmul.msk.f32.gmra.mxu3 %vm246_vm0, %v2267_v16  ;;  %3423 = vmatmul.msk.f32.gmra.mxu0 %vm246_vm0, %v2574_v58  ;;  %v2576_v16 = vld [vmem:[%s3514_s27 + $0xce] sm:$0xff] }
 0x212   : > { %v2868_v36 = vadd.f32 %v4160_v52, %v2828_v42 }
 0x213   : > { %v2113_v17 = vpop.f32.mrf.mxu2 }
 0x214   : > { %vm2904_vm3 = vcmp.gt.f32.partialorder %v2868_v36, 0.0  ;;  %v2940_v39 = vmul.f32 0.2, %v2868_v36  ;;  %v2215_v28 = vadd.f32 %v2113_v17, %v1908_v20  ;;  %v2420_v38 = vpop.f32.mrf.mxu3 }
 0x215   : > { %v1809_v47 = vpop.f32.mrf.mxu1 }
 0x216   : > { %v2976_v22 = vsel %vm2904_vm3, %v2868_v36, %v2940_v39  ;;  %v2522_v50 = vadd.f32 %v2420_v38, %v2215_v28  ;;  %v2730_v49 = vpop.f32.mrf.mxu0  ;;  %v1909_v43 = vadd.f32 %v1809_v47, %v3837_v3  ;;  %v1963_v28 = vld [vmem:[%s3514_s27 + $0xd4] sm:$0xff] }
 0x217   : > { %3012 = vst.msk [vmem:[%s4174_s13 + $0x10] sm:$0xff] %vm246_vm0, %v2976_v22  ;;  %v2270_v47 = vld [vmem:[%s3514_s27 + $0xd5] sm:$0xff] }
 0x218   : > { %v2829_v61 = vadd.f32 %v2727_v21, %v2522_v50  ;;  %3313 = vmatmul.msk.f32.gmra.mxu1 %vm246_vm0, %v1959_v59  ;;  %3350 = vmatmul.msk.f32.gmra.mxu2 %vm246_vm0, %v1961_v60  ;;  %v2577_v50 = vld [vmem:[%s3514_s27 + $0xd6] sm:$0xff] }
 0x219   : > { %3387 = vmatmul.msk.f32.gmra.mxu3 %vm246_vm0, %v2268_v1  ;;  %3424 = vmatmul.msk.f32.gmra.mxu0 %vm246_vm0, %v2575_v24 }
 0x21a   : > { %v2869_v46 = vadd.f32 %v4160_v52, %v2829_v61 }
 0x21b   : > { %v2116_v45 = vpop.f32.mrf.mxu2 }
 0x21c   : > { %vm2905_vm4 = vcmp.gt.f32.partialorder %v2869_v46, 0.0  ;;  %v2941_v5 = vmul.f32 0.2, %v2869_v46  ;;  %v2216_v51 = vadd.f32 %v2116_v45, %v1909_v43  ;;  %v2423_v2 = vpop.f32.mrf.mxu3 }
 0x21d   : > { %v1812_v12 = vpop.f32.mrf.mxu1 }
 0x21e   : > { %v2977_v59 = vsel %vm2905_vm4, %v2869_v46, %v2941_v5  ;;  %v2523_v56 = vadd.f32 %v2423_v2, %v2216_v51  ;;  %v2733_v11 = vpop.f32.mrf.mxu0  ;;  %v1910_v3 = vadd.f32 %v1812_v12, %v3847_v26  ;;  %v1964_v5 = vld [vmem:[%s3514_s27 + $0xdc] sm:$0xff] }
 0x21f   : > { %3013 = vst.msk [vmem:[%s4174_s13 + $0x18] sm:$0xff] %vm246_vm0, %v2977_v59  ;;  %v2271_v2 = vld [vmem:[%s3514_s27 + $0xdd] sm:$0xff] }
 0x220   : > { %v2830_v21 = vadd.f32 %v2730_v49, %v2523_v56  ;;  %3314 = vmatmul.msk.f32.gmra.mxu1 %vm246_vm0, %v1960_v31  ;;  %3351 = vmatmul.msk.f32.gmra.mxu2 %vm246_vm0, %v1962_v10  ;;  %v2578_v59 = vld [vmem:[%s3514_s27 + $0xde] sm:$0xff] }
 0x221   : > { %3388 = vmatmul.msk.f32.gmra.mxu3 %vm246_vm0, %v2269_v35  ;;  %3425 = vmatmul.msk.f32.gmra.mxu0 %vm246_vm0, %v2576_v16 }
 0x222   : > { %v2870_v58 = vadd.f32 %v4160_v52, %v2830_v21 }
 0x223   : > { %v2119_v42 = vpop.f32.mrf.mxu2 }
 0x224   : > { %vm2906_vm5 = vcmp.gt.f32.partialorder %v2870_v58, 0.0  ;;  %v2942_v20 = vmul.f32 0.2, %v2870_v58  ;;  %v2217_v36 = vadd.f32 %v2119_v42, %v1910_v3  ;;  %v2426_v17 = vpop.f32.mrf.mxu3  ;;  %v1965_v42 = vld [vmem:[%s3514_s27 + $0xe4] sm:$0xff] }
 0x225   : > { %v1815_v39 = vpop.f32.mrf.mxu1 }
 0x226   : > { %v2978_v31 = vsel %vm2906_vm5, %v2870_v58, %v2942_v20  ;;  %v2524_v38 = vadd.f32 %v2426_v17, %v2217_v36  ;;  %v2736_v22 = vpop.f32.mrf.mxu0  ;;  %v1911_v26 = vadd.f32 %v1815_v39, %v3857_v48  ;;  %v2272_v36 = vld [vmem:[%s3514_s27 + $0xe5] sm:$0xff] }
 0x227   : > { %3014 = vst.msk [vmem:[%s4174_s13 + $0x20] sm:$0xff] %vm246_vm0, %v2978_v31  ;;  %v2579_v39 = vld [vmem:[%s3514_s27 + $0xe6] sm:$0xff] }
 0x228   : > { %v2831_v1 = vadd.f32 %v2733_v11, %v2524_v38  ;;  %3315 = vmatmul.msk.f32.gmra.mxu1 %vm246_vm0, %v1961_v60  ;;  %3352 = vmatmul.msk.f32.gmra.mxu2 %vm246_vm0, %v1963_v28 }
 0x229   : > { %3389 = vmatmul.msk.f32.gmra.mxu3 %vm246_vm0, %v2270_v47  ;;  %3426 = vmatmul.msk.f32.gmra.mxu0 %vm246_vm0, %v2577_v50 }
 0x22a   : > { %v2871_v49 = vadd.f32 %v4160_v52, %v2831_v1 }
 0x22b   : > { %v2122_v24 = vpop.f32.mrf.mxu2 }
 0x22c   : > { %vm2907_vm6 = vcmp.gt.f32.partialorder %v2871_v49, 0.0  ;;  %v2943_v61 = vmul.f32 0.2, %v2871_v49  ;;  %v2218_v43 = vadd.f32 %v2122_v24, %v1911_v26  ;;  %v2429_v46 = vpop.f32.mrf.mxu3 }
 0x22d   : > { %v1818_v45 = vpop.f32.mrf.mxu1 }
 0x22e   : > { %v2979_v60 = vsel %vm2907_vm6, %v2871_v49, %v2943_v61  ;;  %v2525_v51 = vadd.f32 %v2429_v46, %v2218_v43  ;;  %v2739_v12 = vpop.f32.mrf.mxu0  ;;  %v1912_v48 = vadd.f32 %v1818_v45, %v3867_v8  ;;  %v1966_v49 = vld [vmem:[%s3514_s27 + $0xec] sm:$0xff] }
 0x22f   : > { %3015 = vst.msk [vmem:[%s4174_s13 + $0x28] sm:$0xff] %vm246_vm0, %v2979_v60  ;;  %v2273_v61 = vld [vmem:[%s3514_s27 + $0xed] sm:$0xff] }
 0x230   : > { %v2832_v56 = vadd.f32 %v2736_v22, %v2525_v51  ;;  %3316 = vmatmul.msk.f32.gmra.mxu1 %vm246_vm0, %v1962_v10  ;;  %3353 = vmatmul.msk.f32.gmra.mxu2 %vm246_vm0, %v1964_v5  ;;  %v2580_v46 = vld [vmem:[%s3514_s27 + $0xee] sm:$0xff] }
 0x231   : > { %3390 = vmatmul.msk.f32.gmra.mxu3 %vm246_vm0, %v2271_v2  ;;  %3427 = vmatmul.msk.f32.gmra.mxu0 %vm246_vm0, %v2578_v59 }
 0x232   : > { %v2872_v35 = vadd.f32 %v4160_v52, %v2832_v56 }
 0x233   : > { %v2125_v11 = vpop.f32.mrf.mxu2 }
 0x234   : > { %vm2908_vm7 = vcmp.gt.f32.partialorder %v2872_v35, 0.0  ;;  %v2944_v16 = vmul.f32 0.2, %v2872_v35  ;;  %v2219_v21 = vadd.f32 %v2125_v11, %v1912_v48  ;;  %v2432_v3 = vpop.f32.mrf.mxu3  ;;  %v1967_v48 = vld [vmem:[%s3514_s27 + $0xf4] sm:$0xff] }
 0x235   : > { %v1821_v58 = vpop.f32.mrf.mxu1  ;;  %v2274_v11 = vld [vmem:[%s3514_s27 + $0xf5] sm:$0xff] }
 0x236   : > { %v2980_v10 = vsel %vm2908_vm7, %v2872_v35, %v2944_v16  ;;  %v2526_v20 = vadd.f32 %v2432_v3, %v2219_v21  ;;  %v2742_v17 = vpop.f32.mrf.mxu0  ;;  %v1913_v8 = vadd.f32 %v1821_v58, %v3877_v33  ;;  %v2581_v21 = vld [vmem:[%s3514_s27 + $0xf6] sm:$0xff] }
 0x237   : > { %3016 = vst.msk [vmem:[%s4174_s13 + $0x30] sm:$0xff] %vm246_vm0, %v2980_v10 }
 0x238   : > { %v2833_v31 = vadd.f32 %v2739_v12, %v2526_v20  ;;  %3317 = vmatmul.msk.f32.gmra.mxu1 %vm246_vm0, %v1963_v28  ;;  %3354 = vmatmul.msk.f32.gmra.mxu2 %vm246_vm0, %v1965_v42 }
 0x239   : > { %3391 = vmatmul.msk.f32.gmra.mxu3 %vm246_vm0, %v2272_v36  ;;  %3428 = vmatmul.msk.f32.gmra.mxu0 %vm246_vm0, %v2579_v39 }
 0x23a   : > { %v2873_v38 = vadd.f32 %v4160_v52, %v2833_v31  ;;  %v1968_v31 = vld [vmem:[%s3514_s27 + $0xfc] sm:$0xff] }
 0x23b   : > { %v2128_v47 = vpop.f32.mrf.mxu2 }
 0x23c   : > { %vm2909_vm8 = vcmp.gt.f32.partialorder %v2873_v38, 0.0  ;;  %v2945_v22 = vmul.f32 0.2, %v2873_v38  ;;  %v2220_v50 = vadd.f32 %v2128_v47, %v1913_v8  ;;  %v2435_v1 = vpop.f32.mrf.mxu3 }
 0x23d   : > { %v1824_v26 = vpop.f32.mrf.mxu1 }
 0x23e   : > { %v2981_v28 = vsel %vm2909_vm8, %v2873_v38, %v2945_v22  ;;  %v2527_v24 = vadd.f32 %v2435_v1, %v2220_v50  ;;  %v2745_v43 = vpop.f32.mrf.mxu0  ;;  %v1914_v33 = vadd.f32 %v1824_v26, %v3887_v55  ;;  %v2275_v38 = vld [vmem:[%s3514_s27 + $0xfd] sm:$0xff] }
 0x23f   : > { %3017 = vst.msk [vmem:[%s4174_s13 + $0x38] sm:$0xff] %vm246_vm0, %v2981_v28  ;;  %v2582_v22 = vld [vmem:[%s3514_s27 + $0xfe] sm:$0xff] }
 0x240   : > { %v2834_v45 = vadd.f32 %v2742_v17, %v2527_v24  ;;  %3318 = vmatmul.msk.f32.gmra.mxu1 %vm246_vm0, %v1964_v5  ;;  %3355 = vmatmul.msk.f32.gmra.mxu2 %vm246_vm0, %v1966_v49 }
 0x241   : > { %3392 = vmatmul.msk.f32.gmra.mxu3 %vm246_vm0, %v2273_v61  ;;  %3429 = vmatmul.msk.f32.gmra.mxu0 %vm246_vm0, %v2580_v46  ;;  %v1969_v46 = vld [vmem:[%s3514_s27 + $0x104] sm:$0xff] }
 0x242   : > { %v2874_v60 = vadd.f32 %v4160_v52, %v2834_v45 }
 0x243   : > { %v2131_v51 = vpop.f32.mrf.mxu2 }
 0x244   : > { %vm2910_vm9 = vcmp.gt.f32.partialorder %v2874_v60, 0.0  ;;  %v2946_v2 = vmul.f32 0.2, %v2874_v60  ;;  %v2221_v12 = vadd.f32 %v2131_v51, %v1914_v33  ;;  %v2438_v59 = vpop.f32.mrf.mxu3  ;;  %v2276_v33 = vld [vmem:[%s3514_s27 + $0x105] sm:$0xff] }
 0x245   : > { %v1827_v56 = vpop.f32.mrf.mxu1  ;;  %v2583_v51 = vld [vmem:[%s3514_s27 + $0x106] sm:$0xff] }
 0x246   : > { %v2982_v5 = vsel %vm2910_vm9, %v2874_v60, %v2946_v2  ;;  %v2528_v35 = vadd.f32 %v2438_v59, %v2221_v12  ;;  %v2748_v16 = vpop.f32.mrf.mxu0  ;;  %v1915_v55 = vadd.f32 %v1827_v56, %v3897_v15 }
 0x247   : > { %3018 = vst.msk [vmem:[%s4174_s13 + $0x40] sm:$0xff] %vm246_vm0, %v2982_v5 }
 0x248   : > { %v2835_v3 = vadd.f32 %v2745_v43, %v2528_v35  ;;  %3319 = vmatmul.msk.f32.gmra.mxu1 %vm246_vm0, %v1965_v42  ;;  %3356 = vmatmul.msk.f32.gmra.mxu2 %vm246_vm0, %v1967_v48 }
 0x249   : > { %3393 = vmatmul.msk.f32.gmra.mxu3 %vm246_vm0, %v2274_v11  ;;  %3430 = vmatmul.msk.f32.gmra.mxu0 %vm246_vm0, %v2581_v21 }
 0x24a   : > { %v2875_v58 = vadd.f32 %v4160_v52, %v2835_v3  ;;  %v2277_v3 = vld [vmem:[%s3514_s27 + $0x10d] sm:$0xff] }
 0x24b   : > { %v2134_v10 = vpop.f32.mrf.mxu2 }
 0x24c   : > { %vm2911_vm10 = vcmp.gt.f32.partialorder %v2875_v58, 0.0  ;;  %v2947_v20 = vmul.f32 0.2, %v2875_v58  ;;  %v2222_v36 = vadd.f32 %v2134_v10, %v1915_v55  ;;  %v2441_v17 = vpop.f32.mrf.mxu3 }
 0x24d   : > { %v1830_v39 = vpop.f32.mrf.mxu1 }
 0x24e   : > { %v2983_v42 = vsel %vm2911_vm10, %v2875_v58, %v2947_v20  ;;  %v2529_v8 = vadd.f32 %v2441_v17, %v2222_v36  ;;  %v2751_v47 = vpop.f32.mrf.mxu0  ;;  %v1916_v15 = vadd.f32 %v1830_v39, %v3907_v40  ;;  %v2584_v58 = vld [vmem:[%s3514_s27 + $0x10e] sm:$0xff] }
 0x24f   : > { %3019 = vst.msk [vmem:[%s4174_s13 + $0x48] sm:$0xff] %vm246_vm0, %v2983_v42 }
 0x250   : > { %v2836_v50 = vadd.f32 %v2748_v16, %v2529_v8  ;;  %3320 = vmatmul.msk.f32.gmra.mxu1 %vm246_vm0, %v1966_v49  ;;  %3357 = vmatmul.msk.f32.gmra.mxu2 %vm246_vm0, %v1968_v31  ;;  %v1970_v16 = vld [vmem:[%s3514_s27 + $0x10c] sm:$0xff] }
 0x251   : > { %3394 = vmatmul.msk.f32.gmra.mxu3 %vm246_vm0, %v2275_v38  ;;  %3431 = vmatmul.msk.f32.gmra.mxu0 %vm246_vm0, %v2582_v22  ;;  %v1971_v38 = vld [vmem:[%s3514_s27 + $0x114] sm:$0xff] }
 0x252   : > { %v2876_v1 = vadd.f32 %v4160_v52, %v2836_v50  ;;  %v2278_v22 = vld [vmem:[%s3514_s27 + $0x115] sm:$0xff] }
 0x253   : > { %v2137_v26 = vpop.f32.mrf.mxu2 }
 0x254   : > { %vm2912_vm11 = vcmp.gt.f32.partialorder %v2876_v1, 0.0  ;;  %v2948_v28 = vmul.f32 0.2, %v2876_v1  ;;  %v2223_v24 = vadd.f32 %v2137_v26, %v1916_v15  ;;  %v2444_v61 = vpop.f32.mrf.mxu3  ;;  %v2585_v15 = vld [vmem:[%s3514_s27 + $0x116] sm:$0xff] }
 0x255   : > { %v1833_v43 = vpop.f32.mrf.mxu1 }
 0x256   : > { %v2984_v49 = vsel %vm2912_vm11, %v2876_v1, %v2948_v28  ;;  %v2530_v45 = vadd.f32 %v2444_v61, %v2223_v24  ;;  %v2754_v60 = vpop.f32.mrf.mxu0  ;;  %v1917_v40 = vadd.f32 %v1833_v43, %v3917_v62 }
 0x257   : > { %3020 = vst.msk [vmem:[%s4174_s13 + $0x50] sm:$0xff] %vm246_vm0, %v2984_v49 }
 0x258   : > { %v2837_v2 = vadd.f32 %v2751_v47, %v2530_v45  ;;  %3321 = vmatmul.msk.f32.gmra.mxu1 %vm246_vm0, %v1967_v48  ;;  %3358 = vmatmul.msk.f32.gmra.mxu2 %vm246_vm0, %v1969_v46  ;;  %v1972_v45 = vld [vmem:[%s3514_s27 + $0x11c] sm:$0xff] }
 0x259   : > { %3395 = vmatmul.msk.f32.gmra.mxu3 %vm246_vm0, %v2276_v33  ;;  %3432 = vmatmul.msk.f32.gmra.mxu0 %vm246_vm0, %v2583_v51 }
 0x25a   : > { %v2877_v12 = vadd.f32 %v4160_v52, %v2837_v2  ;;  %v2586_v2 = vld [vmem:[%s3514_s27 + $0x11e] sm:$0xff] }
 0x25b   : > { %v2140_v59 = vpop.f32.mrf.mxu2 }
 0x25c   : > { %vm2913_vm12 = vcmp.gt.f32.partialorder %v2877_v12, 0.0  ;;  %v2949_v56 = vmul.f32 0.2, %v2877_v12  ;;  %v2224_v5 = vadd.f32 %v2140_v59, %v1917_v40  ;;  %v2447_v35 = vpop.f32.mrf.mxu3 }
 0x25d   : > { %v1836_v11 = vpop.f32.mrf.mxu1 }
 0x25e   : > { %v2985_v48 = vsel %vm2913_vm12, %v2877_v12, %v2949_v56  ;;  %v2531_v21 = vadd.f32 %v2447_v35, %v2224_v5  ;;  %v2757_v55 = vpop.f32.mrf.mxu0  ;;  %v1918_v62 = vadd.f32 %v1836_v11, %v3927_v6 }
 0x25f   : > { %3021 = vst.msk [vmem:[%s4174_s13 + $0x58] sm:$0xff] %vm246_vm0, %v2985_v48  ;;  %v1973_v48 = vld [vmem:[%s3514_s27 + $0x124] sm:$0xff] }
 0x260   : > { %v2838_v10 = vadd.f32 %v2754_v60, %v2531_v21  ;;  %3322 = vmatmul.msk.f32.gmra.mxu1 %vm246_vm0, %v1968_v31  ;;  %3359 = vmatmul.msk.f32.gmra.mxu2 %vm246_vm0, %v1970_v16  ;;  %v2279_v60 = vld [vmem:[%s3514_s27 + $0x11d] sm:$0xff] }
 0x261   : > { %3396 = vmatmul.msk.f32.gmra.mxu3 %vm246_vm0, %v2277_v3  ;;  %3433 = vmatmul.msk.f32.gmra.mxu0 %vm246_vm0, %v2584_v58  ;;  %v2280_v3 = vld [vmem:[%s3514_s27 + $0x125] sm:$0xff] }
 0x262   : > { %v2878_v20 = vadd.f32 %v4160_v52, %v2838_v10  ;;  %v2587_v58 = vld [vmem:[%s3514_s27 + $0x126] sm:$0xff] }
 0x263   : > { %v2143_v36 = vpop.f32.mrf.mxu2 }
 0x264   : > { %vm2914_vm13 = vcmp.gt.f32.partialorder %v2878_v20, 0.0  ;;  %v2950_v17 = vmul.f32 0.2, %v2878_v20  ;;  %v2225_v39 = vadd.f32 %v2143_v36, %v1918_v62  ;;  %v2450_v42 = vpop.f32.mrf.mxu3 }
 0x265   : > { %v1839_v8 = vpop.f32.mrf.mxu1 }
 0x266   : > { %v2986_v31 = vsel %vm2914_vm13, %v2878_v20, %v2950_v17  ;;  %v2532_v47 = vadd.f32 %v2450_v42, %v2225_v39  ;;  %v2760_v50 = vpop.f32.mrf.mxu0  ;;  %v1919_v6 = vadd.f32 %v1839_v8, %v3937_v29  ;;  %v1974_v8 = vld [vmem:[%s3514_s27 + $0x12c] sm:$0xff] }
 0x267   : > { %3022 = vst.msk [vmem:[%s4174_s13 + $0x60] sm:$0xff] %vm246_vm0, %v2986_v31 }
 0x268   : > { %v2839_v1 = vadd.f32 %v2757_v55, %v2532_v47  ;;  %3323 = vmatmul.msk.f32.gmra.mxu1 %vm246_vm0, %v1969_v46  ;;  %3360 = vmatmul.msk.f32.gmra.mxu2 %vm246_vm0, %v1971_v38  ;;  %v2281_v47 = vld [vmem:[%s3514_s27 + $0x12d] sm:$0xff] }
 0x269   : > { %3397 = vmatmul.msk.f32.gmra.mxu3 %vm246_vm0, %v2278_v22  ;;  %3434 = vmatmul.msk.f32.gmra.mxu0 %vm246_vm0, %v2585_v15 }
 0x26a   : > { %v2879_v26 = vadd.f32 %v4160_v52, %v2839_v1 }
 0x26b   : > { %v2146_v28 = vpop.f32.mrf.mxu2 }
 0x26c   : > { %vm2915_vm14 = vcmp.gt.f32.partialorder %v2879_v26, 0.0  ;;  %v2951_v24 = vmul.f32 0.2, %v2879_v26  ;;  %v2226_v61 = vadd.f32 %v2146_v28, %v1919_v6  ;;  %v2453_v43 = vpop.f32.mrf.mxu3 }
 0x26d   : > { %v1842_v49 = vpop.f32.mrf.mxu1 }
 0x26e   : > { %v2987_v46 = vsel %vm2915_vm14, %v2879_v26, %v2951_v24  ;;  %v2533_v33 = vadd.f32 %v2453_v43, %v2226_v61  ;;  %v2763_v51 = vpop.f32.mrf.mxu0  ;;  %v1920_v29 = vadd.f32 %v1842_v49, %v3947_v54  ;;  %v1975_v43 = vld [vmem:[%s3514_s27 + $0x134] sm:$0xff] }
 0x26f   : > { %3023 = vst.msk [vmem:[%s4174_s13 + $0x68] sm:$0xff] %vm246_vm0, %v2987_v46  ;;  %v2282_v46 = vld [vmem:[%s3514_s27 + $0x135] sm:$0xff] }
 0x270   : > { %v2840_v40 = vadd.f32 %v2760_v50, %v2533_v33  ;;  %3324 = vmatmul.msk.f32.gmra.mxu1 %vm246_vm0, %v1970_v16  ;;  %3361 = vmatmul.msk.f32.gmra.mxu2 %vm246_vm0, %v1972_v45  ;;  %v2588_v50 = vld [vmem:[%s3514_s27 + $0x12e] sm:$0xff] }
 0x271   : > { %3398 = vmatmul.msk.f32.gmra.mxu3 %vm246_vm0, %v2279_v60  ;;  %3435 = vmatmul.msk.f32.gmra.mxu0 %vm246_vm0, %v2586_v2  ;;  %v2589_v60 = vld [vmem:[%s3514_s27 + $0x136] sm:$0xff] }
 0x272   : > { %v2880_v12 = vadd.f32 %v4160_v52, %v2840_v40 }
 0x273   : > { %v2149_v59 = vpop.f32.mrf.mxu2 }
 0x274   : > { %vm2916_vm15 = vcmp.gt.f32.partialorder %v2880_v12, 0.0  ;;  %v2952_v56 = vmul.f32 0.2, %v2880_v12  ;;  %v2227_v5 = vadd.f32 %v2149_v59, %v1920_v29  ;;  %v2456_v35 = vpop.f32.mrf.mxu3 }
 0x275   : > { %v1845_v11 = vpop.f32.mrf.mxu1 }
 0x276   : > { %v2988_v16 = vsel %vm2916_vm15, %v2880_v12, %v2952_v56  ;;  %v2534_v21 = vadd.f32 %v2456_v35, %v2227_v5  ;;  %v2766_v55 = vpop.f32.mrf.mxu0  ;;  %v1921_v54 = vadd.f32 %v1845_v11, %v3957_v13  ;;  %v1976_v5 = vld [vmem:[%s3514_s27 + $0x13c] sm:$0xff] }
 0x277   : > { %3024 = vst.msk [vmem:[%s4174_s13 + $0x70] sm:$0xff] %vm246_vm0, %v2988_v16 }
 0x278   : > { %v2841_v10 = vadd.f32 %v2763_v51, %v2534_v21  ;;  %3325 = vmatmul.msk.f32.gmra.mxu1 %vm246_vm0, %v1971_v38  ;;  %3362 = vmatmul.msk.f32.gmra.mxu2 %vm246_vm0, %v1973_v48  ;;  %v2590_v21 = vld [vmem:[%s3514_s27 + $0x13e] sm:$0xff] }
 0x279   : > { %3399 = vmatmul.msk.f32.gmra.mxu3 %vm246_vm0, %v2280_v3  ;;  %3436 = vmatmul.msk.f32.gmra.mxu0 %vm246_vm0, %v2587_v58 }
 0x27a   : > { %v2881_v62 = vadd.f32 %v4160_v52, %v2841_v10 }
 0x27b   : > { %v2152_v20 = vpop.f32.mrf.mxu2 }
 0x27c   : > { %vm2917_vm1 = vcmp.gt.f32.partialorder %v2881_v62, 0.0  ;;  %v2953_v36 = vmul.f32 0.2, %v2881_v62  ;;  %v2228_v17 = vadd.f32 %v2152_v20, %v1921_v54  ;;  %v2459_v39 = vpop.f32.mrf.mxu3 }
 0x27d   : > { %v1848_v42 = vpop.f32.mrf.mxu1 }
 0x27e   : > { %v2989_v38 = vsel %vm2917_vm1, %v2881_v62, %v2953_v36  ;;  %v2535_v31 = vadd.f32 %v2459_v39, %v2228_v17  ;;  %v2769_v22 = vpop.f32.mrf.mxu0  ;;  %v1922_v13 = vadd.f32 %v1848_v42, %v3967_v7 }
 0x27f   : > { %3025 = vst.msk [vmem:[%s4174_s13 + $0x78] sm:$0xff] %vm246_vm0, %v2989_v38 }
 0x280   : > { %v2842_v15 = vadd.f32 %v2766_v55, %v2535_v31  ;;  %3326 = vmatmul.msk.f32.gmra.mxu1 %vm246_vm0, %v1972_v45  ;;  %3363 = vmatmul.msk.f32.gmra.mxu2 %vm246_vm0, %v1974_v8 }
 0x281   : > { %3400 = vmatmul.msk.f32.gmra.mxu3 %vm246_vm0, %v2281_v47  ;;  %3437 = vmatmul.msk.f32.gmra.mxu0 %vm246_vm0, %v2588_v50 }
 0x282   : > { %v2882_v1 = vadd.f32 %v4160_v52, %v2842_v15 }
 0x283   : > { %v2155_v6 = vpop.f32.mrf.mxu2 }
 0x284   : > { %vm2918_vm2 = vcmp.gt.f32.partialorder %v2882_v1, 0.0  ;;  %v2954_v26 = vmul.f32 0.2, %v2882_v1  ;;  %v2229_v28 = vadd.f32 %v2155_v6, %v1922_v13  ;;  %v2462_v24 = vpop.f32.mrf.mxu3 }
 0x285   : > { %v1851_v61 = vpop.f32.mrf.mxu1 }
 0x286   : > { %v2990_v49 = vsel %vm2918_vm2, %v2882_v1, %v2954_v26  ;;  %v2536_v45 = vadd.f32 %v2462_v24, %v2229_v28  ;;  %v2772_v33 = vpop.f32.mrf.mxu0  ;;  %v1923_v7 = vadd.f32 %v1851_v61, %v3977_v25 }
 0x287   : > { %3026 = vst.msk [vmem:[%s4174_s13 + $0x80] sm:$0xff] %vm246_vm0, %v2990_v49 }
 0x288   : > { %v2843_v51 = vadd.f32 %v2769_v22, %v2536_v45  ;;  %3327 = vmatmul.msk.f32.gmra.mxu1 %vm246_vm0, %v1973_v48  ;;  %3364 = vmatmul.msk.f32.gmra.mxu2 %vm246_vm0, %v1975_v43  ;;  %v2283_v48 = vld [vmem:[%s3514_s27 + $0x13d] sm:$0xff] }
 0x289   : > { %3401 = vmatmul.msk.f32.gmra.mxu3 %vm246_vm0, %v2282_v46  ;;  %3438 = vmatmul.msk.f32.gmra.mxu0 %vm246_vm0, %v2589_v60 }
 0x28a   : > { %v2883_v2 = vadd.f32 %v4160_v52, %v2843_v51 }
 0x28b   : > { %v2158_v40 = vpop.f32.mrf.mxu2 }
 0x28c   : > { %vm2919_vm3 = vcmp.gt.f32.partialorder %v2883_v2, 0.0  ;;  %v2955_v29 = vmul.f32 0.2, %v2883_v2  ;;  %v2230_v12 = vadd.f32 %v2158_v40, %v1923_v7  ;;  %v2465_v59 = vpop.f32.mrf.mxu3 }
 0x28d   : > { %v1854_v56 = vpop.f32.mrf.mxu1 }
 0x28e   : > { %v2991_v35 = vsel %vm2919_vm3, %v2883_v2, %v2955_v29  ;;  %v2537_v11 = vadd.f32 %v2465_v59, %v2230_v12  ;;  %v2775_v16 = vpop.f32.mrf.mxu0  ;;  %v1924_v25 = vadd.f32 %v1854_v56, %v3988_v32 }
 0x28f   : > { %3027 = vst.msk [vmem:[%s4174_s13 + $0x88] sm:$0xff] %vm246_vm0, %v2991_v35 }
 0x290   : > { %v2844_v3 = vadd.f32 %v2772_v33, %v2537_v11  ;;  %3328 = vmatmul.msk.f32.gmra.mxu1 %vm246_vm0, %v1974_v8  ;;  %3365 = vmatmul.msk.f32.gmra.mxu2 %vm246_vm0, %v1976_v5 }
 0x291   : > { %3402 = vmatmul.msk.f32.gmra.mxu3 %vm246_vm0, %v2283_v48  ;;  %3439 = vmatmul.msk.f32.gmra.mxu0 %vm246_vm0, %v2590_v21 }
 0x292   : > { %v2884_v55 = vadd.f32 %v4160_v52, %v2844_v3 }
 0x293   : > { %v2161_v58 = vpop.f32.mrf.mxu2 }
 0x294   : > { %vm2920_vm4 = vcmp.gt.f32.partialorder %v2884_v55, 0.0  ;;  %v2956_v10 = vmul.f32 0.2, %v2884_v55  ;;  %v2231_v54 = vadd.f32 %v2161_v58, %v1924_v25  ;;  %v2468_v62 = vpop.f32.mrf.mxu3 }
 0x295   : > { %v1857_v20 = vpop.f32.mrf.mxu1 }
 0x296   : > { %v2992_v36 = vsel %vm2920_vm4, %v2884_v55, %v2956_v10  ;;  %v2538_v17 = vadd.f32 %v2468_v62, %v2231_v54  ;;  %v2778_v39 = vpop.f32.mrf.mxu0  ;;  %v1925_v8 = vadd.f32 %v1857_v20, %v3999_v57 }
 0x297   : > { %3028 = vst.msk [vmem:[%s4174_s13 + $0x90] sm:$0xff] %vm246_vm0, %v2992_v36 }
 0x298   : > { %v2845_v42 = vadd.f32 %v2775_v16, %v2538_v17 }
 0x29a   : > { %v2885_v38 = vadd.f32 %v4160_v52, %v2845_v42 }
 0x29b   : > { %v2164_v32 = vpop.f32.mrf.mxu2 }
 0x29c   : > { %vm2921_vm5 = vcmp.gt.f32.partialorder %v2885_v38, 0.0  ;;  %v2957_v31 = vmul.f32 0.2, %v2885_v38  ;;  %v2232_v47 = vadd.f32 %v2164_v32, %v1925_v8  ;;  %v2471_v22 = vpop.f32.mrf.mxu3 }
 0x29d   : > { %v1860_v50 = vpop.f32.mrf.mxu1 }
 0x29e   : > { %v2993_v15 = vsel %vm2921_vm5, %v2885_v38, %v2957_v31  ;;  %v2539_v13 = vadd.f32 %v2471_v22, %v2232_v47  ;;  %v2781_v1 = vpop.f32.mrf.mxu0  ;;  %v1926_v26 = vadd.f32 %v1860_v50, %v4009_v19 }
 0x29f   : > { %3029 = vst.msk [vmem:[%s4174_s13 + $0x98] sm:$0xff] %vm246_vm0, %v2993_v15 }
 0x2a0   : > { %v2846_v6 = vadd.f32 %v2778_v39, %v2539_v13 }
 0x2a2   : > { %v2886_v28 = vadd.f32 %v4160_v52, %v2846_v6 }
 0x2a3   : > { %v2167_v57 = vpop.f32.mrf.mxu2 }
 0x2a4   : > { %vm2922_vm6 = vcmp.gt.f32.partialorder %v2886_v28, 0.0  ;;  %v2958_v24 = vmul.f32 0.2, %v2886_v28  ;;  %v2233_v61 = vadd.f32 %v2167_v57, %v1926_v26  ;;  %v2474_v43 = vpop.f32.mrf.mxu3 }
 0x2a5   : > { %v1863_v49 = vpop.f32.mrf.mxu1 }
 0x2a6   : > { %v2994_v45 = vsel %vm2922_vm6, %v2886_v28, %v2958_v24  ;;  %v2540_v46 = vadd.f32 %v2474_v43, %v2233_v61  ;;  %v2784_v33 = vpop.f32.mrf.mxu0  ;;  %v1927_v51 = vadd.f32 %v1863_v49, %v4019_v41 }
 0x2a7   : > { %3030 = vst.msk [vmem:[%s4174_s13 + $0xa0] sm:$0xff] %vm246_vm0, %v2994_v45 }
 0x2a8   : > { %v2847_v60 = vadd.f32 %v2781_v1, %v2540_v46 }
 0x2aa   : > { %v2887_v7 = vadd.f32 %v4160_v52, %v2847_v60 }
 0x2ab   : > { %v2170_v19 = vpop.f32.mrf.mxu2 }
 0x2ac   : > { %vm2923_vm7 = vcmp.gt.f32.partialorder %v2887_v7, 0.0  ;;  %v2959_v2 = vmul.f32 0.2, %v2887_v7  ;;  %v2234_v40 = vadd.f32 %v2170_v19, %v1927_v51  ;;  %v2477_v29 = vpop.f32.mrf.mxu3 }
 0x2ad   : > { %v1866_v12 = vpop.f32.mrf.mxu1 }
 0x2ae   : > { %v2995_v59 = vsel %vm2923_vm7, %v2887_v7, %v2959_v2  ;;  %v2541_v56 = vadd.f32 %v2477_v29, %v2234_v40  ;;  %v2787_v5 = vpop.f32.mrf.mxu0  ;;  %v1928_v11 = vadd.f32 %v1866_v12, %v4029_v0 }
 0x2af   : > { %3031 = vst.msk [vmem:[%s4174_s13 + $0xa8] sm:$0xff] %vm246_vm0, %v2995_v59 }
 0x2b0   : > { %v2848_v35 = vadd.f32 %v2784_v33, %v2541_v56 }
 0x2b2   : > { %v2888_v48 = vadd.f32 %v4160_v52, %v2848_v35 }
 0x2b3   : > { %v2173_v41 = vpop.f32.mrf.mxu2 }
 0x2b4   : > { %vm2924_vm8 = vcmp.gt.f32.partialorder %v2888_v48, 0.0  ;;  %v2960_v16 = vmul.f32 0.2, %v2888_v48  ;;  %v2235_v21 = vadd.f32 %v2173_v41, %v1928_v11  ;;  %v2480_v3 = vpop.f32.mrf.mxu3 }
 0x2b5   : > { %v1869_v25 = vpop.f32.mrf.mxu1 }
 0x2b6   : > { %v2996_v55 = vsel %vm2924_vm8, %v2888_v48, %v2960_v16  ;;  %v2542_v58 = vadd.f32 %v2480_v3, %v2235_v21  ;;  %v2790_v10 = vpop.f32.mrf.mxu0  ;;  %v1929_v62 = vadd.f32 %v1869_v25, %v4039_v53 }
 0x2b7   : > { %3032 = vst.msk [vmem:[%s4174_s13 + $0xb0] sm:$0xff] %vm246_vm0, %v2996_v55 }
 0x2b8   : > { %v2849_v54 = vadd.f32 %v2787_v5, %v2542_v58 }
 0x2ba   : > { %v2889_v20 = vadd.f32 %v4160_v52, %v2849_v54 }
 0x2bb   : > { %v2176_v0 = vpop.f32.mrf.mxu2 }
 0x2bc   : > { %vm2925_vm9 = vcmp.gt.f32.partialorder %v2889_v20, 0.0  ;;  %v2961_v36 = vmul.f32 0.2, %v2889_v20  ;;  %v2236_v17 = vadd.f32 %v2176_v0, %v1929_v62  ;;  %v2483_v39 = vpop.f32.mrf.mxu3 }
 0x2bd   : > { %v1872_v42 = vpop.f32.mrf.mxu1 }
 0x2be   : > { %v2997_v8 = vsel %vm2925_vm9, %v2889_v20, %v2961_v36  ;;  %v2543_v38 = vadd.f32 %v2483_v39, %v2236_v17  ;;  %v2793_v32 = vpop.f32.mrf.mxu0  ;;  %v1930_v47 = vadd.f32 %v1872_v42, %v4049_v63 }
 0x2bf   : > { %3033 = vst.msk [vmem:[%s4174_s13 + $0xb8] sm:$0xff] %vm246_vm0, %v2997_v8 }
 0x2c0   : > { %v2850_v31 = vadd.f32 %v2790_v10, %v2543_v38 }
 0x2c2   : > { %v2890_v22 = vadd.f32 %v4160_v52, %v2850_v31 }
 0x2c3   : > { %v2179_v53 = vpop.f32.mrf.mxu2 }
 0x2c4   : > { %vm2926_vm10 = vcmp.gt.f32.partialorder %v2890_v22, 0.0  ;;  %v2962_v50 = vmul.f32 0.2, %v2890_v22  ;;  %v2237_v15 = vadd.f32 %v2179_v53, %v1930_v47  ;;  %v2486_v13 = vpop.f32.mrf.mxu3 }
 0x2c5   : > { %v1875_v1 = vpop.f32.mrf.mxu1 }
 0x2c6   : > { %v2998_v6 = vsel %vm2926_vm10, %v2890_v22, %v2962_v50  ;;  %v2544_v26 = vadd.f32 %v2486_v13, %v2237_v15  ;;  %v2796_v28 = vpop.f32.mrf.mxu0  ;;  %v1931_v24 = vadd.f32 %v1875_v1, %v4059_v4 }
 0x2c7   : > { %3034 = vst.msk [vmem:[%s4174_s13 + $0xc0] sm:$0xff] %vm246_vm0, %v2998_v6 }
 0x2c8   : > { %v2851_v57 = vadd.f32 %v2793_v32, %v2544_v26 }
 0x2ca   : > { %v2891_v61 = vadd.f32 %v4160_v52, %v2851_v57 }
 0x2cb   : > { %v2182_v63 = vpop.f32.mrf.mxu2 }
 0x2cc   : > { %vm2927_vm11 = vcmp.gt.f32.partialorder %v2891_v61, 0.0  ;;  %v2963_v43 = vmul.f32 0.2, %v2891_v61  ;;  %v2238_v49 = vadd.f32 %v2182_v63, %v1931_v24  ;;  %v2489_v45 = vpop.f32.mrf.mxu3 }
 0x2cd   : > { %v1878_v46 = vpop.f32.mrf.mxu1 }
 0x2ce   : > { %v2999_v33 = vsel %vm2927_vm11, %v2891_v61, %v2963_v43  ;;  %v2545_v60 = vadd.f32 %v2489_v45, %v2238_v49  ;;  %v2799_v51 = vpop.f32.mrf.mxu0  ;;  %v1932_v19 = vadd.f32 %v1878_v46, %v4069_v27 }
 0x2cf   : > { %3035 = vst.msk [vmem:[%s4174_s13 + $0xc8] sm:$0xff] %vm246_vm0, %v2999_v33 }
 0x2d0   : > { %v2852_v7 = vadd.f32 %v2796_v28, %v2545_v60 }
 0x2d2   : > { %v2892_v2 = vadd.f32 %v4160_v52, %v2852_v7 }
 0x2d3   : > { %v2185_v4 = vpop.f32.mrf.mxu2 }
 0x2d4   : > { %vm2928_vm12 = vcmp.gt.f32.partialorder %v2892_v2, 0.0  ;;  %v2964_v40 = vmul.f32 0.2, %v2892_v2  ;;  %v2239_v29 = vadd.f32 %v2185_v4, %v1932_v19  ;;  %v2492_v12 = vpop.f32.mrf.mxu3 }
 0x2d5   : > { %v1881_v59 = vpop.f32.mrf.mxu1 }
 0x2d6   : > { %v3000_v56 = vsel %vm2928_vm12, %v2892_v2, %v2964_v40  ;;  %v2546_v5 = vadd.f32 %v2492_v12, %v2239_v29  ;;  %v2802_v35 = vpop.f32.mrf.mxu0  ;;  %v1933_v48 = vadd.f32 %v1881_v59, %v4079_v18 }
 0x2d7   : > { %3036 = vst.msk [vmem:[%s4174_s13 + $0xd0] sm:$0xff] %vm246_vm0, %v3000_v56 }
 0x2d8   : > { %v2853_v11 = vadd.f32 %v2799_v51, %v2546_v5 }
 0x2da   : > { %v2893_v41 = vadd.f32 %v4160_v52, %v2853_v11 }
 0x2db   : > { %v2188_v27 = vpop.f32.mrf.mxu2 }
 0x2dc   : > { %vm2929_vm13 = vcmp.gt.f32.partialorder %v2893_v41, 0.0  ;;  %v2965_v16 = vmul.f32 0.2, %v2893_v41  ;;  %v2240_v21 = vadd.f32 %v2188_v27, %v1933_v48  ;;  %v2495_v3 = vpop.f32.mrf.mxu3 }
 0x2dd   : > { %v1884_v25 = vpop.f32.mrf.mxu1 }
 0x2de   : > { %v3001_v55 = vsel %vm2929_vm13, %v2893_v41, %v2965_v16  ;;  %v2547_v58 = vadd.f32 %v2495_v3, %v2240_v21  ;;  %v2805_v10 = vpop.f32.mrf.mxu0  ;;  %v1934_v62 = vadd.f32 %v1884_v25, %v4089_v14  ;;  %v4420_v14 = vld [vmem:[%s4453_s2] ss:$0 sm:$0xff] }
 0x2df   : > { %3037 = vst.msk [vmem:[%s4174_s13 + $0xd8] sm:$0xff] %vm246_vm0, %v3001_v55 }
 0x2e0   : > { %v2854_v54 = vadd.f32 %v2802_v35, %v2547_v58 }
 0x2e2   : > { %v2894_v20 = vadd.f32 %v4160_v52, %v2854_v54 }
 0x2e3   : > { %v2191_v18 = vpop.f32.mrf.mxu2 }
 0x2e4   : > { %vm2930_vm14 = vcmp.gt.f32.partialorder %v2894_v20, 0.0  ;;  %v2966_v0 = vmul.f32 0.2, %v2894_v20  ;;  %v2241_v36 = vadd.f32 %v2191_v18, %v1934_v62  ;;  %v2498_v17 = vpop.f32.mrf.mxu3 }
 0x2e5   : > { %v1887_v39 = vpop.f32.mrf.mxu1 }
 0x2e6   : > { %v3002_v42 = vsel %vm2930_vm14, %v2894_v20, %v2966_v0  ;;  %v2548_v8 = vadd.f32 %v2498_v17, %v2241_v36  ;;  %v2808_v38 = vpop.f32.mrf.mxu0  ;;  %v1935_v31 = vadd.f32 %v1887_v39, %v4099_v34 }
 0x2e7   : > { %3038 = vst.msk [vmem:[%s4174_s13 + $0xe0] sm:$0xff] %vm246_vm0, %v3002_v42 }
 0x2e8   : > { %v2855_v32 = vadd.f32 %v2805_v10, %v2548_v8 }
 0x2ea   : > { %v2895_v52 = vadd.f32 %v4420_v14, %v2855_v32 }
 0x2eb   : > { %v2194_v47 = vpop.f32.mrf.mxu2 }
 0x2ec   : > { %vm2931_vm15 = vcmp.gt.f32.partialorder %v2895_v52, 0.0  ;;  %v2967_v22 = vmul.f32 0.2, %v2895_v52  ;;  %v2242_v53 = vadd.f32 %v2194_v47, %v1935_v31  ;;  %v2501_v50 = vpop.f32.mrf.mxu3 }
 0x2ed   : > { %v1890_v15 = vpop.f32.mrf.mxu1 }
 0x2ee   : > { %v3003_v13 = vsel %vm2931_vm15, %v2895_v52, %v2967_v22  ;;  %v2549_v1 = vadd.f32 %v2501_v50, %v2242_v53  ;;  %v2811_v6 = vpop.f32.mrf.mxu0  ;;  %v1936_v26 = vadd.f32 %v1890_v15, %v4109_v23 }
 0x2ef   : > { %3039 = vst.msk [vmem:[%s4174_s13 + $0xe8] sm:$0xff] %vm246_vm0, %v3003_v13 }
 0x2f0   : > { %v2856_v34 = vadd.f32 %v2808_v38, %v2549_v1 }
 0x2f2   : > { %v2896_v28 = vadd.f32 %v4420_v14, %v2856_v34 }
 0x2f3   : > { %v2197_v57 = vpop.f32.mrf.mxu2 }
 0x2f4   : > { %vm2932_vm1 = vcmp.gt.f32.partialorder %v2896_v28, 0.0  ;;  %v2968_v24 = vmul.f32 0.2, %v2896_v28  ;;  %v2243_v61 = vadd.f32 %v2197_v57, %v1936_v26  ;;  %v2504_v63 = vpop.f32.mrf.mxu3 }
 0x2f5   : > { %v1893_v43 = vpop.f32.mrf.mxu1 }
 0x2f6   : > { %v3004_v49 = vsel %vm2932_vm1, %v2896_v28, %v2968_v24  ;;  %v2550_v45 = vadd.f32 %v2504_v63, %v2243_v61  ;;  %v2814_v46 = vpop.f32.mrf.mxu0  ;;  %v1937_v60 = vadd.f32 %v1893_v43, %v4119_v30 }
 0x2f7   : > { %3040 = vst.msk [vmem:[%s4174_s13 + $0xf0] sm:$0xff] %vm246_vm0, %v3004_v49 }
 0x2f8   : > { %v2857_v33 = vadd.f32 %v2811_v6, %v2550_v45 }
 0x2fa   : > { %v2897_v51 = vadd.f32 %v4420_v14, %v2857_v33 }
 0x2fb   : > { %v2200_v23 = vpop.f32.mrf.mxu2 }
 0x2fc   : > { %vm2933_vm2 = vcmp.gt.f32.partialorder %v2897_v51, 0.0  ;;  %v2969_v7 = vmul.f32 0.2, %v2897_v51  ;;  %v2244_v19 = vadd.f32 %v2200_v23, %v1937_v60  ;;  %v2507_v2 = vpop.f32.mrf.mxu3 }
 0x2fd   : > { %v1896_v4 = vpop.f32.mrf.mxu1 }
 0x2fe   : > { %v3005_v40 = vsel %vm2933_vm2, %v2897_v51, %v2969_v7  ;;  %v2551_v29 = vadd.f32 %v2507_v2, %v2244_v19  ;;  %v2817_v59 = vpop.f32.mrf.mxu0  ;;  %v1938_v56 = vadd.f32 %v1896_v4, %v4129_v37 }
 0x2ff   : > { %3041 = vst.msk [vmem:[%s4174_s13 + $0xf8] sm:$0xff] %vm246_vm0, %v3005_v40 }
 0x300   : > { %v2858_v12 = vadd.f32 %v2814_v46, %v2551_v29 }
 0x302   : > { %v2898_v5 = vadd.f32 %v4420_v14, %v2858_v12 }
 0x303   : > { %v2203_v30 = vpop.f32.mrf.mxu2 }
 0x304   : > { %vm2934_vm3 = vcmp.gt.f32.partialorder %v2898_v5, 0.0  ;;  %v2970_v35 = vmul.f32 0.2, %v2898_v5  ;;  %v2245_v11 = vadd.f32 %v2203_v30, %v1938_v56  ;;  %v2510_v48 = vpop.f32.mrf.mxu3 }
 0x305   : > { %v1899_v41 = vpop.f32.mrf.mxu1 }
 0x306   : > { %v3006_v27 = vsel %vm2934_vm3, %v2898_v5, %v2970_v35  ;;  %v2552_v16 = vadd.f32 %v2510_v48, %v2245_v11  ;;  %v1939_v3 = vadd.f32 %v1899_v41, %v4139_v44  ;;  %v2820_v37 = vpop.f32.mrf.mxu0 }
 0x307   : > { %3042 = vst.msk [vmem:[%s4174_s13 + $0x100] sm:$0xff] %vm246_vm0, %v3006_v27 }
 0x308   : > { %v2859_v21 = vadd.f32 %v2817_v59, %v2552_v16 }
 0x30a   : > { %v2899_v25 = vadd.f32 %v4420_v14, %v2859_v21 }
 0x30b   : > { %v2206_v55 = vpop.f32.mrf.mxu2 }
 0x30c   : > { %vm2935_vm4 = vcmp.gt.f32.partialorder %v2899_v25, 0.0  ;;  %v2971_v58 = vmul.f32 0.2, %v2899_v25  ;;  %v2246_v10 = vadd.f32 %v2206_v55, %v1939_v3  ;;  %v2513_v54 = vpop.f32.mrf.mxu3 }
 0x30d   : > { %v1902_v18 = vpop.f32.mrf.mxu1 }
 0x30e   : > { %v3007_v62 = vsel %vm2935_vm4, %v2899_v25, %v2971_v58  ;;  %v2553_v20 = vadd.f32 %v2513_v54, %v2246_v10  ;;  %v1940_v36 = vadd.f32 %v1902_v18, %v4149_v9  ;;  %v2823_v38 = vpop.f32.mrf.mxu0 }
 0x30f   : > { %3043 = vst.msk [vmem:[%s4174_s13 + $0x108] sm:$0xff] %vm246_vm0, %v3007_v62 }
 0x310   : > { %v2860_v0 = vadd.f32 %v2820_v37, %v2553_v20 }
 0x312   : > { %v2900_v44 = vadd.f32 %v4420_v14, %v2860_v0 }
 0x313   : > { %v2209_v17 = vpop.f32.mrf.mxu2 }
 0x314   : > { %vm2936_vm5 = vcmp.gt.f32.partialorder %v2900_v44, 0.0  ;;  %v2972_v39 = vmul.f32 0.2, %v2900_v44  ;;  %v2247_v42 = vadd.f32 %v2209_v17, %v1940_v36  ;;  %v2516_v8 = vpop.f32.mrf.mxu3 }
 0x316   : > { %v3008_v32 = vsel %vm2936_vm5, %v2900_v44, %v2972_v39  ;;  %v2554_v31 = vadd.f32 %v2516_v8, %v2247_v42 }
 0x317   : > { %3044 = vst.msk [vmem:[%s4174_s13 + $0x110] sm:$0xff] %vm246_vm0, %v3008_v32 }
 0x318   : > { %v2861_v52 = vadd.f32 %v2823_v38, %v2554_v31 }
 0x31a   : > { %v2901_v47 = vadd.f32 %v4420_v14, %v2861_v52 }
 0x31c   : > { %vm2937_vm6 = vcmp.gt.f32.partialorder %v2901_v47, 0.0  ;;  %v2973_v22 = vmul.f32 0.2, %v2901_v47 }
 0x31e   : > { %v3009_v53 = vsel %vm2937_vm6, %v2901_v47, %v2973_v22 }
 0x31f   : > { %3045 = vst.msk [vmem:[%s4174_s13 + $0x118] sm:$0xff] %vm246_vm0, %v3009_v53 }
 0x320 PF: > { %s13_s12 = sadd.s32 1, %s3463_s12  }
 0x321   : > { %p10_p4 = scmp.ge.s32.totalorder %s13_s12, 6  }
 0x323   :  { %12 = sbr.rel (!%p10_p4) target bundleno = 1 (0x1), region = 70 }

</bundles_post_ra>
